<compile_context>
chip_gen: v7x
topology: tpu7x:2x2x1
jax: 0.10.0
libtpu: 0.0.40
codegen_flags: <defaults>
</compile_context>

<pallas_src>
import functools

import numpy as np
import jax
import jax.numpy as jnp
from jax.experimental import pallas as pl
from jax.experimental.pallas import tpu as pltpu

# ----------------------------- config (cfg.GAN.*) -----------------------------
DF_DIM = 4            # cfg.GAN.DF_DIM   (kept small for the synthetic run)
EMBEDDING_DIM = 8     # cfg.GAN.EMBEDDING_DIM
B_CONDITION = True    # cfg.GAN.B_CONDITION
LRELU_SLOPE = 0.2
BN_EPS = 1e-5


# ----------------------------- Pallas kernels ---------------------------------
def _lrelu(y):
    return jnp.where(y >= 0, y, LRELU_SLOPE * y)


def _bn_lrelu(y, g, b):
    # Training-mode BatchNorm over the flattened N*H*W axis (last, lanes)
    # with biased variance (matches PyTorch BatchNorm2d .train() forward),
    # followed by LeakyReLU(0.2).  All math in f32.
    mean = jnp.mean(y, axis=-1, keepdims=True)
    var = jnp.mean(jnp.square(y - mean), axis=-1, keepdims=True)
    y = (y - mean) * jax.lax.rsqrt(var + BN_EPS) * g + b
    return _lrelu(y)


def _conv_lrelu_kernel(w_ref, p_ref, o_ref):
    # w_ref: (Cout, K) bf16, p_ref: (K, bm) bf16, o_ref: (Cout, bm) bf16.
    y = jnp.dot(w_ref[...], p_ref[...], preferred_element_type=jnp.float32)
    o_ref[...] = _lrelu(y).astype(o_ref.dtype)


def _conv_bn_lrelu_kernel(w_ref, p_ref, g_ref, b_ref, o_ref):
    # Whole layer in one fused block: (Cout, K) @ (K, M) -> BN -> LeakyReLU.
    y = jnp.dot(w_ref[...], p_ref[...], preferred_element_type=jnp.float32)
    o_ref[...] = _bn_lrelu(y, g_ref[...], b_ref[...]).astype(o_ref.dtype)


def _gather_conv(x_bf16, s_ref, w_ref):
    # Conv as  sum_t  W_t @ (X @ S_t):
    #   S_t is a 0/1 "shift" matrix (exact in bf16) gathering, for each output
    #   pixel, the input pixel read by tap t (all-zero column == zero padding).
    # Pure MXU work, no strided VMEM loads; f32 accumulation.
    acc = None
    for t in range(s_ref.shape[0]):
        xt = jnp.dot(x_bf16, s_ref[t],
                     preferred_element_type=jnp.float32).astype(jnp.bfloat16)
        yt = jnp.dot(w_ref[t], xt, preferred_element_type=jnp.float32)
        acc = yt if acc is None else acc + yt
    return acc


def _tail_kernel(p4, w4, g4, b4, s5, w5, g5, b5, s6, w6, g6, b6,
                 c, wjc, wjx, gj, bj, wl, bl, wu, bu, msel,
                 oc_ref, ou_ref, *, has_cond):
    # --- layer 4 of encode_image_by_16times: conv4x4/s2 (pre-im2col'd) + BN + LReLU
    y4 = jnp.dot(w4[...], p4[...], preferred_element_type=jnp.float32)   # (8ndf, N*64)
    y4 = _bn_lrelu(y4, g4[...], b4[...])

    # --- img_code_s32: downBlock conv4x4/s2 + BN + LReLU (8x8 -> 4x4)
    y5 = _bn_lrelu(_gather_conv(y4.astype(jnp.bfloat16), s5, w5),
                   g5[...], b5[...])                                     # (16ndf, N*16)

    # --- img_code_s32_1: Block3x3_leakReLu (conv3x3 + BN + LReLU, 4x4 -> 4x4)
    x_code = _bn_lrelu(_gather_conv(y5.astype(jnp.bfloat16), s6, w6),
                       g6[...], b6[...])                                 # (8ndf, N*16)

    # --- jointConv on cat((c_code, x_code), channel); the weight is pre-split
    #     into the c-part and x-part so no in-kernel concat is needed.
    if has_cond:
        accj = (_gather_conv(c[...], s6, wjc) +
                _gather_conv(x_code.astype(jnp.bfloat16), s6, wjx))
        h = _bn_lrelu(accj, gj[...], bj[...])
    else:
        h = x_code

    # --- logits / uncond_logits: conv4x4 stride 4 on the 4x4 map reduces each
    #     image to one scalar = per-image weighted full reduction (sum over
    #     channels, then msel sums the 16 spatial positions of each image).
    zc = jnp.sum(h * wl[...], axis=0, keepdims=True)                     # (1, N*16)
    oc_ref[...] = jnp.dot(zc, msel[...], preferred_element_type=jnp.float32) + bl[...]
    zu = jnp.sum(x_code * wu[...], axis=0, keepdims=True)
    ou_ref[...] = jnp.dot(zu, msel[...], preferred_element_type=jnp.float32) + bu[...]


# ----------------------------- pallas_call wrappers ----------------------------
def conv_lrelu_call(w_T, p_T):
    # Layer 1 (no BN): tiled over the flattened-spatial axis -> pipelined and
    # megacore-friendly (>= 2 parallel grid steps), lane-dense output blocks.
    cout, K = w_T.shape
    _, M = p_T.shape
    bm = M
    for cand in (2048, 1024, 512, 256, 128):
        if M % cand == 0:
            bm = cand
            break
    return pl.pallas_call(
        _conv_lrelu_kernel,
        out_shape=jax.ShapeDtypeStruct((cout, M), jnp.bfloat16),
        grid=(M // bm,),
        in_specs=[pl.BlockSpec((cout, K), lambda i: (0, 0)),
                  pl.BlockSpec((K, bm), lambda i: (0, i))],
        out_specs=pl.BlockSpec((cout, bm), lambda i: (0, i)),
        compiler_params=pltpu.CompilerParams(dimension_semantics=("parallel",)),
    )(w_T, p_T)


def conv_bn_lrelu_call(w_T, p_T, gamma, beta):
    # BN needs whole-batch stats; at these sizes the entire layer (<=256 KB)
    # fits in VMEM, so the full conv+BN+LReLU chain is one fused block.
    cout, _ = w_T.shape
    _, M = p_T.shape
    return pl.pallas_call(
        _conv_bn_lrelu_kernel,
        out_shape=jax.ShapeDtypeStruct((cout, M), jnp.bfloat16),
    )(w_T, p_T, gamma, beta)


def tail_call(params, p4, c_rep, s5, s6, wl_full, wu_full, msel, *, has_cond):
    n = msel.shape[1]
    kernel = functools.partial(_tail_kernel, has_cond=has_cond)
    return pl.pallas_call(
        kernel,
        out_shape=(jax.ShapeDtypeStruct((1, n), jnp.float32),
                   jax.ShapeDtypeStruct((1, n), jnp.float32)),
    )(p4, params["w4_T"], params["bn4_g"], params["bn4_b"],
      s5, params["w5_taps"], params["bn5_g"], params["bn5_b"],
      s6, params["w6_taps"], params["bn6_g"], params["bn6_b"],
      c_rep, params["wjc_taps"], params["wjx_taps"],
      params["bnj_g"], params["bnj_b"],
      wl_full, params["b_logits"], wu_full, params["b_uncond"], msel)


# ----------------------------- glue (wrapper-side) -----------------------------
def _im2col_T(x_cnhw, k, stride, pad):
    # (C, N, H, W) -> (k*k*C, N*Ho*Wo); row order (i, j, cin), column (n, ho, wo).
    C, N, H, W = x_cnhw.shape
    Ho = (H + 2 * pad - k) // stride + 1
    Wo = (W + 2 * pad - k) // stride + 1
    xp = jnp.pad(x_cnhw, ((0, 0), (0, 0), (pad, pad), (pad, pad)))
    taps = []
    for i in range(k):
        for j in range(k):
            taps.append(xp[:, :, i:i + stride * Ho:stride, j:j + stride * Wo:stride])
    p = jnp.stack(taps, axis=0)                        # (k*k, C, N, Ho, Wo)
    return p.reshape(k * k * C, N * Ho * Wo), (Ho, Wo)


def _shift_mats(N, H, W, k, stride, pad):
    # (k*k, N*H*W, N*Ho*Wo) 0/1 gather matrices: for tap (i, j), column m_out
    # selects the input pixel it reads (all-zero column when the tap lands in
    # the zero padding).  Values are 0/1, so bf16 is exact.
    Ho = (H + 2 * pad - k) // stride + 1
    Wo = (W + 2 * pad - k) // stride + 1
    m = np.zeros((k * k, N * H * W, N * Ho * Wo), np.float32)
    for i in range(k):
        for j in range(k):
            t = i * k + j
            for n in range(N):
                for ho in range(Ho):
                    for wo in range(Wo):
                        h = stride * ho + i - pad
                        w = stride * wo + j - pad
                        if 0 <= h < H and 0 <= w < W:
                            m[t, (n * H + h) * W + w, (n * Ho + ho) * Wo + wo] = 1.0
    return jnp.asarray(m, jnp.bfloat16)


# ----------------------------- parameters --------------------------------------
def _conv_w(key, cout, cin, k):
    fan_in = cin * k * k
    return jax.random.normal(key, (cout, cin, k, k), jnp.float32) / np.sqrt(fan_in)


def _to_mat_T(w, dtype):
    # (Cout, Cin, kh, kw) -> (Cout, kh*kw*Cin), columns ordered (i, j, cin)
    # to match the patch-row order produced by _im2col_T.
    cout, cin, kh, kw = w.shape
    return jnp.transpose(w, (0, 2, 3, 1)).reshape(cout, kh * kw * cin).astype(dtype)


def _to_taps(w, dtype):
    # (Cout, Cin, kh, kw) -> (kh*kw, Cout, Cin), tap index i*kw + j.
    cout, cin, kh, kw = w.shape
    return jnp.transpose(w, (2, 3, 0, 1)).reshape(kh * kw, cout, cin).astype(dtype)


def init_params(key):
    ndf, efg = DF_DIM, EMBEDDING_DIM
    ks = jax.random.split(key, 11)
    w1 = _conv_w(ks[0], ndf, 3, 4)                    # encode_image_by_16times
    w2 = _conv_w(ks[1], ndf * 2, ndf, 4)
    w3 = _conv_w(ks[2], ndf * 4, ndf * 2, 4)
    w4 = _conv_w(ks[3], ndf * 8, ndf * 4, 4)
    w5 = _conv_w(ks[4], ndf * 16, ndf * 8, 4)         # img_code_s32 (downBlock)
    w6 = _conv_w(ks[5], ndf * 8, ndf * 16, 3)         # img_code_s32_1 (Block3x3)
    wj = _conv_w(ks[6], ndf * 8, ndf * 8 + efg, 3)    # jointConv (Block3x3)
    wl = _conv_w(ks[7], 1, ndf * 8, 4)                # logits (with bias)
    bl = jax.random.uniform(ks[8], (1,), jnp.float32, -0.05, 0.05)
    wu = _conv_w(ks[9], 1, ndf * 8, 4)                # uncond_logits (spectral norm)
    bu = jax.random.uniform(ks[10], (1,), jnp.float32, -0.05, 0.05)
    # spectral_norm: the reshaped weight has a single row, so one PyTorch
    # power-iteration step yields exactly sigma = ||w||_2; use the exact norm.
    # TODO(synk): the persistent u/v power-iteration buffers of torch spectral_norm
    # are not modeled (irrelevant for a 1-output-channel conv's sigma).
    wu = wu / jnp.sqrt(jnp.sum(jnp.square(wu)))

    p = {
        # matmul-layout (and bf16) weights, prepared once at init
        "w1_T": _to_mat_T(w1, jnp.bfloat16),
        "w2_T": _to_mat_T(w2, jnp.bfloat16),
        "w3_T": _to_mat_T(w3, jnp.bfloat16),
        "w4_T": _to_mat_T(w4, jnp.bfloat16),
        "w5_taps": _to_taps(w5, jnp.bfloat16),
        "w6_taps": _to_taps(w6, jnp.bfloat16),
        # torch.cat((c_code, x_code), 1): first efg in-channels are the embedding
        "wjc_taps": _to_taps(wj[:, :efg], jnp.bfloat16),
        "wjx_taps": _to_taps(wj[:, efg:], jnp.bfloat16),
        "wl_base": wl[0].reshape(ndf * 8, 16).astype(jnp.float32),   # (C, 4*4)
        "wu_base": wu[0].reshape(ndf * 8, 16).astype(jnp.float32),
        "b_logits": bl.reshape(1, 1),
        "b_uncond": bu.reshape(1, 1),
    }
    # BatchNorm2d affine params (PyTorch default init) as (C, 1) columns.
    for name, c in [("bn2", ndf * 2), ("bn3", ndf * 4), ("bn4", ndf * 8),
                    ("bn5", ndf * 16), ("bn6", ndf * 8), ("bnj", ndf * 8)]:
        p[name + "_g"] = jnp.ones((c, 1), jnp.float32)
        p[name + "_b"] = jnp.zeros((c, 1), jnp.float32)
    return p


# ----------------------------- forward ------------------------------------------
def wd_net128_forward(params, x_nchw, c_code=None):
    # x_nchw: (N, 3, 128, 128) float32, same convention as the PyTorch module.
    ndf = DF_DIM
    N, _, H, W = x_nchw.shape
    assert H == 128 and W == 128, "WD_NET128 expects 128x128 inputs"
    x = jnp.transpose(x_nchw, (1, 0, 2, 3)).astype(jnp.bfloat16)   # (3, N, H, W)

    # encode_image_by_16times: four conv4x4/s2 layers (first has no BN).
    p1, (h1, w1) = _im2col_T(x, 4, 2, 1)                                  # (48, N*4096)
    y1 = conv_lrelu_call(params["w1_T"], p1)                              # (ndf, N*4096)
    p2, (h2, w2) = _im2col_T(y1.reshape(ndf, N, h1, w1), 4, 2, 1)
    y2 = conv_bn_lrelu_call(params["w2_T"], p2, params["bn2_g"], params["bn2_b"])
    p3, (h3, w3) = _im2col_T(y2.reshape(ndf * 2, N, h2, w2), 4, 2, 1)
    y3 = conv_bn_lrelu_call(params["w3_T"], p3, params["bn3_g"], params["bn3_b"])
    p4, (h4, w4) = _im2col_T(y3.reshape(ndf * 4, N, h3, w3), 4, 2, 1)     # (256, N*64)

    # Static gather matrices / logits layouts for the fused tail kernel
    # (numpy at trace time -> compile-time constants under jit).
    s5 = _shift_mats(N, h4, w4, 4, 2, 1)               # 8x8 -> 4x4, 16 taps
    s6 = _shift_mats(N, h4 // 2, w4 // 2, 3, 1, 1)     # 4x4 -> 4x4,  9 taps
    msel = jnp.asarray(np.kron(np.eye(N, dtype=np.float32),
                               np.ones((16, 1), np.float32)))             # (N*16, N)
    wl_full = jnp.tile(params["wl_base"], (1, N))                         # (C, N*16)
    wu_full = jnp.tile(params["wu_base"], (1, N))
    has_cond = B_CONDITION and (c_code is not None)
    if has_cond:
        # c_code.view(-1, efg, 1, 1).repeat(1, 1, 4, 4) in channels-first layout.
        c_rep = jnp.repeat(jnp.transpose(c_code).astype(jnp.bfloat16), 16, axis=1)
    else:
        c_rep = jnp.zeros((EMBEDDING_DIM, N * 16), jnp.bfloat16)

    out_c, out_u = tail_call(params, p4, c_rep, s5, s6, wl_full, wu_full, msel,
                             has_cond=has_cond)
    output = out_c.reshape(-1)
    if B_CONDITION:
        return [output, out_u.reshape(-1)]
    return [output]


# ----------------------------- demo ----------------------------------------------
if __name__ == "__main__":
    key = jax.random.PRNGKey(0)
    k_p, k_x, k_c = jax.random.split(key, 3)
    params = init_params(k_p)
    # 128x128 input is required by the architecture (the final 4x4 / stride-4
    # logits convs expect a 4x4 feature map); batch kept small.
    x = jax.random.normal(k_x, (2, 3, 128, 128), jnp.float32)       # NCHW like PyTorch
    c_code = jax.random.normal(k_c, (2, EMBEDDING_DIM), jnp.float32)

    outs = jax.jit(wd_net128_forward)(params, x, c_code)
    for o in outs:
        jax.block_until_ready(o)
    assert outs[0].shape == (2,) and outs[1].shape == (2,)
    print("KERNEL_OK")
</pallas_src>

<mosaic_0001>
module attributes {stable_mosaic.version = 11 : i64} {
  func.func @_conv_lrelu_kernel(%arg0: i32, %arg1: memref<4x48xbf16, #tpu.memory_space<vmem>>, %arg2: memref<48x2048xbf16, #tpu.memory_space<vmem>>, %arg3: memref<4x2048xbf16, #tpu.memory_space<vmem>>) attributes {dimension_semantics = [#tpu.dimension_semantics<parallel>], iteration_bounds = array<i64: 4>, scalar_prefetch = 0 : i64, scratch_operands = 0 : i64, tpu.core_type = #tpu.core_type<tc>, window_params = [{pipeline_mode = #tpu.pipeline_mode<synchronous>, transform_indices = @transform_0, window_bounds = array<i64: 4, 48>}, {transform_indices = @transform_1, window_bounds = array<i64: 48, 2048>}, {transform_indices = @transform_2, window_bounds = array<i64: 4, 2048>}]} {
    %c0 = arith.constant 0 : index
    %c0_0 = arith.constant 0 : index
    %0 = vector.load %arg1[%c0, %c0_0] : memref<4x48xbf16, #tpu.memory_space<vmem>>, vector<4x48xbf16>
    %c0_1 = arith.constant 0 : index
    %c0_2 = arith.constant 0 : index
    %1 = vector.load %arg2[%c0_1, %c0_2] : memref<48x2048xbf16, #tpu.memory_space<vmem>>, vector<48x2048xbf16>
    %cst = arith.constant dense<0.000000e+00> : vector<4x2048xf32>
    %2 = tpu.matmul %0, %1, %cst {dimension_numbers = #tpu.dot_dimension_numbers<[1], [0], [0], [1], [0, 0, 1, 1], [], []>} : vector<4x48xbf16>, vector<48x2048xbf16>, vector<4x2048xf32> -> vector<4x2048xf32>
    %cst_3 = arith.constant 0.000000e+00 : f32
    %3 = vector.broadcast %cst_3 : f32 to vector<4x2048xf32>
    %4 = arith.cmpf oge, %2, %3 : vector<4x2048xf32>
    %cst_4 = arith.constant 2.000000e-01 : f32
    %5 = vector.broadcast %cst_4 : f32 to vector<4x2048xf32>
    %6 = arith.mulf %5, %2 : vector<4x2048xf32>
    %7 = arith.select %4, %2, %6 : vector<4x2048xi1>, vector<4x2048xf32>
    %8 = arith.truncf %7 : vector<4x2048xf32> to vector<4x2048xbf16>
    %c0_5 = arith.constant 0 : index
    %c0_6 = arith.constant 0 : index
    %9 = vector.load %arg3[%c0_5, %c0_6] : memref<4x2048xbf16, #tpu.memory_space<vmem>>, vector<4x2048xbf16>
    tpu.vector_store %arg3[%c0_5, %c0_6], %8 {strides = array<i32>} : memref<4x2048xbf16, #tpu.memory_space<vmem>>, vector<4x2048xbf16>,
    return
  }
  func.func @transform_0(%arg0: i32) -> (i32, i32) {
    %c0_i32 = arith.constant 0 : i32
    %c0_i32_0 = arith.constant 0 : i32
    %c0_i32_1 = arith.constant 0 : i32
    return %c0_i32, %c0_i32_0 : i32, i32
  }
  func.func @transform_1(%arg0: i32) -> (i32, i32) {
    %c0_i32 = arith.constant 0 : i32
    %c0_i32_0 = arith.constant 0 : i32
    return %c0_i32, %arg0 : i32, i32
  }
  func.func @transform_2(%arg0: i32) -> (i32, i32) {
    %c0_i32 = arith.constant 0 : i32
    %c0_i32_0 = arith.constant 0 : i32
    return %c0_i32, %arg0 : i32, i32
  }
}

module attributes {stable_mosaic.version = 11 : i64} {
  func.func @_conv_bn_lrelu_kernel(%arg0: memref<8x64xbf16, #tpu.memory_space<vmem>>, %arg1: memref<64x2048xbf16, #tpu.memory_space<vmem>>, %arg2: memref<8x1xf32, #tpu.memory_space<vmem>>, %arg3: memref<8x1xf32, #tpu.memory_space<vmem>>, %arg4: memref<8x2048xbf16, #tpu.memory_space<vmem>>) attributes {dimension_semantics = [], scalar_prefetch = 0 : i64, scratch_operands = 0 : i64, tpu.core_type = #tpu.core_type<tc>} {
    %c0 = arith.constant 0 : index
    %c0_0 = arith.constant 0 : index
    %0 = vector.load %arg0[%c0, %c0_0] : memref<8x64xbf16, #tpu.memory_space<vmem>>, vector<8x64xbf16>
    %c0_1 = arith.constant 0 : index
    %c0_2 = arith.constant 0 : index
    %1 = vector.load %arg1[%c0_1, %c0_2] : memref<64x2048xbf16, #tpu.memory_space<vmem>>, vector<64x2048xbf16>
    %cst = arith.constant dense<0.000000e+00> : vector<8x2048xf32>
    %2 = tpu.matmul %0, %1, %cst {dimension_numbers = #tpu.dot_dimension_numbers<[1], [0], [0], [1], [0, 0, 1, 1], [], []>} : vector<8x64xbf16>, vector<64x2048xbf16>, vector<8x2048xf32> -> vector<8x2048xf32>
    %c0_3 = arith.constant 0 : index
    %c0_4 = arith.constant 0 : index
    %3 = vector.load %arg2[%c0_3, %c0_4] : memref<8x1xf32, #tpu.memory_space<vmem>>, vector<8x1xf32>
    %c0_5 = arith.constant 0 : index
    %c0_6 = arith.constant 0 : index
    %4 = vector.load %arg3[%c0_5, %c0_6] : memref<8x1xf32, #tpu.memory_space<vmem>>, vector<8x1xf32>
    %cst_7 = arith.constant dense<0.000000e+00> : vector<8xf32>
    %5 = vector.multi_reduction <add>, %2, %cst_7 [1] : vector<8x2048xf32> to vector<8xf32>
    %6 = vector.shape_cast %5 : vector<8xf32> to vector<8x1xf32>
    %cst_8 = arith.constant 2.048000e+03 : f32
    %7 = vector.broadcast %cst_8 : f32 to vector<8x1xf32>
    %8 = arith.divf %6, %7 : vector<8x1xf32>
    %9 = vector.broadcast %8 : vector<8x1xf32> to vector<8x2048xf32>
    %10 = arith.subf %2, %9 : vector<8x2048xf32>
    %11 = arith.mulf %10, %10 : vector<8x2048xf32>
    %cst_9 = arith.constant dense<0.000000e+00> : vector<8xf32>
    %12 = vector.multi_reduction <add>, %11, %cst_9 [1] : vector<8x2048xf32> to vector<8xf32>
    %13 = vector.shape_cast %12 : vector<8xf32> to vector<8x1xf32>
    %cst_10 = arith.constant 2.048000e+03 : f32
    %14 = vector.broadcast %cst_10 : f32 to vector<8x1xf32>
    %15 = arith.divf %13, %14 : vector<8x1xf32>
    %16 = vector.broadcast %8 : vector<8x1xf32> to vector<8x2048xf32>
    %17 = arith.subf %2, %16 : vector<8x2048xf32>
    %cst_11 = arith.constant 9.99999974E-6 : f32
    %18 = vector.broadcast %cst_11 : f32 to vector<8x1xf32>
    %19 = arith.addf %15, %18 : vector<8x1xf32>
    %20 = math.rsqrt %19 : vector<8x1xf32>
    %21 = vector.broadcast %20 : vector<8x1xf32> to vector<8x2048xf32>
    %22 = arith.mulf %17, %21 : vector<8x2048xf32>
    %23 = vector.broadcast %3 : vector<8x1xf32> to vector<8x2048xf32>
    %24 = arith.mulf %22, %23 : vector<8x2048xf32>
    %25 = vector.broadcast %4 : vector<8x1xf32> to vector<8x2048xf32>
    %26 = arith.addf %24, %25 : vector<8x2048xf32>
    %cst_12 = arith.constant 0.000000e+00 : f32
    %27 = vector.broadcast %cst_12 : f32 to vector<8x2048xf32>
    %28 = arith.cmpf oge, %26, %27 : vector<8x2048xf32>
    %cst_13 = arith.constant 2.000000e-01 : f32
    %29 = vector.broadcast %cst_13 : f32 to vector<8x2048xf32>
    %30 = arith.mulf %29, %26 : vector<8x2048xf32>
    %31 = arith.select %28, %26, %30 : vector<8x2048xi1>, vector<8x2048xf32>
    %32 = arith.truncf %31 : vector<8x2048xf32> to vector<8x2048xbf16>
    %c0_14 = arith.constant 0 : index
    %c0_15 = arith.constant 0 : index
    %33 = vector.load %arg4[%c0_14, %c0_15] : memref<8x2048xbf16, #tpu.memory_space<vmem>>, vector<8x2048xbf16>
    tpu.vector_store %arg4[%c0_14, %c0_15], %32 {strides = array<i32>} : memref<8x2048xbf16, #tpu.memory_space<vmem>>, vector<8x2048xbf16>,
    return
  }
}

module attributes {stable_mosaic.version = 11 : i64} {
  func.func @_conv_bn_lrelu_kernel(%arg0: memref<16x128xbf16, #tpu.memory_space<vmem>>, %arg1: memref<128x512xbf16, #tpu.memory_space<vmem>>, %arg2: memref<16x1xf32, #tpu.memory_space<vmem>>, %arg3: memref<16x1xf32, #tpu.memory_space<vmem>>, %arg4: memref<16x512xbf16, #tpu.memory_space<vmem>>) attributes {dimension_semantics = [], scalar_prefetch = 0 : i64, scratch_operands = 0 : i64, tpu.core_type = #tpu.core_type<tc>} {
    %c0 = arith.constant 0 : index
    %c0_0 = arith.constant 0 : index
    %0 = vector.load %arg0[%c0, %c0_0] : memref<16x128xbf16, #tpu.memory_space<vmem>>, vector<16x128xbf16>
    %c0_1 = arith.constant 0 : index
    %c0_2 = arith.constant 0 : index
    %1 = vector.load %arg1[%c0_1, %c0_2] : memref<128x512xbf16, #tpu.memory_space<vmem>>, vector<128x512xbf16>
    %cst = arith.constant dense<0.000000e+00> : vector<16x512xf32>
    %2 = tpu.matmul %0, %1, %cst {dimension_numbers = #tpu.dot_dimension_numbers<[1], [0], [0], [1], [0, 0, 1, 1], [], []>} : vector<16x128xbf16>, vector<128x512xbf16>, vector<16x512xf32> -> vector<16x512xf32>
    %c0_3 = arith.constant 0 : index
    %c0_4 = arith.constant 0 : index
    %3 = vector.load %arg2[%c0_3, %c0_4] : memref<16x1xf32, #tpu.memory_space<vmem>>, vector<16x1xf32>
    %c0_5 = arith.constant 0 : index
    %c0_6 = arith.constant 0 : index
    %4 = vector.load %arg3[%c0_5, %c0_6] : memref<16x1xf32, #tpu.memory_space<vmem>>, vector<16x1xf32>
    %cst_7 = arith.constant dense<0.000000e+00> : vector<16xf32>
    %5 = vector.multi_reduction <add>, %2, %cst_7 [1] : vector<16x512xf32> to vector<16xf32>
    %6 = vector.shape_cast %5 : vector<16xf32> to vector<16x1xf32>
    %cst_8 = arith.constant 5.120000e+02 : f32
    %7 = vector.broadcast %cst_8 : f32 to vector<16x1xf32>
    %8 = arith.divf %6, %7 : vector<16x1xf32>
    %9 = vector.broadcast %8 : vector<16x1xf32> to vector<16x512xf32>
    %10 = arith.subf %2, %9 : vector<16x512xf32>
    %11 = arith.mulf %10, %10 : vector<16x512xf32>
    %cst_9 = arith.constant dense<0.000000e+00> : vector<16xf32>
    %12 = vector.multi_reduction <add>, %11, %cst_9 [1] : vector<16x512xf32> to vector<16xf32>
    %13 = vector.shape_cast %12 : vector<16xf32> to vector<16x1xf32>
    %cst_10 = arith.constant 5.120000e+02 : f32
    %14 = vector.broadcast %cst_10 : f32 to vector<16x1xf32>
    %15 = arith.divf %13, %14 : vector<16x1xf32>
    %16 = vector.broadcast %8 : vector<16x1xf32> to vector<16x512xf32>
    %17 = arith.subf %2, %16 : vector<16x512xf32>
    %cst_11 = arith.constant 9.99999974E-6 : f32
    %18 = vector.broadcast %cst_11 : f32 to vector<16x1xf32>
    %19 = arith.addf %15, %18 : vector<16x1xf32>
    %20 = math.rsqrt %19 : vector<16x1xf32>
    %21 = vector.broadcast %20 : vector<16x1xf32> to vector<16x512xf32>
    %22 = arith.mulf %17, %21 : vector<16x512xf32>
    %23 = vector.broadcast %3 : vector<16x1xf32> to vector<16x512xf32>
    %24 = arith.mulf %22, %23 : vector<16x512xf32>
    %25 = vector.broadcast %4 : vector<16x1xf32> to vector<16x512xf32>
    %26 = arith.addf %24, %25 : vector<16x512xf32>
    %cst_12 = arith.constant 0.000000e+00 : f32
    %27 = vector.broadcast %cst_12 : f32 to vector<16x512xf32>
    %28 = arith.cmpf oge, %26, %27 : vector<16x512xf32>
    %cst_13 = arith.constant 2.000000e-01 : f32
    %29 = vector.broadcast %cst_13 : f32 to vector<16x512xf32>
    %30 = arith.mulf %29, %26 : vector<16x512xf32>
    %31 = arith.select %28, %26, %30 : vector<16x512xi1>, vector<16x512xf32>
    %32 = arith.truncf %31 : vector<16x512xf32> to vector<16x512xbf16>
    %c0_14 = arith.constant 0 : index
    %c0_15 = arith.constant 0 : index
    %33 = vector.load %arg4[%c0_14, %c0_15] : memref<16x512xbf16, #tpu.memory_space<vmem>>, vector<16x512xbf16>
    tpu.vector_store %arg4[%c0_14, %c0_15], %32 {strides = array<i32>} : memref<16x512xbf16, #tpu.memory_space<vmem>>, vector<16x512xbf16>,
    return
  }
}

module attributes {stable_mosaic.version = 11 : i64} {
  func.func @_tail_kernel(%arg0: memref<256x128xbf16, #tpu.memory_space<vmem>>, %arg1: memref<32x256xbf16, #tpu.memory_space<vmem>>, %arg2: memref<32x1xf32, #tpu.memory_space<vmem>>, %arg3: memref<32x1xf32, #tpu.memory_space<vmem>>, %arg4: memref<16x128x32xbf16, #tpu.memory_space<vmem>>, %arg5: memref<16x64x32xbf16, #tpu.memory_space<vmem>>, %arg6: memref<64x1xf32, #tpu.memory_space<vmem>>, %arg7: memref<64x1xf32, #tpu.memory_space<vmem>>, %arg8: memref<9x32x32xbf16, #tpu.memory_space<vmem>>, %arg9: memref<9x32x64xbf16, #tpu.memory_space<vmem>>, %arg10: memref<32x1xf32, #tpu.memory_space<vmem>>, %arg11: memref<32x1xf32, #tpu.memory_space<vmem>>, %arg12: memref<8x32xbf16, #tpu.memory_space<vmem>>, %arg13: memref<9x32x8xbf16, #tpu.memory_space<vmem>>, %arg14: memref<9x32x32xbf16, #tpu.memory_space<vmem>>, %arg15: memref<32x1xf32, #tpu.memory_space<vmem>>, %arg16: memref<32x1xf32, #tpu.memory_space<vmem>>, %arg17: memref<32x32xf32, #tpu.memory_space<vmem>>, %arg18: memref<1x1xf32, #tpu.memory_space<vmem>>, %arg19: memref<32x32xf32, #tpu.memory_space<vmem>>, %arg20: memref<1x1xf32, #tpu.memory_space<vmem>>, %arg21: memref<32x2xf32, #tpu.memory_space<vmem>>, %arg22: memref<1x2xf32, #tpu.memory_space<vmem>>, %arg23: memref<1x2xf32, #tpu.memory_space<vmem>>) attributes {dimension_semantics = [], scalar_prefetch = 0 : i64, scratch_operands = 0 : i64, tpu.core_type = #tpu.core_type<tc>} {
    %c0 = arith.constant 0 : index
    %c0_0 = arith.constant 0 : index
    %0 = vector.load %arg1[%c0, %c0_0] : memref<32x256xbf16, #tpu.memory_space<vmem>>, vector<32x256xbf16>
    %c0_1 = arith.constant 0 : index
    %c0_2 = arith.constant 0 : index
    %1 = vector.load %arg0[%c0_1, %c0_2] : memref<256x128xbf16, #tpu.memory_space<vmem>>, vector<256x128xbf16>
    %cst = arith.constant dense<0.000000e+00> : vector<32x128xf32>
    %2 = tpu.matmul %0, %1, %cst {dimension_numbers = #tpu.dot_dimension_numbers<[1], [0], [0], [1], [0, 0, 1, 1], [], []>} : vector<32x256xbf16>, vector<256x128xbf16>, vector<32x128xf32> -> vector<32x128xf32>
    %c0_3 = arith.constant 0 : index
    %c0_4 = arith.constant 0 : index
    %3 = vector.load %arg2[%c0_3, %c0_4] : memref<32x1xf32, #tpu.memory_space<vmem>>, vector<32x1xf32>
    %c0_5 = arith.constant 0 : index
    %c0_6 = arith.constant 0 : index
    %4 = vector.load %arg3[%c0_5, %c0_6] : memref<32x1xf32, #tpu.memory_space<vmem>>, vector<32x1xf32>
    %cst_7 = arith.constant dense<0.000000e+00> : vector<32xf32>
    %5 = vector.multi_reduction <add>, %2, %cst_7 [1] : vector<32x128xf32> to vector<32xf32>
    %6 = vector.shape_cast %5 : vector<32xf32> to vector<32x1xf32>
    %cst_8 = arith.constant 1.280000e+02 : f32
    %7 = vector.broadcast %cst_8 : f32 to vector<32x1xf32>
    %8 = arith.divf %6, %7 : vector<32x1xf32>
    %9 = vector.broadcast %8 : vector<32x1xf32> to vector<32x128xf32>
    %10 = arith.subf %2, %9 : vector<32x128xf32>
    %11 = arith.mulf %10, %10 : vector<32x128xf32>
    %cst_9 = arith.constant dense<0.000000e+00> : vector<32xf32>
    %12 = vector.multi_reduction <add>, %11, %cst_9 [1] : vector<32x128xf32> to vector<32xf32>
    %13 = vector.shape_cast %12 : vector<32xf32> to vector<32x1xf32>
    %cst_10 = arith.constant 1.280000e+02 : f32
    %14 = vector.broadcast %cst_10 : f32 to vector<32x1xf32>
    %15 = arith.divf %13, %14 : vector<32x1xf32>
    %16 = vector.broadcast %8 : vector<32x1xf32> to vector<32x128xf32>
    %17 = arith.subf %2, %16 : vector<32x128xf32>
    %cst_11 = arith.constant 9.99999974E-6 : f32
    %18 = vector.broadcast %cst_11 : f32 to vector<32x1xf32>
    %19 = arith.addf %15, %18 : vector<32x1xf32>
    %20 = math.rsqrt %19 : vector<32x1xf32>
    %21 = vector.broadcast %20 : vector<32x1xf32> to vector<32x128xf32>
    %22 = arith.mulf %17, %21 : vector<32x128xf32>
    %23 = vector.broadcast %3 : vector<32x1xf32> to vector<32x128xf32>
    %24 = arith.mulf %22, %23 : vector<32x128xf32>
    %25 = vector.broadcast %4 : vector<32x1xf32> to vector<32x128xf32>
    %26 = arith.addf %24, %25 : vector<32x128xf32>
    %cst_12 = arith.constant 0.000000e+00 : f32
    %27 = vector.broadcast %cst_12 : f32 to vector<32x128xf32>
    %28 = arith.cmpf oge, %26, %27 : vector<32x128xf32>
    %cst_13 = arith.constant 2.000000e-01 : f32
    %29 = vector.broadcast %cst_13 : f32 to vector<32x128xf32>
    %30 = arith.mulf %29, %26 : vector<32x128xf32>
    %31 = arith.select %28, %26, %30 : vector<32x128xi1>, vector<32x128xf32>
    %32 = arith.truncf %31 : vector<32x128xf32> to vector<32x128xbf16>
    %c0_14 = arith.constant 0 : index
    %c0_15 = arith.constant 0 : index
    %c0_16 = arith.constant 0 : index
    %33 = vector.load %arg4[%c0_14, %c0_15, %c0_16] : memref<16x128x32xbf16, #tpu.memory_space<vmem>>, vector<1x128x32xbf16>
    %34 = vector.shape_cast %33 : vector<1x128x32xbf16> to vector<128x32xbf16>
    %cst_17 = arith.constant dense<0.000000e+00> : vector<32x32xf32>
    %35 = tpu.matmul %32, %34, %cst_17 {dimension_numbers = #tpu.dot_dimension_numbers<[1], [0], [0], [1], [0, 0, 1, 1], [], []>} : vector<32x128xbf16>, vector<128x32xbf16>, vector<32x32xf32> -> vector<32x32xf32>
    %36 = arith.truncf %35 : vector<32x32xf32> to vector<32x32xbf16>
    %c0_18 = arith.constant 0 : index
    %c0_19 = arith.constant 0 : index
    %c0_20 = arith.constant 0 : index
    %37 = vector.load %arg5[%c0_18, %c0_19, %c0_20] : memref<16x64x32xbf16, #tpu.memory_space<vmem>>, vector<1x64x32xbf16>
    %38 = vector.shape_cast %37 : vector<1x64x32xbf16> to vector<64x32xbf16>
    %cst_21 = arith.constant dense<0.000000e+00> : vector<64x32xf32>
    %39 = tpu.matmul %38, %36, %cst_21 {dimension_numbers = #tpu.dot_dimension_numbers<[1], [0], [0], [1], [0, 0, 1, 1], [], []>} : vector<64x32xbf16>, vector<32x32xbf16>, vector<64x32xf32> -> vector<64x32xf32>
    %c1 = arith.constant 1 : index
    %c0_22 = arith.constant 0 : index
    %c0_23 = arith.constant 0 : index
    %40 = vector.load %arg4[%c1, %c0_22, %c0_23] : memref<16x128x32xbf16, #tpu.memory_space<vmem>>, vector<1x128x32xbf16>
    %41 = vector.shape_cast %40 : vector<1x128x32xbf16> to vector<128x32xbf16>
    %cst_24 = arith.constant dense<0.000000e+00> : vector<32x32xf32>
    %42 = tpu.matmul %32, %41, %cst_24 {dimension_numbers = #tpu.dot_dimension_numbers<[1], [0], [0], [1], [0, 0, 1, 1], [], []>} : vector<32x128xbf16>, vector<128x32xbf16>, vector<32x32xf32> -> vector<32x32xf32>
    %43 = arith.truncf %42 : vector<32x32xf32> to vector<32x32xbf16>
    %c1_25 = arith.constant 1 : index
    %c0_26 = arith.constant 0 : index
    %c0_27 = arith.constant 0 : index
    %44 = vector.load %arg5[%c1_25, %c0_26, %c0_27] : memref<16x64x32xbf16, #tpu.memory_space<vmem>>, vector<1x64x32xbf16>
    %45 = vector.shape_cast %44 : vector<1x64x32xbf16> to vector<64x32xbf16>
    %cst_28 = arith.constant dense<0.000000e+00> : vector<64x32xf32>
    %46 = tpu.matmul %45, %43, %cst_28 {dimension_numbers = #tpu.dot_dimension_numbers<[1], [0], [0], [1], [0, 0, 1, 1], [], []>} : vector<64x32xbf16>, vector<32x32xbf16>, vector<64x32xf32> -> vector<64x32xf32>
    %47 = arith.addf %39, %46 : vector<64x32xf32>
    %c2 = arith.constant 2 : index
    %c0_29 = arith.constant 0 : index
    %c0_30 = arith.constant 0 : index
    %48 = vector.load %arg4[%c2, %c0_29, %c0_30] : memref<16x128x32xbf16, #tpu.memory_space<vmem>>, vector<1x128x32xbf16>
    %49 = vector.shape_cast %48 : vector<1x128x32xbf16> to vector<128x32xbf16>
    %cst_31 = arith.constant dense<0.000000e+00> : vector<32x32xf32>
    %50 = tpu.matmul %32, %49, %cst_31 {dimension_numbers = #tpu.dot_dimension_numbers<[1], [0], [0], [1], [0, 0, 1, 1], [], []>} : vector<32x128xbf16>, vector<128x32xbf16>, vector<32x32xf32> -> vector<32x32xf32>
    %51 = arith.truncf %50 : vector<32x32xf32> to vector<32x32xbf16>
    %c2_32 = arith.constant 2 : index
    %c0_33 = arith.constant 0 : index
    %c0_34 = arith.constant 0 : index
    %52 = vector.load %arg5[%c2_32, %c0_33, %c0_34] : memref<16x64x32xbf16, #tpu.memory_space<vmem>>, vector<1x64x32xbf16>
    %53 = vector.shape_cast %52 : vector<1x64x32xbf16> to vector<64x32xbf16>
    %cst_35 = arith.constant dense<0.000000e+00> : vector<64x32xf32>
    %54 = tpu.matmul %53, %51, %cst_35 {dimension_numbers = #tpu.dot_dimension_numbers<[1], [0], [0], [1], [0, 0, 1, 1], [], []>} : vector<64x32xbf16>, vector<32x32xbf16>, vector<64x32xf32> -> vector<64x32xf32>
    %55 = arith.addf %47, %54 : vector<64x32xf32>
    %c3 = arith.constant 3 : index
    %c0_36 = arith.constant 0 : index
    %c0_37 = arith.constant 0 : index
    %56 = vector.load %arg4[%c3, %c0_36, %c0_37] : memref<16x128x32xbf16, #tpu.memory_space<vmem>>, vector<1x128x32xbf16>
    %57 = vector.shape_cast %56 : vector<1x128x32xbf16> to vector<128x32xbf16>
    %cst_38 = arith.constant dense<0.000000e+00> : vector<32x32xf32>
    %58 = tpu.matmul %32, %57, %cst_38 {dimension_numbers = #tpu.dot_dimension_numbers<[1], [0], [0], [1], [0, 0, 1, 1], [], []>} : vector<32x128xbf16>, vector<128x32xbf16>, vector<32x32xf32> -> vector<32x32xf32>
    %59 = arith.truncf %58 : vector<32x32xf32> to vector<32x32xbf16>
    %c3_39 = arith.constant 3 : index
    %c0_40 = arith.constant 0 : index
    %c0_41 = arith.constant 0 : index
    %60 = vector.load %arg5[%c3_39, %c0_40, %c0_41] : memref<16x64x32xbf16, #tpu.memory_space<vmem>>, vector<1x64x32xbf16>
    %61 = vector.shape_cast %60 : vector<1x64x32xbf16> to vector<64x32xbf16>
    %cst_42 = arith.constant dense<0.000000e+00> : vector<64x32xf32>
    %62 = tpu.matmul %61, %59, %cst_42 {dimension_numbers = #tpu.dot_dimension_numbers<[1], [0], [0], [1], [0, 0, 1, 1], [], []>} : vector<64x32xbf16>, vector<32x32xbf16>, vector<64x32xf32> -> vector<64x32xf32>
    %63 = arith.addf %55, %62 : vector<64x32xf32>
    %c4 = arith.constant 4 : index
    %c0_43 = arith.constant 0 : index
    %c0_44 = arith.constant 0 : index
    %64 = vector.load %arg4[%c4, %c0_43, %c0_44] : memref<16x128x32xbf16, #tpu.memory_space<vmem>>, vector<1x128x32xbf16>
    %65 = vector.shape_cast %64 : vector<1x128x32xbf16> to vector<128x32xbf16>
    %cst_45 = arith.constant dense<0.000000e+00> : vector<32x32xf32>
    %66 = tpu.matmul %32, %65, %cst_45 {dimension_numbers = #tpu.dot_dimension_numbers<[1], [0], [0], [1], [0, 0, 1, 1], [], []>} : vector<32x128xbf16>, vector<128x32xbf16>, vector<32x32xf32> -> vector<32x32xf32>
    %67 = arith.truncf %66 : vector<32x32xf32> to vector<32x32xbf16>
    %c4_46 = arith.constant 4 : index
    %c0_47 = arith.constant 0 : index
    %c0_48 = arith.constant 0 : index
    %68 = vector.load %arg5[%c4_46, %c0_47, %c0_48] : memref<16x64x32xbf16, #tpu.memory_space<vmem>>, vector<1x64x32xbf16>
    %69 = vector.shape_cast %68 : vector<1x64x32xbf16> to vector<64x32xbf16>
    %cst_49 = arith.constant dense<0.000000e+00> : vector<64x32xf32>
    %70 = tpu.matmul %69, %67, %cst_49 {dimension_numbers = #tpu.dot_dimension_numbers<[1], [0], [0], [1], [0, 0, 1, 1], [], []>} : vector<64x32xbf16>, vector<32x32xbf16>, vector<64x32xf32> -> vector<64x32xf32>
    %71 = arith.addf %63, %70 : vector<64x32xf32>
    %c5 = arith.constant 5 : index
    %c0_50 = arith.constant 0 : index
    %c0_51 = arith.constant 0 : index
    %72 = vector.load %arg4[%c5, %c0_50, %c0_51] : memref<16x128x32xbf16, #tpu.memory_space<vmem>>, vector<1x128x32xbf16>
    %73 = vector.shape_cast %72 : vector<1x128x32xbf16> to vector<128x32xbf16>
    %cst_52 = arith.constant dense<0.000000e+00> : vector<32x32xf32>
    %74 = tpu.matmul %32, %73, %cst_52 {dimension_numbers = #tpu.dot_dimension_numbers<[1], [0], [0], [1], [0, 0, 1, 1], [], []>} : vector<32x128xbf16>, vector<128x32xbf16>, vector<32x32xf32> -> vector<32x32xf32>
    %75 = arith.truncf %74 : vector<32x32xf32> to vector<32x32xbf16>
    %c5_53 = arith.constant 5 : index
    %c0_54 = arith.constant 0 : index
    %c0_55 = arith.constant 0 : index
    %76 = vector.load %arg5[%c5_53, %c0_54, %c0_55] : memref<16x64x32xbf16, #tpu.memory_space<vmem>>, vector<1x64x32xbf16>
    %77 = vector.shape_cast %76 : vector<1x64x32xbf16> to vector<64x32xbf16>
    %cst_56 = arith.constant dense<0.000000e+00> : vector<64x32xf32>
    %78 = tpu.matmul %77, %75, %cst_56 {dimension_numbers = #tpu.dot_dimension_numbers<[1], [0], [0], [1], [0, 0, 1, 1], [], []>} : vector<64x32xbf16>, vector<32x32xbf16>, vector<64x32xf32> -> vector<64x32xf32>
    %79 = arith.addf %71, %78 : vector<64x32xf32>
    %c6 = arith.constant 6 : index
    %c0_57 = arith.constant 0 : index
    %c0_58 = arith.constant 0 : index
    %80 = vector.load %arg4[%c6, %c0_57, %c0_58] : memref<16x128x32xbf16, #tpu.memory_space<vmem>>, vector<1x128x32xbf16>
    %81 = vector.shape_cast %80 : vector<1x128x32xbf16> to vector<128x32xbf16>
    %cst_59 = arith.constant dense<0.000000e+00> : vector<32x32xf32>
    %82 = tpu.matmul %32, %81, %cst_59 {dimension_numbers = #tpu.dot_dimension_numbers<[1], [0], [0], [1], [0, 0, 1, 1], [], []>} : vector<32x128xbf16>, vector<128x32xbf16>, vector<32x32xf32> -> vector<32x32xf32>
    %83 = arith.truncf %82 : vector<32x32xf32> to vector<32x32xbf16>
    %c6_60 = arith.constant 6 : index
    %c0_61 = arith.constant 0 : index
    %c0_62 = arith.constant 0 : index
    %84 = vector.load %arg5[%c6_60, %c0_61, %c0_62] : memref<16x64x32xbf16, #tpu.memory_space<vmem>>, vector<1x64x32xbf16>
    %85 = vector.shape_cast %84 : vector<1x64x32xbf16> to vector<64x32xbf16>
    %cst_63 = arith.constant dense<0.000000e+00> : vector<64x32xf32>
    %86 = tpu.matmul %85, %83, %cst_63 {dimension_numbers = #tpu.dot_dimension_numbers<[1], [0], [0], [1], [0, 0, 1, 1], [], []>} : vector<64x32xbf16>, vector<32x32xbf16>, vector<64x32xf32> -> vector<64x32xf32>
    %87 = arith.addf %79, %86 : vector<64x32xf32>
    %c7 = arith.constant 7 : index
    %c0_64 = arith.constant 0 : index
    %c0_65 = arith.constant 0 : index
    %88 = vector.load %arg4[%c7, %c0_64, %c0_65] : memref<16x128x32xbf16, #tpu.memory_space<vmem>>, vector<1x128x32xbf16>
    %89 = vector.shape_cast %88 : vector<1x128x32xbf16> to vector<128x32xbf16>
    %cst_66 = arith.constant dense<0.000000e+00> : vector<32x32xf32>
    %90 = tpu.matmul %32, %89, %cst_66 {dimension_numbers = #tpu.dot_dimension_numbers<[1], [0], [0], [1], [0, 0, 1, 1], [], []>} : vector<32x128xbf16>, vector<128x32xbf16>, vector<32x32xf32> -> vector<32x32xf32>
    %91 = arith.truncf %90 : vector<32x32xf32> to vector<32x32xbf16>
    %c7_67 = arith.constant 7 : index
    %c0_68 = arith.constant 0 : index
    %c0_69 = arith.constant 0 : index
    %92 = vector.load %arg5[%c7_67, %c0_68, %c0_69] : memref<16x64x32xbf16, #tpu.memory_space<vmem>>, vector<1x64x32xbf16>
    %93 = vector.shape_cast %92 : vector<1x64x32xbf16> to vector<64x32xbf16>
    %cst_70 = arith.constant dense<0.000000e+00> : vector<64x32xf32>
    %94 = tpu.matmul %93, %91, %cst_70 {dimension_numbers = #tpu.dot_dimension_numbers<[1], [0], [0], [1], [0, 0, 1, 1], [], []>} : vector<64x32xbf16>, vector<32x32xbf16>, vector<64x32xf32> -> vector<64x32xf32>
    %95 = arith.addf %87, %94 : vector<64x32xf32>
    %c8 = arith.constant 8 : index
    %c0_71 = arith.constant 0 : index
    %c0_72 = arith.constant 0 : index
    %96 = vector.load %arg4[%c8, %c0_71, %c0_72] : memref<16x128x32xbf16, #tpu.memory_space<vmem>>, vector<1x128x32xbf16>
    %97 = vector.shape_cast %96 : vector<1x128x32xbf16> to vector<128x32xbf16>
    %cst_73 = arith.constant dense<0.000000e+00> : vector<32x32xf32>
    %98 = tpu.matmul %32, %97, %cst_73 {dimension_numbers = #tpu.dot_dimension_numbers<[1], [0], [0], [1], [0, 0, 1, 1], [], []>} : vector<32x128xbf16>, vector<128x32xbf16>, vector<32x32xf32> -> vector<32x32xf32>
    %99 = arith.truncf %98 : vector<32x32xf32> to vector<32x32xbf16>
    %c8_74 = arith.constant 8 : index
    %c0_75 = arith.constant 0 : index
    %c0_76 = arith.constant 0 : index
    %100 = vector.load %arg5[%c8_74, %c0_75, %c0_76] : memref<16x64x32xbf16, #tpu.memory_space<vmem>>, vector<1x64x32xbf16>
    %101 = vector.shape_cast %100 : vector<1x64x32xbf16> to vector<64x32xbf16>
    %cst_77 = arith.constant dense<0.000000e+00> : vector<64x32xf32>
    %102 = tpu.matmul %101, %99, %cst_77 {dimension_numbers = #tpu.dot_dimension_numbers<[1], [0], [0], [1], [0, 0, 1, 1], [], []>} : vector<64x32xbf16>, vector<32x32xbf16>, vector<64x32xf32> -> vector<64x32xf32>
    %103 = arith.addf %95, %102 : vector<64x32xf32>
    %c9 = arith.constant 9 : index
    %c0_78 = arith.constant 0 : index
    %c0_79 = arith.constant 0 : index
    %104 = vector.load %arg4[%c9, %c0_78, %c0_79] : memref<16x128x32xbf16, #tpu.memory_space<vmem>>, vector<1x128x32xbf16>
    %105 = vector.shape_cast %104 : vector<1x128x32xbf16> to vector<128x32xbf16>
    %cst_80 = arith.constant dense<0.000000e+00> : vector<32x32xf32>
    %106 = tpu.matmul %32, %105, %cst_80 {dimension_numbers = #tpu.dot_dimension_numbers<[1], [0], [0], [1], [0, 0, 1, 1], [], []>} : vector<32x128xbf16>, vector<128x32xbf16>, vector<32x32xf32> -> vector<32x32xf32>
    %107 = arith.truncf %106 : vector<32x32xf32> to vector<32x32xbf16>
    %c9_81 = arith.constant 9 : index
    %c0_82 = arith.constant 0 : index
    %c0_83 = arith.constant 0 : index
    %108 = vector.load %arg5[%c9_81, %c0_82, %c0_83] : memref<16x64x32xbf16, #tpu.memory_space<vmem>>, vector<1x64x32xbf16>
    %109 = vector.shape_cast %108 : vector<1x64x32xbf16> to vector<64x32xbf16>
    %cst_84 = arith.constant dense<0.000000e+00> : vector<64x32xf32>
    %110 = tpu.matmul %109, %107, %cst_84 {dimension_numbers = #tpu.dot_dimension_numbers<[1], [0], [0], [1], [0, 0, 1, 1], [], []>} : vector<64x32xbf16>, vector<32x32xbf16>, vector<64x32xf32> -> vector<64x32xf32>
    %111 = arith.addf %103, %110 : vector<64x32xf32>
    %c10 = arith.constant 10 : index
    %c0_85 = arith.constant 0 : index
    %c0_86 = arith.constant 0 : index
    %112 = vector.load %arg4[%c10, %c0_85, %c0_86] : memref<16x128x32xbf16, #tpu.memory_space<vmem>>, vector<1x128x32xbf16>
    %113 = vector.shape_cast %112 : vector<1x128x32xbf16> to vector<128x32xbf16>
    %cst_87 = arith.constant dense<0.000000e+00> : vector<32x32xf32>
    %114 = tpu.matmul %32, %113, %cst_87 {dimension_numbers = #tpu.dot_dimension_numbers<[1], [0], [0], [1], [0, 0, 1, 1], [], []>} : vector<32x128xbf16>, vector<128x32xbf16>, vector<32x32xf32> -> vector<32x32xf32>
    %115 = arith.truncf %114 : vector<32x32xf32> to vector<32x32xbf16>
    %c10_88 = arith.constant 10 : index
    %c0_89 = arith.constant 0 : index
    %c0_90 = arith.constant 0 : index
    %116 = vector.load %arg5[%c10_88, %c0_89, %c0_90] : memref<16x64x32xbf16, #tpu.memory_space<vmem>>, vector<1x64x32xbf16>
    %117 = vector.shape_cast %116 : vector<1x64x32xbf16> to vector<64x32xbf16>
    %cst_91 = arith.constant dense<0.000000e+00> : vector<64x32xf32>
    %118 = tpu.matmul %117, %115, %cst_91 {dimension_numbers = #tpu.dot_dimension_numbers<[1], [0], [0], [1], [0, 0, 1, 1], [], []>} : vector<64x32xbf16>, vector<32x32xbf16>, vector<64x32xf32> -> vector<64x32xf32>
    %119 = arith.addf %111, %118 : vector<64x32xf32>
    %c11 = arith.constant 11 : index
    %c0_92 = arith.constant 0 : index
    %c0_93 = arith.constant 0 : index
    %120 = vector.load %arg4[%c11, %c0_92, %c0_93] : memref<16x128x32xbf16, #tpu.memory_space<vmem>>, vector<1x128x32xbf16>
    %121 = vector.shape_cast %120 : vector<1x128x32xbf16> to vector<128x32xbf16>
    %cst_94 = arith.constant dense<0.000000e+00> : vector<32x32xf32>
    %122 = tpu.matmul %32, %121, %cst_94 {dimension_numbers = #tpu.dot_dimension_numbers<[1], [0], [0], [1], [0, 0, 1, 1], [], []>} : vector<32x128xbf16>, vector<128x32xbf16>, vector<32x32xf32> -> vector<32x32xf32>
    %123 = arith.truncf %122 : vector<32x32xf32> to vector<32x32xbf16>
    %c11_95 = arith.constant 11 : index
    %c0_96 = arith.constant 0 : index
    %c0_97 = arith.constant 0 : index
    %124 = vector.load %arg5[%c11_95, %c0_96, %c0_97] : memref<16x64x32xbf16, #tpu.memory_space<vmem>>, vector<1x64x32xbf16>
    %125 = vector.shape_cast %124 : vector<1x64x32xbf16> to vector<64x32xbf16>
    %cst_98 = arith.constant dense<0.000000e+00> : vector<64x32xf32>
    %126 = tpu.matmul %125, %123, %cst_98 {dimension_numbers = #tpu.dot_dimension_numbers<[1], [0], [0], [1], [0, 0, 1, 1], [], []>} : vector<64x32xbf16>, vector<32x32xbf16>, vector<64x32xf32> -> vector<64x32xf32>
    %127 = arith.addf %119, %126 : vector<64x32xf32>
    %c12 = arith.constant 12 : index
    %c0_99 = arith.constant 0 : index
    %c0_100 = arith.constant 0 : index
    %128 = vector.load %arg4[%c12, %c0_99, %c0_100] : memref<16x128x32xbf16, #tpu.memory_space<vmem>>, vector<1x128x32xbf16>
    %129 = vector.shape_cast %128 : vector<1x128x32xbf16> to vector<128x32xbf16>
    %cst_101 = arith.constant dense<0.000000e+00> : vector<32x32xf32>
    %130 = tpu.matmul %32, %129, %cst_101 {dimension_numbers = #tpu.dot_dimension_numbers<[1], [0], [0], [1], [0, 0, 1, 1], [], []>} : vector<32x128xbf16>, vector<128x32xbf16>, vector<32x32xf32> -> vector<32x32xf32>
    %131 = arith.truncf %130 : vector<32x32xf32> to vector<32x32xbf16>
    %c12_102 = arith.constant 12 : index
    %c0_103 = arith.constant 0 : index
    %c0_104 = arith.constant 0 : index
    %132 = vector.load %arg5[%c12_102, %c0_103, %c0_104] : memref<16x64x32xbf16, #tpu.memory_space<vmem>>, vector<1x64x32xbf16>
    %133 = vector.shape_cast %132 : vector<1x64x32xbf16> to vector<64x32xbf16>
    %cst_105 = arith.constant dense<0.000000e+00> : vector<64x32xf32>
    %134 = tpu.matmul %133, %131, %cst_105 {dimension_numbers = #tpu.dot_dimension_numbers<[1], [0], [0], [1], [0, 0, 1, 1], [], []>} : vector<64x32xbf16>, vector<32x32xbf16>, vector<64x32xf32> -> vector<64x32xf32>
    %135 = arith.addf %127, %134 : vector<64x32xf32>
    %c13 = arith.constant 13 : index
    %c0_106 = arith.constant 0 : index
    %c0_107 = arith.constant 0 : index
    %136 = vector.load %arg4[%c13, %c0_106, %c0_107] : memref<16x128x32xbf16, #tpu.memory_space<vmem>>, vector<1x128x32xbf16>
    %137 = vector.shape_cast %136 : vector<1x128x32xbf16> to vector<128x32xbf16>
    %cst_108 = arith.constant dense<0.000000e+00> : vector<32x32xf32>
    %138 = tpu.matmul %32, %137, %cst_108 {dimension_numbers = #tpu.dot_dimension_numbers<[1], [0], [0], [1], [0, 0, 1, 1], [], []>} : vector<32x128xbf16>, vector<128x32xbf16>, vector<32x32xf32> -> vector<32x32xf32>
    %139 = arith.truncf %138 : vector<32x32xf32> to vector<32x32xbf16>
    %c13_109 = arith.constant 13 : index
    %c0_110 = arith.constant 0 : index
    %c0_111 = arith.constant 0 : index
    %140 = vector.load %arg5[%c13_109, %c0_110, %c0_111] : memref<16x64x32xbf16, #tpu.memory_space<vmem>>, vector<1x64x32xbf16>
    %141 = vector.shape_cast %140 : vector<1x64x32xbf16> to vector<64x32xbf16>
    %cst_112 = arith.constant dense<0.000000e+00> : vector<64x32xf32>
    %142 = tpu.matmul %141, %139, %cst_112 {dimension_numbers = #tpu.dot_dimension_numbers<[1], [0], [0], [1], [0, 0, 1, 1], [], []>} : vector<64x32xbf16>, vector<32x32xbf16>, vector<64x32xf32> -> vector<64x32xf32>
    %143 = arith.addf %135, %142 : vector<64x32xf32>
    %c14 = arith.constant 14 : index
    %c0_113 = arith.constant 0 : index
    %c0_114 = arith.constant 0 : index
    %144 = vector.load %arg4[%c14, %c0_113, %c0_114] : memref<16x128x32xbf16, #tpu.memory_space<vmem>>, vector<1x128x32xbf16>
    %145 = vector.shape_cast %144 : vector<1x128x32xbf16> to vector<128x32xbf16>
    %cst_115 = arith.constant dense<0.000000e+00> : vector<32x32xf32>
    %146 = tpu.matmul %32, %145, %cst_115 {dimension_numbers = #tpu.dot_dimension_numbers<[1], [0], [0], [1], [0, 0, 1, 1], [], []>} : vector<32x128xbf16>, vector<128x32xbf16>, vector<32x32xf32> -> vector<32x32xf32>
    %147 = arith.truncf %146 : vector<32x32xf32> to vector<32x32xbf16>
    %c14_116 = arith.constant 14 : index
    %c0_117 = arith.constant 0 : index
    %c0_118 = arith.constant 0 : index
    %148 = vector.load %arg5[%c14_116, %c0_117, %c0_118] : memref<16x64x32xbf16, #tpu.memory_space<vmem>>, vector<1x64x32xbf16>
    %149 = vector.shape_cast %148 : vector<1x64x32xbf16> to vector<64x32xbf16>
    %cst_119 = arith.constant dense<0.000000e+00> : vector<64x32xf32>
    %150 = tpu.matmul %149, %147, %cst_119 {dimension_numbers = #tpu.dot_dimension_numbers<[1], [0], [0], [1], [0, 0, 1, 1], [], []>} : vector<64x32xbf16>, vector<32x32xbf16>, vector<64x32xf32> -> vector<64x32xf32>
    %151 = arith.addf %143, %150 : vector<64x32xf32>
    %c15 = arith.constant 15 : index
    %c0_120 = arith.constant 0 : index
    %c0_121 = arith.constant 0 : index
    %152 = vector.load %arg4[%c15, %c0_120, %c0_121] : memref<16x128x32xbf16, #tpu.memory_space<vmem>>, vector<1x128x32xbf16>
    %153 = vector.shape_cast %152 : vector<1x128x32xbf16> to vector<128x32xbf16>
    %cst_122 = arith.constant dense<0.000000e+00> : vector<32x32xf32>
    %154 = tpu.matmul %32, %153, %cst_122 {dimension_numbers = #tpu.dot_dimension_numbers<[1], [0], [0], [1], [0, 0, 1, 1], [], []>} : vector<32x128xbf16>, vector<128x32xbf16>, vector<32x32xf32> -> vector<32x32xf32>
    %155 = arith.truncf %154 : vector<32x32xf32> to vector<32x32xbf16>
    %c15_123 = arith.constant 15 : index
    %c0_124 = arith.constant 0 : index
    %c0_125 = arith.constant 0 : index
    %156 = vector.load %arg5[%c15_123, %c0_124, %c0_125] : memref<16x64x32xbf16, #tpu.memory_space<vmem>>, vector<1x64x32xbf16>
    %157 = vector.shape_cast %156 : vector<1x64x32xbf16> to vector<64x32xbf16>
    %cst_126 = arith.constant dense<0.000000e+00> : vector<64x32xf32>
    %158 = tpu.matmul %157, %155, %cst_126 {dimension_numbers = #tpu.dot_dimension_numbers<[1], [0], [0], [1], [0, 0, 1, 1], [], []>} : vector<64x32xbf16>, vector<32x32xbf16>, vector<64x32xf32> -> vector<64x32xf32>
    %159 = arith.addf %151, %158 : vector<64x32xf32>
    %c0_127 = arith.constant 0 : index
    %c0_128 = arith.constant 0 : index
    %160 = vector.load %arg6[%c0_127, %c0_128] : memref<64x1xf32, #tpu.memory_space<vmem>>, vector<64x1xf32>
    %c0_129 = arith.constant 0 : index
    %c0_130 = arith.constant 0 : index
    %161 = vector.load %arg7[%c0_129, %c0_130] : memref<64x1xf32, #tpu.memory_space<vmem>>, vector<64x1xf32>
    %cst_131 = arith.constant dense<0.000000e+00> : vector<64xf32>
    %162 = vector.multi_reduction <add>, %159, %cst_131 [1] : vector<64x32xf32> to vector<64xf32>
    %163 = vector.shape_cast %162 : vector<64xf32> to vector<64x1xf32>
    %cst_132 = arith.constant 3.200000e+01 : f32
    %164 = vector.broadcast %cst_132 : f32 to vector<64x1xf32>
    %165 = arith.divf %163, %164 : vector<64x1xf32>
    %166 = vector.broadcast %165 : vector<64x1xf32> to vector<64x32xf32>
    %167 = arith.subf %159, %166 : vector<64x32xf32>
    %168 = arith.mulf %167, %167 : vector<64x32xf32>
    %cst_133 = arith.constant dense<0.000000e+00> : vector<64xf32>
    %169 = vector.multi_reduction <add>, %168, %cst_133 [1] : vector<64x32xf32> to vector<64xf32>
    %170 = vector.shape_cast %169 : vector<64xf32> to vector<64x1xf32>
    %cst_134 = arith.constant 3.200000e+01 : f32
    %171 = vector.broadcast %cst_134 : f32 to vector<64x1xf32>
    %172 = arith.divf %170, %171 : vector<64x1xf32>
    %173 = vector.broadcast %165 : vector<64x1xf32> to vector<64x32xf32>
    %174 = arith.subf %159, %173 : vector<64x32xf32>
    %cst_135 = arith.constant 9.99999974E-6 : f32
    %175 = vector.broadcast %cst_135 : f32 to vector<64x1xf32>
    %176 = arith.addf %172, %175 : vector<64x1xf32>
    %177 = math.rsqrt %176 : vector<64x1xf32>
    %178 = vector.broadcast %177 : vector<64x1xf32> to vector<64x32xf32>
    %179 = arith.mulf %174, %178 : vector<64x32xf32>
    %180 = vector.broadcast %160 : vector<64x1xf32> to vector<64x32xf32>
    %181 = arith.mulf %179, %180 : vector<64x32xf32>
    %182 = vector.broadcast %161 : vector<64x1xf32> to vector<64x32xf32>
    %183 = arith.addf %181, %182 : vector<64x32xf32>
    %cst_136 = arith.constant 0.000000e+00 : f32
    %184 = vector.broadcast %cst_136 : f32 to vector<64x32xf32>
    %185 = arith.cmpf oge, %183, %184 : vector<64x32xf32>
    %cst_137 = arith.constant 2.000000e-01 : f32
    %186 = vector.broadcast %cst_137 : f32 to vector<64x32xf32>
    %187 = arith.mulf %186, %183 : vector<64x32xf32>
    %188 = arith.select %185, %183, %187 : vector<64x32xi1>, vector<64x32xf32>
    %189 = arith.truncf %188 : vector<64x32xf32> to vector<64x32xbf16>
    %c0_138 = arith.constant 0 : index
    %c0_139 = arith.constant 0 : index
    %c0_140 = arith.constant 0 : index
    %190 = vector.load %arg8[%c0_138, %c0_139, %c0_140] : memref<9x32x32xbf16, #tpu.memory_space<vmem>>, vector<1x32x32xbf16>
    %191 = vector.shape_cast %190 : vector<1x32x32xbf16> to vector<32x32xbf16>
    %cst_141 = arith.constant dense<0.000000e+00> : vector<64x32xf32>
    %192 = tpu.matmul %189, %191, %cst_141 {dimension_numbers = #tpu.dot_dimension_numbers<[1], [0], [0], [1], [0, 0, 1, 1], [], []>} : vector<64x32xbf16>, vector<32x32xbf16>, vector<64x32xf32> -> vector<64x32xf32>
    %193 = arith.truncf %192 : vector<64x32xf32> to vector<64x32xbf16>
    %c0_142 = arith.constant 0 : index
    %c0_143 = arith.constant 0 : index
    %c0_144 = arith.constant 0 : index
    %194 = vector.load %arg9[%c0_142, %c0_143, %c0_144] : memref<9x32x64xbf16, #tpu.memory_space<vmem>>, vector<1x32x64xbf16>
    %195 = vector.shape_cast %194 : vector<1x32x64xbf16> to vector<32x64xbf16>
    %cst_145 = arith.constant dense<0.000000e+00> : vector<32x32xf32>
    %196 = tpu.matmul %195, %193, %cst_145 {dimension_numbers = #tpu.dot_dimension_numbers<[1], [0], [0], [1], [0, 0, 1, 1], [], []>} : vector<32x64xbf16>, vector<64x32xbf16>, vector<32x32xf32> -> vector<32x32xf32>
    %c1_146 = arith.constant 1 : index
    %c0_147 = arith.constant 0 : index
    %c0_148 = arith.constant 0 : index
    %197 = vector.load %arg8[%c1_146, %c0_147, %c0_148] : memref<9x32x32xbf16, #tpu.memory_space<vmem>>, vector<1x32x32xbf16>
    %198 = vector.shape_cast %197 : vector<1x32x32xbf16> to vector<32x32xbf16>
    %cst_149 = arith.constant dense<0.000000e+00> : vector<64x32xf32>
    %199 = tpu.matmul %189, %198, %cst_149 {dimension_numbers = #tpu.dot_dimension_numbers<[1], [0], [0], [1], [0, 0, 1, 1], [], []>} : vector<64x32xbf16>, vector<32x32xbf16>, vector<64x32xf32> -> vector<64x32xf32>
    %200 = arith.truncf %199 : vector<64x32xf32> to vector<64x32xbf16>
    %c1_150 = arith.constant 1 : index
    %c0_151 = arith.constant 0 : index
    %c0_152 = arith.constant 0 : index
    %201 = vector.load %arg9[%c1_150, %c0_151, %c0_152] : memref<9x32x64xbf16, #tpu.memory_space<vmem>>, vector<1x32x64xbf16>
    %202 = vector.shape_cast %201 : vector<1x32x64xbf16> to vector<32x64xbf16>
    %cst_153 = arith.constant dense<0.000000e+00> : vector<32x32xf32>
    %203 = tpu.matmul %202, %200, %cst_153 {dimension_numbers = #tpu.dot_dimension_numbers<[1], [0], [0], [1], [0, 0, 1, 1], [], []>} : vector<32x64xbf16>, vector<64x32xbf16>, vector<32x32xf32> -> vector<32x32xf32>
    %204 = arith.addf %196, %203 : vector<32x32xf32>
    %c2_154 = arith.constant 2 : index
    %c0_155 = arith.constant 0 : index
    %c0_156 = arith.constant 0 : index
    %205 = vector.load %arg8[%c2_154, %c0_155, %c0_156] : memref<9x32x32xbf16, #tpu.memory_space<vmem>>, vector<1x32x32xbf16>
    %206 = vector.shape_cast %205 : vector<1x32x32xbf16> to vector<32x32xbf16>
    %cst_157 = arith.constant dense<0.000000e+00> : vector<64x32xf32>
    %207 = tpu.matmul %189, %206, %cst_157 {dimension_numbers = #tpu.dot_dimension_numbers<[1], [0], [0], [1], [0, 0, 1, 1], [], []>} : vector<64x32xbf16>, vector<32x32xbf16>, vector<64x32xf32> -> vector<64x32xf32>
    %208 = arith.truncf %207 : vector<64x32xf32> to vector<64x32xbf16>
    %c2_158 = arith.constant 2 : index
    %c0_159 = arith.constant 0 : index
    %c0_160 = arith.constant 0 : index
    %209 = vector.load %arg9[%c2_158, %c0_159, %c0_160] : memref<9x32x64xbf16, #tpu.memory_space<vmem>>, vector<1x32x64xbf16>
    %210 = vector.shape_cast %209 : vector<1x32x64xbf16> to vector<32x64xbf16>
    %cst_161 = arith.constant dense<0.000000e+00> : vector<32x32xf32>
    %211 = tpu.matmul %210, %208, %cst_161 {dimension_numbers = #tpu.dot_dimension_numbers<[1], [0], [0], [1], [0, 0, 1, 1], [], []>} : vector<32x64xbf16>, vector<64x32xbf16>, vector<32x32xf32> -> vector<32x32xf32>
    %212 = arith.addf %204, %211 : vector<32x32xf32>
    %c3_162 = arith.constant 3 : index
    %c0_163 = arith.constant 0 : index
    %c0_164 = arith.constant 0 : index
    %213 = vector.load %arg8[%c3_162, %c0_163, %c0_164] : memref<9x32x32xbf16, #tpu.memory_space<vmem>>, vector<1x32x32xbf16>
    %214 = vector.shape_cast %213 : vector<1x32x32xbf16> to vector<32x32xbf16>
    %cst_165 = arith.constant dense<0.000000e+00> : vector<64x32xf32>
    %215 = tpu.matmul %189, %214, %cst_165 {dimension_numbers = #tpu.dot_dimension_numbers<[1], [0], [0], [1], [0, 0, 1, 1], [], []>} : vector<64x32xbf16>, vector<32x32xbf16>, vector<64x32xf32> -> vector<64x32xf32>
    %216 = arith.truncf %215 : vector<64x32xf32> to vector<64x32xbf16>
    %c3_166 = arith.constant 3 : index
    %c0_167 = arith.constant 0 : index
    %c0_168 = arith.constant 0 : index
    %217 = vector.load %arg9[%c3_166, %c0_167, %c0_168] : memref<9x32x64xbf16, #tpu.memory_space<vmem>>, vector<1x32x64xbf16>
    %218 = vector.shape_cast %217 : vector<1x32x64xbf16> to vector<32x64xbf16>
    %cst_169 = arith.constant dense<0.000000e+00> : vector<32x32xf32>
    %219 = tpu.matmul %218, %216, %cst_169 {dimension_numbers = #tpu.dot_dimension_numbers<[1], [0], [0], [1], [0, 0, 1, 1], [], []>} : vector<32x64xbf16>, vector<64x32xbf16>, vector<32x32xf32> -> vector<32x32xf32>
    %220 = arith.addf %212, %219 : vector<32x32xf32>
    %c4_170 = arith.constant 4 : index
    %c0_171 = arith.constant 0 : index
    %c0_172 = arith.constant 0 : index
    %221 = vector.load %arg8[%c4_170, %c0_171, %c0_172] : memref<9x32x32xbf16, #tpu.memory_space<vmem>>, vector<1x32x32xbf16>
    %222 = vector.shape_cast %221 : vector<1x32x32xbf16> to vector<32x32xbf16>
    %cst_173 = arith.constant dense<0.000000e+00> : vector<64x32xf32>
    %223 = tpu.matmul %189, %222, %cst_173 {dimension_numbers = #tpu.dot_dimension_numbers<[1], [0], [0], [1], [0, 0, 1, 1], [], []>} : vector<64x32xbf16>, vector<32x32xbf16>, vector<64x32xf32> -> vector<64x32xf32>
    %224 = arith.truncf %223 : vector<64x32xf32> to vector<64x32xbf16>
    %c4_174 = arith.constant 4 : index
    %c0_175 = arith.constant 0 : index
    %c0_176 = arith.constant 0 : index
    %225 = vector.load %arg9[%c4_174, %c0_175, %c0_176] : memref<9x32x64xbf16, #tpu.memory_space<vmem>>, vector<1x32x64xbf16>
    %226 = vector.shape_cast %225 : vector<1x32x64xbf16> to vector<32x64xbf16>
    %cst_177 = arith.constant dense<0.000000e+00> : vector<32x32xf32>
    %227 = tpu.matmul %226, %224, %cst_177 {dimension_numbers = #tpu.dot_dimension_numbers<[1], [0], [0], [1], [0, 0, 1, 1], [], []>} : vector<32x64xbf16>, vector<64x32xbf16>, vector<32x32xf32> -> vector<32x32xf32>
    %228 = arith.addf %220, %227 : vector<32x32xf32>
    %c5_178 = arith.constant 5 : index
    %c0_179 = arith.constant 0 : index
    %c0_180 = arith.constant 0 : index
    %229 = vector.load %arg8[%c5_178, %c0_179, %c0_180] : memref<9x32x32xbf16, #tpu.memory_space<vmem>>, vector<1x32x32xbf16>
    %230 = vector.shape_cast %229 : vector<1x32x32xbf16> to vector<32x32xbf16>
    %cst_181 = arith.constant dense<0.000000e+00> : vector<64x32xf32>
    %231 = tpu.matmul %189, %230, %cst_181 {dimension_numbers = #tpu.dot_dimension_numbers<[1], [0], [0], [1], [0, 0, 1, 1], [], []>} : vector<64x32xbf16>, vector<32x32xbf16>, vector<64x32xf32> -> vector<64x32xf32>
    %232 = arith.truncf %231 : vector<64x32xf32> to vector<64x32xbf16>
    %c5_182 = arith.constant 5 : index
    %c0_183 = arith.constant 0 : index
    %c0_184 = arith.constant 0 : index
    %233 = vector.load %arg9[%c5_182, %c0_183, %c0_184] : memref<9x32x64xbf16, #tpu.memory_space<vmem>>, vector<1x32x64xbf16>
    %234 = vector.shape_cast %233 : vector<1x32x64xbf16> to vector<32x64xbf16>
    %cst_185 = arith.constant dense<0.000000e+00> : vector<32x32xf32>
    %235 = tpu.matmul %234, %232, %cst_185 {dimension_numbers = #tpu.dot_dimension_numbers<[1], [0], [0], [1], [0, 0, 1, 1], [], []>} : vector<32x64xbf16>, vector<64x32xbf16>, vector<32x32xf32> -> vector<32x32xf32>
    %236 = arith.addf %228, %235 : vector<32x32xf32>
    %c6_186 = arith.constant 6 : index
    %c0_187 = arith.constant 0 : index
    %c0_188 = arith.constant 0 : index
    %237 = vector.load %arg8[%c6_186, %c0_187, %c0_188] : memref<9x32x32xbf16, #tpu.memory_space<vmem>>, vector<1x32x32xbf16>
    %238 = vector.shape_cast %237 : vector<1x32x32xbf16> to vector<32x32xbf16>
    %cst_189 = arith.constant dense<0.000000e+00> : vector<64x32xf32>
    %239 = tpu.matmul %189, %238, %cst_189 {dimension_numbers = #tpu.dot_dimension_numbers<[1], [0], [0], [1], [0, 0, 1, 1], [], []>} : vector<64x32xbf16>, vector<32x32xbf16>, vector<64x32xf32> -> vector<64x32xf32>
    %240 = arith.truncf %239 : vector<64x32xf32> to vector<64x32xbf16>
    %c6_190 = arith.constant 6 : index
    %c0_191 = arith.constant 0 : index
    %c0_192 = arith.constant 0 : index
    %241 = vector.load %arg9[%c6_190, %c0_191, %c0_192] : memref<9x32x64xbf16, #tpu.memory_space<vmem>>, vector<1x32x64xbf16>
    %242 = vector.shape_cast %241 : vector<1x32x64xbf16> to vector<32x64xbf16>
    %cst_193 = arith.constant dense<0.000000e+00> : vector<32x32xf32>
    %243 = tpu.matmul %242, %240, %cst_193 {dimension_numbers = #tpu.dot_dimension_numbers<[1], [0], [0], [1], [0, 0, 1, 1], [], []>} : vector<32x64xbf16>, vector<64x32xbf16>, vector<32x32xf32> -> vector<32x32xf32>
    %244 = arith.addf %236, %243 : vector<32x32xf32>
    %c7_194 = arith.constant 7 : index
    %c0_195 = arith.constant 0 : index
    %c0_196 = arith.constant 0 : index
    %245 = vector.load %arg8[%c7_194, %c0_195, %c0_196] : memref<9x32x32xbf16, #tpu.memory_space<vmem>>, vector<1x32x32xbf16>
    %246 = vector.shape_cast %245 : vector<1x32x32xbf16> to vector<32x32xbf16>
    %cst_197 = arith.constant dense<0.000000e+00> : vector<64x32xf32>
    %247 = tpu.matmul %189, %246, %cst_197 {dimension_numbers = #tpu.dot_dimension_numbers<[1], [0], [0], [1], [0, 0, 1, 1], [], []>} : vector<64x32xbf16>, vector<32x32xbf16>, vector<64x32xf32> -> vector<64x32xf32>
    %248 = arith.truncf %247 : vector<64x32xf32> to vector<64x32xbf16>
    %c7_198 = arith.constant 7 : index
    %c0_199 = arith.constant 0 : index
    %c0_200 = arith.constant 0 : index
    %249 = vector.load %arg9[%c7_198, %c0_199, %c0_200] : memref<9x32x64xbf16, #tpu.memory_space<vmem>>, vector<1x32x64xbf16>
    %250 = vector.shape_cast %249 : vector<1x32x64xbf16> to vector<32x64xbf16>
    %cst_201 = arith.constant dense<0.000000e+00> : vector<32x32xf32>
    %251 = tpu.matmul %250, %248, %cst_201 {dimension_numbers = #tpu.dot_dimension_numbers<[1], [0], [0], [1], [0, 0, 1, 1], [], []>} : vector<32x64xbf16>, vector<64x32xbf16>, vector<32x32xf32> -> vector<32x32xf32>
    %252 = arith.addf %244, %251 : vector<32x32xf32>
    %c8_202 = arith.constant 8 : index
    %c0_203 = arith.constant 0 : index
    %c0_204 = arith.constant 0 : index
    %253 = vector.load %arg8[%c8_202, %c0_203, %c0_204] : memref<9x32x32xbf16, #tpu.memory_space<vmem>>, vector<1x32x32xbf16>
    %254 = vector.shape_cast %253 : vector<1x32x32xbf16> to vector<32x32xbf16>
    %cst_205 = arith.constant dense<0.000000e+00> : vector<64x32xf32>
    %255 = tpu.matmul %189, %254, %cst_205 {dimension_numbers = #tpu.dot_dimension_numbers<[1], [0], [0], [1], [0, 0, 1, 1], [], []>} : vector<64x32xbf16>, vector<32x32xbf16>, vector<64x32xf32> -> vector<64x32xf32>
    %256 = arith.truncf %255 : vector<64x32xf32> to vector<64x32xbf16>
    %c8_206 = arith.constant 8 : index
    %c0_207 = arith.constant 0 : index
    %c0_208 = arith.constant 0 : index
    %257 = vector.load %arg9[%c8_206, %c0_207, %c0_208] : memref<9x32x64xbf16, #tpu.memory_space<vmem>>, vector<1x32x64xbf16>
    %258 = vector.shape_cast %257 : vector<1x32x64xbf16> to vector<32x64xbf16>
    %cst_209 = arith.constant dense<0.000000e+00> : vector<32x32xf32>
    %259 = tpu.matmul %258, %256, %cst_209 {dimension_numbers = #tpu.dot_dimension_numbers<[1], [0], [0], [1], [0, 0, 1, 1], [], []>} : vector<32x64xbf16>, vector<64x32xbf16>, vector<32x32xf32> -> vector<32x32xf32>
    %260 = arith.addf %252, %259 : vector<32x32xf32>
    %c0_210 = arith.constant 0 : index
    %c0_211 = arith.constant 0 : index
    %261 = vector.load %arg10[%c0_210, %c0_211] : memref<32x1xf32, #tpu.memory_space<vmem>>, vector<32x1xf32>
    %c0_212 = arith.constant 0 : index
    %c0_213 = arith.constant 0 : index
    %262 = vector.load %arg11[%c0_212, %c0_213] : memref<32x1xf32, #tpu.memory_space<vmem>>, vector<32x1xf32>
    %cst_214 = arith.constant dense<0.000000e+00> : vector<32xf32>
    %263 = vector.multi_reduction <add>, %260, %cst_214 [1] : vector<32x32xf32> to vector<32xf32>
    %264 = vector.shape_cast %263 : vector<32xf32> to vector<32x1xf32>
    %cst_215 = arith.constant 3.200000e+01 : f32
    %265 = vector.broadcast %cst_215 : f32 to vector<32x1xf32>
    %266 = arith.divf %264, %265 : vector<32x1xf32>
    %267 = vector.broadcast %266 : vector<32x1xf32> to vector<32x32xf32>
    %268 = arith.subf %260, %267 : vector<32x32xf32>
    %269 = arith.mulf %268, %268 : vector<32x32xf32>
    %cst_216 = arith.constant dense<0.000000e+00> : vector<32xf32>
    %270 = vector.multi_reduction <add>, %269, %cst_216 [1] : vector<32x32xf32> to vector<32xf32>
    %271 = vector.shape_cast %270 : vector<32xf32> to vector<32x1xf32>
    %cst_217 = arith.constant 3.200000e+01 : f32
    %272 = vector.broadcast %cst_217 : f32 to vector<32x1xf32>
    %273 = arith.divf %271, %272 : vector<32x1xf32>
    %274 = vector.broadcast %266 : vector<32x1xf32> to vector<32x32xf32>
    %275 = arith.subf %260, %274 : vector<32x32xf32>
    %cst_218 = arith.constant 9.99999974E-6 : f32
    %276 = vector.broadcast %cst_218 : f32 to vector<32x1xf32>
    %277 = arith.addf %273, %276 : vector<32x1xf32>
    %278 = math.rsqrt %277 : vector<32x1xf32>
    %279 = vector.broadcast %278 : vector<32x1xf32> to vector<32x32xf32>
    %280 = arith.mulf %275, %279 : vector<32x32xf32>
    %281 = vector.broadcast %261 : vector<32x1xf32> to vector<32x32xf32>
    %282 = arith.mulf %280, %281 : vector<32x32xf32>
    %283 = vector.broadcast %262 : vector<32x1xf32> to vector<32x32xf32>
    %284 = arith.addf %282, %283 : vector<32x32xf32>
    %cst_219 = arith.constant 0.000000e+00 : f32
    %285 = vector.broadcast %cst_219 : f32 to vector<32x32xf32>
    %286 = arith.cmpf oge, %284, %285 : vector<32x32xf32>
    %cst_220 = arith.constant 2.000000e-01 : f32
    %287 = vector.broadcast %cst_220 : f32 to vector<32x32xf32>
    %288 = arith.mulf %287, %284 : vector<32x32xf32>
    %289 = arith.select %286, %284, %288 : vector<32x32xi1>, vector<32x32xf32>
    %c0_221 = arith.constant 0 : index
    %c0_222 = arith.constant 0 : index
    %290 = vector.load %arg12[%c0_221, %c0_222] : memref<8x32xbf16, #tpu.memory_space<vmem>>, vector<8x32xbf16>
    %c0_223 = arith.constant 0 : index
    %c0_224 = arith.constant 0 : index
    %c0_225 = arith.constant 0 : index
    %291 = vector.load %arg8[%c0_223, %c0_224, %c0_225] : memref<9x32x32xbf16, #tpu.memory_space<vmem>>, vector<1x32x32xbf16>
    %292 = vector.shape_cast %291 : vector<1x32x32xbf16> to vector<32x32xbf16>
    %cst_226 = arith.constant dense<0.000000e+00> : vector<8x32xf32>
    %293 = tpu.matmul %290, %292, %cst_226 {dimension_numbers = #tpu.dot_dimension_numbers<[1], [0], [0], [1], [0, 0, 1, 1], [], []>} : vector<8x32xbf16>, vector<32x32xbf16>, vector<8x32xf32> -> vector<8x32xf32>
    %294 = arith.truncf %293 : vector<8x32xf32> to vector<8x32xbf16>
    %c0_227 = arith.constant 0 : index
    %c0_228 = arith.constant 0 : index
    %c0_229 = arith.constant 0 : index
    %295 = vector.load %arg13[%c0_227, %c0_228, %c0_229] : memref<9x32x8xbf16, #tpu.memory_space<vmem>>, vector<1x32x8xbf16>
    %296 = vector.shape_cast %295 : vector<1x32x8xbf16> to vector<32x8xbf16>
    %cst_230 = arith.constant dense<0.000000e+00> : vector<32x32xf32>
    %297 = tpu.matmul %296, %294, %cst_230 {dimension_numbers = #tpu.dot_dimension_numbers<[1], [0], [0], [1], [0, 0, 1, 1], [], []>} : vector<32x8xbf16>, vector<8x32xbf16>, vector<32x32xf32> -> vector<32x32xf32>
    %c1_231 = arith.constant 1 : index
    %c0_232 = arith.constant 0 : index
    %c0_233 = arith.constant 0 : index
    %298 = vector.load %arg8[%c1_231, %c0_232, %c0_233] : memref<9x32x32xbf16, #tpu.memory_space<vmem>>, vector<1x32x32xbf16>
    %299 = vector.shape_cast %298 : vector<1x32x32xbf16> to vector<32x32xbf16>
    %cst_234 = arith.constant dense<0.000000e+00> : vector<8x32xf32>
    %300 = tpu.matmul %290, %299, %cst_234 {dimension_numbers = #tpu.dot_dimension_numbers<[1], [0], [0], [1], [0, 0, 1, 1], [], []>} : vector<8x32xbf16>, vector<32x32xbf16>, vector<8x32xf32> -> vector<8x32xf32>
    %301 = arith.truncf %300 : vector<8x32xf32> to vector<8x32xbf16>
    %c1_235 = arith.constant 1 : index
    %c0_236 = arith.constant 0 : index
    %c0_237 = arith.constant 0 : index
    %302 = vector.load %arg13[%c1_235, %c0_236, %c0_237] : memref<9x32x8xbf16, #tpu.memory_space<vmem>>, vector<1x32x8xbf16>
    %303 = vector.shape_cast %302 : vector<1x32x8xbf16> to vector<32x8xbf16>
    %cst_238 = arith.constant dense<0.000000e+00> : vector<32x32xf32>
    %304 = tpu.matmul %303, %301, %cst_238 {dimension_numbers = #tpu.dot_dimension_numbers<[1], [0], [0], [1], [0, 0, 1, 1], [], []>} : vector<32x8xbf16>, vector<8x32xbf16>, vector<32x32xf32> -> vector<32x32xf32>
    %305 = arith.addf %297, %304 : vector<32x32xf32>
    %c2_239 = arith.constant 2 : index
    %c0_240 = arith.constant 0 : index
    %c0_241 = arith.constant 0 : index
    %306 = vector.load %arg8[%c2_239, %c0_240, %c0_241] : memref<9x32x32xbf16, #tpu.memory_space<vmem>>, vector<1x32x32xbf16>
    %307 = vector.shape_cast %306 : vector<1x32x32xbf16> to vector<32x32xbf16>
    %cst_242 = arith.constant dense<0.000000e+00> : vector<8x32xf32>
    %308 = tpu.matmul %290, %307, %cst_242 {dimension_numbers = #tpu.dot_dimension_numbers<[1], [0], [0], [1], [0, 0, 1, 1], [], []>} : vector<8x32xbf16>, vector<32x32xbf16>, vector<8x32xf32> -> vector<8x32xf32>
    %309 = arith.truncf %308 : vector<8x32xf32> to vector<8x32xbf16>
    %c2_243 = arith.constant 2 : index
    %c0_244 = arith.constant 0 : index
    %c0_245 = arith.constant 0 : index
    %310 = vector.load %arg13[%c2_243, %c0_244, %c0_245] : memref<9x32x8xbf16, #tpu.memory_space<vmem>>, vector<1x32x8xbf16>
    %311 = vector.shape_cast %310 : vector<1x32x8xbf16> to vector<32x8xbf16>
    %cst_246 = arith.constant dense<0.000000e+00> : vector<32x32xf32>
    %312 = tpu.matmul %311, %309, %cst_246 {dimension_numbers = #tpu.dot_dimension_numbers<[1], [0], [0], [1], [0, 0, 1, 1], [], []>} : vector<32x8xbf16>, vector<8x32xbf16>, vector<32x32xf32> -> vector<32x32xf32>
    %313 = arith.addf %305, %312 : vector<32x32xf32>
    %c3_247 = arith.constant 3 : index
    %c0_248 = arith.constant 0 : index
    %c0_249 = arith.constant 0 : index
    %314 = vector.load %arg8[%c3_247, %c0_248, %c0_249] : memref<9x32x32xbf16, #tpu.memory_space<vmem>>, vector<1x32x32xbf16>
    %315 = vector.shape_cast %314 : vector<1x32x32xbf16> to vector<32x32xbf16>
    %cst_250 = arith.constant dense<0.000000e+00> : vector<8x32xf32>
    %316 = tpu.matmul %290, %315, %cst_250 {dimension_numbers = #tpu.dot_dimension_numbers<[1], [0], [0], [1], [0, 0, 1, 1], [], []>} : vector<8x32xbf16>, vector<32x32xbf16>, vector<8x32xf32> -> vector<8x32xf32>
    %317 = arith.truncf %316 : vector<8x32xf32> to vector<8x32xbf16>
    %c3_251 = arith.constant 3 : index
    %c0_252 = arith.constant 0 : index
    %c0_253 = arith.constant 0 : index
    %318 = vector.load %arg13[%c3_251, %c0_252, %c0_253] : memref<9x32x8xbf16, #tpu.memory_space<vmem>>, vector<1x32x8xbf16>
    %319 = vector.shape_cast %318 : vector<1x32x8xbf16> to vector<32x8xbf16>
    %cst_254 = arith.constant dense<0.000000e+00> : vector<32x32xf32>
    %320 = tpu.matmul %319, %317, %cst_254 {dimension_numbers = #tpu.dot_dimension_numbers<[1], [0], [0], [1], [0, 0, 1, 1], [], []>} : vector<32x8xbf16>, vector<8x32xbf16>, vector<32x32xf32> -> vector<32x32xf32>
    %321 = arith.addf %313, %320 : vector<32x32xf32>
    %c4_255 = arith.constant 4 : index
    %c0_256 = arith.constant 0 : index
    %c0_257 = arith.constant 0 : index
    %322 = vector.load %arg8[%c4_255, %c0_256, %c0_257] : memref<9x32x32xbf16, #tpu.memory_space<vmem>>, vector<1x32x32xbf16>
    %323 = vector.shape_cast %322 : vector<1x32x32xbf16> to vector<32x32xbf16>
    %cst_258 = arith.constant dense<0.000000e+00> : vector<8x32xf32>
    %324 = tpu.matmul %290, %323, %cst_258 {dimension_numbers = #tpu.dot_dimension_numbers<[1], [0], [0], [1], [0, 0, 1, 1], [], []>} : vector<8x32xbf16>, vector<32x32xbf16>, vector<8x32xf32> -> vector<8x32xf32>
    %325 = arith.truncf %324 : vector<8x32xf32> to vector<8x32xbf16>
    %c4_259 = arith.constant 4 : index
    %c0_260 = arith.constant 0 : index
    %c0_261 = arith.constant 0 : index
    %326 = vector.load %arg13[%c4_259, %c0_260, %c0_261] : memref<9x32x8xbf16, #tpu.memory_space<vmem>>, vector<1x32x8xbf16>
    %327 = vector.shape_cast %326 : vector<1x32x8xbf16> to vector<32x8xbf16>
    %cst_262 = arith.constant dense<0.000000e+00> : vector<32x32xf32>
    %328 = tpu.matmul %327, %325, %cst_262 {dimension_numbers = #tpu.dot_dimension_numbers<[1], [0], [0], [1], [0, 0, 1, 1], [], []>} : vector<32x8xbf16>, vector<8x32xbf16>, vector<32x32xf32> -> vector<32x32xf32>
    %329 = arith.addf %321, %328 : vector<32x32xf32>
    %c5_263 = arith.constant 5 : index
    %c0_264 = arith.constant 0 : index
    %c0_265 = arith.constant 0 : index
    %330 = vector.load %arg8[%c5_263, %c0_264, %c0_265] : memref<9x32x32xbf16, #tpu.memory_space<vmem>>, vector<1x32x32xbf16>
    %331 = vector.shape_cast %330 : vector<1x32x32xbf16> to vector<32x32xbf16>
    %cst_266 = arith.constant dense<0.000000e+00> : vector<8x32xf32>
    %332 = tpu.matmul %290, %331, %cst_266 {dimension_numbers = #tpu.dot_dimension_numbers<[1], [0], [0], [1], [0, 0, 1, 1], [], []>} : vector<8x32xbf16>, vector<32x32xbf16>, vector<8x32xf32> -> vector<8x32xf32>
    %333 = arith.truncf %332 : vector<8x32xf32> to vector<8x32xbf16>
    %c5_267 = arith.constant 5 : index
    %c0_268 = arith.constant 0 : index
    %c0_269 = arith.constant 0 : index
    %334 = vector.load %arg13[%c5_267, %c0_268, %c0_269] : memref<9x32x8xbf16, #tpu.memory_space<vmem>>, vector<1x32x8xbf16>
    %335 = vector.shape_cast %334 : vector<1x32x8xbf16> to vector<32x8xbf16>
    %cst_270 = arith.constant dense<0.000000e+00> : vector<32x32xf32>
    %336 = tpu.matmul %335, %333, %cst_270 {dimension_numbers = #tpu.dot_dimension_numbers<[1], [0], [0], [1], [0, 0, 1, 1], [], []>} : vector<32x8xbf16>, vector<8x32xbf16>, vector<32x32xf32> -> vector<32x32xf32>
    %337 = arith.addf %329, %336 : vector<32x32xf32>
    %c6_271 = arith.constant 6 : index
    %c0_272 = arith.constant 0 : index
    %c0_273 = arith.constant 0 : index
    %338 = vector.load %arg8[%c6_271, %c0_272, %c0_273] : memref<9x32x32xbf16, #tpu.memory_space<vmem>>, vector<1x32x32xbf16>
    %339 = vector.shape_cast %338 : vector<1x32x32xbf16> to vector<32x32xbf16>
    %cst_274 = arith.constant dense<0.000000e+00> : vector<8x32xf32>
    %340 = tpu.matmul %290, %339, %cst_274 {dimension_numbers = #tpu.dot_dimension_numbers<[1], [0], [0], [1], [0, 0, 1, 1], [], []>} : vector<8x32xbf16>, vector<32x32xbf16>, vector<8x32xf32> -> vector<8x32xf32>
    %341 = arith.truncf %340 : vector<8x32xf32> to vector<8x32xbf16>
    %c6_275 = arith.constant 6 : index
    %c0_276 = arith.constant 0 : index
    %c0_277 = arith.constant 0 : index
    %342 = vector.load %arg13[%c6_275, %c0_276, %c0_277] : memref<9x32x8xbf16, #tpu.memory_space<vmem>>, vector<1x32x8xbf16>
    %343 = vector.shape_cast %342 : vector<1x32x8xbf16> to vector<32x8xbf16>
    %cst_278 = arith.constant dense<0.000000e+00> : vector<32x32xf32>
    %344 = tpu.matmul %343, %341, %cst_278 {dimension_numbers = #tpu.dot_dimension_numbers<[1], [0], [0], [1], [0, 0, 1, 1], [], []>} : vector<32x8xbf16>, vector<8x32xbf16>, vector<32x32xf32> -> vector<32x32xf32>
    %345 = arith.addf %337, %344 : vector<32x32xf32>
    %c7_279 = arith.constant 7 : index
    %c0_280 = arith.constant 0 : index
    %c0_281 = arith.constant 0 : index
    %346 = vector.load %arg8[%c7_279, %c0_280, %c0_281] : memref<9x32x32xbf16, #tpu.memory_space<vmem>>, vector<1x32x32xbf16>
    %347 = vector.shape_cast %346 : vector<1x32x32xbf16> to vector<32x32xbf16>
    %cst_282 = arith.constant dense<0.000000e+00> : vector<8x32xf32>
    %348 = tpu.matmul %290, %347, %cst_282 {dimension_numbers = #tpu.dot_dimension_numbers<[1], [0], [0], [1], [0, 0, 1, 1], [], []>} : vector<8x32xbf16>, vector<32x32xbf16>, vector<8x32xf32> -> vector<8x32xf32>
    %349 = arith.truncf %348 : vector<8x32xf32> to vector<8x32xbf16>
    %c7_283 = arith.constant 7 : index
    %c0_284 = arith.constant 0 : index
    %c0_285 = arith.constant 0 : index
    %350 = vector.load %arg13[%c7_283, %c0_284, %c0_285] : memref<9x32x8xbf16, #tpu.memory_space<vmem>>, vector<1x32x8xbf16>
    %351 = vector.shape_cast %350 : vector<1x32x8xbf16> to vector<32x8xbf16>
    %cst_286 = arith.constant dense<0.000000e+00> : vector<32x32xf32>
    %352 = tpu.matmul %351, %349, %cst_286 {dimension_numbers = #tpu.dot_dimension_numbers<[1], [0], [0], [1], [0, 0, 1, 1], [], []>} : vector<32x8xbf16>, vector<8x32xbf16>, vector<32x32xf32> -> vector<32x32xf32>
    %353 = arith.addf %345, %352 : vector<32x32xf32>
    %c8_287 = arith.constant 8 : index
    %c0_288 = arith.constant 0 : index
    %c0_289 = arith.constant 0 : index
    %354 = vector.load %arg8[%c8_287, %c0_288, %c0_289] : memref<9x32x32xbf16, #tpu.memory_space<vmem>>, vector<1x32x32xbf16>
    %355 = vector.shape_cast %354 : vector<1x32x32xbf16> to vector<32x32xbf16>
    %cst_290 = arith.constant dense<0.000000e+00> : vector<8x32xf32>
    %356 = tpu.matmul %290, %355, %cst_290 {dimension_numbers = #tpu.dot_dimension_numbers<[1], [0], [0], [1], [0, 0, 1, 1], [], []>} : vector<8x32xbf16>, vector<32x32xbf16>, vector<8x32xf32> -> vector<8x32xf32>
    %357 = arith.truncf %356 : vector<8x32xf32> to vector<8x32xbf16>
    %c8_291 = arith.constant 8 : index
    %c0_292 = arith.constant 0 : index
    %c0_293 = arith.constant 0 : index
    %358 = vector.load %arg13[%c8_291, %c0_292, %c0_293] : memref<9x32x8xbf16, #tpu.memory_space<vmem>>, vector<1x32x8xbf16>
    %359 = vector.shape_cast %358 : vector<1x32x8xbf16> to vector<32x8xbf16>
    %cst_294 = arith.constant dense<0.000000e+00> : vector<32x32xf32>
    %360 = tpu.matmul %359, %357, %cst_294 {dimension_numbers = #tpu.dot_dimension_numbers<[1], [0], [0], [1], [0, 0, 1, 1], [], []>} : vector<32x8xbf16>, vector<8x32xbf16>, vector<32x32xf32> -> vector<32x32xf32>
    %361 = arith.addf %353, %360 : vector<32x32xf32>
    %362 = arith.truncf %289 : vector<32x32xf32> to vector<32x32xbf16>
    %c0_295 = arith.constant 0 : index
    %c0_296 = arith.constant 0 : index
    %c0_297 = arith.constant 0 : index
    %363 = vector.load %arg8[%c0_295, %c0_296, %c0_297] : memref<9x32x32xbf16, #tpu.memory_space<vmem>>, vector<1x32x32xbf16>
    %364 = vector.shape_cast %363 : vector<1x32x32xbf16> to vector<32x32xbf16>
    %cst_298 = arith.constant dense<0.000000e+00> : vector<32x32xf32>
    %365 = tpu.matmul %362, %364, %cst_298 {dimension_numbers = #tpu.dot_dimension_numbers<[1], [0], [0], [1], [0, 0, 1, 1], [], []>} : vector<32x32xbf16>, vector<32x32xbf16>, vector<32x32xf32> -> vector<32x32xf32>
    %366 = arith.truncf %365 : vector<32x32xf32> to vector<32x32xbf16>
    %c0_299 = arith.constant 0 : index
    %c0_300 = arith.constant 0 : index
    %c0_301 = arith.constant 0 : index
    %367 = vector.load %arg14[%c0_299, %c0_300, %c0_301] : memref<9x32x32xbf16, #tpu.memory_space<vmem>>, vector<1x32x32xbf16>
    %368 = vector.shape_cast %367 : vector<1x32x32xbf16> to vector<32x32xbf16>
    %cst_302 = arith.constant dense<0.000000e+00> : vector<32x32xf32>
    %369 = tpu.matmul %368, %366, %cst_302 {dimension_numbers = #tpu.dot_dimension_numbers<[1], [0], [0], [1], [0, 0, 1, 1], [], []>} : vector<32x32xbf16>, vector<32x32xbf16>, vector<32x32xf32> -> vector<32x32xf32>
    %c1_303 = arith.constant 1 : index
    %c0_304 = arith.constant 0 : index
    %c0_305 = arith.constant 0 : index
    %370 = vector.load %arg8[%c1_303, %c0_304, %c0_305] : memref<9x32x32xbf16, #tpu.memory_space<vmem>>, vector<1x32x32xbf16>
    %371 = vector.shape_cast %370 : vector<1x32x32xbf16> to vector<32x32xbf16>
    %cst_306 = arith.constant dense<0.000000e+00> : vector<32x32xf32>
    %372 = tpu.matmul %362, %371, %cst_306 {dimension_numbers = #tpu.dot_dimension_numbers<[1], [0], [0], [1], [0, 0, 1, 1], [], []>} : vector<32x32xbf16>, vector<32x32xbf16>, vector<32x32xf32> -> vector<32x32xf32>
    %373 = arith.truncf %372 : vector<32x32xf32> to vector<32x32xbf16>
    %c1_307 = arith.constant 1 : index
    %c0_308 = arith.constant 0 : index
    %c0_309 = arith.constant 0 : index
    %374 = vector.load %arg14[%c1_307, %c0_308, %c0_309] : memref<9x32x32xbf16, #tpu.memory_space<vmem>>, vector<1x32x32xbf16>
    %375 = vector.shape_cast %374 : vector<1x32x32xbf16> to vector<32x32xbf16>
    %cst_310 = arith.constant dense<0.000000e+00> : vector<32x32xf32>
    %376 = tpu.matmul %375, %373, %cst_310 {dimension_numbers = #tpu.dot_dimension_numbers<[1], [0], [0], [1], [0, 0, 1, 1], [], []>} : vector<32x32xbf16>, vector<32x32xbf16>, vector<32x32xf32> -> vector<32x32xf32>
    %377 = arith.addf %369, %376 : vector<32x32xf32>
    %c2_311 = arith.constant 2 : index
    %c0_312 = arith.constant 0 : index
    %c0_313 = arith.constant 0 : index
    %378 = vector.load %arg8[%c2_311, %c0_312, %c0_313] : memref<9x32x32xbf16, #tpu.memory_space<vmem>>, vector<1x32x32xbf16>
    %379 = vector.shape_cast %378 : vector<1x32x32xbf16> to vector<32x32xbf16>
    %cst_314 = arith.constant dense<0.000000e+00> : vector<32x32xf32>
    %380 = tpu.matmul %362, %379, %cst_314 {dimension_numbers = #tpu.dot_dimension_numbers<[1], [0], [0], [1], [0, 0, 1, 1], [], []>} : vector<32x32xbf16>, vector<32x32xbf16>, vector<32x32xf32> -> vector<32x32xf32>
    %381 = arith.truncf %380 : vector<32x32xf32> to vector<32x32xbf16>
    %c2_315 = arith.constant 2 : index
    %c0_316 = arith.constant 0 : index
    %c0_317 = arith.constant 0 : index
    %382 = vector.load %arg14[%c2_315, %c0_316, %c0_317] : memref<9x32x32xbf16, #tpu.memory_space<vmem>>, vector<1x32x32xbf16>
    %383 = vector.shape_cast %382 : vector<1x32x32xbf16> to vector<32x32xbf16>
    %cst_318 = arith.constant dense<0.000000e+00> : vector<32x32xf32>
    %384 = tpu.matmul %383, %381, %cst_318 {dimension_numbers = #tpu.dot_dimension_numbers<[1], [0], [0], [1], [0, 0, 1, 1], [], []>} : vector<32x32xbf16>, vector<32x32xbf16>, vector<32x32xf32> -> vector<32x32xf32>
    %385 = arith.addf %377, %384 : vector<32x32xf32>
    %c3_319 = arith.constant 3 : index
    %c0_320 = arith.constant 0 : index
    %c0_321 = arith.constant 0 : index
    %386 = vector.load %arg8[%c3_319, %c0_320, %c0_321] : memref<9x32x32xbf16, #tpu.memory_space<vmem>>, vector<1x32x32xbf16>
    %387 = vector.shape_cast %386 : vector<1x32x32xbf16> to vector<32x32xbf16>
    %cst_322 = arith.constant dense<0.000000e+00> : vector<32x32xf32>
    %388 = tpu.matmul %362, %387, %cst_322 {dimension_numbers = #tpu.dot_dimension_numbers<[1], [0], [0], [1], [0, 0, 1, 1], [], []>} : vector<32x32xbf16>, vector<32x32xbf16>, vector<32x32xf32> -> vector<32x32xf32>
    %389 = arith.truncf %388 : vector<32x32xf32> to vector<32x32xbf16>
    %c3_323 = arith.constant 3 : index
    %c0_324 = arith.constant 0 : index
    %c0_325 = arith.constant 0 : index
    %390 = vector.load %arg14[%c3_323, %c0_324, %c0_325] : memref<9x32x32xbf16, #tpu.memory_space<vmem>>, vector<1x32x32xbf16>
    %391 = vector.shape_cast %390 : vector<1x32x32xbf16> to vector<32x32xbf16>
    %cst_326 = arith.constant dense<0.000000e+00> : vector<32x32xf32>
    %392 = tpu.matmul %391, %389, %cst_326 {dimension_numbers = #tpu.dot_dimension_numbers<[1], [0], [0], [1], [0, 0, 1, 1], [], []>} : vector<32x32xbf16>, vector<32x32xbf16>, vector<32x32xf32> -> vector<32x32xf32>
    %393 = arith.addf %385, %392 : vector<32x32xf32>
    %c4_327 = arith.constant 4 : index
    %c0_328 = arith.constant 0 : index
    %c0_329 = arith.constant 0 : index
    %394 = vector.load %arg8[%c4_327, %c0_328, %c0_329] : memref<9x32x32xbf16, #tpu.memory_space<vmem>>, vector<1x32x32xbf16>
    %395 = vector.shape_cast %394 : vector<1x32x32xbf16> to vector<32x32xbf16>
    %cst_330 = arith.constant dense<0.000000e+00> : vector<32x32xf32>
    %396 = tpu.matmul %362, %395, %cst_330 {dimension_numbers = #tpu.dot_dimension_numbers<[1], [0], [0], [1], [0, 0, 1, 1], [], []>} : vector<32x32xbf16>, vector<32x32xbf16>, vector<32x32xf32> -> vector<32x32xf32>
    %397 = arith.truncf %396 : vector<32x32xf32> to vector<32x32xbf16>
    %c4_331 = arith.constant 4 : index
    %c0_332 = arith.constant 0 : index
    %c0_333 = arith.constant 0 : index
    %398 = vector.load %arg14[%c4_331, %c0_332, %c0_333] : memref<9x32x32xbf16, #tpu.memory_space<vmem>>, vector<1x32x32xbf16>
    %399 = vector.shape_cast %398 : vector<1x32x32xbf16> to vector<32x32xbf16>
    %cst_334 = arith.constant dense<0.000000e+00> : vector<32x32xf32>
    %400 = tpu.matmul %399, %397, %cst_334 {dimension_numbers = #tpu.dot_dimension_numbers<[1], [0], [0], [1], [0, 0, 1, 1], [], []>} : vector<32x32xbf16>, vector<32x32xbf16>, vector<32x32xf32> -> vector<32x32xf32>
    %401 = arith.addf %393, %400 : vector<32x32xf32>
    %c5_335 = arith.constant 5 : index
    %c0_336 = arith.constant 0 : index
    %c0_337 = arith.constant 0 : index
    %402 = vector.load %arg8[%c5_335, %c0_336, %c0_337] : memref<9x32x32xbf16, #tpu.memory_space<vmem>>, vector<1x32x32xbf16>
    %403 = vector.shape_cast %402 : vector<1x32x32xbf16> to vector<32x32xbf16>
    %cst_338 = arith.constant dense<0.000000e+00> : vector<32x32xf32>
    %404 = tpu.matmul %362, %403, %cst_338 {dimension_numbers = #tpu.dot_dimension_numbers<[1], [0], [0], [1], [0, 0, 1, 1], [], []>} : vector<32x32xbf16>, vector<32x32xbf16>, vector<32x32xf32> -> vector<32x32xf32>
    %405 = arith.truncf %404 : vector<32x32xf32> to vector<32x32xbf16>
    %c5_339 = arith.constant 5 : index
    %c0_340 = arith.constant 0 : index
    %c0_341 = arith.constant 0 : index
    %406 = vector.load %arg14[%c5_339, %c0_340, %c0_341] : memref<9x32x32xbf16, #tpu.memory_space<vmem>>, vector<1x32x32xbf16>
    %407 = vector.shape_cast %406 : vector<1x32x32xbf16> to vector<32x32xbf16>
    %cst_342 = arith.constant dense<0.000000e+00> : vector<32x32xf32>
    %408 = tpu.matmul %407, %405, %cst_342 {dimension_numbers = #tpu.dot_dimension_numbers<[1], [0], [0], [1], [0, 0, 1, 1], [], []>} : vector<32x32xbf16>, vector<32x32xbf16>, vector<32x32xf32> -> vector<32x32xf32>
    %409 = arith.addf %401, %408 : vector<32x32xf32>
    %c6_343 = arith.constant 6 : index
    %c0_344 = arith.constant 0 : index
    %c0_345 = arith.constant 0 : index
    %410 = vector.load %arg8[%c6_343, %c0_344, %c0_345] : memref<9x32x32xbf16, #tpu.memory_space<vmem>>, vector<1x32x32xbf16>
    %411 = vector.shape_cast %410 : vector<1x32x32xbf16> to vector<32x32xbf16>
    %cst_346 = arith.constant dense<0.000000e+00> : vector<32x32xf32>
    %412 = tpu.matmul %362, %411, %cst_346 {dimension_numbers = #tpu.dot_dimension_numbers<[1], [0], [0], [1], [0, 0, 1, 1], [], []>} : vector<32x32xbf16>, vector<32x32xbf16>, vector<32x32xf32> -> vector<32x32xf32>
    %413 = arith.truncf %412 : vector<32x32xf32> to vector<32x32xbf16>
    %c6_347 = arith.constant 6 : index
    %c0_348 = arith.constant 0 : index
    %c0_349 = arith.constant 0 : index
    %414 = vector.load %arg14[%c6_347, %c0_348, %c0_349] : memref<9x32x32xbf16, #tpu.memory_space<vmem>>, vector<1x32x32xbf16>
    %415 = vector.shape_cast %414 : vector<1x32x32xbf16> to vector<32x32xbf16>
    %cst_350 = arith.constant dense<0.000000e+00> : vector<32x32xf32>
    %416 = tpu.matmul %415, %413, %cst_350 {dimension_numbers = #tpu.dot_dimension_numbers<[1], [0], [0], [1], [0, 0, 1, 1], [], []>} : vector<32x32xbf16>, vector<32x32xbf16>, vector<32x32xf32> -> vector<32x32xf32>
    %417 = arith.addf %409, %416 : vector<32x32xf32>
    %c7_351 = arith.constant 7 : index
    %c0_352 = arith.constant 0 : index
    %c0_353 = arith.constant 0 : index
    %418 = vector.load %arg8[%c7_351, %c0_352, %c0_353] : memref<9x32x32xbf16, #tpu.memory_space<vmem>>, vector<1x32x32xbf16>
    %419 = vector.shape_cast %418 : vector<1x32x32xbf16> to vector<32x32xbf16>
    %cst_354 = arith.constant dense<0.000000e+00> : vector<32x32xf32>
    %420 = tpu.matmul %362, %419, %cst_354 {dimension_numbers = #tpu.dot_dimension_numbers<[1], [0], [0], [1], [0, 0, 1, 1], [], []>} : vector<32x32xbf16>, vector<32x32xbf16>, vector<32x32xf32> -> vector<32x32xf32>
    %421 = arith.truncf %420 : vector<32x32xf32> to vector<32x32xbf16>
    %c7_355 = arith.constant 7 : index
    %c0_356 = arith.constant 0 : index
    %c0_357 = arith.constant 0 : index
    %422 = vector.load %arg14[%c7_355, %c0_356, %c0_357] : memref<9x32x32xbf16, #tpu.memory_space<vmem>>, vector<1x32x32xbf16>
    %423 = vector.shape_cast %422 : vector<1x32x32xbf16> to vector<32x32xbf16>
    %cst_358 = arith.constant dense<0.000000e+00> : vector<32x32xf32>
    %424 = tpu.matmul %423, %421, %cst_358 {dimension_numbers = #tpu.dot_dimension_numbers<[1], [0], [0], [1], [0, 0, 1, 1], [], []>} : vector<32x32xbf16>, vector<32x32xbf16>, vector<32x32xf32> -> vector<32x32xf32>
    %425 = arith.addf %417, %424 : vector<32x32xf32>
    %c8_359 = arith.constant 8 : index
    %c0_360 = arith.constant 0 : index
    %c0_361 = arith.constant 0 : index
    %426 = vector.load %arg8[%c8_359, %c0_360, %c0_361] : memref<9x32x32xbf16, #tpu.memory_space<vmem>>, vector<1x32x32xbf16>
    %427 = vector.shape_cast %426 : vector<1x32x32xbf16> to vector<32x32xbf16>
    %cst_362 = arith.constant dense<0.000000e+00> : vector<32x32xf32>
    %428 = tpu.matmul %362, %427, %cst_362 {dimension_numbers = #tpu.dot_dimension_numbers<[1], [0], [0], [1], [0, 0, 1, 1], [], []>} : vector<32x32xbf16>, vector<32x32xbf16>, vector<32x32xf32> -> vector<32x32xf32>
    %429 = arith.truncf %428 : vector<32x32xf32> to vector<32x32xbf16>
    %c8_363 = arith.constant 8 : index
    %c0_364 = arith.constant 0 : index
    %c0_365 = arith.constant 0 : index
    %430 = vector.load %arg14[%c8_363, %c0_364, %c0_365] : memref<9x32x32xbf16, #tpu.memory_space<vmem>>, vector<1x32x32xbf16>
    %431 = vector.shape_cast %430 : vector<1x32x32xbf16> to vector<32x32xbf16>
    %cst_366 = arith.constant dense<0.000000e+00> : vector<32x32xf32>
    %432 = tpu.matmul %431, %429, %cst_366 {dimension_numbers = #tpu.dot_dimension_numbers<[1], [0], [0], [1], [0, 0, 1, 1], [], []>} : vector<32x32xbf16>, vector<32x32xbf16>, vector<32x32xf32> -> vector<32x32xf32>
    %433 = arith.addf %425, %432 : vector<32x32xf32>
    %434 = arith.addf %361, %433 : vector<32x32xf32>
    %c0_367 = arith.constant 0 : index
    %c0_368 = arith.constant 0 : index
    %435 = vector.load %arg15[%c0_367, %c0_368] : memref<32x1xf32, #tpu.memory_space<vmem>>, vector<32x1xf32>
    %c0_369 = arith.constant 0 : index
    %c0_370 = arith.constant 0 : index
    %436 = vector.load %arg16[%c0_369, %c0_370] : memref<32x1xf32, #tpu.memory_space<vmem>>, vector<32x1xf32>
    %cst_371 = arith.constant dense<0.000000e+00> : vector<32xf32>
    %437 = vector.multi_reduction <add>, %434, %cst_371 [1] : vector<32x32xf32> to vector<32xf32>
    %438 = vector.shape_cast %437 : vector<32xf32> to vector<32x1xf32>
    %cst_372 = arith.constant 3.200000e+01 : f32
    %439 = vector.broadcast %cst_372 : f32 to vector<32x1xf32>
    %440 = arith.divf %438, %439 : vector<32x1xf32>
    %441 = vector.broadcast %440 : vector<32x1xf32> to vector<32x32xf32>
    %442 = arith.subf %434, %441 : vector<32x32xf32>
    %443 = arith.mulf %442, %442 : vector<32x32xf32>
    %cst_373 = arith.constant dense<0.000000e+00> : vector<32xf32>
    %444 = vector.multi_reduction <add>, %443, %cst_373 [1] : vector<32x32xf32> to vector<32xf32>
    %445 = vector.shape_cast %444 : vector<32xf32> to vector<32x1xf32>
    %cst_374 = arith.constant 3.200000e+01 : f32
    %446 = vector.broadcast %cst_374 : f32 to vector<32x1xf32>
    %447 = arith.divf %445, %446 : vector<32x1xf32>
    %448 = vector.broadcast %440 : vector<32x1xf32> to vector<32x32xf32>
    %449 = arith.subf %434, %448 : vector<32x32xf32>
    %cst_375 = arith.constant 9.99999974E-6 : f32
    %450 = vector.broadcast %cst_375 : f32 to vector<32x1xf32>
    %451 = arith.addf %447, %450 : vector<32x1xf32>
    %452 = math.rsqrt %451 : vector<32x1xf32>
    %453 = vector.broadcast %452 : vector<32x1xf32> to vector<32x32xf32>
    %454 = arith.mulf %449, %453 : vector<32x32xf32>
    %455 = vector.broadcast %435 : vector<32x1xf32> to vector<32x32xf32>
    %456 = arith.mulf %454, %455 : vector<32x32xf32>
    %457 = vector.broadcast %436 : vector<32x1xf32> to vector<32x32xf32>
    %458 = arith.addf %456, %457 : vector<32x32xf32>
    %cst_376 = arith.constant 0.000000e+00 : f32
    %459 = vector.broadcast %cst_376 : f32 to vector<32x32xf32>
    %460 = arith.cmpf oge, %458, %459 : vector<32x32xf32>
    %cst_377 = arith.constant 2.000000e-01 : f32
    %461 = vector.broadcast %cst_377 : f32 to vector<32x32xf32>
    %462 = arith.mulf %461, %458 : vector<32x32xf32>
    %463 = arith.select %460, %458, %462 : vector<32x32xi1>, vector<32x32xf32>
    %c0_378 = arith.constant 0 : index
    %c0_379 = arith.constant 0 : index
    %464 = vector.load %arg17[%c0_378, %c0_379] : memref<32x32xf32, #tpu.memory_space<vmem>>, vector<32x32xf32>
    %465 = arith.mulf %463, %464 : vector<32x32xf32>
    %cst_380 = arith.constant dense<0.000000e+00> : vector<32xf32>
    %466 = vector.multi_reduction <add>, %465, %cst_380 [0] : vector<32x32xf32> to vector<32xf32>
    %467 = vector.shape_cast %466 : vector<32xf32> to vector<1x32xf32>
    %c0_381 = arith.constant 0 : index
    %c0_382 = arith.constant 0 : index
    %468 = vector.load %arg21[%c0_381, %c0_382] : memref<32x2xf32, #tpu.memory_space<vmem>>, vector<32x2xf32>
    %cst_383 = arith.constant dense<0.000000e+00> : vector<1x2xf32>
    %469 = tpu.matmul %467, %468, %cst_383 {dimension_numbers = #tpu.dot_dimension_numbers<[1], [0], [0], [1], [0, 0, 1, 1], [], []>} : vector<1x32xf32>, vector<32x2xf32>, vector<1x2xf32> -> vector<1x2xf32>
    %c0_384 = arith.constant 0 : index
    %c0_385 = arith.constant 0 : index
    %470 = vector.load %arg18[%c0_384, %c0_385] : memref<1x1xf32, #tpu.memory_space<vmem>>, vector<1x1xf32>
    %471 = vector.broadcast %470 : vector<1x1xf32> to vector<1x2xf32>
    %472 = arith.addf %469, %471 : vector<1x2xf32>
    %c0_386 = arith.constant 0 : index
    %c0_387 = arith.constant 0 : index
    %473 = vector.load %arg22[%c0_386, %c0_387] : memref<1x2xf32, #tpu.memory_space<vmem>>, vector<1x2xf32>
    tpu.vector_store %arg22[%c0_386, %c0_387], %472 {strides = array<i32>} : memref<1x2xf32, #tpu.memory_space<vmem>>, vector<1x2xf32>,
    %c0_388 = arith.constant 0 : index
    %c0_389 = arith.constant 0 : index
    %474 = vector.load %arg19[%c0_388, %c0_389] : memref<32x32xf32, #tpu.memory_space<vmem>>, vector<32x32xf32>
    %475 = arith.mulf %289, %474 : vector<32x32xf32>
    %cst_390 = arith.constant dense<0.000000e+00> : vector<32xf32>
    %476 = vector.multi_reduction <add>, %475, %cst_390 [0] : vector<32x32xf32> to vector<32xf32>
    %477 = vector.shape_cast %476 : vector<32xf32> to vector<1x32xf32>
    %c0_391 = arith.constant 0 : index
    %c0_392 = arith.constant 0 : index
    %478 = vector.load %arg21[%c0_391, %c0_392] : memref<32x2xf32, #tpu.memory_space<vmem>>, vector<32x2xf32>
    %cst_393 = arith.constant dense<0.000000e+00> : vector<1x2xf32>
    %479 = tpu.matmul %477, %478, %cst_393 {dimension_numbers = #tpu.dot_dimension_numbers<[1], [0], [0], [1], [0, 0, 1, 1], [], []>} : vector<1x32xf32>, vector<32x2xf32>, vector<1x2xf32> -> vector<1x2xf32>
    %c0_394 = arith.constant 0 : index
    %c0_395 = arith.constant 0 : index
    %480 = vector.load %arg20[%c0_394, %c0_395] : memref<1x1xf32, #tpu.memory_space<vmem>>, vector<1x1xf32>
    %481 = vector.broadcast %480 : vector<1x1xf32> to vector<1x2xf32>
    %482 = arith.addf %479, %481 : vector<1x2xf32>
    %c0_396 = arith.constant 0 : index
    %c0_397 = arith.constant 0 : index
    %483 = vector.load %arg23[%c0_396, %c0_397] : memref<1x2xf32, #tpu.memory_space<vmem>>, vector<1x2xf32>
    tpu.vector_store %arg23[%c0_396, %c0_397], %482 {strides = array<i32>} : memref<1x2xf32, #tpu.memory_space<vmem>>, vector<1x2xf32>,
    return
  }
}

</mosaic_0001>

<bundles_post_ra>
// kernel: wd_net128_forward.4
= control target key start
LH: loop header
LB: loop body
LE: loop exit
PB: predicated region body
PF: predicated region fallthrough
CT: control target
= control target key end

     0   :  { %s1245_s9 = smov 0   ;;  %s1247_s10 = smov 0   ;;  %s1492_s0 = inlined_call_operand.vmem [shape: bf16[4,48], index: 0, kind: input, shape index: {}]   ;;  %s1493_s1 = inlined_call_operand.vmem [shape: bf16[48,8192], index: 1, kind: input, shape index: {}]   ;;  %s1494_s2 = inlined_call_operand.vmem [shape: bf16[4,8192], index: 2, kind: output, shape index: {}]  }
   0x1   :  { %s1249_s11 = smov 0  }
   0x2 LB: > { %s1100_s12 = sadd.s32 4294967295, %s1226_s11   ;;  %s1262_s13 = sadd.s32 1, %s1226_s11   ;;  %s1226_s11 = sphi %s1249_s11, %s1497_s11   ;;  %s1222_s10 = sphi %s1247_s10, %s1496_s10   ;;  %s1218_s9 = sphi %s1245_s9, %s1495_s9  }
   0x3   : > { %s37_s14 = ssub.s32 %s1226_s11, %s1262_s13  ;;  %s40_s15 = sadd.s32 1, %s1222_s10 }
   0x4   : > { %p38_p0 = scmp.eq.s32.totalorder %s37_s14, 0  ;;  %p47_p1 = scmp.ne.s32.totalorder %s1222_s10, %s1218_s9 }
   0x5   : > { %p48_p2 = scmp.eq.s32.totalorder %s1226_s11, 0  ;;  %p1103_p4 = scmp.ge.s32.totalorder %s1226_s11, 4 }
   0x6   : > { %s1271_s16 = scalar_select %p38_p0, %s1222_s10, %s40_s15  }
   0x7   : > { %p49_p3 = por %p48_p2, %p47_p1  ;;  %102 = sbr.rel (%p1103_p4) target bundleno = 43 (0x2b), region = 20 }
   0xe   : > { %105 = sbr.rel (!%p49_p3) target bundleno = 43 (0x2b), region = 24  ;;  %s107_s17 = sand.u32 (%p49_p3), 1, %s1222_s10  }
   0xf   : > { %s1175_s18 = sshll.u32 (%p49_p3), %s1226_s11, 6  ;;  %s1176_s19 = smul.u32 (%p49_p3), 384, %s107_s17 }
  0x10   : > { %s1279_s22 = scalar_lea.vmem (%p49_p3), %s1493_s1, %s1175_s18 }
  0x11   : > { %v125_v0 = vld [vmem:[%s1279_s22] sm:$0xff] (%p49_p3)  ;;  %v127_v1 = vld [vmem:[%s1279_s22 + $0x8] sm:$0xff] (%p49_p3)  ;;  %v129_v2 = vld [vmem:[%s1279_s22 + $0x10] sm:$0xff] (%p49_p3)  ;;  %s1287_s23 = scalar_lea.vmem (%p49_p3), [#allocation2], %s1176_s19 }
  0x12   : > { %v131_v3 = vld [vmem:[%s1279_s22 + $0x18] sm:$0xff] (%p49_p3)  ;;  %v133_v4 = vld [vmem:[%s1279_s22 + $0x20] sm:$0xff] (%p49_p3)  ;;  %v135_v5 = vld [vmem:[%s1279_s22 + $0x28] sm:$0xff] (%p49_p3)  ;;  %126 = vst [vmem:[%s1287_s23] sm:$0xff] (%p49_p3), %v125_v0 }
  0x13   : > { %128 = vst [vmem:[%s1287_s23 + $0x8] sm:$0xff] (%p49_p3), %v127_v1  ;;  %130 = vst [vmem:[%s1287_s23 + $0x10] sm:$0xff] (%p49_p3), %v129_v2  ;;  %v137_v6 = vld [vmem:[%s1279_s22 + $0x30] sm:$0xff] (%p49_p3)  ;;  %v139_v7 = vld [vmem:[%s1279_s22 + $0x38] sm:$0xff] (%p49_p3) }
  0x14   : > { %132 = vst [vmem:[%s1287_s23 + $0x18] sm:$0xff] (%p49_p3), %v131_v3  ;;  %134 = vst [vmem:[%s1287_s23 + $0x20] sm:$0xff] (%p49_p3), %v133_v4  ;;  %v141_v8 = vld [vmem:[%s1279_s22 + $0x100] sm:$0xff] (%p49_p3)  ;;  %v143_v9 = vld [vmem:[%s1279_s22 + $0x108] sm:$0xff] (%p49_p3) }
  0x15   : > { %136 = vst [vmem:[%s1287_s23 + $0x28] sm:$0xff] %v135_v5  ;;  %138 = vst [vmem:[%s1287_s23 + $0x30] sm:$0xff] %v137_v6  ;;  %v145_v10 = vld [vmem:[%s1279_s22 + $0x110] sm:$0xff]  ;;  %v147_v11 = vld [vmem:[%s1279_s22 + $0x118] sm:$0xff] }
  0x16   : > { %140 = vst [vmem:[%s1287_s23 + $0x38] sm:$0xff] %v139_v7  ;;  %142 = vst [vmem:[%s1287_s23 + $0x40] sm:$0xff] %v141_v8  ;;  %v149_v12 = vld [vmem:[%s1279_s22 + $0x120] sm:$0xff]  ;;  %v151_v13 = vld [vmem:[%s1279_s22 + $0x128] sm:$0xff] }
  0x17   : > { %144 = vst [vmem:[%s1287_s23 + $0x48] sm:$0xff] %v143_v9  ;;  %146 = vst [vmem:[%s1287_s23 + $0x50] sm:$0xff] %v145_v10  ;;  %v153_v14 = vld [vmem:[%s1279_s22 + $0x130] sm:$0xff]  ;;  %v155_v15 = vld [vmem:[%s1279_s22 + $0x138] sm:$0xff] }
  0x18   : > { %148 = vst [vmem:[%s1287_s23 + $0x58] sm:$0xff] %v147_v11  ;;  %150 = vst [vmem:[%s1287_s23 + $0x60] sm:$0xff] %v149_v12  ;;  %v157_v16 = vld [vmem:[%s1279_s22 + $0x200] sm:$0xff]  ;;  %v159_v17 = vld [vmem:[%s1279_s22 + $0x208] sm:$0xff] }
  0x19   : > { %152 = vst [vmem:[%s1287_s23 + $0x68] sm:$0xff] %v151_v13  ;;  %154 = vst [vmem:[%s1287_s23 + $0x70] sm:$0xff] %v153_v14  ;;  %v161_v18 = vld [vmem:[%s1279_s22 + $0x210] sm:$0xff]  ;;  %v163_v19 = vld [vmem:[%s1279_s22 + $0x218] sm:$0xff] }
  0x1a   : > { %156 = vst [vmem:[%s1287_s23 + $0x78] sm:$0xff] %v155_v15  ;;  %158 = vst [vmem:[%s1287_s23 + $0x80] sm:$0xff] %v157_v16  ;;  %v165_v20 = vld [vmem:[%s1279_s22 + $0x220] sm:$0xff]  ;;  %v167_v21 = vld [vmem:[%s1279_s22 + $0x228] sm:$0xff] }
  0x1b   : > { %160 = vst [vmem:[%s1287_s23 + $0x88] sm:$0xff] %v159_v17  ;;  %162 = vst [vmem:[%s1287_s23 + $0x90] sm:$0xff] %v161_v18  ;;  %v169_v22 = vld [vmem:[%s1279_s22 + $0x230] sm:$0xff]  ;;  %v171_v23 = vld [vmem:[%s1279_s22 + $0x238] sm:$0xff] }
  0x1c   : > { %164 = vst [vmem:[%s1287_s23 + $0x98] sm:$0xff] %v163_v19  ;;  %166 = vst [vmem:[%s1287_s23 + $0xa0] sm:$0xff] %v165_v20  ;;  %v173_v24 = vld [vmem:[%s1279_s22 + $0x300] sm:$0xff]  ;;  %v175_v25 = vld [vmem:[%s1279_s22 + $0x308] sm:$0xff] }
  0x1d   : > { %168 = vst [vmem:[%s1287_s23 + $0xa8] sm:$0xff] %v167_v21  ;;  %170 = vst [vmem:[%s1287_s23 + $0xb0] sm:$0xff] %v169_v22  ;;  %v177_v26 = vld [vmem:[%s1279_s22 + $0x310] sm:$0xff]  ;;  %v179_v27 = vld [vmem:[%s1279_s22 + $0x318] sm:$0xff] }
  0x1e   : > { %172 = vst [vmem:[%s1287_s23 + $0xb8] sm:$0xff] %v171_v23  ;;  %174 = vst [vmem:[%s1287_s23 + $0xc0] sm:$0xff] %v173_v24  ;;  %v181_v28 = vld [vmem:[%s1279_s22 + $0x320] sm:$0xff]  ;;  %v183_v29 = vld [vmem:[%s1279_s22 + $0x328] sm:$0xff] }
  0x1f   : > { %176 = vst [vmem:[%s1287_s23 + $0xc8] sm:$0xff] %v175_v25  ;;  %178 = vst [vmem:[%s1287_s23 + $0xd0] sm:$0xff] %v177_v26  ;;  %v185_v30 = vld [vmem:[%s1279_s22 + $0x330] sm:$0xff]  ;;  %v187_v31 = vld [vmem:[%s1279_s22 + $0x338] sm:$0xff] }
  0x20   : > { %180 = vst [vmem:[%s1287_s23 + $0xd8] sm:$0xff] %v179_v27  ;;  %182 = vst [vmem:[%s1287_s23 + $0xe0] sm:$0xff] %v181_v28  ;;  %v189_v32 = vld [vmem:[%s1279_s22 + $0x400] sm:$0xff]  ;;  %v191_v33 = vld [vmem:[%s1279_s22 + $0x408] sm:$0xff] }
  0x21   : > { %184 = vst [vmem:[%s1287_s23 + $0xe8] sm:$0xff] %v183_v29  ;;  %186 = vst [vmem:[%s1287_s23 + $0xf0] sm:$0xff] %v185_v30  ;;  %v193_v34 = vld [vmem:[%s1279_s22 + $0x410] sm:$0xff]  ;;  %v195_v35 = vld [vmem:[%s1279_s22 + $0x418] sm:$0xff] }
  0x22   : > { %188 = vst [vmem:[%s1287_s23 + $0xf8] sm:$0xff] %v187_v31  ;;  %190 = vst [vmem:[%s1287_s23 + $0x100] sm:$0xff] %v189_v32  ;;  %v197_v36 = vld [vmem:[%s1279_s22 + $0x420] sm:$0xff]  ;;  %v199_v37 = vld [vmem:[%s1279_s22 + $0x428] sm:$0xff] }
  0x23   : > { %192 = vst [vmem:[%s1287_s23 + $0x108] sm:$0xff] %v191_v33  ;;  %194 = vst [vmem:[%s1287_s23 + $0x110] sm:$0xff] %v193_v34  ;;  %v201_v38 = vld [vmem:[%s1279_s22 + $0x430] sm:$0xff]  ;;  %v203_v39 = vld [vmem:[%s1279_s22 + $0x438] sm:$0xff] }
  0x24   : > { %196 = vst [vmem:[%s1287_s23 + $0x118] sm:$0xff] %v195_v35  ;;  %198 = vst [vmem:[%s1287_s23 + $0x120] sm:$0xff] %v197_v36  ;;  %v205_v40 = vld [vmem:[%s1279_s22 + $0x500] sm:$0xff]  ;;  %v207_v41 = vld [vmem:[%s1279_s22 + $0x508] sm:$0xff] }
  0x25   : > { %200 = vst [vmem:[%s1287_s23 + $0x128] sm:$0xff] %v199_v37  ;;  %202 = vst [vmem:[%s1287_s23 + $0x130] sm:$0xff] %v201_v38  ;;  %v209_v42 = vld [vmem:[%s1279_s22 + $0x510] sm:$0xff]  ;;  %v211_v43 = vld [vmem:[%s1279_s22 + $0x518] sm:$0xff] }
  0x26   : > { %204 = vst [vmem:[%s1287_s23 + $0x138] sm:$0xff] %v203_v39  ;;  %206 = vst [vmem:[%s1287_s23 + $0x140] sm:$0xff] %v205_v40  ;;  %v213_v44 = vld [vmem:[%s1279_s22 + $0x520] sm:$0xff]  ;;  %v215_v45 = vld [vmem:[%s1279_s22 + $0x528] sm:$0xff] }
  0x27   : > { %208 = vst [vmem:[%s1287_s23 + $0x148] sm:$0xff] %v207_v41  ;;  %210 = vst [vmem:[%s1287_s23 + $0x150] sm:$0xff] %v209_v42  ;;  %v217_v46 = vld [vmem:[%s1279_s22 + $0x530] sm:$0xff]  ;;  %v219_v47 = vld [vmem:[%s1279_s22 + $0x538] sm:$0xff] }
  0x28   : > { %212 = vst [vmem:[%s1287_s23 + $0x158] sm:$0xff] %v211_v43  ;;  %214 = vst [vmem:[%s1287_s23 + $0x160] sm:$0xff] %v213_v44 }
  0x29   : > { %216 = vst [vmem:[%s1287_s23 + $0x168] sm:$0xff] %v215_v45  ;;  %218 = vst [vmem:[%s1287_s23 + $0x170] sm:$0xff] %v217_v46 }
  0x2a   : > { %220 = vst [vmem:[%s1287_s23 + $0x178] sm:$0xff] %v219_v47 }
  0x2b PF: > { %p1106_p5 = scmp.ge.s32.totalorder %s1226_s11, 1  ;;  %p225_p6 = scmp.lt.s32.totalorder %s1226_s11, 5 }
  0x2d   : > { %p226_p7 = pnand %p1106_p5, %p225_p6 }
  0x2e   : > { %s232_s24 = sand.u32 (!%p226_p7), 1, %s1218_s9   ;;  %v1228_v48 = vmov (!%p226_p7), 0   ;;  %v1409_v19 = vld [vmem:[%s1492_s0] sm:$0x3] (!%p226_p7)  ;;  %vm550_vm0 = vcmask (!%p226_p7), 392192   ;;  %s1107_s29 = sshll.u32 (!%p226_p7), %s1100_s12, 4 }
  0x2f   : > { %229 = sbr.rel (%p226_p7) target bundleno = 327 (0x147), region = 47  ;;  %586 = vmatprep.mubr.bf16.mxu0 (!%p226_p7), %v1228_v48  ;;  %627 = vmatprep.mubr.bf16.mxu1 (!%p226_p7), %v1228_v48  ;;  %p255_p8 = scmp.lt.s32.totalorder (!%p226_p7), %s1107_s29, 63 }
  0x30   : > { %s1177_s25 = smul.u32 (!%p226_p7), 384, %s232_s24 }
  0x32   : > { %s1384_s26 = scalar_lea.vmem (!%p226_p7), [#allocation2], %s1177_s25 }
  0x33   : > { %v262_v49 = vld [vmem:[%s1384_s26] sm:$0xff] (!%p226_p7)  ;;  %v263_v51 = vld [vmem:[%s1384_s26 + $0x8] sm:$0xff] (!%p226_p7)  ;;  %v264_v7 = vld [vmem:[%s1384_s26 + $0x10] sm:$0xff] (!%p226_p7) }
  0x34   : > { %v270_v50 = vld [vmem:[%s1384_s26 + $0x40] sm:$0xff] (!%p226_p7)  ;;  %v271_v53 = vld [vmem:[%s1384_s26 + $0x48] sm:$0xff] (!%p226_p7)  ;;  %v272_v8 = vld [vmem:[%s1384_s26 + $0x50] sm:$0xff] (!%p226_p7) }
  0x35   : > { %v1110_v52 = vcombine.high (!%p226_p7), %v262_v49, %v270_v50  ;;  %v1109_v54 = vcombine.low (!%p226_p7), %v262_v49, %v270_v50  ;;  %v278_v55 = vld [vmem:[%s1384_s26 + $0x80] sm:$0xff] (!%p226_p7)  ;;  %v1112_v57 = vcombine.high (!%p226_p7), %v263_v51, %v271_v53  ;;  %v1111_v58 = vcombine.low (!%p226_p7), %v263_v51, %v271_v53  ;;  %v279_v60 = vld [vmem:[%s1384_s26 + $0x88] sm:$0xff] (!%p226_p7)  ;;  %v265_v9 = vld [vmem:[%s1384_s26 + $0x18] sm:$0xff] (!%p226_p7) }
  0x36   : > { %v286_v56 = vld [vmem:[%s1384_s26 + $0xc0] sm:$0xff]  ;;  %v287_v61 = vld [vmem:[%s1384_s26 + $0xc8] sm:$0xff]  ;;  %v273_v10 = vld [vmem:[%s1384_s26 + $0x58] sm:$0xff]  ;;  %v1114_v13 = vcombine.high %v264_v7, %v272_v8  ;;  %v1113_v20 = vcombine.low %v264_v7, %v272_v8  ;;  %s1499_s29 = smov (!%p255_p8, %s1107_s29), 63 }
  0x37   : > { %v1126_v59 = vcombine.high %v278_v55, %v286_v56  ;;  %v294_v62 = vld [vmem:[%s1384_s26 + $0x100] sm:$0xff]  ;;  %554 = vmatprep.subr.bf16.mxu0 %v1110_v52  ;;  %v1128_v63 = vcombine.high %v279_v60, %v287_v61  ;;  %v295_v1 = vld [vmem:[%s1384_s26 + $0x108] sm:$0xff]  ;;  %595 = vmatprep.subr.bf16.mxu1 %v1112_v57  ;;  %v1125_v3 = vcombine.low %v278_v55, %v286_v56  ;;  %v280_v15 = vld [vmem:[%s1384_s26 + $0x90] sm:$0xff]  ;;  %s1108_s30 = sshll.u32 %s1499_s29, 1 }
  0x38   : > { %v302_v0 = vld [vmem:[%s1384_s26 + $0x140] sm:$0xff]  ;;  %v303_v2 = vld [vmem:[%s1384_s26 + $0x148] sm:$0xff]  ;;  %555 = vmatpush1.bf16.msra.mxu0 %v1109_v54  ;;  %596 = vmatpush1.bf16.msra.mxu1 %v1111_v58  ;;  %v1127_v4 = vcombine.low %v279_v60, %v287_v61  ;;  %v1116_v14 = vcombine.high %v265_v9, %v273_v10  ;;  %v288_v16 = vld [vmem:[%s1384_s26 + $0xd0] sm:$0xff]  ;;  %v1115_v21 = vcombine.low %v265_v9, %v273_v10  ;;  %s1470_s5 = scalar_lea.vmem %s1494_s2, %s1108_s30 }
  0x39   : > { %556 = vmatprep.subr.bf16.mxu0 %v1126_v59  ;;  %v1142_v5 = vcombine.high %v294_v62, %v302_v0  ;;  %597 = vmatprep.subr.bf16.mxu1 %v1128_v63  ;;  %v1144_v6 = vcombine.high %v295_v1, %v303_v2  ;;  %v1141_v11 = vcombine.low %v294_v62, %v302_v0  ;;  %v281_v17 = vld [vmem:[%s1384_s26 + $0x98] sm:$0xff]  ;;  %v296_v24 = vld [vmem:[%s1384_s26 + $0x110] sm:$0xff]  ;;  %v266_v32 = vld [vmem:[%s1384_s26 + $0x20] sm:$0xff] }
  0x3a   : > { %v1143_v12 = vcombine.low %v295_v1, %v303_v2  ;;  %v289_v18 = vld [vmem:[%s1384_s26 + $0xd8] sm:$0xff]  ;;  %v1130_v22 = vcombine.high %v280_v15, %v288_v16  ;;  %v304_v25 = vld [vmem:[%s1384_s26 + $0x150] sm:$0xff]  ;;  %v1129_v28 = vcombine.low %v280_v15, %v288_v16  ;;  %v274_v33 = vld [vmem:[%s1384_s26 + $0x60] sm:$0xff] }
  0x3b   : > { %v1132_v23 = vcombine.high %v281_v17, %v289_v18  ;;  %v297_v26 = vld [vmem:[%s1384_s26 + $0x118] sm:$0xff]  ;;  %v1131_v29 = vcombine.low %v281_v17, %v289_v18  ;;  %v1146_v30 = vcombine.high %v296_v24, %v304_v25  ;;  %v267_v34 = vld [vmem:[%s1384_s26 + $0x28] sm:$0xff]  ;;  %v1145_v36 = vcombine.low %v296_v24, %v304_v25  ;;  %v282_v40 = vld [vmem:[%s1384_s26 + $0xa0] sm:$0xff] }
  0x3c   : > { %557 = vmatpush1.bf16.msra.mxu0 %v1125_v3  ;;  %598 = vmatpush1.bf16.msra.mxu1 %v1127_v4  ;;  %v305_v27 = vld [vmem:[%s1384_s26 + $0x158] sm:$0xff]  ;;  %v275_v35 = vld [vmem:[%s1384_s26 + $0x68] sm:$0xff]  ;;  %v1118_v38 = vcombine.high %v266_v32, %v274_v33  ;;  %v290_v41 = vld [vmem:[%s1384_s26 + $0xe0] sm:$0xff]  ;;  %v1117_v44 = vcombine.low %v266_v32, %v274_v33 }
  0x3d   : > { %558 = vmatprep.subr.bf16.mxu0 %v1142_v5  ;;  %599 = vmatprep.subr.bf16.mxu1 %v1144_v6  ;;  %v1148_v31 = vcombine.high %v297_v26, %v305_v27  ;;  %v1147_v37 = vcombine.low %v297_v26, %v305_v27  ;;  %v1120_v39 = vcombine.high %v267_v34, %v275_v35  ;;  %v283_v42 = vld [vmem:[%s1384_s26 + $0xa8] sm:$0xff]  ;;  %v298_v49 = vld [vmem:[%s1384_s26 + $0x120] sm:$0xff]  ;;  %v268_v57 = vld [vmem:[%s1384_s26 + $0x30] sm:$0xff] }
  0x3e   : > { %v291_v43 = vld [vmem:[%s1384_s26 + $0xe8] sm:$0xff]  ;;  %v1119_v45 = vcombine.low %v267_v34, %v275_v35  ;;  %v1134_v46 = vcombine.high %v282_v40, %v290_v41  ;;  %v306_v50 = vld [vmem:[%s1384_s26 + $0x160] sm:$0xff]  ;;  %v1133_v53 = vcombine.low %v282_v40, %v290_v41  ;;  %v276_v58 = vld [vmem:[%s1384_s26 + $0x70] sm:$0xff] }
  0x3f   : > { %v1136_v47 = vcombine.high %v283_v42, %v291_v43  ;;  %v299_v51 = vld [vmem:[%s1384_s26 + $0x128] sm:$0xff]  ;;  %v1135_v54 = vcombine.low %v283_v42, %v291_v43  ;;  %v1150_v55 = vcombine.high %v298_v49, %v306_v50  ;;  %v269_v59 = vld [vmem:[%s1384_s26 + $0x38] sm:$0xff]  ;;  %v1149_v61 = vcombine.low %v298_v49, %v306_v50  ;;  %v284_v1 = vld [vmem:[%s1384_s26 + $0xb0] sm:$0xff] }
  0x40   : > { %559 = vmatpush1.bf16.msra.mxu0 %v1141_v11  ;;  %600 = vmatpush1.bf16.msra.mxu1 %v1143_v12  ;;  %v307_v52 = vld [vmem:[%s1384_s26 + $0x168] sm:$0xff]  ;;  %v277_v60 = vld [vmem:[%s1384_s26 + $0x78] sm:$0xff]  ;;  %v1122_v63 = vcombine.high %v268_v57, %v276_v58  ;;  %v292_v2 = vld [vmem:[%s1384_s26 + $0xf0] sm:$0xff]  ;;  %v1121_v5 = vcombine.low %v268_v57, %v276_v58 }
  0x41   : > { %636 = vmatprep.subr.bf16.mxu0 %v1114_v13  ;;  %677 = vmatprep.subr.bf16.mxu1 %v1116_v14  ;;  %v1152_v56 = vcombine.high %v299_v51, %v307_v52  ;;  %v1151_v62 = vcombine.low %v299_v51, %v307_v52  ;;  %v1124_v0 = vcombine.high %v269_v59, %v277_v60  ;;  %v285_v3 = vld [vmem:[%s1384_s26 + $0xb8] sm:$0xff]  ;;  %v300_v9 = vld [vmem:[%s1384_s26 + $0x130] sm:$0xff] }
  0x42   : > { %v293_v4 = vld [vmem:[%s1384_s26 + $0xf8] sm:$0xff]  ;;  %v1123_v6 = vcombine.low %v269_v59, %v277_v60  ;;  %v1138_v7 = vcombine.high %v284_v1, %v292_v2  ;;  %v308_v10 = vld [vmem:[%s1384_s26 + $0x170] sm:$0xff]  ;;  %v1137_v13 = vcombine.low %v284_v1, %v292_v2 }
  0x43   : > { %1157 = vmatmul.mubr.msk.bf16.vlgmr.msra.gmra.mrb[0].mxu0 %vm550_vm0, %v1409_v19  ;;  %1158 = vmatmul.mubr.msk.bf16.vlgmr.msra.gmra.mrb[0].mxu1 %vm550_vm0, %v1409_v19  ;;  %v1140_v8 = vcombine.high %v285_v3, %v293_v4  ;;  %v301_v11 = vld [vmem:[%s1384_s26 + $0x138] sm:$0xff]  ;;  %v1139_v14 = vcombine.low %v285_v3, %v293_v4  ;;  %v1154_v15 = vcombine.high %v300_v9, %v308_v10 }
  0x44   : > { %637 = vmatpush1.bf16.msra.mxu0 %v1113_v20  ;;  %678 = vmatpush1.bf16.msra.mxu1 %v1115_v21  ;;  %v309_v12 = vld [vmem:[%s1384_s26 + $0x178] sm:$0xff]  ;;  %v1153_v17 = vcombine.low %v300_v9, %v308_v10  ;;  %v1229_v20 = vmov 1983009808  }
  0x45   : > { %638 = vmatprep.subr.bf16.mxu0 %v1130_v22  ;;  %679 = vmatprep.subr.bf16.mxu1 %v1132_v23  ;;  %v1156_v16 = vcombine.high %v301_v11, %v309_v12  ;;  %v1155_v18 = vcombine.low %v301_v11, %v309_v12  ;;  %v965_v21 = vunpack.c.l.s4 %v1229_v20  ;;  %v967_v22 = vlaneseq }
  0x46   : > { %668 = vmatprep.mubr.bf16.mxu0 %v1228_v48  ;;  %709 = vmatprep.mubr.bf16.mxu1 %v1228_v48 }
  0x47   : > { %v968_v23 = vshrl.u32 %v967_v22, 7 }
  0x48   : > { %639 = vmatpush1.bf16.msra.mxu0 %v1129_v28  ;;  %680 = vmatpush1.bf16.msra.mxu1 %v1131_v29 }
  0x49   : > { %640 = vmatprep.subr.bf16.mxu0 %v1146_v30  ;;  %681 = vmatprep.subr.bf16.mxu1 %v1148_v31 }
  0x4c   : > { %641 = vmatpush1.bf16.msra.mxu0 %v1145_v36  ;;  %682 = vmatpush1.bf16.msra.mxu1 %v1147_v37 }
  0x4d   : > { %718 = vmatprep.subr.bf16.mxu0 %v1118_v38  ;;  %759 = vmatprep.subr.bf16.mxu1 %v1120_v39 }
  0x4f   : > { %1159 = vmatmul.mubr.msk.bf16.vlgmr.msra.gmra.mrb[4].mxu0 %vm550_vm0, %v1409_v19  ;;  %1160 = vmatmul.mubr.msk.bf16.vlgmr.msra.gmra.mrb[4].mxu1 %vm550_vm0, %v1409_v19 }
  0x50   : > { %719 = vmatpush1.bf16.msra.mxu0 %v1117_v44  ;;  %760 = vmatpush1.bf16.msra.mxu1 %v1119_v45 }
  0x51   : > { %720 = vmatprep.subr.bf16.mxu0 %v1134_v46  ;;  %761 = vmatprep.subr.bf16.mxu1 %v1136_v47 }
  0x52   : > { %750 = vmatprep.mubr.bf16.mxu0 %v1228_v48  ;;  %791 = vmatprep.mubr.bf16.mxu1 %v1228_v48 }
  0x54   : > { %721 = vmatpush1.bf16.msra.mxu0 %v1133_v53  ;;  %762 = vmatpush1.bf16.msra.mxu1 %v1135_v54 }
  0x55   : > { %722 = vmatprep.subr.bf16.mxu0 %v1150_v55  ;;  %763 = vmatprep.subr.bf16.mxu1 %v1152_v56 }
  0x58   : > { %723 = vmatpush1.bf16.msra.mxu0 %v1149_v61  ;;  %764 = vmatpush1.bf16.msra.mxu1 %v1151_v62 }
  0x59   : > { %800 = vmatprep.subr.bf16.mxu0 %v1122_v63  ;;  %841 = vmatprep.subr.bf16.mxu1 %v1124_v0 }
  0x5b   : > { %1161 = vmatmul.mubr.msk.bf16.vlgmr.msra.gmra.mrb[8].mxu0 %vm550_vm0, %v1409_v19  ;;  %1162 = vmatmul.mubr.msk.bf16.vlgmr.msra.gmra.mrb[8].mxu1 %vm550_vm0, %v1409_v19 }
  0x5c   : > { %801 = vmatpush1.bf16.msra.mxu0 %v1121_v5  ;;  %842 = vmatpush1.bf16.msra.mxu1 %v1123_v6 }
  0x5d   : > { %802 = vmatprep.subr.bf16.mxu0 %v1138_v7  ;;  %843 = vmatprep.subr.bf16.mxu1 %v1140_v8 }
  0x5e   : > { %832 = vmatprep.mubr.bf16.mxu0 %v1228_v48  ;;  %873 = vmatprep.mubr.bf16.mxu1 %v1228_v48  ;;  %v966_v48 = vunpack.c.0.s8 %v965_v21 }
  0x60   : > { %803 = vmatpush1.bf16.msra.mxu0 %v1137_v13  ;;  %844 = vmatpush1.bf16.msra.mxu1 %v1139_v14  ;;  %v1463_v31 = vsub.s32 %v966_v48, %v968_v23 }
  0x61   : > { %804 = vmatprep.subr.bf16.mxu0 %v1154_v15  ;;  %845 = vmatprep.subr.bf16.mxu1 %v1156_v16 }
  0x64   : > { %805 = vmatpush1.bf16.msra.mxu0 %v1153_v17  ;;  %846 = vmatpush1.bf16.msra.mxu1 %v1155_v18 }
  0x67   : > { %1163 = vmatmul.mubr.msk.bf16.vlgmr.msra.gmra.mrb[12].mxu0 %vm550_vm0, %v1409_v19  ;;  %1164 = vmatmul.mubr.msk.bf16.vlgmr.msra.gmra.mrb[12].mxu1 %vm550_vm0, %v1409_v19 }
 0x116   : > { %v588_v24 = vpop.f32.mrb[0].mxu0  ;;  %v629_v26 = vpop.f32.mrb[0].mxu1 }
 0x117   : > { %vm882_vm1 = vcmp.ge.f32.partialorder %v588_v24, 0.0  ;;  %v898_v25 = vmul.f32 0.2, %v588_v24  ;;  %v590_v27 = vpop.f32.mrb[1].mxu0  ;;  %vm884_vm2 = vcmp.ge.f32.partialorder %v629_v26, 0.0  ;;  %v631_v19 = vpop.f32.mrb[1].mxu1 }
 0x118   : > { %v900_v28 = vmul.f32 0.2, %v629_v26  ;;  %vm883_vm3 = vcmp.ge.f32.partialorder %v590_v27, 0.0  ;;  %v899_v29 = vmul.f32 0.2, %v590_v27  ;;  %v592_v32 = vpop.f32.mrb[2].mxu0 }
 0x119   : > { %v914_v30 = vsel %vm882_vm1, %v588_v24, %v898_v25  ;;  %vm885_vm4 = vcmp.ge.f32.partialorder %v631_v19, 0.0  ;;  %v901_v35 = vmul.f32 0.2, %v631_v19  ;;  %v633_v36 = vpop.f32.mrb[2].mxu1  ;;  %v593_v37 = vpop.f32.mrb[3].mxu0 }
 0x11a   : > { %v916_v33 = vsel %vm884_vm2, %v629_v26, %v900_v28  ;;  %v915_v34 = vsel %vm883_vm3, %v590_v27, %v899_v29  ;;  %v634_v39 = vpop.f32.mrb[3].mxu1 }
 0x11b   : > { %v1165_v38 = vpack.c.bf16 %v915_v34, %v914_v30  ;;  %v917_v40 = vsel %vm885_vm4, %v631_v19, %v901_v35 }
 0x11c   : > { %v1166_v42 = vpack.c.bf16 %v917_v40, %v916_v33 }
 0x11d   : > { %v970_v41 = vrot.slane %v1165_v38, %v1463_v31 }
 0x11e   : > { %v977_v43 = vrot.slane %v1166_v42, %v1463_v31 }
 0x120   : > { %v978_v44 = vcombine.low %v970_v41, %v977_v43 }
 0x122   : > { %v670_v45 = vpop.f32.mrb[4].mxu0  ;;  %1034 = vst [vmem:[%s1470_s5] sm:$0xff] %v978_v44  ;;  %v711_v47 = vpop.f32.mrb[4].mxu1 }
 0x123   : > { %vm886_vm5 = vcmp.ge.f32.partialorder %v670_v45, 0.0  ;;  %v902_v46 = vmul.f32 0.2, %v670_v45  ;;  %v672_v49 = vpop.f32.mrb[5].mxu0  ;;  %vm888_vm6 = vcmp.ge.f32.partialorder %v711_v47, 0.0  ;;  %v713_v53 = vpop.f32.mrb[5].mxu1 }
 0x124   : > { %v904_v50 = vmul.f32 0.2, %v711_v47  ;;  %vm887_vm7 = vcmp.ge.f32.partialorder %v672_v49, 0.0  ;;  %v903_v51 = vmul.f32 0.2, %v672_v49  ;;  %v674_v54 = vpop.f32.mrb[6].mxu0 }
 0x125   : > { %v918_v52 = vsel %vm886_vm5, %v670_v45, %v902_v46  ;;  %vm889_vm8 = vcmp.ge.f32.partialorder %v713_v53, 0.0  ;;  %v905_v57 = vmul.f32 0.2, %v713_v53  ;;  %v715_v58 = vpop.f32.mrb[6].mxu1  ;;  %v675_v59 = vpop.f32.mrb[7].mxu0 }
 0x126   : > { %v920_v55 = vsel %vm888_vm6, %v711_v47, %v904_v50  ;;  %v919_v56 = vsel %vm887_vm7, %v672_v49, %v903_v51  ;;  %v716_v61 = vpop.f32.mrb[7].mxu1 }
 0x127   : > { %v1167_v60 = vpack.c.bf16 %v919_v56, %v918_v52  ;;  %v921_v62 = vsel %vm889_vm8, %v713_v53, %v905_v57 }
 0x128   : > { %v1168_v0 = vpack.c.bf16 %v921_v62, %v920_v55 }
 0x129   : > { %v987_v63 = vrot.slane %v1167_v60, %v1463_v31 }
 0x12a   : > { %v994_v1 = vrot.slane %v1168_v0, %v1463_v31 }
 0x12c   : > { %v995_v2 = vcombine.low %v987_v63, %v994_v1 }
 0x12e   : > { %v752_v3 = vpop.f32.mrb[8].mxu0  ;;  %1035 = vst [vmem:[%s1470_s5 + $0x8] sm:$0xff] %v995_v2  ;;  %v793_v5 = vpop.f32.mrb[8].mxu1 }
 0x12f   : > { %vm890_vm9 = vcmp.ge.f32.partialorder %v752_v3, 0.0  ;;  %v906_v4 = vmul.f32 0.2, %v752_v3  ;;  %v754_v6 = vpop.f32.mrb[9].mxu0  ;;  %vm892_vm10 = vcmp.ge.f32.partialorder %v793_v5, 0.0  ;;  %v795_v10 = vpop.f32.mrb[9].mxu1 }
 0x130   : > { %v908_v7 = vmul.f32 0.2, %v793_v5  ;;  %vm891_vm11 = vcmp.ge.f32.partialorder %v754_v6, 0.0  ;;  %v907_v8 = vmul.f32 0.2, %v754_v6  ;;  %v756_v11 = vpop.f32.mrb[10].mxu0 }
 0x131   : > { %v922_v9 = vsel %vm890_vm9, %v752_v3, %v906_v4  ;;  %vm893_vm12 = vcmp.ge.f32.partialorder %v795_v10, 0.0  ;;  %v909_v14 = vmul.f32 0.2, %v795_v10  ;;  %v797_v15 = vpop.f32.mrb[10].mxu1  ;;  %v757_v16 = vpop.f32.mrb[11].mxu0 }
 0x132   : > { %v924_v12 = vsel %vm892_vm10, %v793_v5, %v908_v7  ;;  %v923_v13 = vsel %vm891_vm11, %v754_v6, %v907_v8  ;;  %v798_v18 = vpop.f32.mrb[11].mxu1 }
 0x133   : > { %v1169_v17 = vpack.c.bf16 %v923_v13, %v922_v9  ;;  %v925_v20 = vsel %vm893_vm12, %v795_v10, %v909_v14 }
 0x134   : > { %v1170_v22 = vpack.c.bf16 %v925_v20, %v924_v12 }
 0x135   : > { %v1004_v21 = vrot.slane %v1169_v17, %v1463_v31 }
 0x136   : > { %v1011_v48 = vrot.slane %v1170_v22, %v1463_v31 }
 0x138   : > { %v1012_v23 = vcombine.low %v1004_v21, %v1011_v48 }
 0x13a   : > { %v834_v24 = vpop.f32.mrb[12].mxu0  ;;  %1036 = vst [vmem:[%s1470_s5 + $0x10] sm:$0xff] %v1012_v23  ;;  %v875_v26 = vpop.f32.mrb[12].mxu1 }
 0x13b   : > { %vm894_vm13 = vcmp.ge.f32.partialorder %v834_v24, 0.0  ;;  %v910_v25 = vmul.f32 0.2, %v834_v24  ;;  %v836_v27 = vpop.f32.mrb[13].mxu0  ;;  %vm896_vm14 = vcmp.ge.f32.partialorder %v875_v26, 0.0  ;;  %v877_v19 = vpop.f32.mrb[13].mxu1 }
 0x13c   : > { %v912_v28 = vmul.f32 0.2, %v875_v26  ;;  %vm895_vm15 = vcmp.ge.f32.partialorder %v836_v27, 0.0  ;;  %v911_v29 = vmul.f32 0.2, %v836_v27  ;;  %v838_v32 = vpop.f32.mrb[14].mxu0 }
 0x13d   : > { %v926_v30 = vsel %vm894_vm13, %v834_v24, %v910_v25  ;;  %vm897_vm0 = vcmp.ge.f32.partialorder %v877_v19, 0.0  ;;  %v913_v35 = vmul.f32 0.2, %v877_v19  ;;  %v879_v36 = vpop.f32.mrb[14].mxu1  ;;  %v839_v37 = vpop.f32.mrb[15].mxu0 }
 0x13e   : > { %v928_v33 = vsel %vm896_vm14, %v875_v26, %v912_v28  ;;  %v927_v34 = vsel %vm895_vm15, %v836_v27, %v911_v29  ;;  %v880_v39 = vpop.f32.mrb[15].mxu1 }
 0x13f   : > { %v1171_v38 = vpack.c.bf16 %v927_v34, %v926_v30  ;;  %v929_v40 = vsel %vm897_vm0, %v877_v19, %v913_v35 }
 0x140   : > { %v1172_v42 = vpack.c.bf16 %v929_v40, %v928_v33 }
 0x141   : > { %v1021_v41 = vrot.slane %v1171_v38, %v1463_v31 }
 0x142   : > { %v1028_v43 = vrot.slane %v1172_v42, %v1463_v31 }
 0x144   : > { %v1029_v44 = vcombine.low %v1021_v41, %v1028_v43 }
 0x146   : > { %1037 = vst [vmem:[%s1470_s5 + $0x18] sm:$0xff] %v1029_v44 }
 0x147 PF: > { %p9_p9 = scmp.ge.s32.totalorder %s1262_s13, 6   ;;  %s1495_s9 = smov %s1222_s10 }
 0x148   : > { %s1496_s10 = smov %s1271_s16  ;;  %s1497_s11 = smov %s1262_s13 }
 0x149   :  { %11 = sbr.rel (!%p9_p9) target bundleno = 2 (0x2), region = 86 }

// kernel: wd_net128_forward.5
= control target key start
LH: loop header
LB: loop body
LE: loop exit
PB: predicated region body
PF: predicated region fallthrough
CT: control target
= control target key end

     0   :  { %v1083_v3 = vmov 0   ;;  %vm403_vm0 = vcmask 523264   ;;  %s1378_s1 = inlined_call_operand.vmem [shape: bf16[64,2048], index: 1, kind: input, shape index: {}]   ;;  %s1379_s0 = inlined_call_operand.vmem [shape: bf16[8,64], index: 0, kind: input, shape index: {}]   ;;  %s1380_s2 = inlined_call_operand.vmem [shape: f32[8,1], index: 2, kind: input, shape index: {}]   ;;  %s1381_s3 = inlined_call_operand.vmem [shape: f32[8,1], index: 3, kind: input, shape index: {}]   ;;  %s1382_s4 = inlined_call_operand.vmem [shape: bf16[8,2048], index: 4, kind: output, shape index: {}]  }
   0x1   :  { %v19_v0 = vld [vmem:[%s1378_s1] sm:$0xff]  ;;  %v20_v2 = vld [vmem:[%s1378_s1 + $0x8] sm:$0xff]  ;;  %439 = vmatprep.mubr.bf16.mxu0 %v1083_v3  ;;  %480 = vmatprep.mubr.bf16.mxu1 %v1083_v3  ;;  %v21_v31 = vld [vmem:[%s1378_s1 + $0x10] sm:$0xff] }
   0x2   :  { %v27_v1 = vld [vmem:[%s1378_s1 + $0x40] sm:$0xff]  ;;  %v28_v6 = vld [vmem:[%s1378_s1 + $0x48] sm:$0xff]  ;;  %1079 = vset.pattern.permute.xlu1 %v1083_v3  ;;  %1080 = vset.pattern.permute.xlu0 %v1083_v3  ;;  %v29_v32 = vld [vmem:[%s1378_s1 + $0x50] sm:$0xff] }
   0x3   :  { %v991_v4 = vcombine.high %v19_v0, %v27_v1  ;;  %v990_v5 = vcombine.low %v19_v0, %v27_v1  ;;  %v35_v7 = vld [vmem:[%s1378_s1 + $0x80] sm:$0xff]  ;;  %v993_v9 = vcombine.high %v20_v2, %v28_v6  ;;  %v992_v10 = vcombine.low %v20_v2, %v28_v6  ;;  %v36_v12 = vld [vmem:[%s1378_s1 + $0x88] sm:$0xff]  ;;  %v22_v33 = vld [vmem:[%s1378_s1 + $0x18] sm:$0xff] }
   0x4   :  { %v43_v8 = vld [vmem:[%s1378_s1 + $0xc0] sm:$0xff]  ;;  %v44_v13 = vld [vmem:[%s1378_s1 + $0xc8] sm:$0xff]  ;;  %v30_v34 = vld [vmem:[%s1378_s1 + $0x58] sm:$0xff]  ;;  %v995_v37 = vcombine.high %v21_v31, %v29_v32  ;;  %v994_v44 = vcombine.low %v21_v31, %v29_v32 }
   0x5   :  { %v1007_v11 = vcombine.high %v35_v7, %v43_v8  ;;  %v51_v14 = vld [vmem:[%s1378_s1 + $0x100] sm:$0xff]  ;;  %407 = vmatprep.subr.bf16.mxu0 %v991_v4  ;;  %v1009_v15 = vcombine.high %v36_v12, %v44_v13  ;;  %v52_v17 = vld [vmem:[%s1378_s1 + $0x108] sm:$0xff]  ;;  %448 = vmatprep.subr.bf16.mxu1 %v993_v9  ;;  %v1006_v19 = vcombine.low %v35_v7, %v43_v8  ;;  %v37_v39 = vld [vmem:[%s1378_s1 + $0x90] sm:$0xff] }
   0x6   :  { %v59_v16 = vld [vmem:[%s1378_s1 + $0x140] sm:$0xff]  ;;  %v60_v18 = vld [vmem:[%s1378_s1 + $0x148] sm:$0xff]  ;;  %408 = vmatpush1.bf16.msra.mxu0 %v990_v5  ;;  %449 = vmatpush1.bf16.msra.mxu1 %v992_v10  ;;  %v1008_v20 = vcombine.low %v36_v12, %v44_v13  ;;  %v997_v38 = vcombine.high %v22_v33, %v30_v34  ;;  %v45_v40 = vld [vmem:[%s1378_s1 + $0xd0] sm:$0xff]  ;;  %v996_v45 = vcombine.low %v22_v33, %v30_v34 }
   0x7   :  { %409 = vmatprep.subr.bf16.mxu0 %v1007_v11  ;;  %v1023_v21 = vcombine.high %v51_v14, %v59_v16  ;;  %450 = vmatprep.subr.bf16.mxu1 %v1009_v15  ;;  %v1025_v22 = vcombine.high %v52_v17, %v60_v18  ;;  %v67_v23 = vld [vmem:[%s1378_s1 + $0x180] sm:$0xff]  ;;  %v68_v25 = vld [vmem:[%s1378_s1 + $0x188] sm:$0xff]  ;;  %v1022_v27 = vcombine.low %v51_v14, %v59_v16  ;;  %v38_v41 = vld [vmem:[%s1378_s1 + $0x98] sm:$0xff] }
   0x8   :  { %v75_v24 = vld [vmem:[%s1378_s1 + $0x1c0] sm:$0xff]  ;;  %v76_v26 = vld [vmem:[%s1378_s1 + $0x1c8] sm:$0xff]  ;;  %v1024_v28 = vcombine.low %v52_v17, %v60_v18  ;;  %v46_v42 = vld [vmem:[%s1378_s1 + $0xd8] sm:$0xff]  ;;  %v1011_v46 = vcombine.high %v37_v39, %v45_v40  ;;  %v1010_v52 = vcombine.low %v37_v39, %v45_v40 }
   0x9   :  { %v1039_v29 = vcombine.high %v67_v23, %v75_v24  ;;  %v1041_v30 = vcombine.high %v68_v25, %v76_v26  ;;  %v1038_v35 = vcombine.low %v67_v23, %v75_v24  ;;  %v1040_v36 = vcombine.low %v68_v25, %v76_v26  ;;  %v1188_v43 = vld [vmem:[%s1379_s0] sm:$0xf]  ;;  %v53_v48 = vld [vmem:[%s1378_s1 + $0x110] sm:$0xff]  ;;  %v54_v50 = vld [vmem:[%s1378_s1 + $0x118] sm:$0xff] }
   0xa   :  { %410 = vmatpush1.bf16.msra.mxu0 %v1006_v19  ;;  %451 = vmatpush1.bf16.msra.mxu1 %v1008_v20  ;;  %v1013_v47 = vcombine.high %v38_v41, %v46_v42  ;;  %v61_v49 = vld [vmem:[%s1378_s1 + $0x150] sm:$0xff]  ;;  %v62_v51 = vld [vmem:[%s1378_s1 + $0x158] sm:$0xff]  ;;  %v1012_v53 = vcombine.low %v38_v41, %v46_v42  ;;  %v23_v0 = vld [vmem:[%s1378_s1 + $0x20] sm:$0xff] }
   0xb   :  { %411 = vmatprep.subr.bf16.mxu0 %v1023_v21  ;;  %452 = vmatprep.subr.bf16.mxu1 %v1025_v22  ;;  %v1027_v54 = vcombine.high %v53_v48, %v61_v49  ;;  %v1029_v55 = vcombine.high %v54_v50, %v62_v51  ;;  %v69_v56 = vld [vmem:[%s1378_s1 + $0x190] sm:$0xff]  ;;  %v70_v58 = vld [vmem:[%s1378_s1 + $0x198] sm:$0xff]  ;;  %v1026_v60 = vcombine.low %v53_v48, %v61_v49  ;;  %v31_v1 = vld [vmem:[%s1378_s1 + $0x60] sm:$0xff] }
   0xc   :  { %v77_v57 = vld [vmem:[%s1378_s1 + $0x1d0] sm:$0xff]  ;;  %v78_v59 = vld [vmem:[%s1378_s1 + $0x1d8] sm:$0xff]  ;;  %v1028_v61 = vcombine.low %v54_v50, %v62_v51  ;;  %v24_v2 = vld [vmem:[%s1378_s1 + $0x28] sm:$0xff]  ;;  %v999_v7 = vcombine.high %v23_v0, %v31_v1  ;;  %v998_v13 = vcombine.low %v23_v0, %v31_v1 }
   0xd   :  { %v1043_v62 = vcombine.high %v69_v56, %v77_v57  ;;  %v1045_v63 = vcombine.high %v70_v58, %v78_v59  ;;  %v32_v4 = vld [vmem:[%s1378_s1 + $0x68] sm:$0xff]  ;;  %v1042_v5 = vcombine.low %v69_v56, %v77_v57  ;;  %v1044_v6 = vcombine.low %v70_v58, %v78_v59  ;;  %v39_v9 = vld [vmem:[%s1378_s1 + $0xa0] sm:$0xff]  ;;  %v25_v33 = vld [vmem:[%s1378_s1 + $0x30] sm:$0xff] }
   0xe   :  { %412 = vmatpush1.bf16.msra.mxu0 %v1022_v27  ;;  %453 = vmatpush1.bf16.msra.mxu1 %v1024_v28  ;;  %v1001_v8 = vcombine.high %v24_v2, %v32_v4  ;;  %v47_v10 = vld [vmem:[%s1378_s1 + $0xe0] sm:$0xff]  ;;  %v40_v11 = vld [vmem:[%s1378_s1 + $0xa8] sm:$0xff]  ;;  %v1000_v14 = vcombine.low %v24_v2, %v32_v4  ;;  %v33_v34 = vld [vmem:[%s1378_s1 + $0x70] sm:$0xff] }
   0xf   :  { %413 = vmatprep.subr.bf16.mxu0 %v1039_v29  ;;  %454 = vmatprep.subr.bf16.mxu1 %v1041_v30  ;;  %v48_v12 = vld [vmem:[%s1378_s1 + $0xe8] sm:$0xff]  ;;  %v1015_v15 = vcombine.high %v39_v9, %v47_v10  ;;  %v55_v17 = vld [vmem:[%s1378_s1 + $0x120] sm:$0xff]  ;;  %v1014_v21 = vcombine.low %v39_v9, %v47_v10  ;;  %v1003_v39 = vcombine.high %v25_v33, %v33_v34  ;;  %v41_v41 = vld [vmem:[%s1378_s1 + $0xb0] sm:$0xff] }
  0x10   :  { %v1017_v16 = vcombine.high %v40_v11, %v48_v12  ;;  %v63_v18 = vld [vmem:[%s1378_s1 + $0x160] sm:$0xff]  ;;  %v56_v19 = vld [vmem:[%s1378_s1 + $0x128] sm:$0xff]  ;;  %v1016_v22 = vcombine.low %v40_v11, %v48_v12  ;;  %v49_v42 = vld [vmem:[%s1378_s1 + $0xf0] sm:$0xff] }
  0x11   :  { %v64_v20 = vld [vmem:[%s1378_s1 + $0x168] sm:$0xff]  ;;  %v1031_v23 = vcombine.high %v55_v17, %v63_v18  ;;  %v71_v25 = vld [vmem:[%s1378_s1 + $0x1a0] sm:$0xff]  ;;  %v1030_v29 = vcombine.low %v55_v17, %v63_v18  ;;  %v1019_v48 = vcombine.high %v41_v41, %v49_v42  ;;  %v57_v50 = vld [vmem:[%s1378_s1 + $0x130] sm:$0xff] }
  0x12   :  { %414 = vmatpush1.bf16.msra.mxu0 %v1038_v35  ;;  %455 = vmatpush1.bf16.msra.mxu1 %v1040_v36  ;;  %v1033_v24 = vcombine.high %v56_v19, %v64_v20  ;;  %v79_v26 = vld [vmem:[%s1378_s1 + $0x1e0] sm:$0xff]  ;;  %v72_v27 = vld [vmem:[%s1378_s1 + $0x1a8] sm:$0xff]  ;;  %v1032_v30 = vcombine.low %v56_v19, %v64_v20  ;;  %v26_v35 = vld [vmem:[%s1378_s1 + $0x38] sm:$0xff] }
  0x13   :  { %489 = vmatprep.subr.bf16.mxu0 %v995_v37  ;;  %530 = vmatprep.subr.bf16.mxu1 %v997_v38  ;;  %v80_v28 = vld [vmem:[%s1378_s1 + $0x1e8] sm:$0xff]  ;;  %v1047_v31 = vcombine.high %v71_v25, %v79_v26  ;;  %v34_v36 = vld [vmem:[%s1378_s1 + $0x78] sm:$0xff]  ;;  %v1046_v37 = vcombine.low %v71_v25, %v79_v26  ;;  %v65_v51 = vld [vmem:[%s1378_s1 + $0x170] sm:$0xff] }
  0x14   :  { %v1049_v32 = vcombine.high %v72_v27, %v80_v28  ;;  %v1048_v38 = vcombine.low %v72_v27, %v80_v28  ;;  %v1005_v40 = vcombine.high %v26_v35, %v34_v36  ;;  %v1035_v56 = vcombine.high %v57_v50, %v65_v51  ;;  %v73_v58 = vld [vmem:[%s1378_s1 + $0x1b0] sm:$0xff] }
  0x15   :  { %1054 = vmatmul.mubr.msk.bf16.vlgmr.msra.gmra.mrb[0].mxu0 %vm403_vm0, %v1188_v43  ;;  %1055 = vmatmul.mubr.msk.bf16.vlgmr.msra.gmra.mrb[0].mxu1 %vm403_vm0, %v1188_v43  ;;  %v81_v59 = vld [vmem:[%s1378_s1 + $0x1f0] sm:$0xff] }
  0x16   :  { %490 = vmatpush1.bf16.msra.mxu0 %v994_v44  ;;  %531 = vmatpush1.bf16.msra.mxu1 %v996_v45  ;;  %v42_v44 = vld [vmem:[%s1378_s1 + $0xb8] sm:$0xff]  ;;  %v1051_v0 = vcombine.high %v73_v58, %v81_v59  ;;  %v1050_v2 = vcombine.low %v73_v58, %v81_v59 }
  0x17   :  { %491 = vmatprep.subr.bf16.mxu0 %v1011_v46  ;;  %532 = vmatprep.subr.bf16.mxu1 %v1013_v47  ;;  %v50_v45 = vld [vmem:[%s1378_s1 + $0xf8] sm:$0xff]  ;;  %v1002_v46 = vcombine.low %v25_v33, %v33_v34  ;;  %v1004_v47 = vcombine.low %v26_v35, %v34_v36 }
  0x18   :  { %521 = vmatprep.mubr.bf16.mxu0 %v1083_v3  ;;  %562 = vmatprep.mubr.bf16.mxu1 %v1083_v3  ;;  %v1021_v49 = vcombine.high %v42_v44, %v50_v45 }
  0x1a   :  { %492 = vmatpush1.bf16.msra.mxu0 %v1010_v52  ;;  %533 = vmatpush1.bf16.msra.mxu1 %v1012_v53  ;;  %v58_v52 = vld [vmem:[%s1378_s1 + $0x138] sm:$0xff] }
  0x1b   :  { %493 = vmatprep.subr.bf16.mxu0 %v1027_v54  ;;  %534 = vmatprep.subr.bf16.mxu1 %v1029_v55  ;;  %v66_v53 = vld [vmem:[%s1378_s1 + $0x178] sm:$0xff]  ;;  %v1018_v54 = vcombine.low %v41_v41, %v49_v42  ;;  %v1020_v55 = vcombine.low %v42_v44, %v50_v45 }
  0x1c   :  { %v1037_v57 = vcombine.high %v58_v52, %v66_v53 }
  0x1e   :  { %494 = vmatpush1.bf16.msra.mxu0 %v1026_v60  ;;  %535 = vmatpush1.bf16.msra.mxu1 %v1028_v61  ;;  %v74_v60 = vld [vmem:[%s1378_s1 + $0x1b8] sm:$0xff] }
  0x1f   :  { %495 = vmatprep.subr.bf16.mxu0 %v1043_v62  ;;  %536 = vmatprep.subr.bf16.mxu1 %v1045_v63  ;;  %v82_v61 = vld [vmem:[%s1378_s1 + $0x1f8] sm:$0xff]  ;;  %v1034_v62 = vcombine.low %v57_v50, %v65_v51  ;;  %v1036_v63 = vcombine.low %v58_v52, %v66_v53  ;;  %v735_v51 = vld [vmem:[%s1380_s2] sm:$0xff] }
  0x20   :  { %v1053_v1 = vcombine.high %v74_v60, %v82_v61  ;;  %v1052_v4 = vcombine.low %v74_v60, %v82_v61  ;;  %826 = vperm.xlu1 %1079, %v735_v51   ;;  %v736_v52 = vld [vmem:[%s1381_s3] sm:$0xff] }
  0x22   :  { %496 = vmatpush1.bf16.msra.mxu0 %v1042_v5  ;;  %537 = vmatpush1.bf16.msra.mxu1 %v1044_v6 }
  0x23   :  { %571 = vmatprep.subr.bf16.mxu0 %v999_v7  ;;  %612 = vmatprep.subr.bf16.mxu1 %v1001_v8 }
  0x24   :  { %847 = vperm.xlu1 %1079, %v736_v52  }
  0x25   :  { %1056 = vmatmul.mubr.msk.bf16.vlgmr.msra.gmra.mrb[4].mxu0 %vm403_vm0, %v1188_v43  ;;  %1057 = vmatmul.mubr.msk.bf16.vlgmr.msra.gmra.mrb[4].mxu1 %vm403_vm0, %v1188_v43 }
  0x26   :  { %572 = vmatpush1.bf16.msra.mxu0 %v998_v13  ;;  %613 = vmatpush1.bf16.msra.mxu1 %v1000_v14 }
  0x27   :  { %573 = vmatprep.subr.bf16.mxu0 %v1015_v15  ;;  %614 = vmatprep.subr.bf16.mxu1 %v1017_v16 }
  0x28   :  { %603 = vmatprep.mubr.bf16.mxu0 %v1083_v3  ;;  %644 = vmatprep.mubr.bf16.mxu1 %v1083_v3 }
  0x2a   :  { %574 = vmatpush1.bf16.msra.mxu0 %v1014_v21  ;;  %615 = vmatpush1.bf16.msra.mxu1 %v1016_v22 }
  0x2b   :  { %575 = vmatprep.subr.bf16.mxu0 %v1031_v23  ;;  %616 = vmatprep.subr.bf16.mxu1 %v1033_v24 }
  0x2e   :  { %576 = vmatpush1.bf16.msra.mxu0 %v1030_v29  ;;  %617 = vmatpush1.bf16.msra.mxu1 %v1032_v30 }
  0x2f   :  { %577 = vmatprep.subr.bf16.mxu0 %v1047_v31  ;;  %618 = vmatprep.subr.bf16.mxu1 %v1049_v32 }
  0x32   :  { %578 = vmatpush1.bf16.msra.mxu0 %v1046_v37  ;;  %619 = vmatpush1.bf16.msra.mxu1 %v1048_v38 }
  0x33   :  { %653 = vmatprep.subr.bf16.mxu0 %v1003_v39  ;;  %694 = vmatprep.subr.bf16.mxu1 %v1005_v40 }
  0x35   :  { %1058 = vmatmul.mubr.msk.bf16.vlgmr.msra.gmra.mrb[8].mxu0 %vm403_vm0, %v1188_v43  ;;  %1059 = vmatmul.mubr.msk.bf16.vlgmr.msra.gmra.mrb[8].mxu1 %vm403_vm0, %v1188_v43 }
  0x36   :  { %654 = vmatpush1.bf16.msra.mxu0 %v1002_v46  ;;  %695 = vmatpush1.bf16.msra.mxu1 %v1004_v47 }
  0x37   :  { %655 = vmatprep.subr.bf16.mxu0 %v1019_v48  ;;  %696 = vmatprep.subr.bf16.mxu1 %v1021_v49 }
  0x38   :  { %685 = vmatprep.mubr.bf16.mxu0 %v1083_v3  ;;  %726 = vmatprep.mubr.bf16.mxu1 %v1083_v3 }
  0x3a   :  { %656 = vmatpush1.bf16.msra.mxu0 %v1018_v54  ;;  %697 = vmatpush1.bf16.msra.mxu1 %v1020_v55 }
  0x3b   :  { %657 = vmatprep.subr.bf16.mxu0 %v1035_v56  ;;  %698 = vmatprep.subr.bf16.mxu1 %v1037_v57 }
  0x3e   :  { %658 = vmatpush1.bf16.msra.mxu0 %v1034_v62  ;;  %699 = vmatpush1.bf16.msra.mxu1 %v1036_v63 }
  0x3f   :  { %659 = vmatprep.subr.bf16.mxu0 %v1051_v0  ;;  %700 = vmatprep.subr.bf16.mxu1 %v1053_v1 }
  0x42   :  { %660 = vmatpush1.bf16.msra.mxu0 %v1050_v2  ;;  %701 = vmatpush1.bf16.msra.mxu1 %v1052_v4 }
  0x45   :  { %1060 = vmatmul.mubr.msk.bf16.vlgmr.msra.gmra.mrb[12].mxu0 %vm403_vm0, %v1188_v43  ;;  %1061 = vmatmul.mubr.msk.bf16.vlgmr.msra.gmra.mrb[12].mxu1 %vm403_vm0, %v1188_v43 }
  0xe8   :  { %v441_v3 = vpop.f32.mrb[0].mxu0  ;;  %v482_v6 = vpop.f32.mrb[0].mxu1 }
  0xe9   :  { %v443_v5 = vpop.f32.mrb[1].mxu0  ;;  %v484_v9 = vpop.f32.mrb[1].mxu1 }
  0xea   :  { %v737_v7 = vadd.f32 %v443_v5, %v441_v3  ;;  %v445_v8 = vpop.f32.mrb[2].mxu0  ;;  %v486_v11 = vpop.f32.mrb[2].mxu1 }
  0xeb   :  { %v446_v10 = vpop.f32.mrb[3].mxu0  ;;  %v487_v13 = vpop.f32.mrb[3].mxu1 }
  0xec   :  { %v738_v12 = vadd.f32 %v737_v7, %v482_v6 }
  0xee   :  { %v739_v14 = vadd.f32 %v738_v12, %v484_v9 }
  0xf8   :  { %v523_v15 = vpop.f32.mrb[4].mxu0  ;;  %v564_v18 = vpop.f32.mrb[4].mxu1 }
  0xf9   :  { %v740_v16 = vadd.f32 %v739_v14, %v523_v15  ;;  %v525_v17 = vpop.f32.mrb[5].mxu0  ;;  %v566_v20 = vpop.f32.mrb[5].mxu1 }
  0xfa   :  { %v527_v19 = vpop.f32.mrb[6].mxu0  ;;  %v568_v43 = vpop.f32.mrb[6].mxu1 }
  0xfb   :  { %v741_v21 = vadd.f32 %v740_v16, %v525_v17  ;;  %v528_v22 = vpop.f32.mrb[7].mxu0  ;;  %v569_v23 = vpop.f32.mrb[7].mxu1 }
  0xfd   :  { %v742_v24 = vadd.f32 %v741_v21, %v564_v18 }
  0xff   :  { %v743_v25 = vadd.f32 %v742_v24, %v566_v20 }
 0x108   :  { %v605_v26 = vpop.f32.mrb[8].mxu0  ;;  %v646_v29 = vpop.f32.mrb[8].mxu1 }
 0x109   :  { %v744_v27 = vadd.f32 %v743_v25, %v605_v26  ;;  %v607_v28 = vpop.f32.mrb[9].mxu0  ;;  %v648_v31 = vpop.f32.mrb[9].mxu1 }
 0x10a   :  { %v609_v30 = vpop.f32.mrb[10].mxu0  ;;  %v650_v34 = vpop.f32.mrb[10].mxu1 }
 0x10b   :  { %v745_v32 = vadd.f32 %v744_v27, %v607_v28  ;;  %v610_v33 = vpop.f32.mrb[11].mxu0  ;;  %v651_v35 = vpop.f32.mrb[11].mxu1 }
 0x10d   :  { %v746_v36 = vadd.f32 %v745_v32, %v646_v29 }
 0x10f   :  { %v747_v37 = vadd.f32 %v746_v36, %v648_v31 }
 0x118   :  { %v687_v38 = vpop.f32.mrb[12].mxu0  ;;  %v728_v41 = vpop.f32.mrb[12].mxu1 }
 0x119   :  { %v748_v39 = vadd.f32 %v747_v37, %v687_v38  ;;  %v689_v40 = vpop.f32.mrb[13].mxu0  ;;  %v730_v44 = vpop.f32.mrb[13].mxu1 }
 0x11a   :  { %v691_v42 = vpop.f32.mrb[14].mxu0  ;;  %v732_v47 = vpop.f32.mrb[14].mxu1 }
 0x11b   :  { %v749_v45 = vadd.f32 %v748_v39, %v689_v40  ;;  %v692_v46 = vpop.f32.mrb[15].mxu0  ;;  %v733_v48 = vpop.f32.mrb[15].mxu1 }
 0x11c   :  { %v827_v47 = vpop.permute.xlu1 %826 }
 0x11d   :  { %v750_v49 = vadd.f32 %v749_v45, %v728_v41 }
 0x11f   :  { %v751_v50 = vadd.f32 %v750_v49, %v730_v44 }
 0x121   :  { %752 = vadd.xlane.f32.xlu0 %v751_v50 }
 0x1ae   :  { %v753_v53 = vpop.xlane.xlu0 %752 }
 0x1af   :  { %v755_v54 = vmul.f32 0.00048828125, %v753_v53 }
 0x1b1   :  { %v756_v55 = vsub.f32 %v441_v3, %v755_v54  ;;  %v757_v56 = vsub.f32 %v443_v5, %v755_v54  ;;  %v758_v57 = vsub.f32 %v482_v6, %v755_v54  ;;  %v759_v60 = vsub.f32 %v484_v9, %v755_v54 }
 0x1b2   :  { %v760_v61 = vsub.f32 %v523_v15, %v755_v54  ;;  %v761_v0 = vsub.f32 %v525_v17, %v755_v54  ;;  %v762_v4 = vsub.f32 %v564_v18, %v755_v54  ;;  %v763_v10 = vsub.f32 %v566_v20, %v755_v54 }
 0x1b3   :  { %v772_v58 = vmul.f32 %v756_v55, %v756_v55  ;;  %v773_v59 = vmul.f32 %v757_v56, %v757_v56  ;;  %v774_v62 = vmul.f32 %v758_v57, %v758_v57  ;;  %v775_v1 = vmul.f32 %v759_v60, %v759_v60 }
 0x1b4   :  { %v776_v7 = vmul.f32 %v760_v61, %v760_v61  ;;  %v777_v11 = vmul.f32 %v761_v0, %v761_v0  ;;  %v764_v13 = vsub.f32 %v605_v26, %v755_v54  ;;  %v778_v14 = vmul.f32 %v762_v4, %v762_v4 }
 0x1b5   :  { %v788_v63 = vadd.f32 %v773_v59, %v772_v58  ;;  %v765_v5 = vsub.f32 %v607_v28, %v755_v54  ;;  %v779_v6 = vmul.f32 %v763_v10, %v763_v10  ;;  %v766_v19 = vsub.f32 %v646_v29, %v755_v54 }
 0x1b6   :  { %v780_v9 = vmul.f32 %v764_v13, %v764_v13  ;;  %v767_v21 = vsub.f32 %v648_v31, %v755_v54  ;;  %v768_v43 = vsub.f32 %v687_v38, %v755_v54  ;;  %v769_v24 = vsub.f32 %v689_v40, %v755_v54 }
 0x1b7   :  { %v789_v2 = vadd.f32 %v788_v63, %v774_v62  ;;  %v781_v22 = vmul.f32 %v765_v5, %v765_v5  ;;  %v782_v23 = vmul.f32 %v766_v19, %v766_v19  ;;  %v770_v27 = vsub.f32 %v728_v41, %v755_v54 }
 0x1b8   :  { %v783_v25 = vmul.f32 %v767_v21, %v767_v21  ;;  %v784_v30 = vmul.f32 %v768_v43, %v768_v43  ;;  %v771_v32 = vsub.f32 %v730_v44, %v755_v54  ;;  %v785_v33 = vmul.f32 %v769_v24, %v769_v24 }
 0x1b9   :  { %v790_v8 = vadd.f32 %v789_v2, %v775_v1  ;;  %v786_v34 = vmul.f32 %v770_v27, %v770_v27 }
 0x1ba   :  { %v787_v29 = vmul.f32 %v771_v32, %v771_v32 }
 0x1bb   :  { %v791_v12 = vadd.f32 %v790_v8, %v776_v7 }
 0x1bd   :  { %v792_v3 = vadd.f32 %v791_v12, %v777_v11  ;;  %v848_v11 = vpop.permute.xlu1 %847 }
 0x1bf   :  { %v793_v16 = vadd.f32 %v792_v3, %v778_v14 }
 0x1c1   :  { %v794_v15 = vadd.f32 %v793_v16, %v779_v6 }
 0x1c3   :  { %v795_v17 = vadd.f32 %v794_v15, %v780_v9 }
 0x1c5   :  { %v796_v18 = vadd.f32 %v795_v17, %v781_v22 }
 0x1c7   :  { %v797_v20 = vadd.f32 %v796_v18, %v782_v23 }
 0x1c9   :  { %v798_v26 = vadd.f32 %v797_v20, %v783_v25 }
 0x1cb   :  { %v799_v28 = vadd.f32 %v798_v26, %v784_v30 }
 0x1cd   :  { %v800_v35 = vadd.f32 %v799_v28, %v785_v33 }
 0x1cf   :  { %v801_v36 = vadd.f32 %v800_v35, %v786_v34 }
 0x1d1   :  { %v802_v37 = vadd.f32 %v801_v36, %v787_v29 }
 0x1d3   :  { %803 = vadd.xlane.f32.xlu0 %v802_v37 }
 0x260   :  { %v804_v31 = vpop.xlane.xlu0 %803 }
 0x261   :  { %v805_v39 = vmul.f32 0.00048828125, %v804_v31 }
 0x263   :  { %v806_v38 = vadd.f32 1e-05, %v805_v39 }
 0x265   :  { %1081 = vrsqrt.f32 %v806_v38 }
 0x26f   :  { %v1082_v42 = vpop.eup %1081 }
 0x270   :  { %v808_v40 = vmul.f32 %v1082_v42, %v756_v55  ;;  %v809_v45 = vmul.f32 %v1082_v42, %v757_v56  ;;  %v810_v46 = vmul.f32 %v1082_v42, %v758_v57  ;;  %v811_v41 = vmul.f32 %v1082_v42, %v759_v60 }
 0x271   :  { %v812_v48 = vmul.f32 %v1082_v42, %v760_v61  ;;  %v813_v44 = vmul.f32 %v1082_v42, %v761_v0  ;;  %v814_v49 = vmul.f32 %v1082_v42, %v762_v4  ;;  %v815_v50 = vmul.f32 %v1082_v42, %v763_v10 }
 0x272   :  { %v816_v51 = vmul.f32 %v1082_v42, %v764_v13  ;;  %v817_v52 = vmul.f32 %v1082_v42, %v765_v5  ;;  %v818_v53 = vmul.f32 %v1082_v42, %v766_v19  ;;  %v819_v54 = vmul.f32 %v1082_v42, %v767_v21 }
 0x273   :  { %v820_v58 = vmul.f32 %v1082_v42, %v768_v43  ;;  %v821_v59 = vmul.f32 %v1082_v42, %v769_v24  ;;  %v822_v62 = vmul.f32 %v1082_v42, %v770_v27  ;;  %v823_v63 = vmul.f32 %v1082_v42, %v771_v32 }
 0x274   :  { %v829_v1 = vmul.f32 %v827_v47, %v808_v40  ;;  %v830_v2 = vmul.f32 %v827_v47, %v809_v45  ;;  %v831_v7 = vmul.f32 %v827_v47, %v810_v46  ;;  %v832_v55 = vmul.f32 %v827_v47, %v811_v41 }
 0x275   :  { %v833_v56 = vmul.f32 %v827_v47, %v812_v48  ;;  %v834_v57 = vmul.f32 %v827_v47, %v813_v44  ;;  %v835_v60 = vmul.f32 %v827_v47, %v814_v49  ;;  %v836_v8 = vmul.f32 %v827_v47, %v815_v50 }
 0x276   :  { %v837_v61 = vmul.f32 %v827_v47, %v816_v51  ;;  %v838_v0 = vmul.f32 %v827_v47, %v817_v52  ;;  %v839_v4 = vmul.f32 %v827_v47, %v818_v53  ;;  %v840_v10 = vmul.f32 %v827_v47, %v819_v54 }
 0x277   :  { %v841_v12 = vmul.f32 %v827_v47, %v820_v58  ;;  %v842_v13 = vmul.f32 %v827_v47, %v821_v59  ;;  %v843_v14 = vmul.f32 %v827_v47, %v822_v62  ;;  %v844_v3 = vmul.f32 %v827_v47, %v823_v63 }
 0x278   :  { %v850_v5 = vadd.f32 %v848_v11, %v829_v1  ;;  %v851_v6 = vadd.f32 %v848_v11, %v830_v2  ;;  %v852_v16 = vadd.f32 %v848_v11, %v831_v7  ;;  %v853_v19 = vadd.f32 %v848_v11, %v832_v55 }
 0x279   :  { %v854_v9 = vadd.f32 %v848_v11, %v833_v56  ;;  %v855_v15 = vadd.f32 %v848_v11, %v834_v57  ;;  %v856_v21 = vadd.f32 %v848_v11, %v835_v60  ;;  %v857_v22 = vadd.f32 %v848_v11, %v836_v8 }
 0x27a   :  { %v858_v17 = vadd.f32 %v848_v11, %v837_v61  ;;  %v859_v43 = vadd.f32 %v848_v11, %v838_v0  ;;  %v860_v23 = vadd.f32 %v848_v11, %v839_v4  ;;  %v861_v18 = vadd.f32 %v848_v11, %v840_v10 }
 0x27b   :  { %v862_v24 = vadd.f32 %v848_v11, %v841_v12  ;;  %v863_v25 = vadd.f32 %v848_v11, %v842_v13  ;;  %v864_v20 = vadd.f32 %v848_v11, %v843_v14  ;;  %v865_v27 = vadd.f32 %v848_v11, %v844_v3 }
 0x27c   :  { %vm866_vm1 = vcmp.ge.f32.partialorder %v850_v5, 0.0  ;;  %vm867_vm2 = vcmp.ge.f32.partialorder %v851_v6, 0.0  ;;  %vm868_vm3 = vcmp.ge.f32.partialorder %v852_v16, 0.0  ;;  %vm869_vm4 = vcmp.ge.f32.partialorder %v853_v19, 0.0 }
 0x27d   :  { %vm870_vm5 = vcmp.ge.f32.partialorder %v854_v9, 0.0  ;;  %vm871_vm6 = vcmp.ge.f32.partialorder %v855_v15, 0.0  ;;  %vm872_vm7 = vcmp.ge.f32.partialorder %v856_v21, 0.0  ;;  %vm873_vm8 = vcmp.ge.f32.partialorder %v857_v22, 0.0 }
 0x27e   :  { %vm874_vm9 = vcmp.ge.f32.partialorder %v858_v17, 0.0  ;;  %vm875_vm10 = vcmp.ge.f32.partialorder %v859_v43, 0.0  ;;  %vm876_vm11 = vcmp.ge.f32.partialorder %v860_v23, 0.0  ;;  %vm877_vm12 = vcmp.ge.f32.partialorder %v861_v18, 0.0 }
 0x27f   :  { %vm878_vm13 = vcmp.ge.f32.partialorder %v862_v24, 0.0  ;;  %vm879_vm14 = vcmp.ge.f32.partialorder %v863_v25, 0.0  ;;  %vm880_vm15 = vcmp.ge.f32.partialorder %v864_v20, 0.0  ;;  %vm881_vm0 = vcmp.ge.f32.partialorder %v865_v27, 0.0 }
 0x280   :  { %v882_v30 = vmul.f32 0.2, %v850_v5  ;;  %v883_v26 = vmul.f32 0.2, %v851_v6  ;;  %v884_v32 = vmul.f32 0.2, %v852_v16 }
 0x281   :  { %v885_v33 = vmul.f32 0.2, %v853_v19  ;;  %v886_v28 = vmul.f32 0.2, %v854_v9  ;;  %v887_v34 = vmul.f32 0.2, %v855_v15 }
 0x282   :  { %v888_v35 = vmul.f32 0.2, %v856_v21  ;;  %v889_v29 = vmul.f32 0.2, %v857_v22  ;;  %v890_v36 = vmul.f32 0.2, %v858_v17  ;;  %v898_v37 = vsel %vm866_vm1, %v850_v5, %v882_v30 }
 0x283   :  { %v891_v31 = vmul.f32 0.2, %v859_v43  ;;  %v892_v39 = vmul.f32 0.2, %v860_v23  ;;  %v893_v38 = vmul.f32 0.2, %v861_v18  ;;  %v899_v42 = vsel %vm867_vm2, %v851_v6, %v883_v26 }
 0x284   :  { %v894_v40 = vmul.f32 0.2, %v862_v24  ;;  %v895_v45 = vmul.f32 0.2, %v863_v25  ;;  %v896_v46 = vmul.f32 0.2, %v864_v20  ;;  %v900_v41 = vsel %vm868_vm3, %v852_v16, %v884_v32 }
 0x285   :  { %v897_v47 = vmul.f32 0.2, %v865_v27  ;;  %v901_v48 = vsel %vm869_vm4, %v853_v19, %v885_v33  ;;  %v902_v44 = vsel %vm870_vm5, %v854_v9, %v886_v28  ;;  %v903_v49 = vsel %vm871_vm6, %v855_v15, %v887_v34 }
 0x286   :  { %v904_v50 = vsel %vm872_vm7, %v856_v21, %v888_v35  ;;  %v905_v51 = vsel %vm873_vm8, %v857_v22, %v889_v29  ;;  %v906_v52 = vsel %vm874_vm9, %v858_v17, %v890_v36  ;;  %v907_v53 = vsel %vm875_vm10, %v859_v43, %v891_v31 }
 0x287   :  { %v908_v54 = vsel %vm876_vm11, %v860_v23, %v892_v39  ;;  %v909_v58 = vsel %vm877_vm12, %v861_v18, %v893_v38  ;;  %v910_v59 = vsel %vm878_vm13, %v862_v24, %v894_v40  ;;  %v911_v62 = vsel %vm879_vm14, %v863_v25, %v895_v45 }
 0x288   :  { %v912_v63 = vsel %vm880_vm15, %v864_v20, %v896_v46  ;;  %v913_v1 = vsel %vm881_vm0, %v865_v27, %v897_v47  ;;  %v1070_v2 = vpack.c.bf16 %v899_v42, %v898_v37  ;;  %v1071_v7 = vpack.c.bf16 %v901_v48, %v900_v41 }
 0x289   :  { %v1072_v55 = vpack.c.bf16 %v903_v49, %v902_v44  ;;  %v1073_v56 = vpack.c.bf16 %v905_v51, %v904_v50  ;;  %v1074_v57 = vpack.c.bf16 %v907_v53, %v906_v52  ;;  %v1075_v60 = vpack.c.bf16 %v909_v58, %v908_v54 }
 0x28a   :  { %v1076_v8 = vpack.c.bf16 %v911_v62, %v910_v59  ;;  %v1077_v61 = vpack.c.bf16 %v913_v1, %v912_v63  ;;  %978 = vst [vmem:[%s1382_s4] sm:$0xff] %v1070_v2  ;;  %979 = vst [vmem:[%s1382_s4 + $0x8] sm:$0xff] %v1071_v7 }
 0x28b   :  { %980 = vst [vmem:[%s1382_s4 + $0x10] sm:$0xff] %v1072_v55  ;;  %981 = vst [vmem:[%s1382_s4 + $0x18] sm:$0xff] %v1073_v56 }
 0x28c   :  { %982 = vst [vmem:[%s1382_s4 + $0x20] sm:$0xff] %v1074_v57  ;;  %983 = vst [vmem:[%s1382_s4 + $0x28] sm:$0xff] %v1075_v60 }
 0x28d   :  { %984 = vst [vmem:[%s1382_s4 + $0x30] sm:$0xff] %v1076_v8  ;;  %985 = vst [vmem:[%s1382_s4 + $0x38] sm:$0xff] %v1077_v61 }

// kernel: wd_net128_forward.6
= control target key start
LH: loop header
LB: loop body
LE: loop exit
PB: predicated region body
PF: predicated region fallthrough
CT: control target
= control target key end

     0   :  { %v550_v1 = vmov 0   ;;  %s703_s1 = inlined_call_operand.vmem [shape: bf16[128,512], index: 1, kind: input, shape index: {}]   ;;  %s704_s0 = inlined_call_operand.vmem [shape: bf16[16,128], index: 0, kind: input, shape index: {}]   ;;  %s705_s2 = inlined_call_operand.vmem [shape: f32[16,1], index: 2, kind: input, shape index: {}]   ;;  %s706_s3 = inlined_call_operand.vmem [shape: f32[16,1], index: 3, kind: input, shape index: {}]   ;;  %s707_s4 = inlined_call_operand.vmem [shape: bf16[16,512], index: 4, kind: output, shape index: {}]  }
   0x1   :  { %v497_v0 = vld [vmem:[%s703_s1 + $0x4] ss:$16 sps:$4 sm:$0xff]   ;;  %250 = vmatprep.mubr.bf16.mxu0 %v550_v1  ;;  %293 = vmatprep.mubr.bf16.mxu1 %v550_v1  ;;  %v499_v2 = vld [vmem:[%s703_s1 + $0xc] ss:$16 sps:$4 sm:$0xff]   ;;  %v501_v3 = vld [vmem:[%s703_s1] ss:$16 sps:$4 sm:$0xff]  }
   0x2   :  { %496 = vset.pattern.permute.xlu1 %v550_v1  ;;  %495 = vset.pattern.permute.xlu0 %v550_v1  ;;  %v502_v4 = vld [vmem:[%s703_s1 + $0x8] ss:$16 sps:$4 sm:$0xff]   ;;  %v503_v5 = vld [vmem:[%s703_s1 + $0x24] ss:$16 sps:$4 sm:$0xff]   ;;  %v505_v6 = vld [vmem:[%s703_s1 + $0x2c] ss:$16 sps:$4 sm:$0xff]  }
   0x3   :  { %218 = vmatprep.subr.bf16.mxu0 %v497_v0  ;;  %261 = vmatprep.subr.bf16.mxu1 %v499_v2  ;;  %v507_v7 = vld [vmem:[%s703_s1 + $0x20] ss:$16 sps:$4 sm:$0xff]   ;;  %v508_v8 = vld [vmem:[%s703_s1 + $0x28] ss:$16 sps:$4 sm:$0xff]   ;;  %v509_v9 = vld [vmem:[%s703_s1 + $0x44] ss:$16 sps:$4 sm:$0xff]  }
   0x4   :  { %219 = vmatpush1.bf16.msra.mxu0 %v501_v3  ;;  %262 = vmatpush1.bf16.msra.mxu1 %v502_v4  ;;  %v511_v10 = vld [vmem:[%s703_s1 + $0x4c] ss:$16 sps:$4 sm:$0xff]   ;;  %v513_v11 = vld [vmem:[%s703_s1 + $0x40] ss:$16 sps:$4 sm:$0xff]   ;;  %v514_v12 = vld [vmem:[%s703_s1 + $0x48] ss:$16 sps:$4 sm:$0xff]  }
   0x5   :  { %220 = vmatprep.subr.bf16.mxu0 %v503_v5  ;;  %263 = vmatprep.subr.bf16.mxu1 %v505_v6  ;;  %v515_v13 = vld [vmem:[%s703_s1 + $0x64] ss:$16 sps:$4 sm:$0xff]   ;;  %v517_v14 = vld [vmem:[%s703_s1 + $0x6c] ss:$16 sps:$4 sm:$0xff]   ;;  %v519_v15 = vld [vmem:[%s703_s1 + $0x60] ss:$16 sps:$4 sm:$0xff]  }
   0x6   :  { %v520_v16 = vld [vmem:[%s703_s1 + $0x68] ss:$16 sps:$4 sm:$0xff]   ;;  %v521_v17 = vld [vmem:[%s703_s1 + $0x84] ss:$16 sps:$4 sm:$0xff]   ;;  %v523_v18 = vld [vmem:[%s703_s1 + $0x8c] ss:$16 sps:$4 sm:$0xff]  }
   0x7   :  { %v525_v19 = vld [vmem:[%s703_s1 + $0x80] ss:$16 sps:$4 sm:$0xff]   ;;  %v526_v20 = vld [vmem:[%s703_s1 + $0x88] ss:$16 sps:$4 sm:$0xff]   ;;  %v527_v21 = vld [vmem:[%s703_s1 + $0xa4] ss:$16 sps:$4 sm:$0xff]  }
   0x8   :  { %221 = vmatpush1.bf16.msra.mxu0 %v507_v7  ;;  %264 = vmatpush1.bf16.msra.mxu1 %v508_v8  ;;  %v529_v22 = vld [vmem:[%s703_s1 + $0xac] ss:$16 sps:$4 sm:$0xff]   ;;  %v531_v23 = vld [vmem:[%s703_s1 + $0xa0] ss:$16 sps:$4 sm:$0xff]   ;;  %v532_v24 = vld [vmem:[%s703_s1 + $0xa8] ss:$16 sps:$4 sm:$0xff]  }
   0x9   :  { %222 = vmatprep.subr.bf16.mxu0 %v509_v9  ;;  %265 = vmatprep.subr.bf16.mxu1 %v511_v10  ;;  %v533_v25 = vld [vmem:[%s703_s1 + $0xc4] ss:$16 sps:$4 sm:$0xff]   ;;  %v535_v26 = vld [vmem:[%s703_s1 + $0xcc] ss:$16 sps:$4 sm:$0xff]   ;;  %v537_v27 = vld [vmem:[%s703_s1 + $0xc0] ss:$16 sps:$4 sm:$0xff]  }
   0xa   :  { %v538_v28 = vld [vmem:[%s703_s1 + $0xc8] ss:$16 sps:$4 sm:$0xff]   ;;  %v539_v29 = vld [vmem:[%s703_s1 + $0xe4] ss:$16 sps:$4 sm:$0xff]   ;;  %v541_v30 = vld [vmem:[%s703_s1 + $0xec] ss:$16 sps:$4 sm:$0xff]  }
   0xb   :  { %v543_v31 = vld [vmem:[%s703_s1 + $0xe0] ss:$16 sps:$4 sm:$0xff]   ;;  %v544_v32 = vld [vmem:[%s703_s1 + $0xe8] ss:$16 sps:$4 sm:$0xff]  }
   0xc   :  { %223 = vmatpush1.bf16.msra.mxu0 %v513_v11  ;;  %266 = vmatpush1.bf16.msra.mxu1 %v514_v12  ;;  %v545_v33 = vld [vmem:[%s704_s0] sm:$0xff]   ;;  %v305_v34 = vld [vmem:[%s705_s2 + $0x8] sm:$0xff] }
   0xd   :  { %224 = vmatprep.subr.bf16.mxu0 %v515_v13  ;;  %267 = vmatprep.subr.bf16.mxu1 %v517_v14  ;;  %v306_v35 = vld [vmem:[%s706_s3] sm:$0xff]  ;;  %v307_v13 = vld [vmem:[%s706_s3 + $0x8] sm:$0xff] }
   0xe   :  { %368 = vperm.xlu1 %496, %v305_v34   ;;  %v304_v50 = vld [vmem:[%s705_s2] sm:$0xff] }
  0x10   :  { %225 = vmatpush1.bf16.msra.mxu0 %v519_v15  ;;  %268 = vmatpush1.bf16.msra.mxu1 %v520_v16 }
  0x11   :  { %226 = vmatprep.subr.bf16.mxu0 %v521_v17  ;;  %269 = vmatprep.subr.bf16.mxu1 %v523_v18 }
  0x12   :  { %381 = vperm.xlu1 %496, %v306_v35  }
  0x14   :  { %227 = vmatpush1.bf16.msra.mxu0 %v525_v19  ;;  %270 = vmatpush1.bf16.msra.mxu1 %v526_v20 }
  0x15   :  { %228 = vmatprep.subr.bf16.mxu0 %v527_v21  ;;  %271 = vmatprep.subr.bf16.mxu1 %v529_v22 }
  0x18   :  { %229 = vmatpush1.bf16.msra.mxu0 %v531_v23  ;;  %272 = vmatpush1.bf16.msra.mxu1 %v532_v24 }
  0x19   :  { %230 = vmatprep.subr.bf16.mxu0 %v533_v25  ;;  %273 = vmatprep.subr.bf16.mxu1 %v535_v26 }
  0x1c   :  { %231 = vmatpush1.bf16.msra.mxu0 %v537_v27  ;;  %274 = vmatpush1.bf16.msra.mxu1 %v538_v28 }
  0x1d   :  { %232 = vmatprep.subr.bf16.mxu0 %v539_v29  ;;  %275 = vmatprep.subr.bf16.mxu1 %v541_v30 }
  0x20   :  { %233 = vmatpush1.bf16.msra.mxu0 %v543_v31  ;;  %276 = vmatpush1.bf16.msra.mxu1 %v544_v32 }
  0x23   :  { %251 = vmatmul.mubr.bf16.vlgmr.msra.gmra.mrb[0].mxu0 %v545_v33  ;;  %294 = vmatmul.mubr.bf16.vlgmr.msra.gmra.mrb[0].mxu1 %v545_v33 }
  0x8d   :  { %v369_v14 = vpop.permute.xlu1 %368 }
  0x91   :  { %v382_v15 = vpop.permute.xlu1 %381 }
  0xf6   :  { %v252_v36 = vpop.f32.mrb[0].mxu0  ;;  %v295_v37 = vpop.f32.mrb[0].mxu1 }
  0xf7   :  { %v254_v38 = vpop.f32.mrb[1].mxu0  ;;  %v297_v39 = vpop.f32.mrb[1].mxu1 }
  0xf8   :  { %v308_v40 = vadd.f32 %v254_v38, %v252_v36  ;;  %v256_v41 = vpop.f32.mrb[2].mxu0  ;;  %v299_v42 = vpop.f32.mrb[2].mxu1 }
  0xf9   :  { %v258_v43 = vpop.f32.mrb[3].mxu0  ;;  %v301_v44 = vpop.f32.mrb[3].mxu1 }
  0xfa   :  { %v313_v45 = vadd.f32 %v258_v43, %v256_v41  ;;  %v309_v46 = vadd.f32 %v308_v40, %v295_v37 }
  0xfc   :  { %v314_v47 = vadd.f32 %v313_v45, %v299_v42  ;;  %v310_v48 = vadd.f32 %v309_v46, %v297_v39 }
  0xfe   :  { %v315_v49 = vadd.f32 %v314_v47, %v301_v44  ;;  %311 = vadd.xlane.f32.xlu0 %v310_v48 }
 0x102   :  { %316 = vadd.xlane.f32.xlu0 %v315_v49 }
 0x118   :  { %363 = vperm.xlu0 %495, %v304_v50  }
 0x18b   :  { %v312_v51 = vpop.xlane.xlu0 %311 }
 0x18c   :  { %v319_v52 = vmul.f32 0.001953125, %v312_v51 }
 0x18e   :  { %v321_v53 = vsub.f32 %v252_v36, %v319_v52  ;;  %v322_v54 = vsub.f32 %v254_v38, %v319_v52  ;;  %v323_v55 = vsub.f32 %v295_v37, %v319_v52  ;;  %v324_v57 = vsub.f32 %v297_v39, %v319_v52 }
 0x18f   :  { %v317_v56 = vpop.xlane.xlu0 %316 }
 0x190   :  { %v320_v58 = vmul.f32 0.001953125, %v317_v56  ;;  %v329_v59 = vmul.f32 %v321_v53, %v321_v53  ;;  %v330_v60 = vmul.f32 %v322_v54, %v322_v54  ;;  %v331_v61 = vmul.f32 %v323_v55, %v323_v55 }
 0x191   :  { %v332_v2 = vmul.f32 %v324_v57, %v324_v57 }
 0x192   :  { %v325_v62 = vsub.f32 %v256_v41, %v320_v58  ;;  %v326_v63 = vsub.f32 %v258_v43, %v320_v58  ;;  %v337_v0 = vadd.f32 %v330_v60, %v329_v59  ;;  %v327_v1 = vsub.f32 %v299_v42, %v320_v58 }
 0x193   :  { %v328_v4 = vsub.f32 %v301_v44, %v320_v58 }
 0x194   :  { %v338_v3 = vadd.f32 %v337_v0, %v331_v61  ;;  %v333_v5 = vmul.f32 %v325_v62, %v325_v62  ;;  %v334_v6 = vmul.f32 %v326_v63, %v326_v63  ;;  %v335_v8 = vmul.f32 %v327_v1, %v327_v1 }
 0x195   :  { %v336_v10 = vmul.f32 %v328_v4, %v328_v4 }
 0x196   :  { %v339_v7 = vadd.f32 %v338_v3, %v332_v2  ;;  %v342_v9 = vadd.f32 %v334_v6, %v333_v5 }
 0x197   :  { %v364_v23 = vpop.permute.xlu0 %363 }
 0x198   :  { %340 = vadd.xlane.f32.xlu1 %v339_v7  ;;  %v343_v11 = vadd.f32 %v342_v9, %v335_v8 }
 0x19a   :  { %v344_v12 = vadd.f32 %v343_v11, %v336_v10 }
 0x19c   :  { %345 = vadd.xlane.f32.xlu1 %v344_v12 }
 0x1ad   :  { %386 = vperm.xlu1 %496, %v307_v13  }
 0x225   :  { %v341_v16 = vpop.xlane.xlu1 %340 }
 0x226   :  { %v347_v17 = vmul.f32 0.001953125, %v341_v16 }
 0x228   :  { %v349_v18 = vadd.f32 1e-05, %v347_v17 }
 0x229   :  { %v346_v19 = vpop.xlane.xlu1 %345 }
 0x22a   :  { %546 = vrsqrt.f32 %v349_v18  ;;  %v348_v20 = vmul.f32 0.001953125, %v346_v19 }
 0x22c   :  { %v350_v21 = vadd.f32 1e-05, %v348_v20 }
 0x22d   :  { %v387_v45 = vpop.permute.xlu1 %386 }
 0x22e   :  { %548 = vrsqrt.f32 %v350_v21 }
 0x234   :  { %v547_v22 = vpop.eup %546 }
 0x235   :  { %v353_v24 = vmul.f32 %v547_v22, %v321_v53  ;;  %v354_v25 = vmul.f32 %v547_v22, %v322_v54  ;;  %v355_v26 = vmul.f32 %v547_v22, %v323_v55  ;;  %v356_v27 = vmul.f32 %v547_v22, %v324_v57 }
 0x237   :  { %v371_v28 = vmul.f32 %v364_v23, %v353_v24  ;;  %v372_v29 = vmul.f32 %v364_v23, %v354_v25  ;;  %v373_v30 = vmul.f32 %v364_v23, %v355_v26  ;;  %v374_v31 = vmul.f32 %v364_v23, %v356_v27 }
 0x238   :  { %v549_v32 = vpop.eup %548 }
 0x239   :  { %v357_v33 = vmul.f32 %v549_v32, %v325_v62  ;;  %v358_v34 = vmul.f32 %v549_v32, %v326_v63  ;;  %v359_v35 = vmul.f32 %v549_v32, %v327_v1  ;;  %v360_v36 = vmul.f32 %v549_v32, %v328_v4 }
 0x23a   :  { %v389_v37 = vadd.f32 %v382_v15, %v371_v28  ;;  %v390_v38 = vadd.f32 %v382_v15, %v372_v29  ;;  %v391_v39 = vadd.f32 %v382_v15, %v373_v30  ;;  %v392_v40 = vadd.f32 %v382_v15, %v374_v31 }
 0x23b   :  { %v375_v41 = vmul.f32 %v369_v14, %v357_v33  ;;  %v376_v42 = vmul.f32 %v369_v14, %v358_v34  ;;  %v377_v43 = vmul.f32 %v369_v14, %v359_v35  ;;  %v378_v44 = vmul.f32 %v369_v14, %v360_v36 }
 0x23c   :  { %vm397_vm0 = vcmp.ge.f32.partialorder %v389_v37, 0.0  ;;  %vm398_vm1 = vcmp.ge.f32.partialorder %v390_v38, 0.0  ;;  %vm399_vm2 = vcmp.ge.f32.partialorder %v391_v39, 0.0  ;;  %vm400_vm3 = vcmp.ge.f32.partialorder %v392_v40, 0.0 }
 0x23d   :  { %v393_v46 = vadd.f32 %v387_v45, %v375_v41  ;;  %v394_v47 = vadd.f32 %v387_v45, %v376_v42  ;;  %v395_v48 = vadd.f32 %v387_v45, %v377_v43  ;;  %v396_v49 = vadd.f32 %v387_v45, %v378_v44 }
 0x23e   :  { %v405_v50 = vmul.f32 0.2, %v389_v37  ;;  %v406_v51 = vmul.f32 0.2, %v390_v38  ;;  %v407_v52 = vmul.f32 0.2, %v391_v39 }
 0x23f   :  { %vm401_vm4 = vcmp.ge.f32.partialorder %v393_v46, 0.0  ;;  %vm402_vm5 = vcmp.ge.f32.partialorder %v394_v47, 0.0  ;;  %vm403_vm6 = vcmp.ge.f32.partialorder %v395_v48, 0.0  ;;  %vm404_vm7 = vcmp.ge.f32.partialorder %v396_v49, 0.0 }
 0x240   :  { %v409_v53 = vmul.f32 0.2, %v393_v46  ;;  %v410_v54 = vmul.f32 0.2, %v394_v47  ;;  %v411_v55 = vmul.f32 0.2, %v395_v48  ;;  %v413_v56 = vsel %vm397_vm0, %v389_v37, %v405_v50 }
 0x241   :  { %v412_v57 = vmul.f32 0.2, %v396_v49  ;;  %v408_v58 = vmul.f32 0.2, %v392_v40  ;;  %v414_v59 = vsel %vm398_vm1, %v390_v38, %v406_v51  ;;  %v415_v60 = vsel %vm399_vm2, %v391_v39, %v407_v52 }
 0x242   :  { %v417_v61 = vsel %vm401_vm4, %v393_v46, %v409_v53  ;;  %v418_v62 = vsel %vm402_vm5, %v394_v47, %v410_v54  ;;  %v419_v63 = vsel %vm403_vm6, %v395_v48, %v411_v55  ;;  %v490_v0 = vpack.c.bf16 %v414_v59, %v413_v56 }
 0x243   :  { %v420_v1 = vsel %vm404_vm7, %v396_v49, %v412_v57  ;;  %v492_v2 = vpack.c.bf16 %v418_v62, %v417_v61  ;;  %v416_v3 = vsel %vm400_vm3, %v392_v40, %v408_v58 }
 0x244   :  { %v493_v4 = vpack.c.bf16 %v420_v1, %v419_v63  ;;  %v491_v5 = vpack.c.bf16 %v416_v3, %v415_v60  ;;  %445 = vst [vmem:[%s707_s4] sm:$0xff] %v490_v0 }
 0x245   :  { %447 = vst [vmem:[%s707_s4 + $0x10] sm:$0xff] %v492_v2 }
 0x246   :  { %448 = vst [vmem:[%s707_s4 + $0x18] sm:$0xff] %v493_v4  ;;  %446 = vst [vmem:[%s707_s4 + $0x8] sm:$0xff] %v491_v5 }

// kernel: wd_net128_forward.7
= control target key start
LH: loop header
LB: loop body
LE: loop exit
PB: predicated region body
PF: predicated region fallthrough
CT: control target
= control target key end

     0   :  { %s13531_s0 = inlined_call_operand.vmem [shape: bf16[256,128], index: 0, kind: input, shape index: {}]   ;;  %s13532_s1 = inlined_call_operand.vmem [shape: bf16[32,256], index: 1, kind: input, shape index: {}]   ;;  %s13533_s2 = inlined_call_operand.vmem [shape: f32[32,1], index: 2, kind: input, shape index: {}]   ;;  %s13534_s3 = inlined_call_operand.vmem [shape: f32[32,1], index: 3, kind: input, shape index: {}]   ;;  %s13535_s4 = inlined_call_operand.vmem [shape: bf16[16,128,32], index: 4, kind: input, shape index: {}]   ;;  %s13536_s5 = inlined_call_operand.vmem [shape: bf16[16,64,32], index: 5, kind: input, shape index: {}]   ;;  %s13537_s6 = inlined_call_operand.vmem [shape: f32[64,1], index: 6, kind: input, shape index: {}]   ;;  %s13538_s7 = inlined_call_operand.vmem [shape: f32[64,1], index: 7, kind: input, shape index: {}]   ;;  %s13539_s8 = inlined_call_operand.vmem [shape: bf16[9,32,32], index: 8, kind: input, shape index: {}]   ;;  %s13540_s9 = inlined_call_operand.vmem [shape: bf16[9,32,64], index: 9, kind: input, shape index: {}]   ;;  %s13541_s10 = inlined_call_operand.vmem [shape: f32[32,1], index: 10, kind: input, shape index: {}]   ;;  %s13542_s11 = inlined_call_operand.vmem [shape: f32[32,1], index: 11, kind: input, shape index: {}]   ;;  %s13543_s12 = inlined_call_operand.vmem [shape: bf16[8,32], index: 12, kind: input, shape index: {}]   ;;  %s13544_s13 = inlined_call_operand.vmem [shape: bf16[9,32,8], index: 13, kind: input, shape index: {}]   ;;  %s13545_s14 = inlined_call_operand.vmem [shape: bf16[9,32,32], index: 14, kind: input, shape index: {}]   ;;  %s13546_s15 = inlined_call_operand.vmem [shape: f32[32,1], index: 15, kind: input, shape index: {}]   ;;  %s13547_s16 = inlined_call_operand.vmem [shape: f32[32,1], index: 16, kind: input, shape index: {}]   ;;  %s13548_s17 = inlined_call_operand.vmem [shape: f32[32,32], index: 17, kind: input, shape index: {}]   ;;  %s13549_s18 = inlined_call_operand.<no memory space> [shape: f32[1,1], index: 18, kind: input, shape index: {}]   ;;  %s13550_s19 = inlined_call_operand.vmem [shape: f32[32,32], index: 19, kind: input, shape index: {}]   ;;  %s13551_s21 = inlined_call_operand.vmem [shape: f32[32,2], index: 21, kind: input, shape index: {}]   ;;  %s13552_s22 = inlined_call_operand.hbm [shape: f32[1,2], index: 22, kind: output, shape index: {0}]   ;;  %s13553_s23 = inlined_call_operand.hbm [shape: f32[1,2], index: 23, kind: output, shape index: {1}]   ;;  %s13554_s20 = inlined_call_operand.<no memory space> [shape: f32[1,1], index: 20, kind: input, shape index: {}]  }
   0x1   :  { %13563 = sst [smem:[#allocation10_spill]] %s13531_s0  ;;  %v29_v0 = vstv %s13549_s18  ;;  %v31_v1 = vstv %s13554_s20 }
   0x2   :  { %13564 = sst [smem:[#allocation11_spill]] %s13532_s1  ;;  %30 = vst [vmem:[#allocation2] sm:$0x1] %v29_v0  ;;  %32 = vst [vmem:[#allocation3] sm:$0x1] %v31_v1 }
   0x3   :  { %13565 = sst [smem:[#allocation12_spill]] %s13533_s2 }
   0x4   :  { %13566 = sst [smem:[#allocation13_spill]] %s13534_s3 }
   0x5   :  { %13567 = sst [smem:[#allocation14_spill]] %s13535_s4 }
   0x6   :  { %13568 = sst [smem:[#allocation15_spill]] %s13536_s5 }
   0x7   :  { %13569 = sst [smem:[#allocation16_spill]] %s13537_s6 }
   0x8   :  { %13570 = sst [smem:[#allocation17_spill]] %s13538_s7 }
   0x9   :  { %33 = vsyncpa [#allocation5], 0  ;;  %s13571_s26 = sld [smem:[#allocation10_spill]]  ;;  %s13572_s20 = sld [smem:[#allocation11_spill]] }
   0xf   :  { %v11173_v2 = vld [vmem:[%s13571_s26 + $0x40] sm:$0xff]   ;;  %v11175_v4 = vld [vmem:[%s13571_s26 + $0x48] sm:$0xff]   ;;  %v11177_v6 = vld [vmem:[%s13571_s26 + $0x50] sm:$0xff]  }
  0x10   :  { %v11174_v3 = vld [vmem:[%s13571_s26] sm:$0xff]   ;;  %9376 = vmatprep.subr.bf16.mxu0 %v11173_v2  ;;  %v11176_v5 = vld [vmem:[%s13571_s26 + $0x8] sm:$0xff]   ;;  %v11178_v7 = vld [vmem:[%s13571_s26 + $0x10] sm:$0xff]  }
  0x11   :  { %9377 = vmatpush3.bf16.msra.mxu0 %v11174_v3  ;;  %v11179_v8 = vld [vmem:[%s13571_s26 + $0x58] sm:$0xff]   ;;  %v11181_v10 = vld [vmem:[%s13571_s26 + $0x60] sm:$0xff]   ;;  %v11183_v12 = vld [vmem:[%s13571_s26 + $0x68] sm:$0xff]  }
  0x12   :  { %9378 = vmatprep.subr.bf16.mxu0 %v11175_v4  ;;  %v11180_v9 = vld [vmem:[%s13571_s26 + $0x18] sm:$0xff]   ;;  %v11182_v11 = vld [vmem:[%s13571_s26 + $0x20] sm:$0xff]   ;;  %v11184_v14 = vld [vmem:[%s13571_s26 + $0x28] sm:$0xff]  }
  0x13   :  { %v11191_v13 = vld [vmem:[%s13572_s20 + $0x4] ss:$8 sps:$4 sm:$0xff]   ;;  %v11185_v15 = vld [vmem:[%s13571_s26 + $0x70] sm:$0xff]   ;;  %v11187_v17 = vld [vmem:[%s13571_s26 + $0x78] sm:$0xff]  }
  0x14   :  { %264 = vmatprep.mubr.bf16.mxu0 %v11191_v13  ;;  %v11186_v16 = vld [vmem:[%s13571_s26 + $0x30] sm:$0xff]   ;;  %v11188_v18 = vld [vmem:[%s13571_s26 + $0x38] sm:$0xff]   ;;  %v11189_v19 = vld [vmem:[%s13572_s20] ss:$8 sps:$4 sm:$0xff]  }
  0x15   :  { %9379 = vmatpush3.bf16.msra.mxu0 %v11176_v5  ;;  %v11192_v20 = vld [vmem:[%s13572_s20 + $0x14] ss:$8 sps:$4 sm:$0xff]   ;;  %v11194_v21 = vld [vmem:[%s13572_s20 + $0x10] ss:$8 sps:$4 sm:$0xff]  }
  0x16   :  { %9380 = vmatprep.subr.bf16.mxu0 %v11177_v6 }
  0x19   :  { %9381 = vmatpush3.bf16.msra.mxu0 %v11178_v7 }
  0x1a   :  { %9382 = vmatprep.subr.bf16.mxu0 %v11179_v8 }
  0x1d   :  { %9383 = vmatpush3.bf16.msra.mxu0 %v11180_v9 }
  0x1e   :  { %9384 = vmatprep.subr.bf16.mxu0 %v11181_v10 }
  0x21   :  { %9385 = vmatpush3.bf16.msra.mxu0 %v11182_v11 }
  0x22   :  { %9386 = vmatprep.subr.bf16.mxu0 %v11183_v12 }
  0x25   :  { %9387 = vmatpush3.bf16.msra.mxu0 %v11184_v14 }
  0x26   :  { %9388 = vmatprep.subr.bf16.mxu0 %v11185_v15 }
  0x29   :  { %9389 = vmatpush3.bf16.msra.mxu0 %v11186_v16 }
  0x2a   :  { %9390 = vmatprep.subr.bf16.mxu0 %v11187_v17 }
  0x2d   :  { %9391 = vmatpush3.bf16.msra.mxu0 %v11188_v18 }
  0x30   :  { %265 = vmatmul.mubr.bf16.vlgmr.msra.gmra.mrb[0].mxu0 %v11189_v19 }
  0x31   :  { %272 = vmatprep.mubr.bf16.mxu0 %v11192_v20 }
  0x38   :  { %273 = vmatmul.mubr.bf16.gmra.mrb[4].mxu0 %v11194_v21 }
  0x39   :  { %34 = vsyncpa [#allocation7], 0  ;;  %v11563_v34 = vmov 0   ;;  %s13573_s3 = sld [smem:[#allocation12_spill]]  ;;  %s13574_s6 = sld [smem:[#allocation13_spill]]  ;;  %vm664_vm4 = vcmask 261120  }
  0x3a   :  { %11172 = vset.pattern.permute.xlu1 %v11563_v34  ;;  %11171 = vset.pattern.permute.xlu0 %v11563_v34  ;;  %s13575_s18 = sld [smem:[#allocation16_spill]]  ;;  %s13576_s24 = sld [smem:[#allocation17_spill]]  ;;  %vm4506_vm13 = vcmask 523264   ;;  %vm11565_vm14 = vmmov 0   ;;  %vm5972_vm15 = vcmask 64512  }
  0x3b   :  { %s13577_s1 = sld [smem:[#allocation14_spill]]  ;;  %s13578_s30 = sld [smem:[#allocation15_spill]] }
  0x3f   :  { %v282_v47 = vld [vmem:[%s13573_s3 + $0x8] sm:$0xff]  ;;  %v283_v48 = vld [vmem:[%s13573_s3 + $0x10] sm:$0xff]  ;;  %v284_v49 = vld [vmem:[%s13573_s3 + $0x18] sm:$0xff] }
  0x40   :  { %v281_v50 = vld [vmem:[%s13573_s3] sm:$0xff]  ;;  %v286_v53 = vld [vmem:[%s13574_s6 + $0x8] sm:$0xff]  ;;  %v4062_v54 = vld [vmem:[%s13575_s18 + $0x18] sm:$0xff] }
  0x41   :  { %v285_v51 = vld [vmem:[%s13574_s6] sm:$0xff]  ;;  %v287_v55 = vld [vmem:[%s13574_s6 + $0x10] sm:$0xff]  ;;  %v4068_v56 = vld [vmem:[%s13576_s24 + $0x8] sm:$0xff] }
  0x42   :  { %v4059_v52 = vld [vmem:[%s13575_s18] sm:$0xff]  ;;  %v11197_v59 = vld [vmem:[%s13577_s1 + $0x48] sm:$0xff]   ;;  %v11199_v1 = vld [vmem:[%s13577_s1 + $0x50] sm:$0xff]  }
  0x43   :  { %v11195_v57 = vld [vmem:[%s13577_s1 + $0x40] sm:$0xff]   ;;  %v11198_v60 = vld [vmem:[%s13577_s1 + $0x8] sm:$0xff]   ;;  %v288_v2 = vld [vmem:[%s13574_s6 + $0x18] sm:$0xff] }
  0x44   :  { %v11196_v58 = vld [vmem:[%s13577_s1] sm:$0xff]   ;;  %9924 = vmatprep.subr.bf16.mxu0 %v11195_v57  ;;  %v11200_v3 = vld [vmem:[%s13577_s1 + $0x10] sm:$0xff]   ;;  %v11201_v4 = vld [vmem:[%s13577_s1 + $0x58] sm:$0xff]  }
  0x45   :  { %9904 = vmatprep.subr.bf16.mxu1 %v11196_v58  ;;  %9925 = vmatpush3.bf16.msra.mxu0 %v11195_v57  ;;  %v4060_v5 = vld [vmem:[%s13575_s18 + $0x8] sm:$0xff]  ;;  %v11202_v6 = vld [vmem:[%s13577_s1 + $0x18] sm:$0xff]   ;;  %v11203_v7 = vld [vmem:[%s13577_s1 + $0x60] sm:$0xff]  }
  0x46   :  { %9905 = vmatpush3.bf16.msra.mxu1 %v11196_v58  ;;  %9926 = vmatprep.subr.bf16.mxu0 %v11197_v59  ;;  %v4061_v8 = vld [vmem:[%s13575_s18 + $0x10] sm:$0xff]  ;;  %v11204_v9 = vld [vmem:[%s13577_s1 + $0x20] sm:$0xff]   ;;  %v11205_v10 = vld [vmem:[%s13577_s1 + $0x68] sm:$0xff]  }
  0x47   :  { %9906 = vmatprep.subr.bf16.mxu1 %v11198_v60  ;;  %v4067_v11 = vld [vmem:[%s13576_s24] sm:$0xff]  ;;  %v11206_v12 = vld [vmem:[%s13577_s1 + $0x28] sm:$0xff]   ;;  %v11207_v13 = vld [vmem:[%s13577_s1 + $0x70] sm:$0xff]  }
  0x48   :  { %v4069_v14 = vld [vmem:[%s13576_s24 + $0x10] sm:$0xff]  ;;  %v11209_v16 = vld [vmem:[%s13577_s1 + $0x78] sm:$0xff]   ;;  %v11211_v18 = vld [vmem:[%s13577_s1 + $0xc0] sm:$0xff]  }
  0x49   :  { %9927 = vmatpush3.bf16.msra.mxu0 %v11197_v59  ;;  %v11208_v15 = vld [vmem:[%s13577_s1 + $0x30] sm:$0xff]   ;;  %v11210_v17 = vld [vmem:[%s13577_s1 + $0x38] sm:$0xff]  }
  0x4a   :  { %9907 = vmatpush3.bf16.msra.mxu1 %v11198_v60  ;;  %9928 = vmatprep.subr.bf16.mxu0 %v11199_v1 }
  0x4b   :  { %9908 = vmatprep.subr.bf16.mxu1 %v11200_v3 }
  0x4d   :  { %9929 = vmatpush3.bf16.msra.mxu0 %v11199_v1 }
  0x4e   :  { %9909 = vmatpush3.bf16.msra.mxu1 %v11200_v3  ;;  %9930 = vmatprep.subr.bf16.mxu0 %v11201_v4  ;;  %v11214_v3 = vld [vmem:[%s13577_s1 + $0xd8] sm:$0xff]  }
  0x4f   :  { %9910 = vmatprep.subr.bf16.mxu1 %v11202_v6 }
  0x51   :  { %9931 = vmatpush3.bf16.msra.mxu0 %v11201_v4  ;;  %v11215_v4 = vld [vmem:[%s13577_s1 + $0xe0] sm:$0xff]  }
  0x52   :  { %9911 = vmatpush3.bf16.msra.mxu1 %v11202_v6  ;;  %9932 = vmatprep.subr.bf16.mxu0 %v11203_v7  ;;  %v11217_v6 = vld [vmem:[%s13577_s1 + $0xf0] sm:$0xff]  }
  0x53   :  { %9912 = vmatprep.subr.bf16.mxu1 %v11204_v9 }
  0x55   :  { %9933 = vmatpush3.bf16.msra.mxu0 %v11203_v7  ;;  %v11218_v7 = vld [vmem:[%s13577_s1 + $0xf8] sm:$0xff]  }
  0x56   :  { %9913 = vmatpush3.bf16.msra.mxu1 %v11204_v9  ;;  %9934 = vmatprep.subr.bf16.mxu0 %v11205_v10  ;;  %v11220_v9 = vld [vmem:[%s13577_s1 + $0x108] sm:$0xff]  }
  0x57   :  { %9914 = vmatprep.subr.bf16.mxu1 %v11206_v12 }
  0x59   :  { %9935 = vmatpush3.bf16.msra.mxu0 %v11205_v10  ;;  %v11221_v10 = vld [vmem:[%s13577_s1 + $0x110] sm:$0xff]  }
  0x5a   :  { %9915 = vmatpush3.bf16.msra.mxu1 %v11206_v12  ;;  %9936 = vmatprep.subr.bf16.mxu0 %v11207_v13  ;;  %v11223_v12 = vld [vmem:[%s13577_s1 + $0x120] sm:$0xff]  }
  0x5b   :  { %9916 = vmatprep.subr.bf16.mxu1 %v11208_v15 }
  0x5d   :  { %9937 = vmatpush3.bf16.msra.mxu0 %v11207_v13  ;;  %v11224_v13 = vld [vmem:[%s13577_s1 + $0x128] sm:$0xff]  }
  0x5e   :  { %9917 = vmatpush3.bf16.msra.mxu1 %v11208_v15  ;;  %9938 = vmatprep.subr.bf16.mxu0 %v11209_v16  ;;  %v11226_v15 = vld [vmem:[%s13577_s1 + $0x138] sm:$0xff]  }
  0x5f   :  { %9918 = vmatprep.subr.bf16.mxu1 %v11210_v17 }
  0x61   :  { %9939 = vmatpush3.bf16.msra.mxu0 %v11209_v16  ;;  %v11227_v16 = vld [vmem:[%s13577_s1 + $0x140] sm:$0xff]  }
  0x62   :  { %9919 = vmatpush3.bf16.msra.mxu1 %v11210_v17  ;;  %10000 = vmatprep.subr.bf16.mxu0 %v11211_v18  ;;  %v11228_v17 = vld [vmem:[%s13577_s1 + $0x148] sm:$0xff]  }
 0x103   :  { %v9392_v22 = vpop.f32.mrb[0].mxu0 }
 0x104   :  { %v9393_v23 = vpop.f32.mrb[1].mxu0 }
 0x105   :  { %v9394_v24 = vadd.f32 %v9393_v23, %v9392_v22  ;;  %v9395_v25 = vpop.f32.mrb[2].mxu0 }
 0x106   :  { %v9396_v26 = vpop.f32.mrb[3].mxu0 }
 0x107   :  { %v9397_v27 = vadd.f32 %v9396_v26, %v9395_v25  ;;  %289 = vadd.xlane.f32.xlu0 %v9394_v24 }
 0x10b   :  { %v9398_v28 = vpop.f32.mrb[4].mxu0  ;;  %291 = vadd.xlane.f32.xlu0 %v9397_v27 }
 0x10c   :  { %v9399_v29 = vpop.f32.mrb[5].mxu0 }
 0x10d   :  { %v9400_v30 = vadd.f32 %v9399_v29, %v9398_v28  ;;  %v9401_v31 = vpop.f32.mrb[6].mxu0 }
 0x10e   :  { %v9402_v32 = vpop.f32.mrb[7].mxu0 }
 0x10f   :  { %293 = vadd.xlane.f32.xlu1 %v9400_v30  ;;  %v9403_v33 = vadd.f32 %v9402_v32, %v9401_v31 }
 0x113   :  { %295 = vadd.xlane.f32.xlu1 %v9403_v33 }
 0x194   :  { %v290_v35 = vpop.xlane.xlu0 %289 }
 0x195   :  { %v298_v36 = vmul.f32 0.0078125, %v290_v35 }
 0x197   :  { %v11755_v37 = vsub.f32 %v9394_v24, %v298_v36 }
 0x198   :  { %v292_v38 = vpop.xlane.xlu0 %291 }
 0x199   :  { %v299_v39 = vmul.f32 0.0078125, %v292_v38  ;;  %v306_v40 = vmul.f32 %v11755_v37, %v11755_v37 }
 0x19b   :  { %v11759_v41 = vsub.f32 %v9397_v27, %v299_v39  ;;  %310 = vadd.xlane.f32.xlu0 %v306_v40 }
 0x19c   :  { %v294_v42 = vpop.xlane.xlu1 %293 }
 0x19d   :  { %v300_v43 = vmul.f32 0.0078125, %v294_v42  ;;  %v307_v44 = vmul.f32 %v11759_v41, %v11759_v41 }
 0x19f   :  { %v11763_v45 = vsub.f32 %v9400_v30, %v300_v43  ;;  %312 = vadd.xlane.f32.xlu1 %v307_v44 }
 0x1a0   :  { %v296_v61 = vpop.xlane.xlu1 %295 }
 0x1a1   :  { %v308_v46 = vmul.f32 %v11763_v45, %v11763_v45  ;;  %v301_v62 = vmul.f32 0.0078125, %v296_v61 }
 0x1a3   :  { %314 = vadd.xlane.f32.xlu0 %v308_v46  ;;  %v11809_v63 = vsub.f32 %v9403_v33, %v301_v62 }
 0x1a5   :  { %v309_v0 = vmul.f32 %v11809_v63, %v11809_v63 }
 0x1b0   :  { %341 = vperm.xlu1 %11172, %v282_v47  }
 0x1b4   :  { %346 = vperm.xlu1 %11172, %v283_v48  }
 0x1b8   :  { %351 = vperm.xlu1 %11172, %v284_v49  }
 0x1b9   :  { %336 = vperm.xlu0 %11171, %v281_v50  }
 0x1bc   :  { %360 = vperm.xlu1 %11172, %v285_v51  }
 0x1bd   :  { %4182 = vperm.xlu0 %11171, %v4059_v52  }
 0x1c0   :  { %365 = vperm.xlu1 %11172, %v286_v53  }
 0x1c1   :  { %4197 = vperm.xlu0 %11171, %v4062_v54  }
 0x1c4   :  { %370 = vperm.xlu1 %11172, %v287_v55  }
 0x1c5   :  { %4235 = vperm.xlu0 %11171, %v4068_v56  }
 0x1e8   :  { %316 = vadd.xlane.f32.xlu1 %v309_v0 }
 0x1f9   :  { %375 = vperm.xlu1 %11172, %v288_v2  }
 0x1fd   :  { %4187 = vperm.xlu1 %11172, %v4060_v5   ;;  %v11216_v5 = vld [vmem:[%s13577_s1 + $0xe8] sm:$0xff]  }
 0x201   :  { %4192 = vperm.xlu1 %11172, %v4061_v8   ;;  %v11219_v8 = vld [vmem:[%s13577_s1 + $0x100] sm:$0xff]  }
 0x205   :  { %4230 = vperm.xlu1 %11172, %v4067_v11   ;;  %v11222_v11 = vld [vmem:[%s13577_s1 + $0x118] sm:$0xff]  }
 0x209   :  { %4240 = vperm.xlu1 %11172, %v4069_v14   ;;  %v11225_v14 = vld [vmem:[%s13577_s1 + $0x130] sm:$0xff]  }
 0x228   :  { %v311_v19 = vpop.xlane.xlu0 %310 }
 0x229   :  { %v318_v20 = vmul.f32 0.0078125, %v311_v19  ;;  %v11230_v19 = vld [vmem:[%s13577_s1 + $0x158] sm:$0xff]  }
 0x22b   :  { %v322_v21 = vadd.f32 1e-05, %v318_v20  ;;  %v11231_v20 = vld [vmem:[%s13577_s1 + $0x160] sm:$0xff]  }
 0x22c   :  { %v313_v22 = vpop.xlane.xlu1 %312 }
 0x22d   :  { %11459 = vrsqrt.f32 %v322_v21  ;;  %v319_v23 = vmul.f32 0.0078125, %v313_v22  ;;  %v11232_v21 = vld [vmem:[%s13577_s1 + $0x168] sm:$0xff]   ;;  %v11233_v22 = vld [vmem:[%s13577_s1 + $0x170] sm:$0xff]  }
 0x22f   :  { %v323_v24 = vadd.f32 1e-05, %v319_v23  ;;  %v11234_v23 = vld [vmem:[%s13577_s1 + $0x178] sm:$0xff]  }
 0x230   :  { %v342_v25 = vpop.permute.xlu1 %341  ;;  %v315_v26 = vpop.xlane.xlu0 %314 }
 0x231   :  { %11461 = vrsqrt.f32 %v323_v24  ;;  %v11235_v24 = vld [vmem:[%s13577_s1 + $0x1c0] sm:$0xff]  }
 0x234   :  { %v347_v27 = vpop.permute.xlu1 %346 }
 0x237   :  { %v11460_v28 = vpop.eup %11459 }
 0x238   :  { %v352_v29 = vpop.permute.xlu1 %351  ;;  %v330_v30 = vmul.f32 %v11460_v28, %v11755_v37  ;;  %v337_v31 = vpop.permute.xlu0 %336  ;;  %v320_v37 = vmul.f32 0.0078125, %v315_v26  ;;  %v11268_v26 = vld [vmem:[%s13578_s30 + $0x20] sm:$0xff]   ;;  %v11238_v28 = vld [vmem:[%s13577_s1 + $0x1d8] sm:$0xff]  }
 0x23a   :  { %v354_v32 = vmul.f32 %v337_v31, %v330_v30  ;;  %v324_v48 = vadd.f32 1e-05, %v320_v37  ;;  %v11240_v30 = vld [vmem:[%s13577_s1 + $0x1e8] sm:$0xff]   ;;  %v11241_v31 = vld [vmem:[%s13577_s1 + $0x1f0] sm:$0xff]   ;;  %v11254_v37 = vld [vmem:[%s13577_s1 + $0x298] sm:$0xff]  }
 0x23b   :  { %v11462_v33 = vpop.eup %11461 }
 0x23c   :  { %v331_v34 = vmul.f32 %v11462_v33, %v11759_v41  ;;  %v361_v35 = vpop.permute.xlu1 %360  ;;  %11463 = vrsqrt.f32 %v324_v48  ;;  %v11243_v33 = vld [vmem:[%s13577_s1 + $0x200] sm:$0xff]  }
 0x23d   :  { %v378_v36 = vadd.f32 %v361_v35, %v354_v32  ;;  %v11242_v32 = vld [vmem:[%s13577_s1 + $0x1f8] sm:$0xff]   ;;  %v11245_v35 = vld [vmem:[%s13577_s1 + $0x210] sm:$0xff]   ;;  %v11255_v48 = vld [vmem:[%s13577_s1 + $0x2a0] sm:$0xff]  }
 0x23e   :  { %v355_v38 = vmul.f32 %v342_v25, %v331_v34  ;;  %v11236_v25 = vld [vmem:[%s13577_s1 + $0x1c8] sm:$0xff]  }
 0x23f   :  { %v386_v40 = vmul.f32 0.2, %v378_v36  ;;  %vm382_vm0 = vcmp.ge.f32.partialorder %v378_v36, 0.0  ;;  %v11244_v34 = vld [vmem:[%s13577_s1 + $0x208] sm:$0xff]  }
 0x240   :  { %v366_v39 = vpop.permute.xlu1 %365 }
 0x241   :  { %v379_v42 = vadd.f32 %v366_v39, %v355_v38  ;;  %v390_v44 = vsel %vm382_vm0, %v378_v36, %v386_v40  ;;  %v11246_v36 = vld [vmem:[%s13577_s1 + $0x218] sm:$0xff]   ;;  %v11247_v38 = vld [vmem:[%s13577_s1 + $0x220] sm:$0xff]   ;;  %v11248_v39 = vld [vmem:[%s13577_s1 + $0x228] sm:$0xff]   ;;  %vm5979_vm0 = vcmask 1043456  }
 0x242   :  { %v11249_v40 = vld [vmem:[%s13577_s1 + $0x230] sm:$0xff]  }
 0x243   :  { %vm383_vm1 = vcmp.ge.f32.partialorder %v379_v42, 0.0  ;;  %v387_v43 = vmul.f32 0.2, %v379_v42 }
 0x244   :  { %v371_v41 = vpop.permute.xlu1 %370 }
 0x245   :  { %v391_v46 = vsel %vm383_vm1, %v379_v42, %v387_v43  ;;  %v11250_v42 = vld [vmem:[%s13577_s1 + $0x238] sm:$0xff]   ;;  %v11251_v43 = vld [vmem:[%s13577_s1 + $0x280] sm:$0xff]  }
 0x246   :  { %v11869_v47 = vpack.c.bf16 %v391_v46, %v390_v44  ;;  %v11464_v52 = vpop.eup %11463  ;;  %v11252_v44 = vld [vmem:[%s13577_s1 + $0x288] sm:$0xff]   ;;  %v11253_v46 = vld [vmem:[%s13577_s1 + $0x290] sm:$0xff]  }
 0x247   :  { %v332_v53 = vmul.f32 %v11464_v52, %v11763_v45  ;;  %v11212_v45 = vld [vmem:[%s13577_s1 + $0xc8] sm:$0xff]  }
 0x248   :  { %9920 = vmatprep.mubr.bf16.mxu1 %v11869_v47  ;;  %9940 = vmatprep.mubr.bf16.mxu0 %v11869_v47  ;;  %v11260_v52 = vld [vmem:[%s13577_s1 + $0x2c8] sm:$0xff]  }
 0x249   :  { %v356_v54 = vmul.f32 %v347_v27, %v332_v53  ;;  %v11237_v27 = vld [vmem:[%s13577_s1 + $0x1d0] sm:$0xff]  }
 0x24a   :  { %v11261_v53 = vld [vmem:[%s13577_s1 + $0x2d0] sm:$0xff]  }
 0x24b   :  { %v380_v56 = vadd.f32 %v371_v41, %v356_v54  ;;  %v11256_v41 = vld [vmem:[%s13577_s1 + $0x2a8] sm:$0xff]   ;;  %v11262_v54 = vld [vmem:[%s13577_s1 + $0x2d8] sm:$0xff]  }
 0x24d   :  { %v388_v60 = vmul.f32 0.2, %v380_v56  ;;  %vm384_vm2 = vcmp.ge.f32.partialorder %v380_v56, 0.0 }
 0x24f   :  { %v392_v0 = vsel %vm384_vm2, %v380_v56, %v388_v60  ;;  %v11264_v56 = vld [vmem:[%s13577_s1 + $0x2e8] sm:$0xff]  }
 0x275   :  { %v317_v49 = vpop.xlane.xlu1 %316 }
 0x276   :  { %v321_v50 = vmul.f32 0.0078125, %v317_v49  ;;  %v11257_v49 = vld [vmem:[%s13577_s1 + $0x2b0] sm:$0xff]  }
 0x278   :  { %v325_v51 = vadd.f32 1e-05, %v321_v50  ;;  %v11258_v50 = vld [vmem:[%s13577_s1 + $0x2b8] sm:$0xff]  }
 0x279   :  { %v376_v59 = vpop.permute.xlu1 %375 }
 0x27a   :  { %11465 = vrsqrt.f32 %v325_v51  ;;  %v11259_v51 = vld [vmem:[%s13577_s1 + $0x2c0] sm:$0xff]  }
 0x284   :  { %v11466_v55 = vpop.eup %11465 }
 0x285   :  { %v333_v57 = vmul.f32 %v11466_v55, %v11809_v63  ;;  %v11213_v63 = vld [vmem:[%s13577_s1 + $0xd0] sm:$0xff]   ;;  %v11263_v55 = vld [vmem:[%s13577_s1 + $0x2e0] sm:$0xff]  }
 0x287   :  { %v357_v58 = vmul.f32 %v352_v29, %v333_v57  ;;  %v11239_v29 = vld [vmem:[%s13577_s1 + $0x1e0] sm:$0xff]   ;;  %v11265_v57 = vld [vmem:[%s13577_s1 + $0x2f0] sm:$0xff]  }
 0x289   :  { %v381_v61 = vadd.f32 %v376_v59, %v357_v58 }
 0x28b   :  { %vm385_vm3 = vcmp.ge.f32.partialorder %v381_v61, 0.0  ;;  %v389_v62 = vmul.f32 0.2, %v381_v61 }
 0x28d   :  { %v393_v1 = vsel %vm385_vm3, %v381_v61, %v389_v62 }
 0x28e   :  { %v11875_v2 = vpack.c.bf16 %v393_v1, %v392_v0 }
 0x290   :  { %9921 = vmatmul.mubr.bf16.vlgmr.msra.gmra.mrb[0].mxu1 %v11875_v2  ;;  %9941 = vmatmul.mubr.bf16.vlgmr.msra.gmra.mrb[8].mxu0 %v11875_v2 }
 0x291   :  { %10001 = vmatpush3.bf16.msra.mxu0 %v11211_v18  ;;  %10016 = vmatprep.mubr.bf16.mxu0 %v11869_v47  ;;  %v11229_v18 = vld [vmem:[%s13577_s1 + $0x150] sm:$0xff]  }
 0x292   :  { %10002 = vmatprep.subr.bf16.mxu0 %v11212_v45  ;;  %9948 = vmatprep.mubr.msk.bf16.mxu1 %vm664_vm4, %v11268_v26 }
 0x295   :  { %10003 = vmatpush3.bf16.msra.mxu0 %v11212_v45 }
 0x296   :  { %10004 = vmatprep.subr.bf16.mxu0 %v11213_v63 }
 0x299   :  { %10005 = vmatpush3.bf16.msra.mxu0 %v11213_v63 }
 0x29a   :  { %10006 = vmatprep.subr.bf16.mxu0 %v11214_v3 }
 0x29d   :  { %10007 = vmatpush3.bf16.msra.mxu0 %v11214_v3 }
 0x29e   :  { %10008 = vmatprep.subr.bf16.mxu0 %v11215_v4 }
 0x2a1   :  { %10009 = vmatpush3.bf16.msra.mxu0 %v11215_v4  ;;  %v11266_v4 = vld [vmem:[%s13577_s1 + $0x2f8] sm:$0xff]  }
 0x2a2   :  { %10010 = vmatprep.subr.bf16.mxu0 %v11216_v5 }
 0x2a5   :  { %10011 = vmatpush3.bf16.msra.mxu0 %v11216_v5 }
 0x2a6   :  { %10012 = vmatprep.subr.bf16.mxu0 %v11217_v6 }
 0x2a9   :  { %10013 = vmatpush3.bf16.msra.mxu0 %v11217_v6 }
 0x2aa   :  { %10014 = vmatprep.subr.bf16.mxu0 %v11218_v7 }
 0x2ad   :  { %10015 = vmatpush3.bf16.msra.mxu0 %v11218_v7  ;;  %v11267_v7 = vld [vmem:[%s13577_s1 + $0x300] sm:$0xff]  }
 0x2ae   :  { %10032 = vmatprep.subr.bf16.mxu0 %v11219_v8 }
 0x2b0   :  { %10017 = vmatmul.mubr.bf16.vlgmr.msra.gmra.mrb[12].mxu0 %v11875_v2 }
 0x2b1   :  { %10033 = vmatpush3.bf16.msra.mxu0 %v11219_v8  ;;  %10048 = vmatprep.mubr.bf16.mxu0 %v11869_v47  ;;  %v11269_v8 = vld [vmem:[%s13578_s30 + $0x28] sm:$0xff]  }
 0x2b2   :  { %10034 = vmatprep.subr.bf16.mxu0 %v11220_v9 }
 0x2b5   :  { %10035 = vmatpush3.bf16.msra.mxu0 %v11220_v9  ;;  %v11270_v9 = vld [vmem:[%s13577_s1 + $0x308] sm:$0xff]  }
 0x2b6   :  { %10036 = vmatprep.subr.bf16.mxu0 %v11221_v10 }
 0x2b9   :  { %10037 = vmatpush3.bf16.msra.mxu0 %v11221_v10  ;;  %v11272_v10 = vld [vmem:[%s13578_s30 + $0x30] sm:$0xff]  }
 0x2ba   :  { %10038 = vmatprep.subr.bf16.mxu0 %v11222_v11 }
 0x2bd   :  { %10039 = vmatpush3.bf16.msra.mxu0 %v11222_v11  ;;  %v11271_v11 = vld [vmem:[%s13577_s1 + $0x310] sm:$0xff]  }
 0x2be   :  { %10040 = vmatprep.subr.bf16.mxu0 %v11223_v12 }
 0x2c1   :  { %10041 = vmatpush3.bf16.msra.mxu0 %v11223_v12  ;;  %v11277_v12 = vld [vmem:[%s13577_s1 + $0x80] sm:$0xff]  }
 0x2c2   :  { %10042 = vmatprep.subr.bf16.mxu0 %v11224_v13 }
 0x2c5   :  { %10043 = vmatpush3.bf16.msra.mxu0 %v11224_v13  ;;  %v11273_v13 = vld [vmem:[%s13578_s30 + $0x38] sm:$0xff]  }
 0x2c6   :  { %10044 = vmatprep.subr.bf16.mxu0 %v11225_v14 }
 0x2c9   :  { %10045 = vmatpush3.bf16.msra.mxu0 %v11225_v14  ;;  %v11274_v14 = vld [vmem:[%s13577_s1 + $0x318] sm:$0xff]  }
 0x2ca   :  { %10046 = vmatprep.subr.bf16.mxu0 %v11226_v15 }
 0x2cd   :  { %10047 = vmatpush3.bf16.msra.mxu0 %v11226_v15  ;;  %v11276_v15 = vld [vmem:[%s13578_s30] sm:$0xff]  }
 0x2ce   :  { %10064 = vmatprep.subr.bf16.mxu0 %v11227_v16 }
 0x2d0   :  { %10049 = vmatmul.mubr.bf16.vlgmr.msra.gmra.mrb[16].mxu0 %v11875_v2 }
 0x2d1   :  { %10065 = vmatpush3.bf16.msra.mxu0 %v11227_v16  ;;  %10080 = vmatprep.mubr.bf16.mxu0 %v11869_v47  ;;  %v11275_v16 = vld [vmem:[%s13577_s1 + $0x320] sm:$0xff]  }
 0x2d2   :  { %10066 = vmatprep.subr.bf16.mxu0 %v11228_v17 }
 0x2d5   :  { %10067 = vmatpush3.bf16.msra.mxu0 %v11228_v17  ;;  %v11278_v17 = vld [vmem:[%s13578_s30 + $0x8] sm:$0xff]  }
 0x2d6   :  { %10068 = vmatprep.subr.bf16.mxu0 %v11229_v18 }
 0x2d9   :  { %10069 = vmatpush3.bf16.msra.mxu0 %v11229_v18  ;;  %v11279_v18 = vld [vmem:[%s13577_s1 + $0x328] sm:$0xff]  }
 0x2da   :  { %10070 = vmatprep.subr.bf16.mxu0 %v11230_v19 }
 0x2dd   :  { %10071 = vmatpush3.bf16.msra.mxu0 %v11230_v19  ;;  %v11282_v19 = vld [vmem:[%s13578_s30 + $0x10] sm:$0xff]  }
 0x2de   :  { %10072 = vmatprep.subr.bf16.mxu0 %v11231_v20 }
 0x2e1   :  { %10073 = vmatpush3.bf16.msra.mxu0 %v11231_v20  ;;  %v11280_v20 = vld [vmem:[%s13577_s1 + $0x88] sm:$0xff]  }
 0x2e2   :  { %10074 = vmatprep.subr.bf16.mxu0 %v11232_v21 }
 0x2e5   :  { %10075 = vmatpush3.bf16.msra.mxu0 %v11232_v21  ;;  %v11281_v21 = vld [vmem:[%s13577_s1 + $0x330] sm:$0xff]  }
 0x2e6   :  { %10076 = vmatprep.subr.bf16.mxu0 %v11233_v22 }
 0x2e9   :  { %10077 = vmatpush3.bf16.msra.mxu0 %v11233_v22 }
 0x2ea   :  { %10078 = vmatprep.subr.bf16.mxu0 %v11234_v23 }
 0x2ed   :  { %10079 = vmatpush3.bf16.msra.mxu0 %v11234_v23 }
 0x2ee   :  { %10128 = vmatprep.subr.bf16.mxu0 %v11235_v24 }
 0x2f0   :  { %10081 = vmatmul.mubr.bf16.vlgmr.msra.gmra.mrb[20].mxu0 %v11875_v2 }
 0x2f1   :  { %10129 = vmatpush3.bf16.msra.mxu0 %v11235_v24  ;;  %10144 = vmatprep.mubr.bf16.mxu0 %v11869_v47  ;;  %v11283_v24 = vld [vmem:[%s13577_s1 + $0x90] sm:$0xff]  }
 0x2f2   :  { %10130 = vmatprep.subr.bf16.mxu0 %v11236_v25 }
 0x2f5   :  { %10131 = vmatpush3.bf16.msra.mxu0 %v11236_v25 }
 0x2f6   :  { %10132 = vmatprep.subr.bf16.mxu0 %v11237_v27 }
 0x2f9   :  { %10133 = vmatpush3.bf16.msra.mxu0 %v11237_v27 }
 0x2fa   :  { %10134 = vmatprep.subr.bf16.mxu0 %v11238_v28 }
 0x2fd   :  { %10135 = vmatpush3.bf16.msra.mxu0 %v11238_v28  ;;  %v11284_v28 = vld [vmem:[%s13578_s30 + $0x18] sm:$0xff]  }
 0x2fe   :  { %10136 = vmatprep.subr.bf16.mxu0 %v11239_v29 }
 0x301   :  { %10137 = vmatpush3.bf16.msra.mxu0 %v11239_v29  ;;  %v11285_v29 = vld [vmem:[%s13577_s1 + $0x338] sm:$0xff]  }
 0x302   :  { %10138 = vmatprep.subr.bf16.mxu0 %v11240_v30 }
 0x305   :  { %10139 = vmatpush3.bf16.msra.mxu0 %v11240_v30 }
 0x306   :  { %10140 = vmatprep.subr.bf16.mxu0 %v11241_v31 }
 0x309   :  { %10141 = vmatpush3.bf16.msra.mxu0 %v11241_v31  ;;  %v11286_v31 = vld [vmem:[%s13577_s1 + $0x98] sm:$0xff]  }
 0x30a   :  { %10142 = vmatprep.subr.bf16.mxu0 %v11242_v32 }
 0x30d   :  { %10143 = vmatpush3.bf16.msra.mxu0 %v11242_v32  ;;  %v11287_v32 = vld [vmem:[%s13577_s1 + $0x380] sm:$0xff]  }
 0x30e   :  { %10160 = vmatprep.subr.bf16.mxu0 %v11243_v33 }
 0x310   :  { %10145 = vmatmul.mubr.bf16.vlgmr.msra.gmra.mrb[24].mxu0 %v11875_v2 }
 0x311   :  { %10161 = vmatpush3.bf16.msra.mxu0 %v11243_v33  ;;  %10176 = vmatprep.mubr.bf16.mxu0 %v11869_v47  ;;  %v11288_v33 = vld [vmem:[%s13577_s1 + $0xa0] sm:$0xff]  }
 0x312   :  { %10162 = vmatprep.subr.bf16.mxu0 %v11244_v34 }
 0x315   :  { %10163 = vmatpush3.bf16.msra.mxu0 %v11244_v34  ;;  %v11289_v34 = vld [vmem:[%s13577_s1 + $0x388] sm:$0xff]  }
 0x316   :  { %10164 = vmatprep.subr.bf16.mxu0 %v11245_v35 }
 0x319   :  { %10165 = vmatpush3.bf16.msra.mxu0 %v11245_v35  ;;  %v11290_v35 = vld [vmem:[%s13577_s1 + $0xa8] sm:$0xff]  }
 0x31a   :  { %10166 = vmatprep.subr.bf16.mxu0 %v11246_v36 }
 0x31d   :  { %10167 = vmatpush3.bf16.msra.mxu0 %v11246_v36  ;;  %v11291_v36 = vld [vmem:[%s13577_s1 + $0x390] sm:$0xff]  }
 0x31e   :  { %10168 = vmatprep.subr.bf16.mxu0 %v11247_v38 }
 0x321   :  { %10169 = vmatpush3.bf16.msra.mxu0 %v11247_v38  ;;  %v11292_v38 = vld [vmem:[%s13577_s1 + $0xb0] sm:$0xff]  }
 0x322   :  { %10170 = vmatprep.subr.bf16.mxu0 %v11248_v39 }
 0x325   :  { %10171 = vmatpush3.bf16.msra.mxu0 %v11248_v39  ;;  %v11293_v39 = vld [vmem:[%s13577_s1 + $0x398] sm:$0xff]  }
 0x326   :  { %10172 = vmatprep.subr.bf16.mxu0 %v11249_v40 }
 0x329   :  { %10173 = vmatpush3.bf16.msra.mxu0 %v11249_v40  ;;  %v11294_v40 = vld [vmem:[%s13577_s1 + $0xb8] sm:$0xff]  }
 0x32a   :  { %10174 = vmatprep.subr.bf16.mxu0 %v11250_v42 }
 0x32d   :  { %10175 = vmatpush3.bf16.msra.mxu0 %v11250_v42  ;;  %v11295_v42 = vld [vmem:[%s13577_s1 + $0x3a0] sm:$0xff]  }
 0x32e   :  { %10224 = vmatprep.subr.bf16.mxu0 %v11251_v43 }
 0x330   :  { %10177 = vmatmul.mubr.bf16.vlgmr.msra.gmra.mrb[28].mxu0 %v11875_v2 }
 0x331   :  { %10225 = vmatpush3.bf16.msra.mxu0 %v11251_v43  ;;  %10240 = vmatprep.mubr.bf16.mxu0 %v11869_v47  ;;  %v11296_v43 = vld [vmem:[%s13577_s1 + $0x3a8] sm:$0xff]  }
 0x332   :  { %10226 = vmatprep.subr.bf16.mxu0 %v11252_v44 }
 0x335   :  { %10227 = vmatpush3.bf16.msra.mxu0 %v11252_v44  ;;  %v11297_v44 = vld [vmem:[%s13577_s1 + $0x3b0] sm:$0xff]  }
 0x336   :  { %10228 = vmatprep.subr.bf16.mxu0 %v11253_v46 }
 0x339   :  { %10229 = vmatpush3.bf16.msra.mxu0 %v11253_v46 }
 0x33a   :  { %10230 = vmatprep.subr.bf16.mxu0 %v11254_v37 }
 0x33d   :  { %10231 = vmatpush3.bf16.msra.mxu0 %v11254_v37 }
 0x33e   :  { %10232 = vmatprep.subr.bf16.mxu0 %v11255_v48 }
 0x341   :  { %10233 = vmatpush3.bf16.msra.mxu0 %v11255_v48 }
 0x342   :  { %10234 = vmatprep.subr.bf16.mxu0 %v11256_v41 }
 0x345   :  { %10235 = vmatpush3.bf16.msra.mxu0 %v11256_v41 }
 0x346   :  { %10236 = vmatprep.subr.bf16.mxu0 %v11257_v49 }
 0x349   :  { %10237 = vmatpush3.bf16.msra.mxu0 %v11257_v49 }
 0x34a   :  { %10238 = vmatprep.subr.bf16.mxu0 %v11258_v50 }
 0x34d   :  { %10239 = vmatpush3.bf16.msra.mxu0 %v11258_v50  ;;  %v11298_v50 = vld [vmem:[%s13577_s1 + $0x3b8] sm:$0xff]  }
 0x34e   :  { %10256 = vmatprep.subr.bf16.mxu0 %v11259_v51 }
 0x350   :  { %10241 = vmatmul.mubr.bf16.vlgmr.msra.gmra.mrb[32].mxu0 %v11875_v2 }
 0x351   :  { %10257 = vmatpush3.bf16.msra.mxu0 %v11259_v51  ;;  %10272 = vmatprep.mubr.bf16.mxu0 %v11869_v47 }
 0x352   :  { %10258 = vmatprep.subr.bf16.mxu0 %v11260_v52 }
 0x355   :  { %10259 = vmatpush3.bf16.msra.mxu0 %v11260_v52  ;;  %v11299_v52 = vld [vmem:[%s13577_s1 + $0x3c0] sm:$0xff]  }
 0x356   :  { %10260 = vmatprep.subr.bf16.mxu0 %v11261_v53 }
 0x359   :  { %10261 = vmatpush3.bf16.msra.mxu0 %v11261_v53  ;;  %v11300_v53 = vld [vmem:[%s13577_s1 + $0x3c8] sm:$0xff]  }
 0x35a   :  { %10262 = vmatprep.subr.bf16.mxu0 %v11262_v54 }
 0x35d   :  { %10263 = vmatpush3.bf16.msra.mxu0 %v11262_v54  ;;  %v11301_v54 = vld [vmem:[%s13577_s1 + $0x3d0] sm:$0xff]  }
 0x35e   :  { %10264 = vmatprep.subr.bf16.mxu0 %v11263_v55 }
 0x361   :  { %10265 = vmatpush3.bf16.msra.mxu0 %v11263_v55  ;;  %v11302_v55 = vld [vmem:[%s13577_s1 + $0x3d8] sm:$0xff]  }
 0x362   :  { %10266 = vmatprep.subr.bf16.mxu0 %v11264_v56 }
 0x363   :  { %v9922_v58 = vpop.f32.mrb[0].mxu1  ;;  %v9942_v59 = vpop.f32.mrb[8].mxu0 }
 0x364   :  { %v494_v60 = vpop.f32.mrb[1].mxu1  ;;  %v618_v61 = vpop.f32.mrb[9].mxu0 }
 0x365   :  { %10267 = vmatpush3.bf16.msra.mxu0 %v11264_v56  ;;  %v9923_v62 = vpop.f32.mrb[2].mxu1  ;;  %v9943_v0 = vpop.f32.mrb[10].mxu0  ;;  %v11303_v56 = vld [vmem:[%s13577_s1 + $0x3e0] sm:$0xff]  }
 0x366   :  { %v510_v1 = vpack.c.bf16 %v9923_v62, %v9922_v58  ;;  %v634_v45 = vpack.c.bf16 %v9943_v0, %v9942_v59  ;;  %v497_v63 = vpop.f32.mrb[3].mxu1  ;;  %v621_v3 = vpop.f32.mrb[11].mxu0  ;;  %10268 = vmatprep.subr.bf16.mxu0 %v11265_v57  ;;  %v11305_v58 = vld [vmem:[%s13577_s1 + $0x3f0] sm:$0xff]  }
 0x367   :  { %v509_v5 = vpack.c.bf16 %v497_v63, %v494_v60  ;;  %v633_v6 = vpack.c.bf16 %v621_v3, %v618_v61 }
 0x369   :  { %10269 = vmatpush3.bf16.msra.mxu0 %v11265_v57  ;;  %9944 = vmatprep.subr.bf16.mxu1 %v633_v6  ;;  %v11304_v57 = vld [vmem:[%s13577_s1 + $0x3e8] sm:$0xff]  }
 0x36a   :  { %9945 = vmatpush3.bf16.msra.mxu1 %v633_v6  ;;  %10270 = vmatprep.subr.bf16.mxu0 %v11266_v4 }
 0x36b   :  { %9946 = vmatprep.subr.bf16.mxu1 %v634_v45 }
 0x36d   :  { %10271 = vmatpush3.bf16.msra.mxu0 %v11266_v4 }
 0x36e   :  { %9947 = vmatpush3.bf16.msra.mxu1 %v634_v45  ;;  %10288 = vmatprep.subr.bf16.mxu0 %v11267_v7 }
 0x36f   :  { %9956 = vmatprep.subr.bf16.mxu1 %v509_v5 }
 0x370   :  { %10273 = vmatmul.mubr.bf16.vlgmr.msra.gmra.mrb[36].mxu0 %v11875_v2 }
 0x371   :  { %10289 = vmatpush3.bf16.msra.mxu0 %v11267_v7  ;;  %10304 = vmatprep.mubr.bf16.mxu0 %v11869_v47 }
 0x372   :  { %9949 = vmatmul.mubr.msk.bf16.vlgmr.msra.gmra.mrb[4].mxu1 %vm664_vm4, %v11269_v8  ;;  %10290 = vmatprep.subr.bf16.mxu0 %v11270_v9  ;;  %v11307_v8 = vld [vmem:[%s13578_s30 + $0x40] sm:$0xff]  }
 0x373   :  { %9957 = vmatpush3.bf16.msra.mxu1 %v509_v5  ;;  %9952 = vmatprep.mubr.msk.bf16.mxu1 %vm664_vm4, %v11272_v10 }
 0x374   :  { %9958 = vmatprep.subr.bf16.mxu1 %v510_v1 }
 0x375   :  { %10291 = vmatpush3.bf16.msra.mxu0 %v11270_v9 }
 0x376   :  { %10292 = vmatprep.subr.bf16.mxu0 %v11271_v11 }
 0x377   :  { %9959 = vmatpush3.bf16.msra.mxu1 %v510_v1  ;;  %v11306_v1 = vld [vmem:[%s13577_s1 + $0x3f8] sm:$0xff]  }
 0x378   :  { %9968 = vmatprep.subr.bf16.mxu1 %v11277_v12 }
 0x379   :  { %10293 = vmatpush3.bf16.msra.mxu0 %v11271_v11 }
 0x37a   :  { %9953 = vmatmul.mubr.msk.bf16.gmra.mrb[8].mxu1 %vm664_vm4, %v11273_v13  ;;  %10294 = vmatprep.subr.bf16.mxu0 %v11274_v14 }
 0x37b   :  { %9960 = vmatprep.mubr.msk.bf16.mxu1 %vm664_vm4, %v11276_v15 }
 0x37d   :  { %10295 = vmatpush3.bf16.msra.mxu0 %v11274_v14 }
 0x37e   :  { %10296 = vmatprep.subr.bf16.mxu0 %v11275_v16 }
 0x381   :  { %10297 = vmatpush3.bf16.msra.mxu0 %v11275_v16 }
 0x382   :  { %9961 = vmatmul.mubr.msk.bf16.vlgmr.msra.gmra.mrb[4].mxu1 %vm664_vm4, %v11278_v17  ;;  %10298 = vmatprep.subr.bf16.mxu0 %v11279_v18 }
 0x383   :  { %9969 = vmatpush3.bf16.msra.mxu1 %v11277_v12  ;;  %v10018_v22 = vpop.f32.mrb[12].mxu0  ;;  %9964 = vmatprep.mubr.msk.bf16.mxu1 %vm664_vm4, %v11282_v19 }
 0x384   :  { %v1168_v23 = vpop.f32.mrb[13].mxu0  ;;  %9970 = vmatprep.subr.bf16.mxu1 %v11280_v20 }
 0x385   :  { %v10019_v25 = vpop.f32.mrb[14].mxu0  ;;  %10299 = vmatpush3.bf16.msra.mxu0 %v11279_v18 }
 0x386   :  { %v12117_v26 = vpack.c.bf16 %v10019_v25, %v10018_v22  ;;  %v1171_v27 = vpop.f32.mrb[15].mxu0  ;;  %10300 = vmatprep.subr.bf16.mxu0 %v11281_v21 }
 0x387   :  { %9971 = vmatpush3.bf16.msra.mxu1 %v11280_v20  ;;  %v12125_v30 = vpack.c.bf16 %v1171_v27, %v1168_v23 }
 0x388   :  { %9972 = vmatprep.subr.bf16.mxu1 %v11283_v24 }
 0x389   :  { %10301 = vmatpush3.bf16.msra.mxu0 %v11281_v21 }
 0x38a   :  { %9965 = vmatmul.mubr.msk.bf16.gmra.mrb[8].mxu1 %vm664_vm4, %v11284_v28  ;;  %10302 = vmatprep.subr.bf16.mxu0 %v11285_v29 }
 0x38b   :  { %9973 = vmatpush3.bf16.msra.mxu1 %v11283_v24  ;;  %9984 = vmatprep.mubr.bf16.mxu1 %v11869_v47 }
 0x38c   :  { %9974 = vmatprep.subr.bf16.mxu1 %v11286_v31 }
 0x38d   :  { %10303 = vmatpush3.bf16.msra.mxu0 %v11285_v29 }
 0x38e   :  { %10352 = vmatprep.subr.bf16.mxu0 %v11287_v32 }
 0x38f   :  { %9975 = vmatpush3.bf16.msra.mxu1 %v11286_v31 }
 0x390   :  { %10305 = vmatmul.mubr.bf16.vlgmr.msra.gmra.mrb[40].mxu0 %v11875_v2  ;;  %9976 = vmatprep.subr.bf16.mxu1 %v11288_v33 }
 0x391   :  { %10353 = vmatpush3.bf16.msra.mxu0 %v11287_v32  ;;  %10368 = vmatprep.mubr.bf16.mxu0 %v11869_v47 }
 0x392   :  { %10354 = vmatprep.subr.bf16.mxu0 %v11289_v34 }
 0x393   :  { %9977 = vmatpush3.bf16.msra.mxu1 %v11288_v33 }
 0x394   :  { %9978 = vmatprep.subr.bf16.mxu1 %v11290_v35 }
 0x395   :  { %10355 = vmatpush3.bf16.msra.mxu0 %v11289_v34 }
 0x396   :  { %10356 = vmatprep.subr.bf16.mxu0 %v11291_v36 }
 0x397   :  { %9979 = vmatpush3.bf16.msra.mxu1 %v11290_v35 }
 0x398   :  { %9980 = vmatprep.subr.bf16.mxu1 %v11292_v38 }
 0x399   :  { %10357 = vmatpush3.bf16.msra.mxu0 %v11291_v36 }
 0x39a   :  { %10358 = vmatprep.subr.bf16.mxu0 %v11293_v39 }
 0x39b   :  { %9981 = vmatpush3.bf16.msra.mxu1 %v11292_v38 }
 0x39c   :  { %9982 = vmatprep.subr.bf16.mxu1 %v11294_v40 }
 0x39d   :  { %10359 = vmatpush3.bf16.msra.mxu0 %v11293_v39 }
 0x39e   :  { %10360 = vmatprep.subr.bf16.mxu0 %v11295_v42 }
 0x39f   :  { %9983 = vmatpush3.bf16.msra.mxu1 %v11294_v40 }
 0x3a1   :  { %10361 = vmatpush3.bf16.msra.mxu0 %v11295_v42 }
 0x3a2   :  { %9985 = vmatmul.mubr.bf16.vlgmr.msra.gmra.mrb[12].mxu1 %v11875_v2  ;;  %10362 = vmatprep.subr.bf16.mxu0 %v11296_v43 }
 0x3a3   :  { %v10050_v46 = vpop.f32.mrb[16].mxu0  ;;  %9992 = vmatprep.mubr.msk.bf16.mxu1 %vm664_vm4, %v11307_v8  ;;  %v11325_v8 = vld [vmem:[%s13578_s30 + $0xb8] sm:$0xff]  }
 0x3a4   :  { %v1398_v37 = vpop.f32.mrb[17].mxu0 }
 0x3a5   :  { %v10051_v48 = vpop.f32.mrb[18].mxu0  ;;  %10363 = vmatpush3.bf16.msra.mxu0 %v11296_v43  ;;  %v11308_v43 = vld [vmem:[%s13578_s30 + $0x48] sm:$0xff]  }
 0x3a6   :  { %v12168_v41 = vpack.c.bf16 %v10051_v48, %v10050_v46  ;;  %v1401_v49 = vpop.f32.mrb[19].mxu0  ;;  %10364 = vmatprep.subr.bf16.mxu0 %v11297_v44 }
 0x3a7   :  { %v12173_v51 = vpack.c.bf16 %v1401_v49, %v1398_v37 }
 0x3a9   :  { %10365 = vmatpush3.bf16.msra.mxu0 %v11297_v44  ;;  %v11309_v44 = vld [vmem:[%s13578_s30 + $0x50] sm:$0xff]  }
 0x3aa   :  { %10366 = vmatprep.subr.bf16.mxu0 %v11298_v50 }
 0x3ad   :  { %10367 = vmatpush3.bf16.msra.mxu0 %v11298_v50 }
 0x3ae   :  { %10384 = vmatprep.subr.bf16.mxu0 %v11299_v52 }
 0x3b0   :  { %10369 = vmatmul.mubr.bf16.vlgmr.msra.gmra.mrb[44].mxu0 %v11875_v2 }
 0x3b1   :  { %10385 = vmatpush3.bf16.msra.mxu0 %v11299_v52  ;;  %10400 = vmatprep.mubr.bf16.mxu0 %v11869_v47 }
 0x3b2   :  { %10386 = vmatprep.subr.bf16.mxu0 %v11300_v53 }
 0x3b5   :  { %10387 = vmatpush3.bf16.msra.mxu0 %v11300_v53  ;;  %v11310_v53 = vld [vmem:[%s13578_s30 + $0x58] sm:$0xff]  }
 0x3b6   :  { %10388 = vmatprep.subr.bf16.mxu0 %v11301_v54 }
 0x3b9   :  { %10389 = vmatpush3.bf16.msra.mxu0 %v11301_v54  ;;  %v11312_v54 = vld [vmem:[%s13578_s30 + $0x68] sm:$0xff]  }
 0x3ba   :  { %10390 = vmatprep.subr.bf16.mxu0 %v11302_v55 }
 0x3bd   :  { %10391 = vmatpush3.bf16.msra.mxu0 %v11302_v55  ;;  %v11313_v55 = vld [vmem:[%s13578_s30 + $0x70] sm:$0xff]  }
 0x3be   :  { %10392 = vmatprep.subr.bf16.mxu0 %v11303_v56 }
 0x3c1   :  { %10393 = vmatpush3.bf16.msra.mxu0 %v11303_v56  ;;  %v11315_v56 = vld [vmem:[%s13578_s30 + $0x80] sm:$0xff]  }
 0x3c2   :  { %10394 = vmatprep.subr.bf16.mxu0 %v11304_v57 }
 0x3c3   :  { %v10082_v59 = vpop.f32.mrb[20].mxu0 }
 0x3c4   :  { %v1628_v60 = vpop.f32.mrb[21].mxu0 }
 0x3c5   :  { %v10083_v61 = vpop.f32.mrb[22].mxu0  ;;  %10395 = vmatpush3.bf16.msra.mxu0 %v11304_v57  ;;  %v11317_v57 = vld [vmem:[%s13578_s30 + $0x90] sm:$0xff]  }
 0x3c6   :  { %v12198_v62 = vpack.c.bf16 %v10083_v61, %v10082_v59  ;;  %v1631_v0 = vpop.f32.mrb[23].mxu0  ;;  %10396 = vmatprep.subr.bf16.mxu0 %v11305_v58 }
 0x3c7   :  { %v12203_v45 = vpack.c.bf16 %v1631_v0, %v1628_v60  ;;  %v11320_v60 = vld [vmem:[%s13577_s1 + $0x180] sm:$0xff]  }
 0x3c9   :  { %10397 = vmatpush3.bf16.msra.mxu0 %v11305_v58 }
 0x3ca   :  { %10398 = vmatprep.subr.bf16.mxu0 %v11306_v1 }
 0x3cd   :  { %10399 = vmatpush3.bf16.msra.mxu0 %v11306_v1 }
 0x3d0   :  { %10401 = vmatmul.mubr.bf16.vlgmr.msra.gmra.mrb[48].mxu0 %v11875_v2 }
 0x3e3   :  { %v10146_v63 = vpop.f32.mrb[24].mxu0 }
 0x3e4   :  { %v2088_v3 = vpop.f32.mrb[25].mxu0 }
 0x3e5   :  { %v10147_v4 = vpop.f32.mrb[26].mxu0 }
 0x3e6   :  { %v12206_v5 = vpack.c.bf16 %v10147_v4, %v10146_v63  ;;  %v2091_v6 = vpop.f32.mrb[27].mxu0  ;;  %v11318_v63 = vld [vmem:[%s13578_s30 + $0x98] sm:$0xff]   ;;  %v11323_v4 = vld [vmem:[%s13578_s30 + $0xb0] sm:$0xff]  }
 0x3e7   :  { %v12208_v7 = vpack.c.bf16 %v2091_v6, %v2088_v3  ;;  %v11321_v3 = vld [vmem:[%s13578_s30 + $0xa8] sm:$0xff]   ;;  %v11324_v6 = vld [vmem:[%s13577_s1 + $0x190] sm:$0xff]  }
 0x403   :  { %v10178_v9 = vpop.f32.mrb[28].mxu0 }
 0x404   :  { %v2318_v10 = vpop.f32.mrb[29].mxu0 }
 0x405   :  { %v10179_v11 = vpop.f32.mrb[30].mxu0 }
 0x406   :  { %v12214_v12 = vpack.c.bf16 %v10179_v11, %v10178_v9  ;;  %v2321_v13 = vpop.f32.mrb[31].mxu0  ;;  %v11326_v9 = vld [vmem:[%s13577_s1 + $0x198] sm:$0xff]   ;;  %v11328_v11 = vld [vmem:[%s13577_s1 + $0x1a8] sm:$0xff]  }
 0x407   :  { %v12216_v14 = vpack.c.bf16 %v2321_v13, %v2318_v10  ;;  %v11327_v10 = vld [vmem:[%s13577_s1 + $0x1a0] sm:$0xff]   ;;  %v11329_v13 = vld [vmem:[%s13577_s1 + $0x1b0] sm:$0xff]  }
 0x423   :  { %v10242_v15 = vpop.f32.mrb[32].mxu0 }
 0x424   :  { %v2778_v16 = vpop.f32.mrb[33].mxu0 }
 0x425   :  { %v10243_v17 = vpop.f32.mrb[34].mxu0 }
 0x426   :  { %v12218_v18 = vpack.c.bf16 %v10243_v17, %v10242_v15  ;;  %v2781_v19 = vpop.f32.mrb[35].mxu0  ;;  %v11330_v15 = vld [vmem:[%s13577_s1 + $0x1b8] sm:$0xff]  }
 0x427   :  { %v12220_v20 = vpack.c.bf16 %v2781_v19, %v2778_v16  ;;  %v11331_v16 = vld [vmem:[%s13578_s30 + $0xc0] sm:$0xff]  }
 0x443   :  { %v10274_v21 = vpop.f32.mrb[36].mxu0 }
 0x444   :  { %v3008_v22 = vpop.f32.mrb[37].mxu0 }
 0x445   :  { %v10275_v23 = vpop.f32.mrb[38].mxu0 }
 0x446   :  { %v12222_v24 = vpack.c.bf16 %v10275_v23, %v10274_v21  ;;  %v3011_v25 = vpop.f32.mrb[39].mxu0 }
 0x447   :  { %v12224_v27 = vpack.c.bf16 %v3011_v25, %v3008_v22 }
 0x463   :  { %v10306_v28 = vpop.f32.mrb[40].mxu0 }
 0x464   :  { %v3238_v29 = vpop.f32.mrb[41].mxu0 }
 0x465   :  { %v10307_v31 = vpop.f32.mrb[42].mxu0 }
 0x466   :  { %v12226_v32 = vpack.c.bf16 %v10307_v31, %v10306_v28  ;;  %v3241_v33 = vpop.f32.mrb[43].mxu0  ;;  %v11332_v28 = vld [vmem:[%s13578_s30 + $0xc8] sm:$0xff]   ;;  %v11334_v31 = vld [vmem:[%s13578_s30 + $0xd8] sm:$0xff]  }
 0x467   :  { %v12228_v34 = vpack.c.bf16 %v3241_v33, %v3238_v29  ;;  %v11333_v29 = vld [vmem:[%s13578_s30 + $0xd0] sm:$0xff]   ;;  %v11335_v33 = vld [vmem:[%s13578_s30 + $0xe0] sm:$0xff]  }
 0x475   :  { %v9986_v35 = vpop.f32.mrb[12].mxu1 }
 0x476   :  { %v938_v36 = vpop.f32.mrb[13].mxu1 }
 0x477   :  { %v9987_v38 = vpop.f32.mrb[14].mxu1 }
 0x478   :  { %v954_v39 = vpack.c.bf16 %v9987_v38, %v9986_v35  ;;  %v941_v40 = vpop.f32.mrb[15].mxu1  ;;  %v11337_v35 = vld [vmem:[%s13578_s30 + $0xf0] sm:$0xff]   ;;  %v11339_v38 = vld [vmem:[%s13578_s30 + $0x100] sm:$0xff]  }
 0x479   :  { %v953_v42 = vpack.c.bf16 %v941_v40, %v938_v36  ;;  %v11338_v36 = vld [vmem:[%s13578_s30 + $0xf8] sm:$0xff]   ;;  %v11344_v40 = vld [vmem:[%s13577_s1 + $0x250] sm:$0xff]  }
 0x47b   :  { %9988 = vmatprep.subr.bf16.mxu1 %v953_v42 }
 0x47c   :  { %9989 = vmatpush3.bf16.msra.mxu1 %v953_v42  ;;  %v11345_v42 = vld [vmem:[%s13578_s30 + $0x118] sm:$0xff]  }
 0x47d   :  { %9990 = vmatprep.subr.bf16.mxu1 %v954_v39 }
 0x480   :  { %9991 = vmatpush3.bf16.msra.mxu1 %v954_v39  ;;  %v11343_v39 = vld [vmem:[%s13578_s30 + $0x110] sm:$0xff]  }
 0x481   :  { %10020 = vmatprep.subr.bf16.mxu1 %v12125_v30 }
 0x483   :  { %9993 = vmatmul.mubr.msk.bf16.vlgmr.msra.gmra.mrb[4].mxu1 %vm664_vm4, %v11308_v43  ;;  %v10370_v46 = vpop.f32.mrb[44].mxu0  ;;  %v11346_v43 = vld [vmem:[%s13577_s1 + $0x258] sm:$0xff]  }
 0x484   :  { %10021 = vmatpush3.bf16.msra.mxu1 %v12125_v30  ;;  %v3698_v37 = vpop.f32.mrb[45].mxu0  ;;  %9996 = vmatprep.mubr.msk.bf16.mxu1 %vm664_vm4, %v11309_v44  ;;  %v11311_v30 = vld [vmem:[%s13578_s30 + $0x60] sm:$0xff]  }
 0x485   :  { %10022 = vmatprep.subr.bf16.mxu1 %v12117_v26  ;;  %v10371_v48 = vpop.f32.mrb[46].mxu0  ;;  %v11347_v44 = vld [vmem:[%s13577_s1 + $0x260] sm:$0xff]  }
 0x486   :  { %v12241_v49 = vpack.c.bf16 %v10371_v48, %v10370_v46  ;;  %v3701_v50 = vpop.f32.mrb[47].mxu0  ;;  %v11348_v46 = vld [vmem:[%s13577_s1 + $0x268] sm:$0xff]   ;;  %v11350_v48 = vld [vmem:[%s13577_s1 + $0x278] sm:$0xff]  }
 0x487   :  { %v12243_v52 = vpack.c.bf16 %v3701_v50, %v3698_v37  ;;  %v11349_v37 = vld [vmem:[%s13577_s1 + $0x270] sm:$0xff]   ;;  %v11351_v50 = vld [vmem:[%s13578_s30 + $0x120] sm:$0xff]  }
 0x488   :  { %10023 = vmatpush3.bf16.msra.mxu1 %v12117_v26  ;;  %v11314_v26 = vld [vmem:[%s13578_s30 + $0x78] sm:$0xff]  }
 0x489   :  { %10052 = vmatprep.subr.bf16.mxu1 %v12173_v51 }
 0x48b   :  { %9997 = vmatmul.mubr.msk.bf16.gmra.mrb[8].mxu1 %vm664_vm4, %v11310_v53 }
 0x48c   :  { %10024 = vmatprep.mubr.msk.bf16.mxu1 %vm664_vm4, %v11311_v30 }
 0x493   :  { %10025 = vmatmul.mubr.msk.bf16.vlgmr.msra.gmra.mrb[4].mxu1 %vm664_vm4, %v11312_v54 }
 0x494   :  { %10053 = vmatpush3.bf16.msra.mxu1 %v12173_v51  ;;  %10028 = vmatprep.mubr.msk.bf16.mxu1 %vm664_vm4, %v11313_v55  ;;  %v11316_v51 = vld [vmem:[%s13578_s30 + $0x88] sm:$0xff]  }
 0x495   :  { %10054 = vmatprep.subr.bf16.mxu1 %v12168_v41 }
 0x498   :  { %10055 = vmatpush3.bf16.msra.mxu1 %v12168_v41 }
 0x499   :  { %10084 = vmatprep.subr.bf16.mxu1 %v12203_v45 }
 0x49b   :  { %10029 = vmatmul.mubr.msk.bf16.gmra.mrb[8].mxu1 %vm664_vm4, %v11314_v26 }
 0x49c   :  { %10056 = vmatprep.mubr.msk.bf16.mxu1 %vm664_vm4, %v11315_v56 }
 0x4a3   :  { %10057 = vmatmul.mubr.msk.bf16.vlgmr.msra.gmra.mrb[4].mxu1 %vm664_vm4, %v11316_v51  ;;  %v10402_v41 = vpop.f32.mrb[48].mxu0  ;;  %v11352_v51 = vld [vmem:[%s13578_s30 + $0x128] sm:$0xff]  }
 0x4a4   :  { %10085 = vmatpush3.bf16.msra.mxu1 %v12203_v45  ;;  %v3928_v58 = vpop.f32.mrb[49].mxu0  ;;  %10060 = vmatprep.mubr.msk.bf16.mxu1 %vm664_vm4, %v11317_v57  ;;  %v11319_v45 = vld [vmem:[%s13578_s30 + $0xa0] sm:$0xff]   ;;  %v11353_v57 = vld [vmem:[%s13578_s30 + $0x130] sm:$0xff]  }
 0x4a5   :  { %10086 = vmatprep.subr.bf16.mxu1 %v12198_v62  ;;  %v10403_v59 = vpop.f32.mrb[50].mxu0 }
 0x4a6   :  { %v12288_v61 = vpack.c.bf16 %v10403_v59, %v10402_v41  ;;  %v3931_v0 = vpop.f32.mrb[51].mxu0  ;;  %v11354_v41 = vld [vmem:[%s13578_s30 + $0x138] sm:$0xff]   ;;  %v11357_v59 = vld [vmem:[%s13578_s30 + $0x150] sm:$0xff]  }
 0x4a7   :  { %v12290_v1 = vpack.c.bf16 %v3931_v0, %v3928_v58  ;;  %v11355_v58 = vld [vmem:[%s13578_s30 + $0x140] sm:$0xff]   ;;  %v11361_v0 = vld [vmem:[%s13578_s30 + $0x170] sm:$0xff]  }
 0x4a8   :  { %10087 = vmatpush3.bf16.msra.mxu1 %v12198_v62  ;;  %v11322_v62 = vld [vmem:[%s13577_s1 + $0x188] sm:$0xff]  }
 0x4a9   :  { %10096 = vmatprep.subr.bf16.mxu1 %v11320_v60 }
 0x4ab   :  { %10061 = vmatmul.mubr.msk.bf16.gmra.mrb[8].mxu1 %vm664_vm4, %v11318_v63  ;;  %v11362_v63 = vld [vmem:[%s13578_s30 + $0x178] sm:$0xff]  }
 0x4ac   :  { %10088 = vmatprep.mubr.msk.bf16.mxu1 %vm664_vm4, %v11319_v45  ;;  %v11363_v45 = vld [vmem:[%s13578_s30 + $0x180] sm:$0xff]  }
 0x4b3   :  { %10089 = vmatmul.mubr.msk.bf16.vlgmr.msra.gmra.mrb[4].mxu1 %vm664_vm4, %v11321_v3  ;;  %v11367_v3 = vld [vmem:[%s13578_s30 + $0x190] sm:$0xff]  }
 0x4b4   :  { %10097 = vmatpush3.bf16.msra.mxu1 %v11320_v60  ;;  %10092 = vmatprep.mubr.msk.bf16.mxu1 %vm664_vm4, %v11323_v4  ;;  %v11359_v60 = vld [vmem:[%s13578_s30 + $0x160] sm:$0xff]   ;;  %v11368_v4 = vld [vmem:[%s13577_s1 + $0x350] sm:$0xff]  }
 0x4b5   :  { %10098 = vmatprep.subr.bf16.mxu1 %v11322_v62 }
 0x4b8   :  { %10099 = vmatpush3.bf16.msra.mxu1 %v11322_v62  ;;  %v11369_v62 = vld [vmem:[%s13578_s30 + $0x198] sm:$0xff]  }
 0x4b9   :  { %10100 = vmatprep.subr.bf16.mxu1 %v11324_v6 }
 0x4bb   :  { %10093 = vmatmul.mubr.msk.bf16.gmra.mrb[8].mxu1 %vm664_vm4, %v11325_v8  ;;  %v11371_v8 = vld [vmem:[%s13577_s1 + $0x360] sm:$0xff]  }
 0x4bc   :  { %10101 = vmatpush3.bf16.msra.mxu1 %v11324_v6  ;;  %10112 = vmatprep.mubr.bf16.mxu1 %v11869_v47  ;;  %v11370_v6 = vld [vmem:[%s13577_s1 + $0x358] sm:$0xff]  }
 0x4bd   :  { %10102 = vmatprep.subr.bf16.mxu1 %v11326_v9 }
 0x4c0   :  { %10103 = vmatpush3.bf16.msra.mxu1 %v11326_v9  ;;  %v11372_v9 = vld [vmem:[%s13577_s1 + $0x368] sm:$0xff]  }
 0x4c1   :  { %10104 = vmatprep.subr.bf16.mxu1 %v11327_v10 }
 0x4c4   :  { %10105 = vmatpush3.bf16.msra.mxu1 %v11327_v10  ;;  %v11373_v10 = vld [vmem:[%s13577_s1 + $0x370] sm:$0xff]  }
 0x4c5   :  { %10106 = vmatprep.subr.bf16.mxu1 %v11328_v11 }
 0x4c8   :  { %10107 = vmatpush3.bf16.msra.mxu1 %v11328_v11  ;;  %v11375_v11 = vld [vmem:[%s13578_s30 + $0x1a0] sm:$0xff]  }
 0x4c9   :  { %10108 = vmatprep.subr.bf16.mxu1 %v11329_v13 }
 0x4cc   :  { %10109 = vmatpush3.bf16.msra.mxu1 %v11329_v13 }
 0x4cd   :  { %10110 = vmatprep.subr.bf16.mxu1 %v11330_v15 }
 0x4d0   :  { %10111 = vmatpush3.bf16.msra.mxu1 %v11330_v15 }
 0x4d3   :  { %10113 = vmatmul.mubr.bf16.vlgmr.msra.gmra.mrb[16].mxu1 %v11875_v2 }
 0x4d4   :  { %10120 = vmatprep.mubr.msk.bf16.mxu1 %vm664_vm4, %v11331_v16 }
 0x5a6   :  { %v10114_v17 = vpop.f32.mrb[16].mxu1 }
 0x5a7   :  { %v1858_v19 = vpop.f32.mrb[17].mxu1 }
 0x5a8   :  { %v10115_v21 = vpop.f32.mrb[18].mxu1 }
 0x5a9   :  { %v1874_v22 = vpack.c.bf16 %v10115_v21, %v10114_v17  ;;  %v1861_v23 = vpop.f32.mrb[19].mxu1 }
 0x5aa   :  { %v1873_v25 = vpack.c.bf16 %v1861_v23, %v1858_v19  ;;  %v11378_v23 = vld [vmem:[%s13578_s30 + $0x1b8] sm:$0xff]  }
 0x5ac   :  { %10116 = vmatprep.subr.bf16.mxu1 %v1873_v25 }
 0x5ad   :  { %10117 = vmatpush3.bf16.msra.mxu1 %v1873_v25  ;;  %v11379_v25 = vld [vmem:[%s13578_s30 + $0x1c0] sm:$0xff]  }
 0x5ae   :  { %10118 = vmatprep.subr.bf16.mxu1 %v1874_v22 }
 0x5b1   :  { %10119 = vmatpush3.bf16.msra.mxu1 %v1874_v22  ;;  %v11376_v22 = vld [vmem:[%s13578_s30 + $0x1a8] sm:$0xff]  }
 0x5b2   :  { %10148 = vmatprep.subr.bf16.mxu1 %v12208_v7 }
 0x5b4   :  { %10121 = vmatmul.mubr.msk.bf16.vlgmr.msra.gmra.mrb[4].mxu1 %vm664_vm4, %v11332_v28  ;;  %v11381_v28 = vld [vmem:[%s13578_s30 + $0x1d0] sm:$0xff]  }
 0x5b5   :  { %10149 = vmatpush3.bf16.msra.mxu1 %v12208_v7  ;;  %10124 = vmatprep.mubr.msk.bf16.mxu1 %vm664_vm4, %v11333_v29  ;;  %v11336_v7 = vld [vmem:[%s13578_s30 + $0xe8] sm:$0xff]   ;;  %v11383_v29 = vld [vmem:[%s13578_s30 + $0x1e0] sm:$0xff]  }
 0x5b6   :  { %10150 = vmatprep.subr.bf16.mxu1 %v12206_v5 }
 0x5b9   :  { %10151 = vmatpush3.bf16.msra.mxu1 %v12206_v5  ;;  %v11340_v5 = vld [vmem:[%s13577_s1 + $0x240] sm:$0xff]  }
 0x5ba   :  { %10180 = vmatprep.subr.bf16.mxu1 %v12216_v14 }
 0x5bc   :  { %10125 = vmatmul.mubr.msk.bf16.gmra.mrb[8].mxu1 %vm664_vm4, %v11334_v31  ;;  %v11385_v31 = vld [vmem:[%s13578_s30 + $0x1f0] sm:$0xff]  }
 0x5bd   :  { %10152 = vmatprep.mubr.msk.bf16.mxu1 %vm664_vm4, %v11335_v33 }
 0x5c4   :  { %10153 = vmatmul.mubr.msk.bf16.vlgmr.msra.gmra.mrb[4].mxu1 %vm664_vm4, %v11336_v7 }
 0x5c5   :  { %10181 = vmatpush3.bf16.msra.mxu1 %v12216_v14  ;;  %10156 = vmatprep.mubr.msk.bf16.mxu1 %vm664_vm4, %v11337_v35  ;;  %v11341_v14 = vld [vmem:[%s13578_s30 + $0x108] sm:$0xff]  }
 0x5c6   :  { %10182 = vmatprep.subr.bf16.mxu1 %v12214_v12 }
 0x5c9   :  { %10183 = vmatpush3.bf16.msra.mxu1 %v12214_v12  ;;  %v11342_v12 = vld [vmem:[%s13577_s1 + $0x248] sm:$0xff]  }
 0x5ca   :  { %10192 = vmatprep.subr.bf16.mxu1 %v11340_v5 }
 0x5cc   :  { %10157 = vmatmul.mubr.msk.bf16.gmra.mrb[8].mxu1 %vm664_vm4, %v11338_v36 }
 0x5cd   :  { %10184 = vmatprep.mubr.msk.bf16.mxu1 %vm664_vm4, %v11339_v38 }
 0x5d4   :  { %10185 = vmatmul.mubr.msk.bf16.vlgmr.msra.gmra.mrb[4].mxu1 %vm664_vm4, %v11341_v14 }
 0x5d5   :  { %10193 = vmatpush3.bf16.msra.mxu1 %v11340_v5  ;;  %10188 = vmatprep.mubr.msk.bf16.mxu1 %vm664_vm4, %v11343_v39 }
 0x5d6   :  { %10194 = vmatprep.subr.bf16.mxu1 %v11342_v12 }
 0x5d9   :  { %10195 = vmatpush3.bf16.msra.mxu1 %v11342_v12 }
 0x5da   :  { %10196 = vmatprep.subr.bf16.mxu1 %v11344_v40 }
 0x5dc   :  { %10189 = vmatmul.mubr.msk.bf16.gmra.mrb[8].mxu1 %vm664_vm4, %v11345_v42 }
 0x5dd   :  { %10197 = vmatpush3.bf16.msra.mxu1 %v11344_v40  ;;  %10208 = vmatprep.mubr.bf16.mxu1 %v11869_v47 }
 0x5de   :  { %10198 = vmatprep.subr.bf16.mxu1 %v11346_v43 }
 0x5e1   :  { %10199 = vmatpush3.bf16.msra.mxu1 %v11346_v43 }
 0x5e2   :  { %10200 = vmatprep.subr.bf16.mxu1 %v11347_v44 }
 0x5e5   :  { %10201 = vmatpush3.bf16.msra.mxu1 %v11347_v44 }
 0x5e6   :  { %10202 = vmatprep.subr.bf16.mxu1 %v11348_v46 }
 0x5e9   :  { %10203 = vmatpush3.bf16.msra.mxu1 %v11348_v46 }
 0x5ea   :  { %10204 = vmatprep.subr.bf16.mxu1 %v11349_v37 }
 0x5ed   :  { %10205 = vmatpush3.bf16.msra.mxu1 %v11349_v37 }
 0x5ee   :  { %10206 = vmatprep.subr.bf16.mxu1 %v11350_v48 }
 0x5f1   :  { %10207 = vmatpush3.bf16.msra.mxu1 %v11350_v48 }
 0x5f4   :  { %10209 = vmatmul.mubr.bf16.vlgmr.msra.gmra.mrb[20].mxu1 %v11875_v2 }
 0x5f5   :  { %10216 = vmatprep.mubr.msk.bf16.mxu1 %vm664_vm4, %v11351_v50  ;;  %v4063_v50 = vld [vmem:[%s13575_s18 + $0x20] sm:$0xff] }
 0x6c7   :  { %v10210_v53 = vpop.f32.mrb[20].mxu1 }
 0x6c8   :  { %v2548_v30 = vpop.f32.mrb[21].mxu1 }
 0x6c9   :  { %v10211_v54 = vpop.f32.mrb[22].mxu1 }
 0x6ca   :  { %v2564_v55 = vpack.c.bf16 %v10211_v54, %v10210_v53  ;;  %v2551_v26 = vpop.f32.mrb[23].mxu1  ;;  %v4070_v53 = vld [vmem:[%s13576_s24 + $0x18] sm:$0xff]  ;;  %v4064_v54 = vld [vmem:[%s13575_s18 + $0x28] sm:$0xff] }
 0x6cb   :  { %v2563_v56 = vpack.c.bf16 %v2551_v26, %v2548_v30  ;;  %v4065_v30 = vld [vmem:[%s13575_s18 + $0x30] sm:$0xff]  ;;  %v4066_v26 = vld [vmem:[%s13575_s18 + $0x38] sm:$0xff] }
 0x6cd   :  { %10212 = vmatprep.subr.bf16.mxu1 %v2563_v56 }
 0x6ce   :  { %10213 = vmatpush3.bf16.msra.mxu1 %v2563_v56  ;;  %v4072_v56 = vld [vmem:[%s13576_s24 + $0x28] sm:$0xff] }
 0x6cf   :  { %10214 = vmatprep.subr.bf16.mxu1 %v2564_v55 }
 0x6d2   :  { %10215 = vmatpush3.bf16.msra.mxu1 %v2564_v55  ;;  %v4071_v55 = vld [vmem:[%s13576_s24 + $0x20] sm:$0xff] }
 0x6d3   :  { %10244 = vmatprep.subr.bf16.mxu1 %v12220_v20 }
 0x6d5   :  { %10217 = vmatmul.mubr.msk.bf16.vlgmr.msra.gmra.mrb[4].mxu1 %vm664_vm4, %v11352_v51  ;;  %v12611_v51 = vpop.permute.xlu1 %4187 }
 0x6d6   :  { %10245 = vmatpush3.bf16.msra.mxu1 %v12220_v20  ;;  %10220 = vmatprep.mubr.msk.bf16.mxu1 %vm664_vm4, %v11353_v57  ;;  %v11356_v20 = vld [vmem:[%s13578_s30 + $0x148] sm:$0xff]   ;;  %v12613_v57 = vpop.permute.xlu0 %4182 }
 0x6d7   :  { %10246 = vmatprep.subr.bf16.mxu1 %v12218_v18 }
 0x6da   :  { %10247 = vmatpush3.bf16.msra.mxu1 %v12218_v18  ;;  %v11358_v18 = vld [vmem:[%s13578_s30 + $0x158] sm:$0xff]  }
 0x6db   :  { %10276 = vmatprep.subr.bf16.mxu1 %v12224_v27 }
 0x6dd   :  { %10221 = vmatmul.mubr.msk.bf16.gmra.mrb[8].mxu1 %vm664_vm4, %v11354_v41  ;;  %v12615_v41 = vpop.permute.xlu1 %4192 }
 0x6de   :  { %10248 = vmatprep.mubr.msk.bf16.mxu1 %vm664_vm4, %v11355_v58  ;;  %v12617_v58 = vpop.permute.xlu0 %4197 }
 0x6e5   :  { %10249 = vmatmul.mubr.msk.bf16.vlgmr.msra.gmra.mrb[4].mxu1 %vm664_vm4, %v11356_v20  ;;  %v12619_v20 = vpop.permute.xlu1 %4230 }
 0x6e6   :  { %10277 = vmatpush3.bf16.msra.mxu1 %v12224_v27  ;;  %10252 = vmatprep.mubr.msk.bf16.mxu1 %vm664_vm4, %v11357_v59  ;;  %v11360_v27 = vld [vmem:[%s13578_s30 + $0x168] sm:$0xff]   ;;  %v12621_v59 = vpop.permute.xlu0 %4235 }
 0x6e7   :  { %10278 = vmatprep.subr.bf16.mxu1 %v12222_v24 }
 0x6ea   :  { %10279 = vmatpush3.bf16.msra.mxu1 %v12222_v24  ;;  %v11364_v24 = vld [vmem:[%s13577_s1 + $0x340] sm:$0xff]  }
 0x6eb   :  { %10308 = vmatprep.subr.bf16.mxu1 %v12228_v34 }
 0x6ed   :  { %10253 = vmatmul.mubr.msk.bf16.gmra.mrb[8].mxu1 %vm664_vm4, %v11358_v18  ;;  %v12623_v18 = vpop.permute.xlu1 %4240 }
 0x6ee   :  { %10280 = vmatprep.mubr.msk.bf16.mxu1 %vm664_vm4, %v11359_v60 }
 0x6f5   :  { %10281 = vmatmul.mubr.msk.bf16.vlgmr.msra.gmra.mrb[4].mxu1 %vm664_vm4, %v11360_v27 }
 0x6f6   :  { %10309 = vmatpush3.bf16.msra.mxu1 %v12228_v34  ;;  %10284 = vmatprep.mubr.msk.bf16.mxu1 %vm664_vm4, %v11361_v0  ;;  %v11365_v34 = vld [vmem:[%s13578_s30 + $0x188] sm:$0xff]  }
 0x6f7   :  { %10310 = vmatprep.subr.bf16.mxu1 %v12226_v32 }
 0x6fa   :  { %10311 = vmatpush3.bf16.msra.mxu1 %v12226_v32  ;;  %v11366_v32 = vld [vmem:[%s13577_s1 + $0x348] sm:$0xff]  }
 0x6fb   :  { %10320 = vmatprep.subr.bf16.mxu1 %v11364_v24 }
 0x6fd   :  { %10285 = vmatmul.mubr.msk.bf16.gmra.mrb[8].mxu1 %vm664_vm4, %v11362_v63 }
 0x6fe   :  { %10312 = vmatprep.mubr.msk.bf16.mxu1 %vm664_vm4, %v11363_v45 }
 0x705   :  { %10313 = vmatmul.mubr.msk.bf16.vlgmr.msra.gmra.mrb[4].mxu1 %vm664_vm4, %v11365_v34 }
 0x706   :  { %10321 = vmatpush3.bf16.msra.mxu1 %v11364_v24  ;;  %10316 = vmatprep.mubr.msk.bf16.mxu1 %vm664_vm4, %v11367_v3 }
 0x707   :  { %10322 = vmatprep.subr.bf16.mxu1 %v11366_v32 }
 0x70a   :  { %10323 = vmatpush3.bf16.msra.mxu1 %v11366_v32 }
 0x70b   :  { %10324 = vmatprep.subr.bf16.mxu1 %v11368_v4 }
 0x70d   :  { %10317 = vmatmul.mubr.msk.bf16.gmra.mrb[8].mxu1 %vm664_vm4, %v11369_v62 }
 0x70e   :  { %10325 = vmatpush3.bf16.msra.mxu1 %v11368_v4  ;;  %10336 = vmatprep.mubr.bf16.mxu1 %v11869_v47  ;;  %v11374_v47 = vld [vmem:[%s13577_s1 + $0x378] sm:$0xff]  }
 0x70f   :  { %10326 = vmatprep.subr.bf16.mxu1 %v11370_v6 }
 0x712   :  { %10327 = vmatpush3.bf16.msra.mxu1 %v11370_v6 }
 0x713   :  { %10328 = vmatprep.subr.bf16.mxu1 %v11371_v8 }
 0x716   :  { %10329 = vmatpush3.bf16.msra.mxu1 %v11371_v8 }
 0x717   :  { %10330 = vmatprep.subr.bf16.mxu1 %v11372_v9 }
 0x71a   :  { %10331 = vmatpush3.bf16.msra.mxu1 %v11372_v9 }
 0x71b   :  { %10332 = vmatprep.subr.bf16.mxu1 %v11373_v10 }
 0x71e   :  { %10333 = vmatpush3.bf16.msra.mxu1 %v11373_v10 }
 0x71f   :  { %10334 = vmatprep.subr.bf16.mxu1 %v11374_v47 }
 0x722   :  { %10335 = vmatpush3.bf16.msra.mxu1 %v11374_v47 }
 0x725   :  { %10337 = vmatmul.mubr.bf16.vlgmr.msra.gmra.mrb[24].mxu1 %v11875_v2  ;;  %v11377_v2 = vld [vmem:[%s13578_s30 + $0x1b0] sm:$0xff]  }
 0x726   :  { %10344 = vmatprep.mubr.msk.bf16.mxu1 %vm664_vm4, %v11375_v11 }
 0x7f8   :  { %v10338_v13 = vpop.f32.mrb[24].mxu1 }
 0x7f9   :  { %v3468_v15 = vpop.f32.mrb[25].mxu1 }
 0x7fa   :  { %v10339_v16 = vpop.f32.mrb[26].mxu1 }
 0x7fb   :  { %v3484_v17 = vpack.c.bf16 %v10339_v16, %v10338_v13  ;;  %v3471_v19 = vpop.f32.mrb[27].mxu1 }
 0x7fc   :  { %v3483_v21 = vpack.c.bf16 %v3471_v19, %v3468_v15 }
 0x7fe   :  { %10340 = vmatprep.subr.bf16.mxu1 %v3483_v21 }
 0x7ff   :  { %10341 = vmatpush3.bf16.msra.mxu1 %v3483_v21 }
 0x800   :  { %10342 = vmatprep.subr.bf16.mxu1 %v3484_v17 }
 0x803   :  { %10343 = vmatpush3.bf16.msra.mxu1 %v3484_v17 }
 0x804   :  { %10372 = vmatprep.subr.bf16.mxu1 %v12243_v52 }
 0x806   :  { %10345 = vmatmul.mubr.msk.bf16.vlgmr.msra.gmra.mrb[4].mxu1 %vm664_vm4, %v11376_v22 }
 0x807   :  { %10373 = vmatpush3.bf16.msra.mxu1 %v12243_v52  ;;  %10348 = vmatprep.mubr.msk.bf16.mxu1 %vm664_vm4, %v11377_v2  ;;  %v11380_v52 = vld [vmem:[%s13578_s30 + $0x1c8] sm:$0xff]  }
 0x808   :  { %10374 = vmatprep.subr.bf16.mxu1 %v12241_v49 }
 0x80b   :  { %10375 = vmatpush3.bf16.msra.mxu1 %v12241_v49  ;;  %v11382_v49 = vld [vmem:[%s13578_s30 + $0x1d8] sm:$0xff]  }
 0x80c   :  { %10404 = vmatprep.subr.bf16.mxu1 %v12290_v1 }
 0x80e   :  { %10349 = vmatmul.mubr.msk.bf16.gmra.mrb[8].mxu1 %vm664_vm4, %v11378_v23 }
 0x80f   :  { %10376 = vmatprep.mubr.msk.bf16.mxu1 %vm664_vm4, %v11379_v25 }
 0x816   :  { %10377 = vmatmul.mubr.msk.bf16.vlgmr.msra.gmra.mrb[4].mxu1 %vm664_vm4, %v11380_v52 }
 0x817   :  { %10405 = vmatpush3.bf16.msra.mxu1 %v12290_v1  ;;  %10380 = vmatprep.mubr.msk.bf16.mxu1 %vm664_vm4, %v11381_v28  ;;  %v11384_v1 = vld [vmem:[%s13578_s30 + $0x1e8] sm:$0xff]  }
 0x818   :  { %10406 = vmatprep.subr.bf16.mxu1 %v12288_v61 }
 0x81b   :  { %10407 = vmatpush3.bf16.msra.mxu1 %v12288_v61  ;;  %v11386_v61 = vld [vmem:[%s13578_s30 + $0x1f8] sm:$0xff]  }
 0x81e   :  { %10381 = vmatmul.mubr.msk.bf16.gmra.mrb[8].mxu1 %vm664_vm4, %v11382_v49 }
 0x81f   :  { %10408 = vmatprep.mubr.msk.bf16.mxu1 %vm664_vm4, %v11383_v29 }
 0x826   :  { %10409 = vmatmul.mubr.msk.bf16.vlgmr.msra.gmra.mrb[4].mxu1 %vm664_vm4, %v11384_v1 }
 0x827   :  { %10412 = vmatprep.mubr.msk.bf16.mxu1 %vm664_vm4, %v11385_v31 }
 0x82e   :  { %10413 = vmatmul.mubr.msk.bf16.gmra.mrb[8].mxu1 %vm664_vm4, %v11386_v61 }
 0x8f9   :  { %v10410_v33 = vpop.f32.mrb[4].mxu1 }
 0x8fa   :  { %v4020_v7 = vpop.f32.mrb[5].mxu1  ;;  %v4081_v35 = vsel %vm664_vm4, %v10410_v33, 0.0 }
 0x8fb   :  { %4082 = vadd.xlane.f32.xlu0 %v4081_v35  ;;  %v10411_v5 = vpop.f32.mrb[6].mxu1  ;;  %v4075_v36 = vsel %vm664_vm4, %v4020_v7, 0.0 }
 0x8fc   :  { %4076 = vadd.xlane.f32.xlu1 %v4075_v36  ;;  %v4023_v38 = vpop.f32.mrb[7].mxu1  ;;  %v4084_v39 = vsel %vm664_vm4, %v10411_v5, 0.0 }
 0x8fd   :  { %v4078_v14 = vsel %vm664_vm4, %v4023_v38, 0.0 }
 0x8ff   :  { %4079 = vadd.xlane.f32.xlu0 %v4078_v14  ;;  %v4073_v14 = vld [vmem:[%s13576_s24 + $0x30] sm:$0xff] }
 0x900   :  { %4085 = vadd.xlane.f32.xlu1 %v4084_v39  ;;  %v4074_v39 = vld [vmem:[%s13576_s24 + $0x38] sm:$0xff] }
 0x901   :  { %v10414_v12 = vpop.f32.mrb[8].mxu1 }
 0x902   :  { %v12580_v40 = vpop.f32.mrb[9].mxu1  ;;  %v4093_v42 = vsel %vm664_vm4, %v10414_v12, 0.0 }
 0x903   :  { %4094 = vadd.xlane.f32.xlu0 %v4093_v42  ;;  %v10415_v43 = vpop.f32.mrb[10].mxu1  ;;  %v4087_v37 = vsel %vm664_vm4, %v12580_v40, 0.0  ;;  %v12690_v42 = vld [vmem:[%s13539_s8 + $0x8] sm:$0xff]  }
 0x904   :  { %v12583_v44 = vpop.f32.mrb[11].mxu1  ;;  %v4096_v46 = vsel %vm664_vm4, %v10415_v43, 0.0 }
 0x905   :  { %4097 = vadd.xlane.f32.xlu1 %v4096_v46  ;;  %v4090_v48 = vsel %vm664_vm4, %v12583_v44, 0.0 }
 0x907   :  { %4088 = vadd.xlane.f32.xlu0 %v4087_v37 }
 0x909   :  { %4091 = vadd.xlane.f32.xlu1 %v4090_v48 }
 0x91a   :  { %4202 = vperm.xlu1 %11172, %v4063_v50  }
 0x91d   :  { %4245 = vperm.xlu0 %11171, %v4070_v53  }
 0x91e   :  { %4212 = vperm.xlu1 %11172, %v4065_v30  }
 0x921   :  { %4207 = vperm.xlu0 %11171, %v4064_v54  }
 0x922   :  { %4250 = vperm.xlu1 %11172, %v4071_v55  }
 0x925   :  { %4217 = vperm.xlu0 %11171, %v4066_v26  }
 0x929   :  { %4255 = vperm.xlu0 %11171, %v4072_v56  }
 0x988   :  { %v4083_v60 = vpop.xlane.xlu0 %4082 }
 0x989   :  { %v4102_v27 = vmul.f32 0.03125, %v4083_v60  ;;  %v4077_v0 = vpop.xlane.xlu1 %4076 }
 0x98a   :  { %v4100_v24 = vmul.f32 0.03125, %v4077_v0 }
 0x98b   :  { %v12625_v63 = vsub.f32 %v10410_v33, %v4102_v27 }
 0x98c   :  { %v12627_v45 = vsub.f32 %v4020_v7, %v4100_v24  ;;  %v4080_v34 = vpop.xlane.xlu0 %4079 }
 0x98d   :  { %v4101_v3 = vmul.f32 0.03125, %v4080_v34  ;;  %v4086_v32 = vpop.xlane.xlu1 %4085  ;;  %v4118_v4 = vmul.f32 %v12625_v63, %v12625_v63 }
 0x98e   :  { %v4103_v62 = vmul.f32 0.03125, %v4086_v32  ;;  %v4116_v8 = vmul.f32 %v12627_v45, %v12627_v45 }
 0x98f   :  { %v4130_v6 = vsel %vm664_vm4, %v4118_v4, 0.0  ;;  %v12634_v9 = vsub.f32 %v4023_v38, %v4101_v3 }
 0x990   :  { %v12636_v10 = vsub.f32 %v10411_v5, %v4103_v62  ;;  %4131 = vadd.xlane.f32.xlu0 %v4130_v6  ;;  %v4095_v47 = vpop.xlane.xlu0 %4094  ;;  %v4124_v19 = vsel %vm664_vm4, %v4116_v8, 0.0 }
 0x991   :  { %v4106_v11 = vmul.f32 0.03125, %v4095_v47  ;;  %v4117_v2 = vmul.f32 %v12634_v9, %v12634_v9 }
 0x992   :  { %v4098_v13 = vpop.xlane.xlu1 %4097  ;;  %v4119_v15 = vmul.f32 %v12636_v10, %v12636_v10 }
 0x993   :  { %v12640_v16 = vsub.f32 %v10414_v12, %v4106_v11  ;;  %v4107_v17 = vmul.f32 0.03125, %v4098_v13  ;;  %v4127_v31 = vsel %vm664_vm4, %v4117_v2, 0.0  ;;  %v12676_v12 = vld [vmem:[%s13539_s8 + $0x10] sm:$0xff]  }
 0x994   :  { %4125 = vadd.xlane.f32.xlu0 %v4124_v19  ;;  %v4089_v21 = vpop.xlane.xlu0 %4088  ;;  %v4133_v22 = vsel %vm664_vm4, %v4119_v15, 0.0  ;;  %10428 = vmatprep.subr.bf16.mxu1 %v12676_v12 }
 0x995   :  { %v12646_v23 = vsub.f32 %v10415_v43, %v4107_v17  ;;  %v4104_v25 = vmul.f32 0.03125, %v4089_v21  ;;  %4134 = vadd.xlane.f32.xlu1 %v4133_v22  ;;  %v4122_v52 = vmul.f32 %v12640_v16, %v12640_v16  ;;  %10429 = vmatpush3.bf16.msra.mxu1 %v12676_v12  ;;  %v12695_v43 = vld [vmem:[%s13539_s8 + $0x18] sm:$0xff]  }
 0x996   :  { %v4092_v28 = vpop.xlane.xlu1 %4091  ;;  %10430 = vmatprep.subr.bf16.mxu1 %v12695_v43 }
 0x997   :  { %v12651_v49 = vsub.f32 %v12580_v40, %v4104_v25  ;;  %v4105_v29 = vmul.f32 0.03125, %v4092_v28  ;;  %v4142_v1 = vsel %vm664_vm4, %v4122_v52, 0.0  ;;  %v4123_v61 = vmul.f32 %v12646_v23, %v12646_v23  ;;  %v12681_v40 = vld [vmem:[%s13539_s8] sm:$0xff]  }
 0x998   :  { %4143 = vadd.xlane.f32.xlu0 %v4142_v1  ;;  %10416 = vmatprep.subr.bf16.mxu0 %v12681_v40 }
 0x999   :  { %v12658_v33 = vsub.f32 %v12583_v44, %v4105_v29  ;;  %4128 = vadd.xlane.f32.xlu1 %v4127_v31  ;;  %v4120_v7 = vmul.f32 %v12651_v49, %v12651_v49  ;;  %v4145_v5 = vsel %vm664_vm4, %v4123_v61, 0.0  ;;  %10417 = vmatpush3.bf16.msra.mxu0 %v12681_v40  ;;  %v12704_v44 = vld [vmem:[%s13539_s8 + $0x20] sm:$0xff]  }
 0x99a   :  { %10418 = vmatprep.subr.bf16.mxu0 %v12690_v42  ;;  %10431 = vmatpush3.bf16.msra.mxu1 %v12695_v43  ;;  %v12709_v48 = vpop.permute.xlu1 %4202 }
 0x99b   :  { %v4136_v35 = vsel %vm664_vm4, %v4120_v7, 0.0  ;;  %v4121_v36 = vmul.f32 %v12658_v33, %v12658_v33  ;;  %10464 = vmatprep.subr.bf16.mxu1 %v12704_v44 }
 0x99c   :  { %4137 = vadd.xlane.f32.xlu0 %v4136_v35  ;;  %v4246_v46 = vpop.permute.xlu0 %4245 }
 0x99d   :  { %4146 = vadd.xlane.f32.xlu1 %v4145_v5  ;;  %v4139_v38 = vsel %vm664_vm4, %v4121_v36, 0.0  ;;  %10419 = vmatpush3.bf16.msra.mxu0 %v12690_v42 }
 0x99e   :  { %v12713_v53 = vpop.permute.xlu1 %4212 }
 0x9a0   :  { %v12707_v37 = vpop.permute.xlu0 %4207 }
 0x9a1   :  { %4140 = vadd.xlane.f32.xlu1 %v4139_v38 }
 0x9a2   :  { %v12717_v55 = vpop.permute.xlu1 %4250 }
 0x9a4   :  { %v12711_v50 = vpop.permute.xlu0 %4217 }
 0x9a8   :  { %v12715_v30 = vpop.permute.xlu0 %4255 }
 0x9b2   :  { %4260 = vperm.xlu1 %11172, %v4073_v14   ;;  %4265 = vperm.xlu0 %11171, %v4074_v39  }
 0xa1d   :  { %v4132_v54 = vpop.xlane.xlu0 %4131 }
 0xa1e   :  { %v4150_v26 = vmul.f32 0.03125, %v4132_v54 }
 0xa20   :  { %v4158_v56 = vadd.f32 1e-05, %v4150_v26 }
 0xa21   :  { %v4126_v60 = vpop.xlane.xlu0 %4125 }
 0xa22   :  { %11467 = vrsqrt.f32 %v4158_v56  ;;  %v4148_v27 = vmul.f32 0.03125, %v4126_v60  ;;  %v4135_v0 = vpop.xlane.xlu1 %4134 }
 0xa23   :  { %v4151_v24 = vmul.f32 0.03125, %v4135_v0 }
 0xa24   :  { %v4156_v34 = vadd.f32 1e-05, %v4148_v27 }
 0xa25   :  { %v4159_v3 = vadd.f32 1e-05, %v4151_v24  ;;  %v4144_v32 = vpop.xlane.xlu0 %4143 }
 0xa26   :  { %11469 = vrsqrt.f32 %v4156_v34  ;;  %v4154_v4 = vmul.f32 0.03125, %v4144_v32  ;;  %v4129_v62 = vpop.xlane.xlu1 %4128 }
 0xa27   :  { %11471 = vrsqrt.f32 %v4159_v3  ;;  %v4149_v6 = vmul.f32 0.03125, %v4129_v62 }
 0xa28   :  { %v4162_v8 = vadd.f32 1e-05, %v4154_v4 }
 0xa29   :  { %v4157_v47 = vadd.f32 1e-05, %v4149_v6  ;;  %v4138_v11 = vpop.xlane.xlu0 %4137 }
 0xa2a   :  { %11473 = vrsqrt.f32 %v4162_v8  ;;  %v4152_v13 = vmul.f32 0.03125, %v4138_v11  ;;  %v4147_v15 = vpop.xlane.xlu1 %4146 }
 0xa2b   :  { %11475 = vrsqrt.f32 %v4157_v47  ;;  %v4155_v17 = vmul.f32 0.03125, %v4147_v15 }
 0xa2c   :  { %v11468_v19 = vpop.eup %11467  ;;  %v4160_v21 = vadd.f32 1e-05, %v4152_v13 }
 0xa2d   :  { %v4163_v22 = vadd.f32 1e-05, %v4155_v17  ;;  %v4174_v25 = vmul.f32 %v11468_v19, %v12625_v63 }
 0xa2e   :  { %11477 = vrsqrt.f32 %v4160_v21  ;;  %v4141_v2 = vpop.xlane.xlu1 %4140 }
 0xa2f   :  { %11479 = vrsqrt.f32 %v4163_v22  ;;  %v4153_v52 = vmul.f32 0.03125, %v4141_v2  ;;  %v4222_v7 = vmul.f32 %v12615_v41, %v4174_v25  ;;  %v12783_v22 = vld [vmem:[%s13539_s8 + $0x38] sm:$0xff]   ;;  %v12794_v2 = vld [vmem:[%s13539_s8 + $0x40] sm:$0xff]   ;;  %v12805_v25 = vld [vmem:[%s13539_s8 + $0x48] sm:$0xff]  }
 0xa30   :  { %v11470_v28 = vpop.eup %11469 }
 0xa31   :  { %v11472_v29 = vpop.eup %11471  ;;  %v4172_v1 = vmul.f32 %v11470_v28, %v12627_v45  ;;  %v4161_v31 = vadd.f32 1e-05, %v4153_v52  ;;  %v4270_v54 = vadd.f32 %v12623_v18, %v4222_v7  ;;  %v12816_v52 = vld [vmem:[%s13539_s8 + $0x50] sm:$0xff]   ;;  %v12827_v28 = vld [vmem:[%s13539_s8 + $0x58] sm:$0xff]   ;;  %v12882_v7 = vld [vmem:[%s13539_s8 + $0x80] sm:$0xff]  }
 0xa32   :  { %v4175_v61 = vmul.f32 %v11472_v29, %v12636_v10  ;;  %v4261_v32 = vpop.permute.xlu1 %4260  ;;  %v12838_v29 = vld [vmem:[%s13539_s8 + $0x60] sm:$0xff]  }
 0xa33   :  { %v4220_v35 = vmul.f32 %v12613_v57, %v4172_v1  ;;  %11481 = vrsqrt.f32 %v4161_v31  ;;  %vm4278_vm7 = vcmp.ge.f32.partialorder %v4270_v54, 0.0  ;;  %v12849_v1 = vld [vmem:[%s13539_s8 + $0x68] sm:$0xff]   ;;  %v12860_v31 = vld [vmem:[%s13539_s8 + $0x70] sm:$0xff]  }
 0xa34   :  { %v11474_v5 = vpop.eup %11473  ;;  %v4223_v36 = vmul.f32 %v12617_v58, %v4175_v61  ;;  %v12871_v61 = vld [vmem:[%s13539_s8 + $0x78] sm:$0xff]  }
 0xa35   :  { %v11476_v38 = vpop.eup %11475  ;;  %v4268_v63 = vadd.f32 %v12619_v20, %v4220_v35  ;;  %v4178_v45 = vmul.f32 %v11474_v5, %v12640_v16  ;;  %v12893_v35 = vld [vmem:[%s13539_s8 + $0x88] sm:$0xff]   ;;  %v11405_v5 = vld [vmem:[%s13540_s9 + $0x10] sm:$0xff]  }
 0xa36   :  { %v4271_v14 = vadd.f32 %v4246_v46, %v4223_v36  ;;  %v4173_v39 = vmul.f32 %v11476_v38, %v12634_v9  ;;  %v4286_v46 = vmul.f32 0.2, %v4270_v54 }
 0xa37   :  { %v4284_v56 = vmul.f32 0.2, %v4268_v63  ;;  %vm4276_vm5 = vcmp.ge.f32.partialorder %v4268_v63, 0.0  ;;  %v4226_v18 = vmul.f32 %v12713_v53, %v4178_v45 }
 0xa38   :  { %v11478_v26 = vpop.eup %11477  ;;  %v4221_v10 = vmul.f32 %v12611_v51, %v4173_v39  ;;  %v4287_v57 = vmul.f32 0.2, %v4271_v14  ;;  %vm4279_vm6 = vcmp.ge.f32.partialorder %v4271_v14, 0.0  ;;  %v4294_v4 = vsel %vm4278_vm7, %v4270_v54, %v4286_v46 }
 0xa39   :  { %v11480_v41 = vpop.eup %11479  ;;  %v4176_v60 = vmul.f32 %v11478_v26, %v12651_v49  ;;  %v4292_v0 = vsel %vm4276_vm5, %v4268_v63, %v4284_v56  ;;  %v4266_v49 = vpop.permute.xlu0 %4265  ;;  %v4274_v53 = vadd.f32 %v4261_v32, %v4226_v18 }
 0xa3a   :  { %v4269_v58 = vadd.f32 %v12621_v59, %v4221_v10  ;;  %v4179_v20 = vmul.f32 %v11480_v41, %v12646_v23  ;;  %v4295_v24 = vsel %vm4279_vm6, %v4271_v14, %v4287_v57 }
 0xa3b   :  { %v4224_v9 = vmul.f32 %v12709_v48, %v4176_v60  ;;  %v12740_v62 = vpack.c.bf16 %v4295_v24, %v4294_v4  ;;  %vm4282_vm12 = vcmp.ge.f32.partialorder %v4274_v53, 0.0 }
 0xa3c   :  { %vm4277_vm8 = vcmp.ge.f32.partialorder %v4269_v58, 0.0  ;;  %v4285_v16 = vmul.f32 0.2, %v4269_v58  ;;  %v4227_v51 = vmul.f32 %v12711_v50, %v4179_v20  ;;  %v12746_v50 = vld [vmem:[%s13539_s8 + $0x28] sm:$0xff]  }
 0xa3d   :  { %v11482_v27 = vpop.eup %11481  ;;  %v4272_v3 = vadd.f32 %v12717_v55, %v4224_v9 }
 0xa3e   :  { %v4293_v34 = vsel %vm4277_vm8, %v4269_v58, %v4285_v16  ;;  %v4177_v59 = vmul.f32 %v11482_v27, %v12658_v33  ;;  %v4275_v23 = vadd.f32 %v4266_v49, %v4227_v51 }
 0xa3f   :  { %v12738_v48 = vpack.c.bf16 %v4293_v34, %v4292_v0  ;;  %v4288_v33 = vmul.f32 0.2, %v4272_v3  ;;  %vm4280_vm10 = vcmp.ge.f32.partialorder %v4272_v3, 0.0 }
 0xa40   :  { %v4225_v6 = vmul.f32 %v12707_v37, %v4177_v59  ;;  %v4291_v8 = vmul.f32 0.2, %v4275_v23  ;;  %vm4283_vm9 = vcmp.ge.f32.partialorder %v4275_v23, 0.0  ;;  %v4290_v37 = vmul.f32 0.2, %v4274_v53 }
 0xa41   :  { %10420 = vmatprep.mubr.msk.bf16.mxu0 %vm664_vm4, %v12738_v48  ;;  %10432 = vmatprep.mubr.msk.bf16.mxu1 %vm664_vm4, %v12738_v48  ;;  %v4296_v13 = vsel %vm4280_vm10, %v4272_v3, %v4288_v33  ;;  %vm8282_vm10 = vcmask 8192  }
 0xa42   :  { %v4273_v55 = vadd.f32 %v12715_v30, %v4225_v6  ;;  %10421 = vmatmul.mubr.msk.bf16.vlgmr.msra.gmra.mrb[52].mxu0 %vm664_vm4, %v12740_v62  ;;  %10433 = vmatmul.mubr.msk.bf16.vlgmr.msra.gmra.mrb[28].mxu1 %vm664_vm4, %v12740_v62  ;;  %v12762_v30 = vld [vmem:[%s13539_s8 + $0x30] sm:$0xff]   ;;  %v4299_v11 = vsel %vm4283_vm9, %v4275_v23, %v4291_v8  ;;  %v4298_v19 = vsel %vm4282_vm12, %v4274_v53, %v4290_v37  ;;  %v11406_v23 = vld [vmem:[%s13540_s9 + $0x18] sm:$0xff]  }
 0xa43   :  { %10465 = vmatpush3.bf16.msra.mxu1 %v12704_v44  ;;  %v12767_v21 = vpack.c.bf16 %v4299_v11, %v4298_v19 }
 0xa44   :  { %vm4281_vm11 = vcmp.ge.f32.partialorder %v4273_v55, 0.0  ;;  %v4289_v47 = vmul.f32 0.2, %v4273_v55  ;;  %10466 = vmatprep.subr.bf16.mxu1 %v12746_v50 }
 0xa46   :  { %v4297_v15 = vsel %vm4281_vm11, %v4273_v55, %v4289_v47 }
 0xa47   :  { %v12764_v17 = vpack.c.bf16 %v4297_v15, %v4296_v13  ;;  %10467 = vmatpush3.bf16.msra.mxu1 %v12746_v50  ;;  %v11408_v15 = vld [vmem:[%s13540_s9 + $0x8] sm:$0xff]  }
 0xa48   :  { %10488 = vmatprep.subr.bf16.mxu1 %v12762_v30 }
 0xa49   :  { %10424 = vmatprep.mubr.msk.bf16.mxu0 %vm664_vm4, %v12764_v17  ;;  %10436 = vmatprep.mubr.msk.bf16.mxu1 %vm664_vm4, %v12764_v17 }
 0xa4a   :  { %10425 = vmatmul.mubr.msk.bf16.gmra.mrb[56].mxu0 %vm664_vm4, %v12767_v21  ;;  %10437 = vmatmul.mubr.msk.bf16.gmra.mrb[32].mxu1 %vm664_vm4, %v12767_v21 }
 0xa4b   :  { %10468 = vmatprep.mubr.msk.bf16.mxu1 %vm664_vm4, %v12738_v48  ;;  %10448 = vmatprep.mubr.msk.bf16.mxu0 %vm4506_vm13, %v11405_v5 }
 0xa52   :  { %10469 = vmatmul.mubr.msk.bf16.vlgmr.msra.gmra.mrb[36].mxu1 %vm664_vm4, %v12740_v62 }
 0xa53   :  { %10472 = vmatprep.mubr.msk.bf16.mxu1 %vm664_vm4, %v12764_v17  ;;  %10489 = vmatpush3.bf16.msra.mxu1 %v12762_v30 }
 0xa54   :  { %10490 = vmatprep.subr.bf16.mxu1 %v12783_v22 }
 0xa57   :  { %10491 = vmatpush3.bf16.msra.mxu1 %v12783_v22 }
 0xa58   :  { %10512 = vmatprep.subr.bf16.mxu1 %v12794_v2 }
 0xa5a   :  { %10473 = vmatmul.mubr.msk.bf16.gmra.mrb[40].mxu1 %vm664_vm4, %v12767_v21 }
 0xa5b   :  { %10492 = vmatprep.mubr.msk.bf16.mxu1 %vm664_vm4, %v12738_v48 }
 0xa62   :  { %10493 = vmatmul.mubr.msk.bf16.vlgmr.msra.gmra.mrb[44].mxu1 %vm664_vm4, %v12740_v62 }
 0xa63   :  { %10496 = vmatprep.mubr.msk.bf16.mxu1 %vm664_vm4, %v12764_v17  ;;  %10513 = vmatpush3.bf16.msra.mxu1 %v12794_v2 }
 0xa64   :  { %10514 = vmatprep.subr.bf16.mxu1 %v12805_v25 }
 0xa67   :  { %10515 = vmatpush3.bf16.msra.mxu1 %v12805_v25 }
 0xa68   :  { %10536 = vmatprep.subr.bf16.mxu1 %v12816_v52 }
 0xa6a   :  { %10497 = vmatmul.mubr.msk.bf16.gmra.mrb[48].mxu1 %vm664_vm4, %v12767_v21 }
 0xa6b   :  { %10516 = vmatprep.mubr.msk.bf16.mxu1 %vm664_vm4, %v12738_v48 }
 0xa72   :  { %10517 = vmatmul.mubr.msk.bf16.vlgmr.msra.gmra.mrb[52].mxu1 %vm664_vm4, %v12740_v62 }
 0xa73   :  { %10520 = vmatprep.mubr.msk.bf16.mxu1 %vm664_vm4, %v12764_v17  ;;  %10537 = vmatpush3.bf16.msra.mxu1 %v12816_v52 }
 0xa74   :  { %10538 = vmatprep.subr.bf16.mxu1 %v12827_v28 }
 0xa77   :  { %10539 = vmatpush3.bf16.msra.mxu1 %v12827_v28 }
 0xa78   :  { %10560 = vmatprep.subr.bf16.mxu1 %v12838_v29 }
 0xa7a   :  { %10521 = vmatmul.mubr.msk.bf16.gmra.mrb[56].mxu1 %vm664_vm4, %v12767_v21 }
 0xa7b   :  { %10540 = vmatprep.mubr.msk.bf16.mxu1 %vm664_vm4, %v12738_v48 }
 0xa82   :  { %10541 = vmatmul.mubr.msk.bf16.vlgmr.msra.gmra.mrb[60].mxu1 %vm664_vm4, %v12740_v62 }
 0xa83   :  { %10544 = vmatprep.mubr.msk.bf16.mxu1 %vm664_vm4, %v12764_v17  ;;  %10561 = vmatpush3.bf16.msra.mxu1 %v12838_v29 }
 0xa84   :  { %10562 = vmatprep.subr.bf16.mxu1 %v12849_v1 }
 0xa87   :  { %10563 = vmatpush3.bf16.msra.mxu1 %v12849_v1 }
 0xa88   :  { %10584 = vmatprep.subr.bf16.mxu1 %v12860_v31 }
 0xa8a   :  { %10545 = vmatmul.mubr.msk.bf16.gmra.mrb[64].mxu1 %vm664_vm4, %v12767_v21 }
 0xa8b   :  { %10564 = vmatprep.mubr.msk.bf16.mxu1 %vm664_vm4, %v12738_v48 }
 0xa92   :  { %10565 = vmatmul.mubr.msk.bf16.vlgmr.msra.gmra.mrb[68].mxu1 %vm664_vm4, %v12740_v62 }
 0xa93   :  { %10568 = vmatprep.mubr.msk.bf16.mxu1 %vm664_vm4, %v12764_v17  ;;  %10585 = vmatpush3.bf16.msra.mxu1 %v12860_v31 }
 0xa94   :  { %10586 = vmatprep.subr.bf16.mxu1 %v12871_v61 }
 0xa97   :  { %10587 = vmatpush3.bf16.msra.mxu1 %v12871_v61 }
 0xa98   :  { %10608 = vmatprep.subr.bf16.mxu1 %v12882_v7 }
 0xa9a   :  { %10569 = vmatmul.mubr.msk.bf16.gmra.mrb[72].mxu1 %vm664_vm4, %v12767_v21 }
 0xa9b   :  { %10588 = vmatprep.mubr.msk.bf16.mxu1 %vm664_vm4, %v12738_v48 }
 0xaa2   :  { %10589 = vmatmul.mubr.msk.bf16.vlgmr.msra.gmra.mrb[76].mxu1 %vm664_vm4, %v12740_v62 }
 0xaa3   :  { %10592 = vmatprep.mubr.msk.bf16.mxu1 %vm664_vm4, %v12764_v17  ;;  %10609 = vmatpush3.bf16.msra.mxu1 %v12882_v7 }
 0xaa4   :  { %10610 = vmatprep.subr.bf16.mxu1 %v12893_v35 }
 0xaa7   :  { %10611 = vmatpush3.bf16.msra.mxu1 %v12893_v35 }
 0xaaa   :  { %10593 = vmatmul.mubr.msk.bf16.gmra.mrb[80].mxu1 %vm664_vm4, %v12767_v21 }
 0xaab   :  { %10612 = vmatprep.mubr.msk.bf16.mxu1 %vm664_vm4, %v12738_v48  ;;  %v11407_v48 = vld [vmem:[%s13540_s9] sm:$0xff]  }
 0xab2   :  { %10613 = vmatmul.mubr.msk.bf16.vlgmr.msra.gmra.mrb[84].mxu1 %vm664_vm4, %v12740_v62 }
 0xab3   :  { %10616 = vmatprep.mubr.msk.bf16.mxu1 %vm664_vm4, %v12764_v17 }
 0xaba   :  { %10617 = vmatmul.mubr.msk.bf16.gmra.mrb[88].mxu1 %vm664_vm4, %v12767_v21  ;;  %v11409_v21 = vld [vmem:[%s13540_s9 + $0x20] sm:$0xff]  }
 0xb15   :  { %v10422_v36 = vpop.f32.mrb[52].mxu0  ;;  %v10434_v38 = vpop.f32.mrb[28].mxu1 }
 0xb16   :  { %v4366_v63 = vpop.f32.mrb[53].mxu0  ;;  %v4456_v14 = vpop.f32.mrb[29].mxu1 }
 0xb17   :  { %v10423_v39 = vpop.f32.mrb[54].mxu0  ;;  %v10435_v54 = vpop.f32.mrb[30].mxu1 }
 0xb18   :  { %v4398_v45 = vpack.c.bf16 %v10423_v39, %v10422_v36  ;;  %v4488_v26 = vpack.c.bf16 %v10435_v54, %v10434_v38  ;;  %v4369_v10 = vpop.f32.mrb[55].mxu0  ;;  %v4459_v41 = vpop.f32.mrb[31].mxu1 }
 0xb19   :  { %v4397_v56 = vpack.c.bf16 %v4369_v10, %v4366_v63  ;;  %v4487_v57 = vpack.c.bf16 %v4459_v41, %v4456_v14  ;;  %v11410_v41 = vld [vmem:[%s13540_s9 + $0x28] sm:$0xff]  }
 0xb1b   :  { %10440 = vmatprep.subr.bf16.mxu0 %v4487_v57 }
 0xb1c   :  { %10441 = vmatpush3.bf16.msra.mxu0 %v4487_v57 }
 0xb1d   :  { %v10426_v60 = vpop.f32.mrb[56].mxu0  ;;  %v10438_v58 = vpop.f32.mrb[32].mxu1  ;;  %10442 = vmatprep.subr.bf16.mxu0 %v4488_v26 }
 0xb1e   :  { %v4382_v20 = vpop.f32.mrb[57].mxu0  ;;  %v4472_v46 = vpop.f32.mrb[33].mxu1 }
 0xb1f   :  { %v10427_v9 = vpop.f32.mrb[58].mxu0  ;;  %v10439_v18 = vpop.f32.mrb[34].mxu1 }
 0xb20   :  { %v4400_v16 = vpack.c.bf16 %v10427_v9, %v10426_v60  ;;  %v4490_v51 = vpack.c.bf16 %v10439_v18, %v10438_v58  ;;  %v4385_v27 = vpop.f32.mrb[59].mxu0  ;;  %v4475_v0 = vpop.f32.mrb[35].mxu1  ;;  %10443 = vmatpush3.bf16.msra.mxu0 %v4488_v26  ;;  %v11411_v60 = vld [vmem:[%s13540_s9 + $0x30] sm:$0xff]  }
 0xb21   :  { %v4399_v24 = vpack.c.bf16 %v4385_v27, %v4382_v20  ;;  %v4489_v49 = vpack.c.bf16 %v4475_v0, %v4472_v46 }
 0xb23   :  { %10444 = vmatprep.subr.bf16.mxu0 %v4489_v49 }
 0xb24   :  { %10445 = vmatpush3.bf16.msra.mxu0 %v4489_v49  ;;  %v11412_v49 = vld [vmem:[%s13540_s9 + $0x38] sm:$0xff]  }
 0xb25   :  { %10446 = vmatprep.subr.bf16.mxu0 %v4490_v51  ;;  %v10470_v34 = vpop.f32.mrb[36].mxu1 }
 0xb26   :  { %v4678_v3 = vpop.f32.mrb[37].mxu1 }
 0xb27   :  { %v10471_v59 = vpop.f32.mrb[38].mxu1 }
 0xb28   :  { %v4710_v32 = vpack.c.bf16 %v10471_v59, %v10470_v34  ;;  %10447 = vmatpush3.bf16.msra.mxu0 %v4490_v51  ;;  %v4681_v4 = vpop.f32.mrb[39].mxu1  ;;  %v11413_v59 = vld [vmem:[%s13540_s9 + $0x40] sm:$0xff]  }
 0xb29   :  { %v4709_v53 = vpack.c.bf16 %v4681_v4, %v4678_v3  ;;  %10452 = vmatprep.subr.bf16.mxu0 %v4397_v56 }
 0xb2b   :  { %10449 = vmatmul.mubr.msk.bf16.vlgmr.msra.gmra.mrb[60].mxu0 %vm4506_vm13, %v11406_v23 }
 0xb2c   :  { %10453 = vmatpush3.bf16.msra.mxu0 %v4397_v56  ;;  %10460 = vmatprep.mubr.msk.bf16.mxu0 %vm4506_vm13, %v11407_v48 }
 0xb2d   :  { %10454 = vmatprep.subr.bf16.mxu0 %v4398_v45  ;;  %v10474_v62 = vpop.f32.mrb[40].mxu1 }
 0xb2e   :  { %v4694_v6 = vpop.f32.mrb[41].mxu1 }
 0xb2f   :  { %v10475_v8 = vpop.f32.mrb[42].mxu1 }
 0xb30   :  { %v4712_v33 = vpack.c.bf16 %v10475_v8, %v10474_v62  ;;  %10455 = vmatpush3.bf16.msra.mxu0 %v4398_v45  ;;  %v4697_v55 = vpop.f32.mrb[43].mxu1 }
 0xb31   :  { %v4711_v37 = vpack.c.bf16 %v4697_v55, %v4694_v6  ;;  %10456 = vmatprep.subr.bf16.mxu0 %v4399_v24 }
 0xb34   :  { %10457 = vmatpush3.bf16.msra.mxu0 %v4399_v24 }
 0xb35   :  { %10458 = vmatprep.subr.bf16.mxu0 %v4400_v16  ;;  %v10494_v47 = vpop.f32.mrb[44].mxu1 }
 0xb36   :  { %v4838_v11 = vpop.f32.mrb[45].mxu1 }
 0xb37   :  { %v10495_v13 = vpop.f32.mrb[46].mxu1 }
 0xb38   :  { %v4870_v17 = vpack.c.bf16 %v10495_v13, %v10494_v47  ;;  %10459 = vmatpush3.bf16.msra.mxu0 %v4400_v16  ;;  %v4841_v19 = vpop.f32.mrb[47].mxu1  ;;  %v11415_v13 = vld [vmem:[%s13540_s9 + $0x50] sm:$0xff]  }
 0xb39   :  { %v4869_v5 = vpack.c.bf16 %v4841_v19, %v4838_v11  ;;  %10476 = vmatprep.subr.bf16.mxu0 %v4709_v53 }
 0xb3b   :  { %10461 = vmatmul.mubr.msk.bf16.vlgmr.msra.gmra.mrb[60].mxu0 %vm4506_vm13, %v11408_v15 }
 0xb3c   :  { %10477 = vmatpush3.bf16.msra.mxu0 %v4709_v53  ;;  %10484 = vmatprep.mubr.msk.bf16.mxu0 %vm4506_vm13, %v11409_v21 }
 0xb3d   :  { %10478 = vmatprep.subr.bf16.mxu0 %v4710_v32  ;;  %v10498_v36 = vpop.f32.mrb[48].mxu1 }
 0xb3e   :  { %v4854_v38 = vpop.f32.mrb[49].mxu1 }
 0xb3f   :  { %v10499_v63 = vpop.f32.mrb[50].mxu1 }
 0xb40   :  { %v4872_v14 = vpack.c.bf16 %v10499_v63, %v10498_v36  ;;  %10479 = vmatpush3.bf16.msra.mxu0 %v4710_v32  ;;  %v4857_v39 = vpop.f32.mrb[51].mxu1 }
 0xb41   :  { %v4871_v54 = vpack.c.bf16 %v4857_v39, %v4854_v38  ;;  %10480 = vmatprep.subr.bf16.mxu0 %v4711_v37 }
 0xb44   :  { %10481 = vmatpush3.bf16.msra.mxu0 %v4711_v37  ;;  %v11414_v37 = vld [vmem:[%s13540_s9 + $0x48] sm:$0xff]  }
 0xb45   :  { %10482 = vmatprep.subr.bf16.mxu0 %v4712_v33  ;;  %v10518_v45 = vpop.f32.mrb[52].mxu1 }
 0xb46   :  { %v4998_v26 = vpop.f32.mrb[53].mxu1 }
 0xb47   :  { %v10519_v10 = vpop.f32.mrb[54].mxu1 }
 0xb48   :  { %v5030_v56 = vpack.c.bf16 %v10519_v10, %v10518_v45  ;;  %10483 = vmatpush3.bf16.msra.mxu0 %v4712_v33  ;;  %v5001_v57 = vpop.f32.mrb[55].mxu1  ;;  %v11417_v10 = vld [vmem:[%s13540_s9 + $0x60] sm:$0xff]  }
 0xb49   :  { %v5029_v58 = vpack.c.bf16 %v5001_v57, %v4998_v26  ;;  %10500 = vmatprep.subr.bf16.mxu0 %v4869_v5 }
 0xb4b   :  { %10485 = vmatmul.mubr.msk.bf16.vlgmr.msra.gmra.mrb[60].mxu0 %vm4506_vm13, %v11410_v41 }
 0xb4c   :  { %10501 = vmatpush3.bf16.msra.mxu0 %v4869_v5  ;;  %10508 = vmatprep.mubr.msk.bf16.mxu0 %vm4506_vm13, %v11411_v60 }
 0xb4d   :  { %10502 = vmatprep.subr.bf16.mxu0 %v4870_v17  ;;  %v10522_v20 = vpop.f32.mrb[56].mxu1 }
 0xb4e   :  { %v5014_v46 = vpop.f32.mrb[57].mxu1 }
 0xb4f   :  { %v10523_v9 = vpop.f32.mrb[58].mxu1 }
 0xb50   :  { %v5032_v18 = vpack.c.bf16 %v10523_v9, %v10522_v20  ;;  %10503 = vmatpush3.bf16.msra.mxu0 %v4870_v17  ;;  %v5017_v16 = vpop.f32.mrb[59].mxu1 }
 0xb51   :  { %v5031_v51 = vpack.c.bf16 %v5017_v16, %v5014_v46  ;;  %10504 = vmatprep.subr.bf16.mxu0 %v4871_v54 }
 0xb54   :  { %10505 = vmatpush3.bf16.msra.mxu0 %v4871_v54  ;;  %v11416_v54 = vld [vmem:[%s13540_s9 + $0x58] sm:$0xff]  }
 0xb55   :  { %10506 = vmatprep.subr.bf16.mxu0 %v4872_v14  ;;  %v10542_v27 = vpop.f32.mrb[60].mxu1 }
 0xb56   :  { %v5158_v0 = vpop.f32.mrb[61].mxu1 }
 0xb57   :  { %v10543_v24 = vpop.f32.mrb[62].mxu1 }
 0xb58   :  { %v5190_v34 = vpack.c.bf16 %v10543_v24, %v10542_v27  ;;  %10507 = vmatpush3.bf16.msra.mxu0 %v4872_v14  ;;  %v5161_v3 = vpop.f32.mrb[63].mxu1  ;;  %v11419_v24 = vld [vmem:[%s13540_s9 + $0x70] sm:$0xff]  }
 0xb59   :  { %v5189_v23 = vpack.c.bf16 %v5161_v3, %v5158_v0  ;;  %10524 = vmatprep.subr.bf16.mxu0 %v5029_v58 }
 0xb5b   :  { %10509 = vmatmul.mubr.msk.bf16.vlgmr.msra.gmra.mrb[60].mxu0 %vm4506_vm13, %v11412_v49 }
 0xb5c   :  { %10525 = vmatpush3.bf16.msra.mxu0 %v5029_v58  ;;  %10532 = vmatprep.mubr.msk.bf16.mxu0 %vm4506_vm13, %v11413_v59 }
 0xb5d   :  { %10526 = vmatprep.subr.bf16.mxu0 %v5030_v56  ;;  %v10546_v32 = vpop.f32.mrb[64].mxu1 }
 0xb5e   :  { %v5174_v4 = vpop.f32.mrb[65].mxu1 }
 0xb5f   :  { %v10547_v48 = vpop.f32.mrb[66].mxu1 }
 0xb60   :  { %v5192_v53 = vpack.c.bf16 %v10547_v48, %v10546_v32  ;;  %10527 = vmatpush3.bf16.msra.mxu0 %v5030_v56  ;;  %v5177_v62 = vpop.f32.mrb[67].mxu1  ;;  %v11420_v48 = vld [vmem:[%s13540_s9 + $0x78] sm:$0xff]  }
 0xb61   :  { %v5191_v6 = vpack.c.bf16 %v5177_v62, %v5174_v4  ;;  %10528 = vmatprep.subr.bf16.mxu0 %v5031_v51  ;;  %v11422_v62 = vld [vmem:[%s13540_s9 + $0x88] sm:$0xff]  }
 0xb64   :  { %10529 = vmatpush3.bf16.msra.mxu0 %v5031_v51  ;;  %v11418_v51 = vld [vmem:[%s13540_s9 + $0x68] sm:$0xff]  }
 0xb65   :  { %10530 = vmatprep.subr.bf16.mxu0 %v5032_v18  ;;  %v10566_v8 = vpop.f32.mrb[68].mxu1 }
 0xb66   :  { %v5318_v33 = vpop.f32.mrb[69].mxu1 }
 0xb67   :  { %v10567_v55 = vpop.f32.mrb[70].mxu1 }
 0xb68   :  { %v5350_v47 = vpack.c.bf16 %v10567_v55, %v10566_v8  ;;  %10531 = vmatpush3.bf16.msra.mxu0 %v5032_v18  ;;  %v5321_v11 = vpop.f32.mrb[71].mxu1 }
 0xb69   :  { %v5349_v15 = vpack.c.bf16 %v5321_v11, %v5318_v33  ;;  %10548 = vmatprep.subr.bf16.mxu0 %v5189_v23 }
 0xb6b   :  { %10533 = vmatmul.mubr.msk.bf16.vlgmr.msra.gmra.mrb[60].mxu0 %vm4506_vm13, %v11414_v37 }
 0xb6c   :  { %10549 = vmatpush3.bf16.msra.mxu0 %v5189_v23  ;;  %10556 = vmatprep.mubr.msk.bf16.mxu0 %vm4506_vm13, %v11415_v13 }
 0xb6d   :  { %10550 = vmatprep.subr.bf16.mxu0 %v5190_v34  ;;  %v10570_v17 = vpop.f32.mrb[72].mxu1 }
 0xb6e   :  { %v5334_v19 = vpop.f32.mrb[73].mxu1 }
 0xb6f   :  { %v10571_v21 = vpop.f32.mrb[74].mxu1 }
 0xb70   :  { %v5352_v5 = vpack.c.bf16 %v10571_v21, %v10570_v17  ;;  %10551 = vmatpush3.bf16.msra.mxu0 %v5190_v34  ;;  %v5337_v36 = vpop.f32.mrb[75].mxu1  ;;  %v5749_v17 = vld [vmem:[%s13541_s10 + $0x10] sm:$0xff]  ;;  %v5751_v21 = vld [vmem:[%s13542_s11] sm:$0xff] }
 0xb71   :  { %v5351_v38 = vpack.c.bf16 %v5337_v36, %v5334_v19  ;;  %10552 = vmatprep.subr.bf16.mxu0 %v5191_v6  ;;  %v5747_v19 = vld [vmem:[%s13541_s10] sm:$0xff]  ;;  %v5752_v36 = vld [vmem:[%s13542_s11 + $0x8] sm:$0xff] }
 0xb74   :  { %10553 = vmatpush3.bf16.msra.mxu0 %v5191_v6 }
 0xb75   :  { %10554 = vmatprep.subr.bf16.mxu0 %v5192_v53  ;;  %v10590_v63 = vpop.f32.mrb[76].mxu1 }
 0xb76   :  { %v5478_v14 = vpop.f32.mrb[77].mxu1 }
 0xb77   :  { %v10591_v39 = vpop.f32.mrb[78].mxu1 }
 0xb78   :  { %v5510_v45 = vpack.c.bf16 %v10591_v39, %v10590_v63  ;;  %10555 = vmatpush3.bf16.msra.mxu0 %v5192_v53  ;;  %v5481_v26 = vpop.f32.mrb[79].mxu1  ;;  %v11421_v53 = vld [vmem:[%s13540_s9 + $0x80] sm:$0xff]  }
 0xb79   :  { %v5509_v41 = vpack.c.bf16 %v5481_v26, %v5478_v14  ;;  %10572 = vmatprep.subr.bf16.mxu0 %v5349_v15  ;;  %v5867_v63 = vld [vmem:[%s13543_s12] sm:$0xf]  ;;  %v11423_v26 = vld [vmem:[%s13544_s13 + $0x10] sm:$0xff]  }
 0xb7b   :  { %10557 = vmatmul.mubr.msk.bf16.vlgmr.msra.gmra.mrb[60].mxu0 %vm4506_vm13, %v11416_v54  ;;  %v5753_v54 = vld [vmem:[%s13542_s11 + $0x10] sm:$0xff] }
 0xb7c   :  { %10573 = vmatpush3.bf16.msra.mxu0 %v5349_v15  ;;  %10580 = vmatprep.mubr.msk.bf16.mxu0 %vm4506_vm13, %v11417_v10  ;;  %v5748_v15 = vld [vmem:[%s13541_s10 + $0x8] sm:$0xff] }
 0xb7d   :  { %10574 = vmatprep.subr.bf16.mxu0 %v5350_v47  ;;  %v10594_v56 = vpop.f32.mrb[80].mxu1 }
 0xb7e   :  { %v5494_v57 = vpop.f32.mrb[81].mxu1 }
 0xb7f   :  { %v10595_v60 = vpop.f32.mrb[82].mxu1 }
 0xb80   :  { %v5512_v58 = vpack.c.bf16 %v10595_v60, %v10594_v56  ;;  %10575 = vmatpush3.bf16.msra.mxu0 %v5350_v47  ;;  %v5497_v20 = vpop.f32.mrb[83].mxu1 }
 0xb81   :  { %v5511_v46 = vpack.c.bf16 %v5497_v20, %v5494_v57  ;;  %10576 = vmatprep.subr.bf16.mxu0 %v5351_v38 }
 0xb84   :  { %10577 = vmatpush3.bf16.msra.mxu0 %v5351_v38  ;;  %v11564_v38 = vmov 0.0  }
 0xb85   :  { %10578 = vmatprep.subr.bf16.mxu0 %v5352_v5  ;;  %v10614_v9 = vpop.f32.mrb[84].mxu1  ;;  %10632 = vmatprep.subr.bf16.mxu1 %v11564_v38 }
 0xb86   :  { %v5638_v18 = vpop.f32.mrb[85].mxu1  ;;  %10636 = vmatprep.mubr.msk.bf16.mxu1 %vm11565_vm14, %v11564_v38  ;;  %10633 = vmatpush3.bf16.msra.mxu1 %v12681_v40 }
 0xb87   :  { %v10615_v16 = vpop.f32.mrb[86].mxu1  ;;  %10634 = vmatprep.subr.bf16.mxu1 %v11564_v38 }
 0xb88   :  { %v5670_v27 = vpack.c.bf16 %v10615_v16, %v10614_v9  ;;  %10579 = vmatpush3.bf16.msra.mxu0 %v5352_v5  ;;  %v5641_v0 = vpop.f32.mrb[87].mxu1  ;;  %v5750_v5 = vld [vmem:[%s13541_s10 + $0x18] sm:$0xff] }
 0xb89   :  { %v5669_v49 = vpack.c.bf16 %v5641_v0, %v5638_v18  ;;  %10596 = vmatprep.subr.bf16.mxu0 %v5509_v41 }
 0xb8a   :  { %10635 = vmatpush3.bf16.msra.mxu1 %v12690_v42 }
 0xb8b   :  { %10581 = vmatmul.mubr.msk.bf16.vlgmr.msra.gmra.mrb[60].mxu0 %vm4506_vm13, %v11418_v51  ;;  %10640 = vmatprep.subr.bf16.mxu1 %v11564_v38 }
 0xb8c   :  { %10597 = vmatpush3.bf16.msra.mxu0 %v5509_v41  ;;  %10604 = vmatprep.mubr.msk.bf16.mxu0 %vm4506_vm13, %v11419_v24 }
 0xb8d   :  { %10598 = vmatprep.subr.bf16.mxu0 %v5510_v45  ;;  %v10618_v34 = vpop.f32.mrb[88].mxu1  ;;  %10637 = vmatmul.mubr.msk.bf16.vlgmr.msra.gmra.mrb[92].mxu1 %vm664_vm4, %v5867_v63 }
 0xb8e   :  { %v5654_v3 = vpop.f32.mrb[89].mxu1  ;;  %10641 = vmatpush3.bf16.msra.mxu1 %v12676_v12  ;;  %10644 = vmatprep.mubr.msk.bf16.mxu1 %vm11565_vm14, %v11564_v38 }
 0xb8f   :  { %v10619_v59 = vpop.f32.mrb[90].mxu1  ;;  %10642 = vmatprep.subr.bf16.mxu1 %v11564_v38 }
 0xb90   :  { %v5672_v23 = vpack.c.bf16 %v10619_v59, %v10618_v34  ;;  %10599 = vmatpush3.bf16.msra.mxu0 %v5510_v45  ;;  %v5657_v32 = vpop.f32.mrb[91].mxu1  ;;  %v5754_v45 = vld [vmem:[%s13542_s11 + $0x18] sm:$0xff] }
 0xb91   :  { %v5671_v4 = vpack.c.bf16 %v5657_v32, %v5654_v3  ;;  %10600 = vmatprep.subr.bf16.mxu0 %v5511_v46  ;;  %v11424_v59 = vld [vmem:[%s13544_s13 + $0x18] sm:$0xff]  }
 0xb92   :  { %10643 = vmatpush3.bf16.msra.mxu1 %v12695_v43 }
 0xb94   :  { %10601 = vmatpush3.bf16.msra.mxu0 %v5511_v46 }
 0xb95   :  { %10602 = vmatprep.subr.bf16.mxu0 %v5512_v58  ;;  %10645 = vmatmul.mubr.msk.bf16.vlgmr.msra.gmra.mrb[96].mxu1 %vm664_vm4, %v5867_v63 }
 0xb96   :  { %10650 = vmatprep.mubr.msk.bf16.mxu1 %vm5972_vm15, %v11423_v26 }
 0xb98   :  { %10603 = vmatpush3.bf16.msra.mxu0 %v5512_v58 }
 0xb99   :  { %10620 = vmatprep.subr.bf16.mxu0 %v5669_v49 }
 0xb9b   :  { %10605 = vmatmul.mubr.msk.bf16.vlgmr.msra.gmra.mrb[60].mxu0 %vm4506_vm13, %v11420_v48 }
 0xb9c   :  { %10621 = vmatpush3.bf16.msra.mxu0 %v5669_v49  ;;  %10628 = vmatprep.mubr.msk.bf16.mxu0 %vm4506_vm13, %v11421_v53 }
 0xb9d   :  { %10622 = vmatprep.subr.bf16.mxu0 %v5670_v27 }
 0xba0   :  { %10623 = vmatpush3.bf16.msra.mxu0 %v5670_v27 }
 0xba1   :  { %10624 = vmatprep.subr.bf16.mxu0 %v5671_v4 }
 0xba4   :  { %10625 = vmatpush3.bf16.msra.mxu0 %v5671_v4  ;;  %v11425_v4 = vld [vmem:[%s13544_s13] sm:$0xff]  }
 0xba5   :  { %10626 = vmatprep.subr.bf16.mxu0 %v5672_v23 }
 0xba8   :  { %10627 = vmatpush3.bf16.msra.mxu0 %v5672_v23 }
 0xba9   :  { %10660 = vmatprep.subr.bf16.mxu0 %v11564_v38 }
 0xbab   :  { %10629 = vmatmul.mubr.msk.bf16.vlgmr.msra.gmra.mrb[60].mxu0 %vm4506_vm13, %v11422_v62 }
 0xbac   :  { %10661 = vmatpush3.bf16.msra.mxu0 %v12704_v44  ;;  %10664 = vmatprep.mubr.msk.bf16.mxu0 %vm11565_vm14, %v11564_v38 }
 0xbad   :  { %10662 = vmatprep.subr.bf16.mxu0 %v11564_v38 }
 0xbb0   :  { %10663 = vmatpush3.bf16.msra.mxu0 %v12746_v50 }
 0xbb1   :  { %10674 = vmatprep.subr.bf16.mxu0 %v11564_v38 }
 0xbb3   :  { %10665 = vmatmul.mubr.msk.bf16.vlgmr.msra.gmra.mrb[64].mxu0 %vm664_vm4, %v5867_v63 }
 0xbb4   :  { %10675 = vmatpush3.bf16.msra.mxu0 %v12762_v30  ;;  %10678 = vmatprep.mubr.msk.bf16.mxu0 %vm11565_vm14, %v11564_v38 }
 0xbb5   :  { %10676 = vmatprep.subr.bf16.mxu0 %v11564_v38 }
 0xbb8   :  { %10677 = vmatpush3.bf16.msra.mxu0 %v12783_v22 }
 0xbb9   :  { %10688 = vmatprep.subr.bf16.mxu0 %v11564_v38 }
 0xbbb   :  { %10679 = vmatmul.mubr.msk.bf16.vlgmr.msra.gmra.mrb[68].mxu0 %vm664_vm4, %v5867_v63 }
 0xbbc   :  { %10689 = vmatpush3.bf16.msra.mxu0 %v12794_v2  ;;  %10692 = vmatprep.mubr.msk.bf16.mxu0 %vm11565_vm14, %v11564_v38 }
 0xbbd   :  { %10690 = vmatprep.subr.bf16.mxu0 %v11564_v38 }
 0xbc0   :  { %10691 = vmatpush3.bf16.msra.mxu0 %v12805_v25 }
 0xbc1   :  { %10702 = vmatprep.subr.bf16.mxu0 %v11564_v38 }
 0xbc3   :  { %10693 = vmatmul.mubr.msk.bf16.vlgmr.msra.gmra.mrb[72].mxu0 %vm664_vm4, %v5867_v63 }
 0xbc4   :  { %10703 = vmatpush3.bf16.msra.mxu0 %v12816_v52  ;;  %10706 = vmatprep.mubr.msk.bf16.mxu0 %vm11565_vm14, %v11564_v38 }
 0xbc5   :  { %10704 = vmatprep.subr.bf16.mxu0 %v11564_v38 }
 0xbc8   :  { %10705 = vmatpush3.bf16.msra.mxu0 %v12827_v28 }
 0xbc9   :  { %10716 = vmatprep.subr.bf16.mxu0 %v11564_v38 }
 0xbcb   :  { %10707 = vmatmul.mubr.msk.bf16.vlgmr.msra.gmra.mrb[76].mxu0 %vm664_vm4, %v5867_v63 }
 0xbcc   :  { %10717 = vmatpush3.bf16.msra.mxu0 %v12838_v29  ;;  %10720 = vmatprep.mubr.msk.bf16.mxu0 %vm11565_vm14, %v11564_v38 }
 0xbcd   :  { %10718 = vmatprep.subr.bf16.mxu0 %v11564_v38 }
 0xbd0   :  { %10719 = vmatpush3.bf16.msra.mxu0 %v12849_v1 }
 0xbd1   :  { %10730 = vmatprep.subr.bf16.mxu0 %v11564_v38 }
 0xbd3   :  { %10721 = vmatmul.mubr.msk.bf16.vlgmr.msra.gmra.mrb[80].mxu0 %vm664_vm4, %v5867_v63 }
 0xbd4   :  { %10731 = vmatpush3.bf16.msra.mxu0 %v12860_v31  ;;  %10734 = vmatprep.mubr.msk.bf16.mxu0 %vm11565_vm14, %v11564_v38 }
 0xbd5   :  { %10732 = vmatprep.subr.bf16.mxu0 %v11564_v38 }
 0xbd8   :  { %10733 = vmatpush3.bf16.msra.mxu0 %v12871_v61 }
 0xbd9   :  { %10744 = vmatprep.subr.bf16.mxu0 %v11564_v38 }
 0xbdb   :  { %10735 = vmatmul.mubr.msk.bf16.vlgmr.msra.gmra.mrb[84].mxu0 %vm664_vm4, %v5867_v63 }
 0xbdc   :  { %10745 = vmatpush3.bf16.msra.mxu0 %v12882_v7  ;;  %10748 = vmatprep.mubr.msk.bf16.mxu0 %vm11565_vm14, %v11564_v38 }
 0xbdd   :  { %10746 = vmatprep.subr.bf16.mxu0 %v11564_v38 }
 0xbe0   :  { %10747 = vmatpush3.bf16.msra.mxu0 %v12893_v35 }
 0xbe1   :  { %10758 = vmatprep.subr.bf16.mxu0 %v12681_v40 }
 0xbe3   :  { %10749 = vmatmul.mubr.msk.bf16.vlgmr.msra.gmra.mrb[88].mxu0 %vm664_vm4, %v5867_v63  ;;  %v11427_v63 = vld [vmem:[%s13544_s13 + $0x20] sm:$0xff]  }
 0xbe4   :  { %10759 = vmatpush3.bf16.msra.mxu0 %v12681_v40 }
 0xbe5   :  { %10760 = vmatprep.subr.bf16.mxu0 %v12690_v42 }
 0xbe8   :  { %10761 = vmatpush3.bf16.msra.mxu0 %v12690_v42 }
 0xbe9   :  { %10766 = vmatprep.subr.bf16.mxu0 %v12676_v12 }
 0xc60   :  { %v5905_v10 = vpop.f32.mrb[92].mxu1 }
 0xc61   :  { %v10638_v56 = vpop.f32.mrb[93].mxu1  ;;  %v5911_v27 = vpack.c.bf16 %v5905_v10, %v5905_v10 }
 0xc62   :  { %v5908_v57 = vpop.f32.mrb[94].mxu1 }
 0xc63   :  { %v10639_v58 = vpop.f32.mrb[95].mxu1  ;;  %v6049_v62 = vsel %vm5979_vm0, %v5911_v27, 0 }
 0xc68   :  { %v5950_v16 = vpop.f32.mrb[96].mxu1 }
 0xc69   :  { %v5956_v0 = vpack.c.bf16 %v5950_v16, %v5950_v16  ;;  %v10646_v24 = vpop.f32.mrb[97].mxu1 }
 0xc6a   :  { %v5953_v49 = vpop.f32.mrb[98].mxu1 }
 0xc6b   :  { %v5981_v3 = vsel %vm5979_vm0, %v5956_v0, 0  ;;  %11156 = vmatprep.subr.msk.bf16.mxu1 %vm5979_vm0, %v5956_v0  ;;  %v10647_v23 = vpop.f32.mrb[99].mxu1 }
 0xc6c   :  { %10649 = vmatpush3.bf16.msra.mxu1 %v5981_v3 }
 0xc6d   :  { %11157 = vmatprep.subr.msk.bf16.mxu1 %vm5979_vm0, %v5911_v27 }
 0xc6f   :  { %10651 = vmatmul.mubr.msk.bf16.vlgmr.msra.gmra.mrb[100].mxu1 %vm5972_vm15, %v11424_v59 }
 0xc70   :  { %10655 = vmatpush3.bf16.msra.mxu1 %v6049_v62  ;;  %10656 = vmatprep.mubr.msk.bf16.mxu1 %vm5972_vm15, %v11425_v4 }
 0xc7e   :  { %v12984_v6 = vpop.f32.mrb[60].mxu0 }
 0xc7f   :  { %v12986_v8 = vpop.f32.mrb[61].mxu0  ;;  %v5761_v13 = vsel %vm664_vm4, %v12984_v6, 0.0 }
 0xc80   :  { %v12988_v33 = vpop.f32.mrb[62].mxu0  ;;  %v5755_v55 = vsel %vm664_vm4, %v12986_v8, 0.0 }
 0xc81   :  { %5756 = vadd.xlane.f32.xlu1 %v5755_v55  ;;  %v12992_v37 = vpop.f32.mrb[63].mxu0  ;;  %v5764_v11 = vsel %vm664_vm4, %v12988_v33, 0.0 }
 0xc82   :  { %v5758_v47 = vsel %vm664_vm4, %v12992_v37, 0.0 }
 0xc83   :  { %5759 = vadd.xlane.f32.xlu0 %v5758_v47 }
 0xc85   :  { %5765 = vadd.xlane.f32.xlu1 %v5764_v11 }
 0xc86   :  { %v6134_v60 = vpop.f32.mrb[64].mxu0 }
 0xc87   :  { %5762 = vadd.xlane.f32.xlu0 %v5761_v13  ;;  %v10666_v20 = vpop.f32.mrb[65].mxu0 }
 0xc88   :  { %v6137_v46 = vpop.f32.mrb[66].mxu0 }
 0xc89   :  { %v10667_v9 = vpop.f32.mrb[67].mxu0 }
 0xc8e   :  { %v6252_v34 = vpop.f32.mrb[68].mxu0 }
 0xc8f   :  { %v10680_v32 = vpop.f32.mrb[69].mxu0 }
 0xc90   :  { %v6255_v48 = vpop.f32.mrb[70].mxu0 }
 0xc96   :  { %5814 = vperm.xlu1 %11172, %v5748_v15  }
 0xc9a   :  { %5819 = vperm.xlu1 %11172, %v5749_v17  }
 0xc9d   :  { %5809 = vperm.xlu0 %11171, %v5747_v19  }
 0xc9e   :  { %5833 = vperm.xlu1 %11172, %v5751_v21   ;;  %v11426_v21 = vld [vmem:[%s13544_s13 + $0x8] sm:$0xff]  }
 0xc9f   :  { %10657 = vmatmul.mubr.msk.bf16.vlgmr.msra.gmra.mrb[100].mxu1 %vm5972_vm15, %v11426_v21  ;;  %v8287_v21 = vld [vmem:[%s13550_s19 + $0x18] sm:$0xff] }
 0xca0   :  { %10670 = vmatprep.mubr.msk.bf16.mxu1 %vm5972_vm15, %v11427_v63 }
 0xca1   :  { %5824 = vperm.xlu0 %11171, %v5750_v5  }
 0xca5   :  { %5838 = vperm.xlu0 %11171, %v5752_v36  }
 0xd0e   :  { %v5757_v43 = vpop.xlane.xlu1 %5756 }
 0xd0f   :  { %v5767_v22 = vmul.f32 0.03125, %v5757_v43 }
 0xd10   :  { %v5760_v44 = vpop.xlane.xlu0 %5759 }
 0xd11   :  { %v5768_v50 = vmul.f32 0.03125, %v5760_v44  ;;  %v13096_v29 = vsub.f32 %v12986_v8, %v5767_v22  ;;  %v10681_v8 = vpop.f32.mrb[71].mxu0 }
 0xd12   :  { %v5766_v30 = vpop.xlane.xlu1 %5765  ;;  %v6370_v55 = vpop.f32.mrb[72].mxu0 }
 0xd13   :  { %v5770_v2 = vmul.f32 0.03125, %v5766_v30  ;;  %v13090_v52 = vsub.f32 %v12992_v37, %v5768_v50  ;;  %v5775_v35 = vmul.f32 %v13096_v29, %v13096_v29  ;;  %v10694_v47 = vpop.f32.mrb[73].mxu0  ;;  %v6258_v50 = vpack.c.bf16 %v6252_v34, %v6252_v34 }
 0xd14   :  { %v5763_v25 = vpop.xlane.xlu0 %5762  ;;  %v6373_v11 = vpop.f32.mrb[74].mxu0  ;;  %v6376_v57 = vpack.c.bf16 %v6370_v55, %v6370_v55 }
 0xd15   :  { %v13093_v28 = vsub.f32 %v12988_v33, %v5770_v2  ;;  %v5769_v40 = vmul.f32 0.03125, %v5763_v25  ;;  %v5776_v61 = vmul.f32 %v13090_v52, %v13090_v52  ;;  %v5779_v39 = vsel %vm664_vm4, %v5775_v35, 0.0  ;;  %v10695_v15 = vpop.f32.mrb[75].mxu0 }
 0xd16   :  { %v13123_v41 = vpop.permute.xlu1 %5814  ;;  %v6488_v2 = vpop.f32.mrb[76].mxu0  ;;  %v6281_v56 = vsel %vm5979_vm0, %v6258_v50, 0  ;;  %v6399_v8 = vsel %vm5979_vm0, %v6376_v57, 0 }
 0xd17   :  { %v13099_v42 = vsub.f32 %v12984_v6, %v5769_v40  ;;  %v5778_v12 = vmul.f32 %v13093_v28, %v13093_v28  ;;  %v5782_v14 = vsel %vm664_vm4, %v5776_v61, 0.0  ;;  %v6140_v6 = vpack.c.bf16 %v6134_v60, %v6134_v60  ;;  %v10708_v40 = vpop.f32.mrb[77].mxu0 }
 0xd18   :  { %v6494_v55 = vpack.c.bf16 %v6488_v2, %v6488_v2 }
 0xd19   :  { %v5788_v1 = vsel %vm664_vm4, %v5778_v12, 0.0  ;;  %v5777_v31 = vmul.f32 %v13099_v42, %v13099_v42  ;;  %11158 = vmatprep.subr.msk.bf16.mxu1 %vm5979_vm0, %v6140_v6  ;;  %v6163_v44 = vsel %vm5979_vm0, %v6140_v6, 0 }
 0xd1a   :  { %5789 = vadd.xlane.f32.xlu1 %v5788_v1  ;;  %v13127_v51 = vpop.permute.xlu1 %5819  ;;  %10669 = vmatpush3.bf16.msra.mxu1 %v6163_v44 }
 0xd1b   :  { %v5785_v7 = vsel %vm664_vm4, %v5777_v31, 0.0  ;;  %v6491_v31 = vpop.f32.mrb[78].mxu0  ;;  %11159 = vmatprep.subr.msk.bf16.mxu1 %vm5979_vm0, %v6258_v50 }
 0xd1c   :  { %5786 = vadd.xlane.f32.xlu0 %v5785_v7  ;;  %v13125_v18 = vpop.permute.xlu0 %5809  ;;  %v10709_v61 = vpop.f32.mrb[79].mxu0  ;;  %v11499_v31 = vld [vmem:[%s13539_s8 + $0x10] sm:$0xff]  }
 0xd1d   :  { %v13154_v35 = vpop.f32.mrb[80].mxu0 }
 0xd1e   :  { %5783 = vadd.xlane.f32.xlu1 %v5782_v14  ;;  %v13141_v33 = vpop.permute.xlu1 %5833  ;;  %v11428_v14 = vld [vmem:[%s13544_s13 + $0x28] sm:$0xff]  }
 0xd1f   :  { %10671 = vmatmul.mubr.msk.bf16.vlgmr.msra.gmra.mrb[100].mxu1 %vm5972_vm15, %v11428_v14 }
 0xd20   :  { %5780 = vadd.xlane.f32.xlu0 %v5779_v39  ;;  %v5825_v53 = vpop.permute.xlu0 %5824  ;;  %v10722_v39 = vpop.f32.mrb[81].mxu0  ;;  %10683 = vmatpush3.bf16.msra.mxu1 %v6281_v56  ;;  %v6612_v56 = vpack.c.bf16 %v13154_v35, %v13154_v35  ;;  %v11503_v35 = vld [vmem:[%s13539_s8 + $0x30] sm:$0xff]  }
 0xd21   :  { %v6609_v26 = vpop.f32.mrb[82].mxu0  ;;  %11160 = vmatprep.subr.msk.bf16.mxu1 %vm5979_vm0, %v6376_v57  ;;  %v11502_v57 = vld [vmem:[%s13539_s8 + $0x28] sm:$0xff]  }
 0xd22   :  { %v10723_v60 = vpop.f32.mrb[83].mxu0  ;;  %v6517_v26 = vsel %vm5979_vm0, %v6494_v55, 0 }
 0xd23   :  { %v13170_v49 = vpop.f32.mrb[84].mxu0  ;;  %v11434_v60 = vld [vmem:[%s13544_s13 + $0x58] sm:$0xff]  }
 0xd24   :  { %v5839_v37 = vpop.permute.xlu0 %5838  ;;  %v10736_v23 = vpop.f32.mrb[85].mxu0 }
 0xd25   :  { %v6727_v32 = vpop.f32.mrb[86].mxu0  ;;  %v11510_v23 = vld [vmem:[%s13539_s8 + $0x68] sm:$0xff]  }
 0xd2f   :  { %5843 = vperm.xlu1 %11172, %v5753_v54  }
 0xd36   :  { %5848 = vperm.xlu0 %11171, %v5754_v45   ;;  %v11429_v45 = vld [vmem:[%s13544_s13 + $0x30] sm:$0xff]  }
 0xd37   :  { %10684 = vmatprep.mubr.msk.bf16.mxu1 %vm5972_vm15, %v11429_v45  ;;  %v11501_v45 = vld [vmem:[%s13539_s8 + $0x20] sm:$0xff]  }
 0xda7   :  { %v5790_v13 = vpop.xlane.xlu1 %5789 }
 0xda8   :  { %v5794_v17 = vmul.f32 0.03125, %v5790_v13 }
 0xda9   :  { %v5787_v19 = vpop.xlane.xlu0 %5786 }
 0xdaa   :  { %v5798_v5 = vadd.f32 1e-05, %v5794_v17  ;;  %v5793_v36 = vmul.f32 0.03125, %v5787_v19 }
 0xdab   :  { %v5784_v43 = vpop.xlane.xlu1 %5783 }
 0xdac   :  { %11483 = vrsqrt.f32 %v5798_v5  ;;  %v5797_v30 = vadd.f32 1e-05, %v5793_v36  ;;  %v5792_v22 = vmul.f32 0.03125, %v5784_v43 }
 0xdad   :  { %v5781_v25 = vpop.xlane.xlu0 %5780 }
 0xdae   :  { %11485 = vrsqrt.f32 %v5797_v30  ;;  %v5796_v12 = vadd.f32 1e-05, %v5792_v22  ;;  %v5791_v1 = vmul.f32 0.03125, %v5781_v25 }
 0xdaf   :  { %v5844_v27 = vpop.permute.xlu1 %5843 }
 0xdb0   :  { %11487 = vrsqrt.f32 %v5796_v12  ;;  %v5795_v7 = vadd.f32 1e-05, %v5791_v1 }
 0xdb2   :  { %11489 = vrsqrt.f32 %v5795_v7  ;;  %v11500_v7 = vld [vmem:[%s13539_s8 + $0x18] sm:$0xff]  }
 0xdb5   :  { %v5849_v24 = vpop.permute.xlu0 %5848 }
 0xdb6   :  { %v11484_v54 = vpop.eup %11483 }
 0xdb7   :  { %v5806_v10 = vmul.f32 %v11484_v54, %v13093_v28  ;;  %v11432_v54 = vld [vmem:[%s13544_s13 + $0x48] sm:$0xff]  }
 0xdb8   :  { %v11486_v58 = vpop.eup %11485 }
 0xdb9   :  { %v5805_v20 = vmul.f32 %v11486_v58, %v13099_v42  ;;  %v5830_v46 = vmul.f32 %v5825_v53, %v5806_v10  ;;  %v10737_v53 = vpop.f32.mrb[87].mxu0  ;;  %v11433_v10 = vld [vmem:[%s13544_s13 + $0x50] sm:$0xff]   ;;  %v11504_v58 = vld [vmem:[%s13539_s8 + $0x38] sm:$0xff]  }
 0xdba   :  { %v11488_v9 = vpop.eup %11487  ;;  %v13192_v17 = vpop.f32.mrb[88].mxu0  ;;  %v11514_v53 = vld [vmem:[%s13539_s8 + $0x88] sm:$0xff]  }
 0xdbb   :  { %v5804_v16 = vmul.f32 %v11488_v9, %v13090_v52  ;;  %v5829_v0 = vmul.f32 %v13127_v51, %v5805_v20  ;;  %v5854_v59 = vadd.f32 %v5849_v24, %v5830_v46  ;;  %v8285_v51 = vld [vmem:[%s13550_s19 + $0x8] sm:$0xff]  ;;  %v10750_v36 = vpop.f32.mrb[89].mxu0  ;;  %v6635_v20 = vsel %vm5979_vm0, %v6612_v56, 0  ;;  %v11435_v46 = vld [vmem:[%s13544_s13 + $0x60] sm:$0xff]  }
 0xdbc   :  { %v11490_v28 = vpop.eup %11489  ;;  %v6845_v50 = vpop.f32.mrb[90].mxu0  ;;  %v6730_v9 = vpack.c.bf16 %v13170_v49, %v13170_v49  ;;  %v6848_v49 = vpack.c.bf16 %v13192_v17, %v13192_v17  ;;  %v11442_v36 = vld [vmem:[%s13545_s14 + $0x18] sm:$0xff]  }
 0xdbd   :  { %v5828_v42 = vmul.f32 %v13123_v41, %v5804_v16  ;;  %v5803_v34 = vmul.f32 %v11490_v28, %v13096_v29  ;;  %v5853_v3 = vadd.f32 %v5844_v27, %v5829_v0  ;;  %v5862_v6 = vmul.f32 0.2, %v5854_v59  ;;  %v11430_v29 = vld [vmem:[%s13544_s13 + $0x38] sm:$0xff]   ;;  %v10751_v22 = vpop.f32.mrb[91].mxu0  ;;  %v11505_v16 = vld [vmem:[%s13539_s8 + $0x40] sm:$0xff]   ;;  %v11506_v27 = vld [vmem:[%s13539_s8 + $0x48] sm:$0xff]  }
 0xdbe   :  { %vm5858_vm3 = vcmp.ge.f32.partialorder %v5854_v59, 0.0  ;;  %10685 = vmatmul.mubr.msk.bf16.vlgmr.msra.gmra.mrb[100].mxu1 %vm5972_vm15, %v11430_v29  ;;  %v11436_v0 = vld [vmem:[%s13544_s13 + $0x68] sm:$0xff]   ;;  %v11507_v28 = vld [vmem:[%s13539_s8 + $0x50] sm:$0xff]   ;;  %v6753_v24 = vsel %vm5979_vm0, %v6730_v9, 0  ;;  %v6871_v32 = vsel %vm5979_vm0, %v6848_v49, 0 }
 0xdbf   :  { %v5852_v4 = vadd.f32 %v5839_v37, %v5828_v42  ;;  %v5827_v52 = vmul.f32 %v13125_v18, %v5803_v34  ;;  %v5861_v48 = vmul.f32 0.2, %v5853_v3  ;;  %vm5857_vm1 = vcmp.ge.f32.partialorder %v5853_v3, 0.0  ;;  %v11431_v18 = vld [vmem:[%s13544_s13 + $0x40] sm:$0xff]   ;;  %10697 = vmatpush3.bf16.msra.mxu1 %v6399_v8  ;;  %v11437_v42 = vld [vmem:[%s13544_s13 + $0x70] sm:$0xff]   ;;  %v11508_v34 = vld [vmem:[%s13539_s8 + $0x58] sm:$0xff]  }
 0xdc0   :  { %v8284_v37 = vld [vmem:[%s13550_s19] sm:$0xff]  ;;  %v5866_v5 = vsel %vm5858_vm3, %v5854_v59, %v5862_v6  ;;  %10698 = vmatprep.mubr.msk.bf16.mxu1 %vm5972_vm15, %v11431_v18  ;;  %11161 = vmatprep.subr.msk.bf16.mxu1 %vm5979_vm0, %v6494_v55  ;;  %v11438_v59 = vld [vmem:[%s13544_s13 + $0x78] sm:$0xff]  }
 0xdc1   :  { %v5851_v62 = vadd.f32 %v13141_v33, %v5827_v52  ;;  %vm5856_vm2 = vcmp.ge.f32.partialorder %v5852_v4, 0.0  ;;  %v5860_v41 = vmul.f32 0.2, %v5852_v4  ;;  %v8286_v33 = vld [vmem:[%s13550_s19 + $0x10] sm:$0xff]  ;;  %v5865_v13 = vsel %vm5857_vm1, %v5853_v3, %v5861_v48  ;;  %v11509_v3 = vld [vmem:[%s13539_s8 + $0x60] sm:$0xff]   ;;  %v11512_v52 = vld [vmem:[%s13539_s8 + $0x78] sm:$0xff]  }
 0xdc2   :  { %v8290_v44 = vmul.f32 %v8286_v33, %v5865_v13  ;;  %v13201_v30 = vpack.c.bf16 %v5866_v5, %v5865_v13  ;;  %v8291_v40 = vmul.f32 %v8287_v21, %v5866_v5  ;;  %v11513_v48 = vld [vmem:[%s13539_s8 + $0x80] sm:$0xff]  }
 0xdc3   :  { %vm5855_vm5 = vcmp.ge.f32.partialorder %v5851_v62, 0.0  ;;  %v5859_v47 = vmul.f32 0.2, %v5851_v62  ;;  %v5864_v11 = vsel %vm5856_vm2, %v5852_v4, %v5860_v41  ;;  %v11511_v4 = vld [vmem:[%s13539_s8 + $0x70] sm:$0xff]  }
 0xdc4   :  { %v8289_v15 = vmul.f32 %v8285_v51, %v5864_v11  ;;  %v8295_v1 = vsel %vm664_vm4, %v8290_v44, 0.0  ;;  %v8297_v14 = vsel %vm664_vm4, %v8291_v40, 0.0  ;;  %v11439_v51 = vld [vmem:[%s13544_s13 + $0x80] sm:$0xff]   ;;  %v11441_v41 = vld [vmem:[%s13545_s14 + $0x10] sm:$0xff]  }
 0xdc5   :  { %v5863_v19 = vsel %vm5855_vm5, %v5851_v62, %v5859_v47  ;;  %v11440_v62 = vld [vmem:[%s13544_s13 + $0x88] sm:$0xff]   ;;  %v11443_v44 = vld [vmem:[%s13545_s14] sm:$0xff]  }
 0xdc6   :  { %v13198_v63 = vpack.c.bf16 %v5864_v11, %v5863_v19  ;;  %v8288_v43 = vmul.f32 %v8284_v37, %v5863_v19  ;;  %v8293_v25 = vsel %vm664_vm4, %v8289_v15, 0.0 }
 0xdc8   :  { %v8292_v2 = vsel %vm664_vm4, %v8288_v43, 0.0  ;;  %10762 = vmatprep.mubr.msk.bf16.mxu0 %vm664_vm4, %v13198_v63 }
 0xdc9   :  { %v8294_v12 = vadd.f32 %v8293_v25, %v8292_v2  ;;  %10763 = vmatmul.mubr.msk.bf16.vlgmr.msra.gmra.mrb[92].mxu0 %vm664_vm4, %v13201_v30 }
 0xdca   :  { %10767 = vmatpush3.bf16.msra.mxu0 %v11499_v31  ;;  %10770 = vmatprep.mubr.msk.bf16.mxu0 %vm664_vm4, %v13198_v63  ;;  %v11445_v31 = vld [vmem:[%s13545_s14 + $0x20] sm:$0xff]  }
 0xdcb   :  { %v8296_v61 = vadd.f32 %v8295_v1, %v8294_v12  ;;  %10768 = vmatprep.subr.bf16.mxu0 %v11500_v7  ;;  %10699 = vmatmul.mubr.msk.bf16.vlgmr.msra.gmra.mrb[100].mxu1 %vm5972_vm15, %v11432_v54  ;;  %v11444_v1 = vld [vmem:[%s13545_s14 + $0x8] sm:$0xff]  }
 0xdcc   :  { %10711 = vmatpush3.bf16.msra.mxu1 %v6517_v26  ;;  %10712 = vmatprep.mubr.msk.bf16.mxu1 %vm5972_vm15, %v11433_v10 }
 0xdcd   :  { %v13220_v39 = vadd.f32 %v8297_v14, %v8296_v61  ;;  %11162 = vmatprep.subr.msk.bf16.mxu1 %vm5979_vm0, %v6612_v56 }
 0xdce   :  { %10769 = vmatpush3.bf16.msra.mxu0 %v11500_v7 }
 0xdcf   :  { %10790 = vmatprep.subr.bf16.mxu0 %v11501_v45 }
 0xdd1   :  { %10771 = vmatmul.mubr.msk.bf16.vlgmr.msra.gmra.mrb[96].mxu0 %vm664_vm4, %v13201_v30 }
 0xdd2   :  { %10791 = vmatpush3.bf16.msra.mxu0 %v11501_v45  ;;  %10794 = vmatprep.mubr.msk.bf16.mxu0 %vm664_vm4, %v13198_v63 }
 0xdd3   :  { %10792 = vmatprep.subr.bf16.mxu0 %v11502_v57 }
 0xdd6   :  { %10793 = vmatpush3.bf16.msra.mxu0 %v11502_v57 }
 0xdd7   :  { %10806 = vmatprep.subr.bf16.mxu0 %v11503_v35  ;;  %10713 = vmatmul.mubr.msk.bf16.vlgmr.msra.gmra.mrb[100].mxu1 %vm5972_vm15, %v11434_v60 }
 0xdd8   :  { %10725 = vmatpush3.bf16.msra.mxu1 %v6635_v20  ;;  %10726 = vmatprep.mubr.msk.bf16.mxu1 %vm5972_vm15, %v11435_v46  ;;  %v11447_v20 = vld [vmem:[%s13545_s14 + $0x30] sm:$0xff]  }
 0xdd9   :  { %10795 = vmatmul.mubr.msk.bf16.vlgmr.msra.gmra.mrb[100].mxu0 %vm664_vm4, %v13201_v30  ;;  %11163 = vmatprep.subr.msk.bf16.mxu1 %vm5979_vm0, %v6730_v9 }
 0xdda   :  { %10807 = vmatpush3.bf16.msra.mxu0 %v11503_v35  ;;  %10810 = vmatprep.mubr.msk.bf16.mxu0 %vm664_vm4, %v13198_v63  ;;  %v11446_v35 = vld [vmem:[%s13545_s14 + $0x28] sm:$0xff]  }
 0xddb   :  { %10808 = vmatprep.subr.bf16.mxu0 %v11504_v58 }
 0xdde   :  { %10809 = vmatpush3.bf16.msra.mxu0 %v11504_v58 }
 0xddf   :  { %10822 = vmatprep.subr.bf16.mxu0 %v11505_v16 }
 0xde1   :  { %10811 = vmatmul.mubr.msk.bf16.vlgmr.msra.gmra.mrb[104].mxu0 %vm664_vm4, %v13201_v30 }
 0xde2   :  { %10823 = vmatpush3.bf16.msra.mxu0 %v11505_v16  ;;  %10826 = vmatprep.mubr.msk.bf16.mxu0 %vm664_vm4, %v13198_v63 }
 0xde3   :  { %10824 = vmatprep.subr.bf16.mxu0 %v11506_v27  ;;  %10727 = vmatmul.mubr.msk.bf16.vlgmr.msra.gmra.mrb[100].mxu1 %vm5972_vm15, %v11436_v0 }
 0xde4   :  { %10739 = vmatpush3.bf16.msra.mxu1 %v6753_v24  ;;  %10740 = vmatprep.mubr.msk.bf16.mxu1 %vm5972_vm15, %v11437_v42  ;;  %v11449_v42 = vld [vmem:[%s13545_s14 + $0x40] sm:$0xff]  }
 0xde5   :  { %11164 = vmatprep.subr.msk.bf16.mxu1 %vm5979_vm0, %v6848_v49  ;;  %v11448_v49 = vld [vmem:[%s13545_s14 + $0x38] sm:$0xff]  }
 0xde6   :  { %10825 = vmatpush3.bf16.msra.mxu0 %v11506_v27 }
 0xde7   :  { %10838 = vmatprep.subr.bf16.mxu0 %v11507_v28 }
 0xde9   :  { %10827 = vmatmul.mubr.msk.bf16.vlgmr.msra.gmra.mrb[108].mxu0 %vm664_vm4, %v13201_v30 }
 0xdea   :  { %10839 = vmatpush3.bf16.msra.mxu0 %v11507_v28  ;;  %10842 = vmatprep.mubr.msk.bf16.mxu0 %vm664_vm4, %v13198_v63 }
 0xdeb   :  { %10840 = vmatprep.subr.bf16.mxu0 %v11508_v34 }
 0xdee   :  { %10841 = vmatpush3.bf16.msra.mxu0 %v11508_v34 }
 0xdef   :  { %10854 = vmatprep.subr.bf16.mxu0 %v11509_v3  ;;  %10741 = vmatmul.mubr.msk.bf16.vlgmr.msra.gmra.mrb[100].mxu1 %vm5972_vm15, %v11438_v59 }
 0xdf0   :  { %10753 = vmatpush3.bf16.msra.mxu1 %v6871_v32  ;;  %10754 = vmatprep.mubr.msk.bf16.mxu1 %vm5972_vm15, %v11439_v51  ;;  %v11450_v51 = vld [vmem:[%s13545_s14 + $0x48] sm:$0xff]  }
 0xdf1   :  { %10843 = vmatmul.mubr.msk.bf16.vlgmr.msra.gmra.mrb[112].mxu0 %vm664_vm4, %v13201_v30 }
 0xdf2   :  { %10855 = vmatpush3.bf16.msra.mxu0 %v11509_v3  ;;  %10858 = vmatprep.mubr.msk.bf16.mxu0 %vm664_vm4, %v13198_v63 }
 0xdf3   :  { %10856 = vmatprep.subr.bf16.mxu0 %v11510_v23 }
 0xdf6   :  { %10857 = vmatpush3.bf16.msra.mxu0 %v11510_v23 }
 0xdf7   :  { %10870 = vmatprep.subr.bf16.mxu0 %v11511_v4 }
 0xdf9   :  { %10859 = vmatmul.mubr.msk.bf16.vlgmr.msra.gmra.mrb[116].mxu0 %vm664_vm4, %v13201_v30 }
 0xdfa   :  { %10871 = vmatpush3.bf16.msra.mxu0 %v11511_v4  ;;  %10874 = vmatprep.mubr.msk.bf16.mxu0 %vm664_vm4, %v13198_v63 }
 0xdfb   :  { %10872 = vmatprep.subr.bf16.mxu0 %v11512_v52  ;;  %10755 = vmatmul.mubr.msk.bf16.vlgmr.msra.gmra.mrb[100].mxu1 %vm5972_vm15, %v11440_v62 }
 0xdfc   :  { %10778 = vmatprep.mubr.msk.bf16.mxu1 %vm664_vm4, %v11441_v41 }
 0xdfe   :  { %10873 = vmatpush3.bf16.msra.mxu0 %v11512_v52 }
 0xdff   :  { %10886 = vmatprep.subr.bf16.mxu0 %v11513_v48 }
 0xe01   :  { %10875 = vmatmul.mubr.msk.bf16.vlgmr.msra.gmra.mrb[120].mxu0 %vm664_vm4, %v13201_v30 }
 0xe02   :  { %10887 = vmatpush3.bf16.msra.mxu0 %v11513_v48  ;;  %10890 = vmatprep.mubr.msk.bf16.mxu0 %vm664_vm4, %v13198_v63 }
 0xe03   :  { %10888 = vmatprep.subr.bf16.mxu0 %v11514_v53 }
 0xe06   :  { %10889 = vmatpush3.bf16.msra.mxu0 %v11514_v53 }
 0xe09   :  { %10891 = vmatmul.mubr.msk.bf16.vlgmr.msra.gmra.mrb[124].mxu0 %vm664_vm4, %v13201_v30 }
 0xe0a   :  { %10910 = vmatprep.mubr.msk.f32.mxu0 %vm11565_vm14, %v11564_v38 }
 0xe9c   :  { %v10764_v6 = vpop.f32.mrb[92].mxu0 }
 0xe9d   :  { %v6968_v29 = vpop.f32.mrb[93].mxu0 }
 0xe9e   :  { %v10765_v8 = vpop.f32.mrb[94].mxu0 }
 0xe9f   :  { %v6984_v18 = vpack.c.bf16 %v10765_v8, %v10764_v6  ;;  %v6971_v55 = vpop.f32.mrb[95].mxu0  ;;  %v11451_v6 = vld [vmem:[%s13545_s14 + $0x50] sm:$0xff]   ;;  %v11452_v8 = vld [vmem:[%s13545_s14 + $0x58] sm:$0xff]  }
 0xea0   :  { %v6983_v37 = vpack.c.bf16 %v6971_v55, %v6968_v29  ;;  %v11454_v55 = vld [vmem:[%s13545_s14 + $0x68] sm:$0xff]  }
 0xea4   :  { %v10772_v33 = vpop.f32.mrb[96].mxu0 }
 0xea5   :  { %v7023_v47 = vpop.f32.mrb[97].mxu0 }
 0xea6   :  { %v10773_v11 = vpop.f32.mrb[98].mxu0 }
 0xea7   :  { %v7039_v13 = vpack.c.bf16 %v10773_v11, %v10772_v33  ;;  %v7026_v15 = vpop.f32.mrb[99].mxu0  ;;  %v11456_v33 = vld [vmem:[%s13545_s14 + $0x78] sm:$0xff]   ;;  %v11458_v11 = vld [vmem:[%s13545_s14 + $0x88] sm:$0xff]  }
 0xea8   :  { %v7038_v17 = vpack.c.bf16 %v7026_v15, %v7023_v47  ;;  %v11457_v47 = vld [vmem:[%s13545_s14 + $0x80] sm:$0xff]  }
 0xeaa   :  { %10774 = vmatprep.subr.bf16.mxu1 %v7038_v17 }
 0xeab   :  { %10775 = vmatpush3.bf16.msra.mxu1 %v7038_v17 }
 0xeac   :  { %10776 = vmatprep.subr.bf16.mxu1 %v7039_v13  ;;  %v10796_v19 = vpop.f32.mrb[100].mxu0 }
 0xead   :  { %v7209_v21 = vpop.f32.mrb[101].mxu0 }
 0xeae   :  { %v10797_v5 = vpop.f32.mrb[102].mxu0 }
 0xeaf   :  { %v7225_v63 = vpack.c.bf16 %v10797_v5, %v10796_v19  ;;  %10777 = vmatpush3.bf16.msra.mxu1 %v7039_v13  ;;  %v7212_v43 = vpop.f32.mrb[103].mxu0 }
 0xeb0   :  { %v7224_v50 = vpack.c.bf16 %v7212_v43, %v7209_v21  ;;  %10782 = vmatprep.subr.bf16.mxu1 %v6983_v37  ;;  %v8055_v43 = vld [vmem:[%s13546_s15 + $0x8] sm:$0xff] }
 0xeb2   :  { %10779 = vmatmul.mubr.msk.bf16.vlgmr.msra.gmra.mrb[100].mxu1 %vm664_vm4, %v11442_v36 }
 0xeb3   :  { %10783 = vmatpush3.bf16.msra.mxu1 %v6983_v37  ;;  %10786 = vmatprep.mubr.msk.bf16.mxu1 %vm664_vm4, %v11443_v44  ;;  %v11455_v37 = vld [vmem:[%s13545_s14 + $0x70] sm:$0xff]  }
 0xeb4   :  { %10784 = vmatprep.subr.bf16.mxu1 %v6984_v18  ;;  %v10812_v30 = vpop.f32.mrb[104].mxu0  ;;  %v8056_v44 = vld [vmem:[%s13546_s15 + $0x10] sm:$0xff] }
 0xeb5   :  { %v7334_v22 = vpop.f32.mrb[105].mxu0 }
 0xeb6   :  { %v10813_v2 = vpop.f32.mrb[106].mxu0 }
 0xeb7   :  { %v7350_v25 = vpack.c.bf16 %v10813_v2, %v10812_v30  ;;  %10785 = vmatpush3.bf16.msra.mxu1 %v6984_v18  ;;  %v7337_v40 = vpop.f32.mrb[107].mxu0  ;;  %v11453_v18 = vld [vmem:[%s13545_s14 + $0x60] sm:$0xff]   ;;  %v8059_v30 = vld [vmem:[%s13547_s16 + $0x8] sm:$0xff]  ;;  %v8057_v2 = vld [vmem:[%s13546_s15 + $0x18] sm:$0xff] }
 0xeb8   :  { %v7349_v12 = vpack.c.bf16 %v7337_v40, %v7334_v22  ;;  %10798 = vmatprep.subr.bf16.mxu1 %v7224_v50  ;;  %v8058_v22 = vld [vmem:[%s13547_s16] sm:$0xff] }
 0xebc   :  { %v10828_v61 = vpop.f32.mrb[108].mxu0 }
 0xebd   :  { %v7459_v7 = vpop.f32.mrb[109].mxu0 }
 0xebe   :  { %10787 = vmatmul.mubr.msk.bf16.vlgmr.msra.gmra.mrb[100].mxu1 %vm664_vm4, %v11444_v1  ;;  %v10829_v14 = vpop.f32.mrb[110].mxu0 }
 0xebf   :  { %10799 = vmatpush3.bf16.msra.mxu1 %v7224_v50  ;;  %v7475_v54 = vpack.c.bf16 %v10829_v14, %v10828_v61  ;;  %v7462_v45 = vpop.f32.mrb[111].mxu0  ;;  %10802 = vmatprep.mubr.msk.bf16.mxu1 %vm664_vm4, %v11445_v31  ;;  %v8054_v50 = vld [vmem:[%s13546_s15] sm:$0xff] }
 0xec0   :  { %10800 = vmatprep.subr.bf16.mxu1 %v7225_v63  ;;  %v7474_v26 = vpack.c.bf16 %v7462_v45, %v7459_v7 }
 0xec3   :  { %10801 = vmatpush3.bf16.msra.mxu1 %v7225_v63 }
 0xec4   :  { %10814 = vmatprep.subr.bf16.mxu1 %v7349_v12  ;;  %v10844_v10 = vpop.f32.mrb[112].mxu0 }
 0xec5   :  { %v7584_v56 = vpop.f32.mrb[113].mxu0 }
 0xec6   :  { %v10845_v57 = vpop.f32.mrb[114].mxu0 }
 0xec7   :  { %v7600_v60 = vpack.c.bf16 %v10845_v57, %v10844_v10  ;;  %v7587_v58 = vpop.f32.mrb[115].mxu0 }
 0xec8   :  { %v7599_v46 = vpack.c.bf16 %v7587_v58, %v7584_v56 }
 0xeca   :  { %10803 = vmatmul.mubr.msk.bf16.vlgmr.msra.gmra.mrb[100].mxu1 %vm664_vm4, %v11446_v35 }
 0xecb   :  { %10815 = vmatpush3.bf16.msra.mxu1 %v7349_v12  ;;  %10818 = vmatprep.mubr.msk.bf16.mxu1 %vm664_vm4, %v11447_v20 }
 0xecc   :  { %10816 = vmatprep.subr.bf16.mxu1 %v7350_v25  ;;  %v10860_v9 = vpop.f32.mrb[116].mxu0 }
 0xecd   :  { %v7709_v16 = vpop.f32.mrb[117].mxu0 }
 0xece   :  { %v10861_v27 = vpop.f32.mrb[118].mxu0 }
 0xecf   :  { %10817 = vmatpush3.bf16.msra.mxu1 %v7350_v25  ;;  %v7725_v0 = vpack.c.bf16 %v10861_v27, %v10860_v9  ;;  %v7712_v28 = vpop.f32.mrb[119].mxu0  ;;  %v8199_v27 = vld [vmem:[#allocation2] sm:$0x1] }
 0xed0   :  { %10830 = vmatprep.subr.bf16.mxu1 %v7474_v26  ;;  %v7724_v24 = vpack.c.bf16 %v7712_v28, %v7709_v16  ;;  %v8060_v16 = vld [vmem:[%s13547_s16 + $0x10] sm:$0xff]  ;;  %v8309_v28 = vld [vmem:[#allocation3] sm:$0x1] }
 0xed4   :  { %v10876_v34 = vpop.f32.mrb[120].mxu0 }
 0xed5   :  { %v7834_v3 = vpop.f32.mrb[121].mxu0 }
 0xed6   :  { %10819 = vmatmul.mubr.msk.bf16.vlgmr.msra.gmra.mrb[100].mxu1 %vm664_vm4, %v11448_v49  ;;  %v10877_v59 = vpop.f32.mrb[122].mxu0  ;;  %v8196_v49 = vld [vmem:[%s13551_s21 + $0x8] sm:$0xff] }
 0xed7   :  { %10831 = vmatpush3.bf16.msra.mxu1 %v7474_v26  ;;  %v7850_v23 = vpack.c.bf16 %v10877_v59, %v10876_v34  ;;  %v7837_v32 = vpop.f32.mrb[123].mxu0  ;;  %10834 = vmatprep.mubr.msk.bf16.mxu1 %vm664_vm4, %v11449_v42  ;;  %v11566_v34 = vmov 0.0|0.0   ;;  %v8198_v59 = vld [vmem:[%s13551_s21 + $0x18] sm:$0xff] }
 0xed8   :  { %10832 = vmatprep.subr.bf16.mxu1 %v7475_v54  ;;  %v7849_v4 = vpack.c.bf16 %v7837_v32, %v7834_v3  ;;  %10924 = vmatprep.subr.bf16.mxu0 %v11566_v34  ;;  %v8197_v3 = vld [vmem:[%s13551_s21 + $0x10] sm:$0xff] }
 0xedb   :  { %10833 = vmatpush3.bf16.msra.mxu1 %v7475_v54 }
 0xedc   :  { %10846 = vmatprep.subr.bf16.mxu1 %v7599_v46  ;;  %v10892_v52 = vpop.f32.mrb[124].mxu0 }
 0xedd   :  { %v7959_v48 = vpop.f32.mrb[125].mxu0 }
 0xede   :  { %v10893_v53 = vpop.f32.mrb[126].mxu0 }
 0xedf   :  { %v7975_v62 = vpack.c.bf16 %v10893_v53, %v10892_v52  ;;  %v7962_v41 = vpop.f32.mrb[127].mxu0 }
 0xee0   :  { %v7974_v29 = vpack.c.bf16 %v7962_v41, %v7959_v48 }
 0xee2   :  { %10835 = vmatmul.mubr.msk.bf16.vlgmr.msra.gmra.mrb[100].mxu1 %vm664_vm4, %v11450_v51 }
 0xee3   :  { %10847 = vmatpush3.bf16.msra.mxu1 %v7599_v46  ;;  %10850 = vmatprep.mubr.msk.bf16.mxu1 %vm664_vm4, %v11451_v6 }
 0xee4   :  { %10848 = vmatprep.subr.bf16.mxu1 %v7600_v60 }
 0xee7   :  { %10849 = vmatpush3.bf16.msra.mxu1 %v7600_v60 }
 0xee8   :  { %10862 = vmatprep.subr.bf16.mxu1 %v7724_v24 }
 0xeee   :  { %10851 = vmatmul.mubr.msk.bf16.vlgmr.msra.gmra.mrb[100].mxu1 %vm664_vm4, %v11452_v8 }
 0xeef   :  { %10863 = vmatpush3.bf16.msra.mxu1 %v7724_v24  ;;  %10866 = vmatprep.mubr.msk.bf16.mxu1 %vm664_vm4, %v11453_v18  ;;  %v8195_v24 = vld [vmem:[%s13551_s21] sm:$0xff] }
 0xef0   :  { %10864 = vmatprep.subr.bf16.mxu1 %v7725_v0  ;;  %v13463_v42 = vpack.c.bf16 %v8196_v49, %v8195_v24 }
 0xef2   :  { %10926 = vmatpush3.bf16.msra.mxu0 %v13463_v42 }
 0xef3   :  { %10865 = vmatpush3.bf16.msra.mxu1 %v7725_v0  ;;  %v8061_v0 = vld [vmem:[%s13547_s16 + $0x18] sm:$0xff]  ;;  %10927 = vmatprep.subr.bf16.mxu0 %v11566_v34 }
 0xef4   :  { %10878 = vmatprep.subr.bf16.mxu1 %v7849_v4 }
 0xefa   :  { %10867 = vmatmul.mubr.msk.bf16.vlgmr.msra.gmra.mrb[100].mxu1 %vm664_vm4, %v11454_v55 }
 0xefb   :  { %10879 = vmatpush3.bf16.msra.mxu1 %v7849_v4  ;;  %10882 = vmatprep.mubr.msk.bf16.mxu1 %vm664_vm4, %v11455_v37 }
 0xefc   :  { %10880 = vmatprep.subr.bf16.mxu1 %v7850_v23 }
 0xeff   :  { %10881 = vmatpush3.bf16.msra.mxu1 %v7850_v23  ;;  %v13474_v23 = vpack.c.bf16 %v8198_v59, %v8197_v3  ;;  %v8299_v59 = vrot.slane %v13220_v39, 4 }
 0xf00   :  { %10894 = vmatprep.subr.bf16.mxu1 %v7974_v29 }
 0xf01   :  { %10929 = vmatpush3.bf16.msra.mxu0 %v13474_v23 }
 0xf02   :  { %10930 = vmatprep.subr.bf16.mxu0 %v11566_v34 }
 0xf06   :  { %10883 = vmatmul.mubr.msk.bf16.vlgmr.msra.gmra.mrb[100].mxu1 %vm664_vm4, %v11456_v33 }
 0xf07   :  { %10895 = vmatpush3.bf16.msra.mxu1 %v7974_v29  ;;  %10898 = vmatprep.mubr.msk.bf16.mxu1 %vm664_vm4, %v11457_v47 }
 0xf08   :  { %10896 = vmatprep.subr.bf16.mxu1 %v7975_v62 }
 0xf0b   :  { %10897 = vmatpush3.bf16.msra.mxu1 %v7975_v62 }
 0xf12   :  { %10899 = vmatmul.mubr.msk.bf16.vlgmr.msra.gmra.mrb[100].mxu1 %vm664_vm4, %v11458_v11 }
 0xfe5   :  { %v10900_v13 = vpop.f32.mrb[100].mxu1 }
 0xfe6   :  { %v8031_v15 = vpop.f32.mrb[101].mxu1  ;;  %v8068_v63 = vsel %vm664_vm4, %v10900_v13, 0.0 }
 0xfe7   :  { %v10901_v17 = vpop.f32.mrb[102].mxu1  ;;  %v8062_v19 = vsel %vm664_vm4, %v8031_v15, 0.0 }
 0xfe8   :  { %8063 = vadd.xlane.f32.xlu1 %v8062_v19  ;;  %v8034_v21 = vpop.f32.mrb[103].mxu1  ;;  %v8071_v36 = vsel %vm664_vm4, %v10901_v17, 0.0 }
 0xfe9   :  { %v8065_v5 = vsel %vm664_vm4, %v8034_v21, 0.0 }
 0xfea   :  { %8066 = vadd.xlane.f32.xlu0 %v8065_v5 }
 0xfec   :  { %8072 = vadd.xlane.f32.xlu1 %v8071_v36 }
 0xfee   :  { %8069 = vadd.xlane.f32.xlu0 %v8068_v63 }
 0xffd   :  { %8121 = vperm.xlu1 %11172, %v8055_v43  }
0x1001   :  { %8126 = vperm.xlu1 %11172, %v8056_v44  }
0x1004   :  { %8116 = vperm.xlu0 %11171, %v8054_v50  }
0x1005   :  { %8145 = vperm.xlu1 %11172, %v8059_v30  }
0x1008   :  { %8140 = vperm.xlu0 %11171, %v8058_v22  }
0x100c   :  { %8131 = vperm.xlu0 %11171, %v8057_v2  }
0x1075   :  { %v8064_v25 = vpop.xlane.xlu1 %8063 }
0x1076   :  { %v8074_v31 = vmul.f32 0.03125, %v8064_v25 }
0x1077   :  { %v8067_v40 = vpop.xlane.xlu0 %8066 }
0x1078   :  { %v8075_v12 = vmul.f32 0.03125, %v8067_v40  ;;  %v13441_v26 = vsub.f32 %v8031_v15, %v8074_v31 }
0x1079   :  { %v8073_v1 = vpop.xlane.xlu1 %8072 }
0x107a   :  { %v8077_v61 = vmul.f32 0.03125, %v8073_v1  ;;  %v13439_v14 = vsub.f32 %v8034_v21, %v8075_v12  ;;  %v8082_v20 = vmul.f32 %v13441_v26, %v13441_v26 }
0x107b   :  { %v8070_v7 = vpop.xlane.xlu0 %8069 }
0x107c   :  { %v8081_v54 = vsub.f32 %v10901_v17, %v8077_v61  ;;  %v8076_v45 = vmul.f32 0.03125, %v8070_v7  ;;  %v8083_v60 = vmul.f32 %v13439_v14, %v13439_v14  ;;  %v8086_v9 = vsel %vm664_vm4, %v8082_v20, 0.0 }
0x107d   :  { %v8122_v32 = vpop.permute.xlu1 %8121 }
0x107e   :  { %v8080_v10 = vsub.f32 %v10900_v13, %v8076_v45  ;;  %v8085_v56 = vmul.f32 %v8081_v54, %v8081_v54  ;;  %v8089_v46 = vsel %vm664_vm4, %v8083_v60, 0.0 }
0x1080   :  { %v8095_v57 = vsel %vm664_vm4, %v8085_v56, 0.0  ;;  %v8084_v35 = vmul.f32 %v8080_v10, %v8080_v10 }
0x1081   :  { %8096 = vadd.xlane.f32.xlu1 %v8095_v57  ;;  %v8127_v52 = vpop.permute.xlu1 %8126 }
0x1082   :  { %v8092_v58 = vsel %vm664_vm4, %v8084_v35, 0.0 }
0x1083   :  { %8093 = vadd.xlane.f32.xlu0 %v8092_v58  ;;  %v8117_v4 = vpop.permute.xlu0 %8116  ;;  %v8177_v58 = vld [vmem:[%s13548_s17 + $0x18] sm:$0xff] }
0x1085   :  { %8090 = vadd.xlane.f32.xlu1 %v8089_v46  ;;  %v8146_v53 = vpop.permute.xlu1 %8145 }
0x1087   :  { %8087 = vadd.xlane.f32.xlu0 %v8086_v9  ;;  %v8141_v48 = vpop.permute.xlu0 %8140 }
0x108b   :  { %v8132_v51 = vpop.permute.xlu0 %8131 }
0x1096   :  { %8150 = vperm.xlu1 %11172, %v8060_v16  }
0x109a   :  { %8202 = vperm.xlu1 %11172, %v8199_v27  }
0x109d   :  { %8155 = vperm.xlu0 %11171, %v8061_v0  }
0x10a1   :  { %8312 = vperm.xlu0 %11171, %v8309_v28  }
0x110e   :  { %v8097_v62 = vpop.xlane.xlu1 %8096 }
0x110f   :  { %v8101_v41 = vmul.f32 0.03125, %v8097_v62 }
0x1110   :  { %v8094_v6 = vpop.xlane.xlu0 %8093 }
0x1111   :  { %v8105_v29 = vadd.f32 1e-05, %v8101_v41  ;;  %v8100_v8 = vmul.f32 0.03125, %v8094_v6 }
0x1112   :  { %v8091_v18 = vpop.xlane.xlu1 %8090 }
0x1113   :  { %11491 = vrsqrt.f32 %v8105_v29  ;;  %v8104_v55 = vadd.f32 1e-05, %v8100_v8  ;;  %v8099_v37 = vmul.f32 0.03125, %v8091_v18  ;;  %v8205_v18 = vlaneseq }
0x1114   :  { %v8088_v33 = vpop.xlane.xlu0 %8087 }
0x1115   :  { %11493 = vrsqrt.f32 %v8104_v55  ;;  %v8103_v47 = vadd.f32 1e-05, %v8099_v37  ;;  %v8098_v11 = vmul.f32 0.03125, %v8088_v33  ;;  %v8206_v55 = vshrl.u32 %v8205_v18, 7 }
0x1116   :  { %v8151_v50 = vpop.permute.xlu1 %8150 }
0x1117   :  { %11495 = vrsqrt.f32 %v8103_v47  ;;  %v8102_v13 = vadd.f32 1e-05, %v8098_v11  ;;  %v8207_v37 = vsub.s32 0, %v8206_v55 }
0x1119   :  { %11497 = vrsqrt.f32 %v8102_v13 }
0x111a   :  { %v8203_v33 = vpop.permute.xlu1 %8202 }
0x111b   :  { %v8208_v47 = vrot.slane %v8203_v33, %v8207_v37 }
0x111c   :  { %v8156_v30 = vpop.permute.xlu0 %8155 }
0x111d   :  { %v11492_v15 = vpop.eup %11491 }
0x111e   :  { %v8113_v17 = vmul.f32 %v11492_v15, %v8081_v54 }
0x111f   :  { %v11494_v19 = vpop.eup %11493 }
0x1120   :  { %v8112_v21 = vmul.f32 %v11494_v19, %v8080_v10  ;;  %v8137_v5 = vmul.f32 %v8132_v51, %v8113_v17  ;;  %v8176_v10 = vld [vmem:[%s13548_s17 + $0x10] sm:$0xff] }
0x1121   :  { %v11496_v36 = vpop.eup %11495 }
0x1122   :  { %v8111_v63 = vmul.f32 %v11496_v36, %v13439_v14  ;;  %v8136_v43 = vmul.f32 %v8127_v52, %v8112_v21  ;;  %v8161_v40 = vadd.f32 %v8156_v30, %v8137_v5  ;;  %v8175_v14 = vld [vmem:[%s13548_s17 + $0x8] sm:$0xff]  ;;  %v8300_v52 = vadd.f32 %v8299_v59, %v13220_v39 }
0x1123   :  { %v11498_v44 = vpop.eup %11497 }
0x1124   :  { %v8135_v22 = vmul.f32 %v8122_v32, %v8111_v63  ;;  %v8110_v2 = vmul.f32 %v11498_v44, %v13441_v26  ;;  %v8160_v25 = vadd.f32 %v8151_v50, %v8136_v43  ;;  %v8169_v54 = vmul.f32 0.2, %v8161_v40  ;;  %v8174_v26 = vld [vmem:[%s13548_s17] sm:$0xff]  ;;  %s11567_s17 = smov [#allocation4]  }
0x1125   :  { %vm8165_vm8 = vcmp.ge.f32.partialorder %v8161_v40, 0.0  ;;  %v8301_v51 = vrot.slane %v8300_v52, 2  ;;  %s8399_s11 = sshll.u32 %s11567_s17, 4  ;;  %s8400_s11 = int_to_ptr.vmem [resolvable:$true] %s8399_s11 }
0x1126   :  { %v8159_v12 = vadd.f32 %v8146_v53, %v8135_v22  ;;  %v8134_v1 = vmul.f32 %v8117_v4, %v8110_v2  ;;  %v8168_v31 = vmul.f32 0.2, %v8160_v25  ;;  %vm8164_vm6 = vcmp.ge.f32.partialorder %v8160_v25, 0.0  ;;  %s11515_s9 = scalar_lea.vmem %s8400_s11, 16  ;;  %s11519_s24 = scalar_lea.vmem %s8400_s11, 32 }
0x1127   :  { %v8173_v20 = vsel %vm8165_vm8, %v8161_v40, %v8169_v54  ;;  %v8302_v6 = vadd.f32 %v8301_v51, %v8300_v52  ;;  %p11516_p0 = scmp.ne.s32.totalorder %s8400_s11, %s11515_s9  ;;  %p11520_p1 = scmp.lt.s32.totalorder %s8400_s11, %s8400_s11 }
0x1128   :  { %v8158_v61 = vadd.f32 %v8141_v48, %v8134_v1  ;;  %vm8163_vm7 = vcmp.ge.f32.partialorder %v8159_v12, 0.0  ;;  %v8167_v7 = vmul.f32 0.2, %v8159_v12  ;;  %v8172_v57 = vsel %vm8164_vm6, %v8160_v25, %v8168_v31  ;;  %p11521_p2 = scmp.lt.s32.totalorder %s11519_s24, %s11515_s9 }
0x1129   :  { %v8180_v9 = vmul.f32 %v8176_v10, %v8172_v57  ;;  %v8181_v0 = vmul.f32 %v8177_v58, %v8173_v20  ;;  %v8303_v8 = vrot.slane %v8302_v6, 1 }
0x112a   :  { %v8171_v45 = vsel %vm8163_vm7, %v8159_v12, %v8167_v7  ;;  %vm8162_vm9 = vcmp.ge.f32.partialorder %v8158_v61, 0.0  ;;  %v8166_v56 = vmul.f32 0.2, %v8158_v61  ;;  %p11522_p3 = por %p11521_p2, %p11520_p1 }
0x112b   :  { %v8179_v35 = vmul.f32 %v8175_v14, %v8171_v45  ;;  %v8185_v24 = vsel %vm664_vm4, %v8180_v9, 0.0  ;;  %v8187_v3 = vsel %vm664_vm4, %v8181_v0, 0.0  ;;  %v8304_v39 = vadd.f32 %v8303_v8, %v8302_v6 }
0x112c   :  { %v8170_v60 = vsel %vm8162_vm9, %v8158_v61, %v8166_v56  ;;  %p11523_p4 = pnand %p11522_p3, %p11516_p0 }
0x112d   :  { %v8178_v46 = vmul.f32 %v8174_v26, %v8170_v60  ;;  %v8183_v16 = vsel %vm664_vm4, %v8179_v35, 0.0 }
0x112f   :  { %v8182_v27 = vsel %vm664_vm4, %v8178_v46, 0.0 }
0x1130   :  { %v8184_v28 = vadd.f32 %v8183_v16, %v8182_v27 }
0x1132   :  { %v8186_v49 = vadd.f32 %v8185_v24, %v8184_v28 }
0x1134   :  { %v8188_v32 = vadd.f32 %v8187_v3, %v8186_v49 }
0x1136   :  { %v8189_v4 = vrot.slane %v8188_v32, 4 }
0x1138   :  { %v8190_v48 = vadd.f32 %v8189_v4, %v8188_v32 }
0x113a   :  { %v8191_v53 = vrot.slane %v8190_v48, 2 }
0x113c   :  { %v8192_v62 = vadd.f32 %v8191_v53, %v8190_v48 }
0x113e   :  { %v8193_v41 = vrot.slane %v8192_v62, 1 }
0x1140   :  { %v8194_v29 = vadd.f32 %v8193_v41, %v8192_v62 }
0x1142   :  { %10911 = vmatmul.mubr.msk.f32.vlgmr.msra.gmra.mrb[128].mxu0 %vm664_vm4, %v8194_v29 }
0x1143   :  { %10932 = vmatpush3.bf16.msra.mxu0 %v13463_v42  ;;  %10921 = vmatprep.mubr.msk.f32.mxu0 %vm11565_vm14, %v11564_v38  ;;  %v8313_v38 = vpop.permute.xlu0 %8312 }
0x1144   :  { %10933 = vmatprep.subr.bf16.mxu0 %v11566_v34 }
0x1147   :  { %10935 = vmatpush3.bf16.msra.mxu0 %v13474_v23 }
0x114a   :  { %10922 = vmatmul.mubr.msk.f32.vlgmr.msra.gmra.mrb[130].mxu0 %vm664_vm4, %v8304_v39 }
0x1215   :  { %v8278_v11 = vpop.f32.mrb[128].mxu0 }
0x1216   :  { %v8279_v42 = vadd.f32 %v8278_v11, %v8208_v47  ;;  %v10912_v13 = vpop.f32.mrb[129].mxu0 }
0x1218   :  { %8283 = vst.msk [vmem:[#allocation4] sm:$0x1] %vm8282_vm10, %v8279_v42 }
0x1219   :  { %11526 = shalt.err (!%p11523_p4)
}
0x121a   :  { %s11527_s1 = scalar_lea.hbm %s13552_s22, 16 }
0x121b   :  { %p11528_p5 = scmp.ne.s32.totalorder %s13552_s22, %s11527_s1  ;;  %p11531_p6 = scmp.lt.u32.totalorder %s11527_s1, %s13552_s22 }
0x121d   :  { %p11533_p7 = pnand %p11531_p6, %p11528_p5 }
0x121f   :  { %11536 = shalt.err (!%p11533_p7)
}
0x1220   :  { %8402 = dma.vmem_to_hbm [thread:$0]  %s8400_s11, 16, %s13552_s22, [#allocation5]   ;;  %v8318_v34 = vrot.slane %v8313_v38, %v8207_v37  ;;  %v8388_v23 = vpop.f32.mrb[130].mxu0 }
0x1221   :  { %s11568_s13 = smov [#allocation6]   ;;  %v10923_v17 = vpop.f32.mrb[131].mxu0 }
0x1222   :  { %s8409_s6 = sshll.u32 %s11568_s13, 4  ;;  %v8389_v15 = vadd.f32 %v8388_v23, %v8318_v34  ;;  %s8410_s6 = int_to_ptr.vmem [resolvable:$true] %s8409_s6 }
0x1223   :  { %s11537_s26 = scalar_lea.vmem %s8410_s6, 16  ;;  %s11541_s18 = scalar_lea.vmem %s8410_s6, 32 }
0x1224   :  { %8392 = vst.msk [vmem:[#allocation6] sm:$0x1] %vm8282_vm10, %v8389_v15  ;;  %p11538_p8 = scmp.ne.s32.totalorder %s8410_s6, %s11537_s26  ;;  %p11542_p9 = scmp.lt.s32.totalorder %s8410_s6, %s8410_s6 }
0x1225   :  { %p11543_p10 = scmp.lt.s32.totalorder %s11541_s18, %s11537_s26 }
0x1227   :  { %p11544_p11 = por %p11543_p10, %p11542_p9 }
0x1229   :  { %p11545_p12 = pnand %p11544_p11, %p11538_p8 }
0x122b   :  { %11548 = shalt.err (!%p11545_p12)
}
0x122c   :  { %s11549_s22 = scalar_lea.hbm %s13553_s23, 16 }
0x122d   :  { %p11550_p13 = scmp.ne.s32.totalorder %s13553_s23, %s11549_s22  ;;  %p11553_p0 = scmp.lt.u32.totalorder %s11549_s22, %s13553_s23 }
0x122f   :  { %p11555_p1 = pnand %p11553_p0, %p11550_p13 }
0x1231   :  { %11558 = shalt.err (!%p11555_p1)
}
0x1232   :  { %8412 = dma.vmem_to_hbm [thread:$0]  %s8410_s6, 16, %s13553_s23, [#allocation7]  }
0x1233   :  { %11559 = dma.done.wait [#allocation5], 16  }
0x1234   :  { %11560 = vsyncadd [#allocation5], 4294967280 }
0x1235   :  { %11561 = dma.done.wait [#allocation7], 16  }
0x1236   :  { %11562 = vsyncadd [#allocation7], 4294967280 }
0x1237   :  { %8419 = vsyncpa [#allocation5], 1 }
0x1238   :  { %8420 = vsyncpa [#allocation7], 1 }

</bundles_post_ra>
